<compile_context>
chip_gen: v6e
topology: v6e:2x2x1
jax: 0.10.0
libtpu: 0.0.40
codegen_flags: <defaults>
</compile_context>

<pallas_src>
import functools

import jax
import jax.numpy as jnp
from jax.experimental import pallas as pl
from jax.experimental.pallas import tpu as pltpu

LANE = 128


def _round_up(x, m):
    return (x + m - 1) // m * m


def _pick_tile(rows, max_tile=512):
    """Row tile for the pointwise / tail kernels (prefers exact divisors)."""
    if rows <= max_tile:
        return max(rows, 1)
    t = max_tile
    while t >= 8 and rows % t:
        t -= 8
    return t if t >= 8 else max_tile   # non-divisor -> Pallas masks the ragged tail


def _pick_h_tile(H, W, cp, budget_bytes=16 * 1024 * 1024):
    """H-band tile for the fused bottleneck kernel (halo'ed 3x3 conv)."""
    per_row = 28 * W * cp                        # ~VMEM bytes per H row in flight
    cap = max(1, min(H, budget_bytes // max(per_row, 1)))
    if H >= 2:                                   # >=2 grid items (v7x megacore @ N=1)
        cap = min(cap, max(1, H // 2))
    th = cap
    while th > 1 and H % th:
        th -= 1
    return th


def _leaky(v):
    return jnp.where(v > 0, v, 0.1 * v)


# ----------------------------------------------------------------------------
# Kernels
# ----------------------------------------------------------------------------
def _pw_kernel(x_ref, w_ref, s_ref, b_ref, o_ref, *, act):
    """Fused 1x1 conv + folded BN (+ LeakyReLU). bf16 MXU operands, f32 math."""
    x = x_ref[...].astype(jnp.bfloat16)
    y = jnp.dot(x, w_ref[...], preferred_element_type=jnp.float32)
    y = y * s_ref[...] + b_ref[...]
    if act:
        y = _leaky(y)
    o_ref[...] = y.astype(o_ref.dtype)


def _bottleneck_kernel(band_ref, prev_ref, next_ref, w1_ref, w2m_ref,
                       s1_ref, b1_ref, s2_ref, b2_ref,
                       o_ref, apad_ref, *, H, W, th):
    """One whole Bottleneck(c_, c_, e=1.0) on an H band, fully in VMEM:
       a = leaky(bn1(t @ W1));  out = t + leaky(bn2(conv3x3(zero_pad(a), W2)))."""
    cp = w1_ref.shape[0]
    hh = th + 2                                    # halo'ed band height
    h0 = pl.program_id(1) * th                     # first output row of this band

    # ---- fused 1x1 conv + BN + LeakyReLU on the halo'ed band ----------------
    xh = jnp.concatenate([prev_ref[...], band_ref[...], next_ref[...]], axis=0)
    a = jnp.dot(xh.reshape(hh * W, cp).astype(jnp.bfloat16), w1_ref[...],
                preferred_element_type=jnp.float32)
    a = _leaky(a * s1_ref[...] + b1_ref[...]).reshape(hh, W, cp)
    # rows outside the image must be exactly zero (padding happens AFTER the 1x1)
    gidx = jax.lax.broadcasted_iota(jnp.int32, (hh, 1, 1), 0) + (h0 - 1)
    a = jnp.where((gidx >= 0) & (gidx < H), a, 0.0).astype(jnp.bfloat16)

    # zero-padded activation buffer (left/right zero columns), all in VMEM
    apad_ref[...] = jnp.zeros_like(apad_ref)
    apad_ref[:, 1:W + 1, :] = a

    # ---- 3x3 conv as 3 merged-K matmuls (K = 3*cp per kernel row) ----------
    acc = jnp.zeros((th * W, cp), jnp.float32)
    for dy in range(3):                            # static unroll
        slab = jnp.concatenate(
            [apad_ref[dy:dy + th, dx:dx + W, :] for dx in range(3)], axis=-1)
        acc = acc + jnp.dot(slab.reshape(th * W, 3 * cp), w2m_ref[dy],
                            preferred_element_type=jnp.float32)

    y = _leaky(acc * s2_ref[...] + b2_ref[...])
    res = band_ref[...].astype(jnp.float32).reshape(th * W, cp)   # shortcut add (f32)
    o_ref[...] = (y + res).reshape(th, W, cp).astype(o_ref.dtype)


def _tail_kernel(t_ref, x_ref, w3_ref, w2_ref, w4a_ref, w4b_ref,
                 s1_ref, b1_ref, s2_ref, b2_ref, s4_ref, b4_ref, o_ref):
    """Fused tail: y1=cv3(t), y2=cv2(x), cat-BN+act, cv4 (+BN+act).
    cv4 weight is split row-wise so the concatenation never materializes."""
    tb = t_ref[...].astype(jnp.bfloat16)
    xb = x_ref[...].astype(jnp.bfloat16)
    y1 = jnp.dot(tb, w3_ref[...], preferred_element_type=jnp.float32)    # cv3
    y2 = jnp.dot(xb, w2_ref[...], preferred_element_type=jnp.float32)    # cv2
    p1 = _leaky(y1 * s1_ref[...] + b1_ref[...]).astype(jnp.bfloat16)     # bn+act (top)
    p2 = _leaky(y2 * s2_ref[...] + b2_ref[...]).astype(jnp.bfloat16)     # bn+act (bottom)
    z = jnp.dot(p1, w4a_ref[...], preferred_element_type=jnp.float32)    # cv4 split
    z = z + jnp.dot(p2, w4b_ref[...], preferred_element_type=jnp.float32)
    o_ref[...] = _leaky(z * s4_ref[...] + b4_ref[...]).astype(o_ref.dtype)


# ----------------------------------------------------------------------------
# pallas_call wrappers (row / halo-band tiled, pipelined)
# ----------------------------------------------------------------------------
def pointwise_conv(x_rows, w, s, b, *, act, out_dtype=jnp.bfloat16, max_tile=512):
    rows, cin = x_rows.shape
    cout = w.shape[1]
    tm = _pick_tile(rows, max_tile)
    row = lambda i: (i, 0)
    full = lambda i: (0, 0)
    return pl.pallas_call(
        functools.partial(_pw_kernel, act=act),
        out_shape=jax.ShapeDtypeStruct((rows, cout), out_dtype),
        grid=(pl.cdiv(rows, tm),),
        in_specs=[
            pl.BlockSpec((tm, cin), row),
            pl.BlockSpec((cin, cout), full),
            pl.BlockSpec((1, cout), full),
            pl.BlockSpec((1, cout), full),
        ],
        out_specs=pl.BlockSpec((tm, cout), row),
        compiler_params=pltpu.CompilerParams(dimension_semantics=("parallel",)),
        cost_estimate=pl.CostEstimate(
            flops=2 * rows * cin * cout, transcendentals=0,
            bytes_accessed=2 * rows * (cin + cout) + 2 * cin * cout),
    )(x_rows, w, s, b)


def bottleneck_block(t_img, w1, w2m, s1, b1, s2, b2):
    """One fused Bottleneck block over a (N, H, W, cp) bf16 image in HBM."""
    N, H, W, cp = t_img.shape
    th = _pick_h_tile(H, W, cp)
    nh = pl.cdiv(H, th)

    band = pl.BlockSpec((None, th, W, cp), lambda n, h: (n, h, 0, 0))
    # one-row halos fetched via clamped element-row index maps (block size 1)
    prev_row = pl.BlockSpec((None, 1, W, cp),
                            lambda n, h: (n, jnp.maximum(h * th - 1, 0), 0, 0))
    next_row = pl.BlockSpec((None, 1, W, cp),
                            lambda n, h: (n, jnp.minimum(h * th + th, H - 1), 0, 0))
    full2 = lambda n, h: (0, 0)

    return pl.pallas_call(
        functools.partial(_bottleneck_kernel, H=H, W=W, th=th),
        out_shape=jax.ShapeDtypeStruct((N, H, W, cp), jnp.bfloat16),
        grid=(N, nh),
        in_specs=[
            band, prev_row, next_row,
            pl.BlockSpec((cp, cp), full2),
            pl.BlockSpec((3, 3 * cp, cp), lambda n, h: (0, 0, 0)),
            pl.BlockSpec((1, cp), full2),
            pl.BlockSpec((1, cp), full2),
            pl.BlockSpec((1, cp), full2),
            pl.BlockSpec((1, cp), full2),
        ],
        out_specs=pl.BlockSpec((None, th, W, cp), lambda n, h: (n, h, 0, 0)),
        scratch_shapes=[pltpu.VMEM((th + 2, W + 2, cp), jnp.bfloat16)],
        compiler_params=pltpu.CompilerParams(
            dimension_semantics=("parallel", "parallel"),
            vmem_limit_bytes=48 * 1024 * 1024),
        cost_estimate=pl.CostEstimate(
            flops=2 * N * H * W * cp * cp * 10, transcendentals=0,
            bytes_accessed=2 * N * H * W * cp * 3 + 2 * 10 * cp * cp),
    )(t_img, t_img, t_img, w1, w2m, s1, b1, s2, b2)


def csp_tail(t_rows, x_rows, w3, w2, w4a, w4b, sb1, bb1, sb2, bb2, s4, b4,
             *, max_tile=512):
    rows, c_t = t_rows.shape
    c_x = x_rows.shape[1]
    cout = w4a.shape[1]
    tm = _pick_tile(rows, max_tile)
    row = lambda i: (i, 0)
    full = lambda i: (0, 0)
    return pl.pallas_call(
        _tail_kernel,
        out_shape=jax.ShapeDtypeStruct((rows, cout), jnp.float32),
        grid=(pl.cdiv(rows, tm),),
        in_specs=[
            pl.BlockSpec((tm, c_t), row),
            pl.BlockSpec((tm, c_x), row),
            pl.BlockSpec((c_t, c_t), full),
            pl.BlockSpec((c_x, c_t), full),
            pl.BlockSpec((c_t, cout), full),
            pl.BlockSpec((c_t, cout), full),
            pl.BlockSpec((1, c_t), full),
            pl.BlockSpec((1, c_t), full),
            pl.BlockSpec((1, c_t), full),
            pl.BlockSpec((1, c_t), full),
            pl.BlockSpec((1, cout), full),
            pl.BlockSpec((1, cout), full),
        ],
        out_specs=pl.BlockSpec((tm, cout), row),
        compiler_params=pltpu.CompilerParams(dimension_semantics=("parallel",)),
        cost_estimate=pl.CostEstimate(
            flops=2 * rows * (c_t * c_t + c_x * c_t + 2 * c_t * cout),
            transcendentals=0,
            bytes_accessed=2 * rows * (c_t + c_x) + 4 * rows * cout
            + 2 * (c_t * c_t + c_x * c_t + 2 * c_t * cout)),
    )(t_rows, x_rows, w3, w2, w4a, w4b, sb1, bb1, sb2, bb2, s4, b4)


# ----------------------------------------------------------------------------
# BottleneckCSP forward (Pallas)
# ----------------------------------------------------------------------------
@jax.jit
def bottleneck_csp_forward(x_nchw, p):
    N, c1, H, W = x_nchw.shape
    c_ = p["w_cv1"].shape[1]
    c2 = p["w_cv4"].shape[1]
    c1p, cp, c2p = _round_up(c1, LANE), _round_up(c_, LANE), _round_up(c2, LANE)

    wb = lambda a: a.astype(jnp.bfloat16)
    pad_w = lambda a, r, c: wb(jnp.pad(a, ((0, r - a.shape[0]), (0, c - a.shape[1]))))
    pad_v = lambda a, c: jnp.pad(a, ((0, 0), (0, c - a.shape[1])))

    # NCHW -> lane-dense bf16 (rows, c1p) in one XLA pass
    rows_x = wb(pad_v(jnp.transpose(x_nchw, (0, 2, 3, 1)).reshape(N * H * W, c1), c1p))

    # cv1 : Conv(c1, c_, 1) = 1x1 conv + BN + LeakyReLU  (bf16 activations in HBM)
    t = pointwise_conv(rows_x, pad_w(p["w_cv1"], c1p, cp),
                       pad_v(p["s_cv1"], cp), pad_v(p["b_cv1"], cp), act=True)
    t_img = t.reshape(N, H, W, cp)

    # m : n x Bottleneck(c_, c_, shortcut=True, e=1.0) — one fused kernel each
    for blk in p["blocks"]:
        w2p = jnp.pad(blk["w2"], ((0, 0), (0, cp - c_), (0, cp - c_)))      # (9, cp, cp)
        w2m = wb(w2p.reshape(3, 3, cp, cp).reshape(3, 3 * cp, cp))          # merged K
        t_img = bottleneck_block(t_img, pad_w(blk["w1"], cp, cp), w2m,
                                 pad_v(blk["s1"], cp), pad_v(blk["b1"], cp),
                                 pad_v(blk["s2"], cp), pad_v(blk["b2"], cp))

    # fused tail: cv3 / cv2 / bn / act / cv4 — the channel concat never hits HBM
    out = csp_tail(
        t_img.reshape(N * H * W, cp), rows_x,
        pad_w(p["w_cv3"], cp, cp), pad_w(p["w_cv2"], c1p, cp),
        pad_w(p["w_cv4"][:c_], cp, c2p), pad_w(p["w_cv4"][c_:], cp, c2p),
        pad_v(p["s_bn"][:, :c_], cp), pad_v(p["b_bn"][:, :c_], cp),
        pad_v(p["s_bn"][:, c_:], cp), pad_v(p["b_bn"][:, c_:], cp),
        pad_v(p["s_cv4"], c2p), pad_v(p["b_cv4"], c2p))

    out = out[:, :c2].reshape(N, H, W, c2)
    return jnp.transpose(out, (0, 3, 1, 2))                                 # NCHW


# ----------------------------------------------------------------------------
# Pure-JAX reference (same eval-mode folded BN, same bf16 HBM boundaries)
# ----------------------------------------------------------------------------
def reference_forward(x_nchw, p):
    N, c1, H, W = x_nchw.shape
    c_ = p["w_cv1"].shape[1]
    c2 = p["w_cv4"].shape[1]

    def bdot(a, b):
        return jnp.dot(a.astype(jnp.bfloat16), b.astype(jnp.bfloat16),
                       preferred_element_type=jnp.float32)

    bf = lambda a: a.astype(jnp.bfloat16)

    x = jnp.transpose(x_nchw, (0, 2, 3, 1)).astype(jnp.float32)
    rows = bf(x.reshape(N * H * W, c1))

    t = bf(_leaky(bdot(rows, p["w_cv1"]) * p["s_cv1"] + p["b_cv1"]))
    for blk in p["blocks"]:
        a = bf(_leaky(bdot(t, blk["w1"]) * blk["s1"] + blk["b1"]))
        a_pad = jnp.pad(a.reshape(N, H, W, c_), ((0, 0), (1, 1), (1, 1), (0, 0)))
        acc = jnp.zeros((N * H * W, c_), jnp.float32)
        for k in range(9):
            dy, dx = k // 3, k % 3
            tap = a_pad[:, dy:dy + H, dx:dx + W, :].reshape(N * H * W, c_)
            acc = acc + bdot(tap, blk["w2"][k])
        t = bf(t.astype(jnp.float32) + _leaky(acc * blk["s2"] + blk["b2"]))
    y1 = bdot(t, p["w_cv3"])
    y2 = bdot(rows, p["w_cv2"])
    cat = jnp.concatenate([y1, y2], axis=-1)
    pre = _leaky(cat * p["s_bn"] + p["b_bn"])
    out = _leaky(bdot(pre, p["w_cv4"]) * p["s_cv4"] + p["b_cv4"])
    return out.reshape(N, H, W, c2).transpose(0, 3, 1, 2)


# ----------------------------------------------------------------------------
# Deterministic parameter initialization (eval-mode BN folded to scale/bias)
# ----------------------------------------------------------------------------
def _fold_bn(key, c):
    k1, k2, k3, k4 = jax.random.split(key, 4)
    gamma = jax.random.uniform(k1, (c,), minval=0.5, maxval=1.5)
    beta = 0.1 * jax.random.normal(k2, (c,))
    mean = 0.1 * jax.random.normal(k3, (c,))
    var = jax.random.uniform(k4, (c,), minval=0.5, maxval=1.5)
    scale = gamma / jnp.sqrt(var + 1e-5)
    bias = beta - mean * scale
    return (scale.reshape(1, c).astype(jnp.float32),
            bias.reshape(1, c).astype(jnp.float32))


def init_params(key, c1, c2, n=1, e=0.5):
    c_ = int(c2 * e)
    keys = iter(jax.random.split(key, 8 + 4 * n))
    w = lambda shp: (0.2 * jax.random.normal(next(keys), shp)).astype(jnp.float32)

    p = {}
    p["w_cv1"] = w((c1, c_))                      # Conv cv1 (1x1), (Cin, Cout)
    p["s_cv1"], p["b_cv1"] = _fold_bn(next(keys), c_)
    p["w_cv2"] = w((c1, c_))                      # plain Conv2d cv2
    p["w_cv3"] = w((c_, c_))                      # plain Conv2d cv3
    p["w_cv4"] = w((2 * c_, c2))                  # Conv cv4 (1x1)
    p["s_cv4"], p["b_cv4"] = _fold_bn(next(keys), c2)
    p["s_bn"], p["b_bn"] = _fold_bn(next(keys), 2 * c_)   # self.bn on the cat
    blocks = []
    for _ in range(n):                            # Bottleneck(c_, c_, e=1.0), g=1
        blk = {}
        blk["w1"] = w((c_, c_))                   # Bottleneck.cv1 (1x1)
        blk["s1"], blk["b1"] = _fold_bn(next(keys), c_)
        blk["w2"] = w((9, c_, c_))                # Bottleneck.cv2 (3x3), tap-major
        blk["s2"], blk["b2"] = _fold_bn(next(keys), c_)
        blocks.append(blk)
    p["blocks"] = blocks
    return p


# ----------------------------------------------------------------------------
if __name__ == "__main__":
    key = jax.random.PRNGKey(0)
    kx, kp = jax.random.split(key)

    c1, c2, n = 4, 4, 1
    x = jax.random.normal(kx, (2, c1, 16, 16), dtype=jnp.float32)   # NCHW
    params = init_params(kp, c1, c2, n=n)

    out = jax.block_until_ready(bottleneck_csp_forward(x, params))
    ref = jax.block_until_ready(reference_forward(x, params))

    assert out.shape == (2, c2, 16, 16), out.shape
    max_err = float(jnp.max(jnp.abs(out - ref)))
    assert jnp.allclose(out, ref, rtol=2e-2, atol=2e-2), max_err

    print("KERNEL_OK")
</pallas_src>

<mosaic_0001>
module attributes {stable_mosaic.version = 11 : i64} {
  func.func @_pw_kernel(%arg0: i32, %arg1: memref<512x128xbf16, #tpu.memory_space<vmem>>, %arg2: memref<128x128xbf16, #tpu.memory_space<vmem>>, %arg3: memref<1x128xf32, #tpu.memory_space<vmem>>, %arg4: memref<1x128xf32, #tpu.memory_space<vmem>>, %arg5: memref<512x128xbf16, #tpu.memory_space<vmem>>) attributes {dimension_semantics = [#tpu.dimension_semantics<parallel>], iteration_bounds = array<i64: 1>, scalar_prefetch = 0 : i64, scratch_operands = 0 : i64, tpu.core_type = #tpu.core_type<tc>, window_params = [{transform_indices = @transform_0, window_bounds = array<i64: 512, 128>}, {pipeline_mode = #tpu.pipeline_mode<synchronous>, transform_indices = @transform_1, window_bounds = array<i64: 128, 128>}, {pipeline_mode = #tpu.pipeline_mode<synchronous>, transform_indices = @transform_2, window_bounds = array<i64: 1, 128>}, {pipeline_mode = #tpu.pipeline_mode<synchronous>, transform_indices = @transform_3, window_bounds = array<i64: 1, 128>}, {transform_indices = @transform_4, window_bounds = array<i64: 512, 128>}]} {
    %c0 = arith.constant 0 : index
    %c0_0 = arith.constant 0 : index
    %0 = vector.load %arg1[%c0, %c0_0] : memref<512x128xbf16, #tpu.memory_space<vmem>>, vector<512x128xbf16>
    %c0_1 = arith.constant 0 : index
    %c0_2 = arith.constant 0 : index
    %1 = vector.load %arg2[%c0_1, %c0_2] : memref<128x128xbf16, #tpu.memory_space<vmem>>, vector<128x128xbf16>
    %cst = arith.constant dense<0.000000e+00> : vector<512x128xf32>
    %2 = tpu.matmul %0, %1, %cst {dimension_numbers = #tpu.dot_dimension_numbers<[1], [0], [0], [1], [0, 0, 1, 1], [], []>} : vector<512x128xbf16>, vector<128x128xbf16>, vector<512x128xf32> -> vector<512x128xf32>
    %c0_3 = arith.constant 0 : index
    %c0_4 = arith.constant 0 : index
    %3 = vector.load %arg3[%c0_3, %c0_4] : memref<1x128xf32, #tpu.memory_space<vmem>>, vector<1x128xf32>
    %4 = vector.broadcast %3 : vector<1x128xf32> to vector<512x128xf32>
    %5 = arith.mulf %2, %4 : vector<512x128xf32>
    %c0_5 = arith.constant 0 : index
    %c0_6 = arith.constant 0 : index
    %6 = vector.load %arg4[%c0_5, %c0_6] : memref<1x128xf32, #tpu.memory_space<vmem>>, vector<1x128xf32>
    %7 = vector.broadcast %6 : vector<1x128xf32> to vector<512x128xf32>
    %8 = arith.addf %5, %7 : vector<512x128xf32>
    %cst_7 = arith.constant 0.000000e+00 : f32
    %9 = vector.broadcast %cst_7 : f32 to vector<512x128xf32>
    %10 = arith.cmpf ogt, %8, %9 : vector<512x128xf32>
    %cst_8 = arith.constant 1.000000e-01 : f32
    %11 = vector.broadcast %cst_8 : f32 to vector<512x128xf32>
    %12 = arith.mulf %11, %8 : vector<512x128xf32>
    %13 = arith.select %10, %8, %12 : vector<512x128xi1>, vector<512x128xf32>
    %14 = arith.truncf %13 : vector<512x128xf32> to vector<512x128xbf16>
    %c0_9 = arith.constant 0 : index
    %c0_10 = arith.constant 0 : index
    %15 = vector.load %arg5[%c0_9, %c0_10] : memref<512x128xbf16, #tpu.memory_space<vmem>>, vector<512x128xbf16>
    tpu.vector_store %arg5[%c0_9, %c0_10], %14 {strides = array<i32>} : memref<512x128xbf16, #tpu.memory_space<vmem>>, vector<512x128xbf16>,
    return
  }
  func.func @transform_0(%arg0: i32) -> (i32, i32) {
    %c0_i32 = arith.constant 0 : i32
    %c0_i32_0 = arith.constant 0 : i32
    return %arg0, %c0_i32 : i32, i32
  }
  func.func @transform_1(%arg0: i32) -> (i32, i32) {
    %c0_i32 = arith.constant 0 : i32
    %c0_i32_0 = arith.constant 0 : i32
    %c0_i32_1 = arith.constant 0 : i32
    return %c0_i32, %c0_i32_0 : i32, i32
  }
  func.func @transform_2(%arg0: i32) -> (i32, i32) {
    %c0_i32 = arith.constant 0 : i32
    %c0_i32_0 = arith.constant 0 : i32
    %c0_i32_1 = arith.constant 0 : i32
    return %c0_i32, %c0_i32_0 : i32, i32
  }
  func.func @transform_3(%arg0: i32) -> (i32, i32) {
    %c0_i32 = arith.constant 0 : i32
    %c0_i32_0 = arith.constant 0 : i32
    %c0_i32_1 = arith.constant 0 : i32
    return %c0_i32, %c0_i32_0 : i32, i32
  }
  func.func @transform_4(%arg0: i32) -> (i32, i32) {
    %c0_i32 = arith.constant 0 : i32
    %c0_i32_0 = arith.constant 0 : i32
    return %arg0, %c0_i32 : i32, i32
  }
}

module attributes {stable_mosaic.version = 11 : i64} {
  func.func @_bottleneck_kernel(%arg0: i32, %arg1: i32, %arg2: memref<1x8x16x128xbf16, #tpu.memory_space<vmem>>, %arg3: memref<1x1x16x128xbf16, #tpu.memory_space<vmem>>, %arg4: memref<1x1x16x128xbf16, #tpu.memory_space<vmem>>, %arg5: memref<128x128xbf16, #tpu.memory_space<vmem>>, %arg6: memref<3x384x128xbf16, #tpu.memory_space<vmem>>, %arg7: memref<1x128xf32, #tpu.memory_space<vmem>>, %arg8: memref<1x128xf32, #tpu.memory_space<vmem>>, %arg9: memref<1x128xf32, #tpu.memory_space<vmem>>, %arg10: memref<1x128xf32, #tpu.memory_space<vmem>>, %arg11: memref<1x8x16x128xbf16, #tpu.memory_space<vmem>>, %arg12: memref<10x18x128xbf16, #tpu.memory_space<vmem>>) attributes {dimension_semantics = [#tpu.dimension_semantics<parallel>, #tpu.dimension_semantics<parallel>], iteration_bounds = array<i64: 2, 2>, scalar_prefetch = 0 : i64, scratch_operands = 1 : i64, tpu.core_type = #tpu.core_type<tc>, window_params = [{transform_indices = @transform_0, window_bounds = array<i64: 1, 8, 16, 128>}, {transform_indices = @transform_1, window_bounds = array<i64: 1, 1, 16, 128>}, {transform_indices = @transform_2, window_bounds = array<i64: 1, 1, 16, 128>}, {pipeline_mode = #tpu.pipeline_mode<synchronous>, transform_indices = @transform_3, window_bounds = array<i64: 128, 128>}, {pipeline_mode = #tpu.pipeline_mode<synchronous>, transform_indices = @transform_4, window_bounds = array<i64: 3, 384, 128>}, {pipeline_mode = #tpu.pipeline_mode<synchronous>, transform_indices = @transform_5, window_bounds = array<i64: 1, 128>}, {pipeline_mode = #tpu.pipeline_mode<synchronous>, transform_indices = @transform_6, window_bounds = array<i64: 1, 128>}, {pipeline_mode = #tpu.pipeline_mode<synchronous>, transform_indices = @transform_7, window_bounds = array<i64: 1, 128>}, {pipeline_mode = #tpu.pipeline_mode<synchronous>, transform_indices = @transform_8, window_bounds = array<i64: 1, 128>}, {transform_indices = @transform_9, window_bounds = array<i64: 1, 8, 16, 128>}]} {
    %c8_i32 = arith.constant 8 : i32
    %0 = arith.muli %arg1, %c8_i32 : i32
    %c0 = arith.constant 0 : index
    %c0_0 = arith.constant 0 : index
    %c0_1 = arith.constant 0 : index
    %c0_2 = arith.constant 0 : index
    %1 = vector.load %arg3[%c0, %c0_0, %c0_1, %c0_2] : memref<1x1x16x128xbf16, #tpu.memory_space<vmem>>, vector<1x1x16x128xbf16>
    %2 = vector.shape_cast %1 : vector<1x1x16x128xbf16> to vector<1x16x128xbf16>
    %c0_3 = arith.constant 0 : index
    %c0_4 = arith.constant 0 : index
    %c0_5 = arith.constant 0 : index
    %c0_6 = arith.constant 0 : index
    %3 = vector.load %arg2[%c0_3, %c0_4, %c0_5, %c0_6] : memref<1x8x16x128xbf16, #tpu.memory_space<vmem>>, vector<1x8x16x128xbf16>
    %4 = vector.shape_cast %3 : vector<1x8x16x128xbf16> to vector<8x16x128xbf16>
    %c0_7 = arith.constant 0 : index
    %c0_8 = arith.constant 0 : index
    %c0_9 = arith.constant 0 : index
    %c0_10 = arith.constant 0 : index
    %5 = vector.load %arg4[%c0_7, %c0_8, %c0_9, %c0_10] : memref<1x1x16x128xbf16, #tpu.memory_space<vmem>>, vector<1x1x16x128xbf16>
    %6 = vector.shape_cast %5 : vector<1x1x16x128xbf16> to vector<1x16x128xbf16>
    %7 = tpu.concatenate %2, %4, %6 in 0 : vector<1x16x128xbf16>, vector<8x16x128xbf16>, vector<1x16x128xbf16> -> vector<10x16x128xbf16>
    %8 = vector.shape_cast %7 : vector<10x16x128xbf16> to vector<160x128xbf16>
    %c0_11 = arith.constant 0 : index
    %c0_12 = arith.constant 0 : index
    %9 = vector.load %arg5[%c0_11, %c0_12] : memref<128x128xbf16, #tpu.memory_space<vmem>>, vector<128x128xbf16>
    %cst = arith.constant dense<0.000000e+00> : vector<160x128xf32>
    %10 = tpu.matmul %8, %9, %cst {dimension_numbers = #tpu.dot_dimension_numbers<[1], [0], [0], [1], [0, 0, 1, 1], [], []>} : vector<160x128xbf16>, vector<128x128xbf16>, vector<160x128xf32> -> vector<160x128xf32>
    %c0_13 = arith.constant 0 : index
    %c0_14 = arith.constant 0 : index
    %11 = vector.load %arg7[%c0_13, %c0_14] : memref<1x128xf32, #tpu.memory_space<vmem>>, vector<1x128xf32>
    %12 = vector.broadcast %11 : vector<1x128xf32> to vector<160x128xf32>
    %13 = arith.mulf %10, %12 : vector<160x128xf32>
    %c0_15 = arith.constant 0 : index
    %c0_16 = arith.constant 0 : index
    %14 = vector.load %arg8[%c0_15, %c0_16] : memref<1x128xf32, #tpu.memory_space<vmem>>, vector<1x128xf32>
    %15 = vector.broadcast %14 : vector<1x128xf32> to vector<160x128xf32>
    %16 = arith.addf %13, %15 : vector<160x128xf32>
    %cst_17 = arith.constant 0.000000e+00 : f32
    %17 = vector.broadcast %cst_17 : f32 to vector<160x128xf32>
    %18 = arith.cmpf ogt, %16, %17 : vector<160x128xf32>
    %cst_18 = arith.constant 1.000000e-01 : f32
    %19 = vector.broadcast %cst_18 : f32 to vector<160x128xf32>
    %20 = arith.mulf %19, %16 : vector<160x128xf32>
    %21 = arith.select %18, %16, %20 : vector<160x128xi1>, vector<160x128xf32>
    %22 = vector.shape_cast %21 : vector<160x128xf32> to vector<10x16x128xf32>
    %23 = tpu.iota {dimensions = array<i32: 0>} : vector<10x1x1xi32>
    %c1_i32 = arith.constant 1 : i32
    %24 = arith.subi %0, %c1_i32 : i32
    %25 = vector.broadcast %24 : i32 to vector<10x1x1xi32>
    %26 = arith.addi %23, %25 : vector<10x1x1xi32>
    %c0_i32 = arith.constant 0 : i32
    %27 = vector.broadcast %c0_i32 : i32 to vector<10x1x1xi32>
    %28 = arith.cmpi sge, %26, %27 : vector<10x1x1xi32>
    %c16_i32 = arith.constant 16 : i32
    %29 = vector.broadcast %c16_i32 : i32 to vector<10x1x1xi32>
    %30 = arith.cmpi slt, %26, %29 : vector<10x1x1xi32>
    %31 = arith.andi %28, %30 : vector<10x1x1xi1>
    %cst_19 = arith.constant 0.000000e+00 : f32
    %32 = vector.shape_cast %31 : vector<10x1x1xi1> to vector<10x1x1xi1>
    %33 = vector.broadcast %32 : vector<10x1x1xi1> to vector<10x16x128xi1>
    %34 = vector.broadcast %cst_19 : f32 to vector<10x16x128xf32>
    %35 = arith.select %33, %22, %34 : vector<10x16x128xi1>, vector<10x16x128xf32>
    %36 = arith.truncf %35 : vector<10x16x128xf32> to vector<10x16x128xbf16>
    %cst_20 = arith.constant 0.000000e+00 : bf16
    %37 = vector.broadcast %cst_20 : bf16 to vector<10x18x128xbf16>
    %c0_21 = arith.constant 0 : index
    %c0_22 = arith.constant 0 : index
    %c0_23 = arith.constant 0 : index
    %38 = vector.load %arg12[%c0_21, %c0_22, %c0_23] : memref<10x18x128xbf16, #tpu.memory_space<vmem>>, vector<10x18x128xbf16>
    tpu.vector_store %arg12[%c0_21, %c0_22, %c0_23], %37 {strides = array<i32>} : memref<10x18x128xbf16, #tpu.memory_space<vmem>>, vector<10x18x128xbf16>,
    %c0_24 = arith.constant 0 : index
    %c1 = arith.constant 1 : index
    %c0_25 = arith.constant 0 : index
    %39 = vector.load %arg12[%c0_24, %c1, %c0_25] : memref<10x18x128xbf16, #tpu.memory_space<vmem>>, vector<10x16x128xbf16>
    tpu.vector_store %arg12[%c0_24, %c1, %c0_25], %36 {strides = array<i32>} : memref<10x18x128xbf16, #tpu.memory_space<vmem>>, vector<10x16x128xbf16>,
    %cst_26 = arith.constant 0.000000e+00 : f32
    %40 = vector.broadcast %cst_26 : f32 to vector<128x128xf32>
    %c0_27 = arith.constant 0 : index
    %c0_28 = arith.constant 0 : index
    %c0_29 = arith.constant 0 : index
    %41 = vector.load %arg12[%c0_27, %c0_28, %c0_29] : memref<10x18x128xbf16, #tpu.memory_space<vmem>>, vector<8x16x128xbf16>
    %c0_30 = arith.constant 0 : index
    %c1_31 = arith.constant 1 : index
    %c0_32 = arith.constant 0 : index
    %42 = vector.load %arg12[%c0_30, %c1_31, %c0_32] : memref<10x18x128xbf16, #tpu.memory_space<vmem>>, vector<8x16x128xbf16>
    %c0_33 = arith.constant 0 : index
    %c2 = arith.constant 2 : index
    %c0_34 = arith.constant 0 : index
    %43 = vector.load %arg12[%c0_33, %c2, %c0_34] : memref<10x18x128xbf16, #tpu.memory_space<vmem>>, vector<8x16x128xbf16>
    %44 = tpu.concatenate %41, %42, %43 in 2 : vector<8x16x128xbf16>, vector<8x16x128xbf16>, vector<8x16x128xbf16> -> vector<8x16x384xbf16>
    %45 = vector.shape_cast %44 : vector<8x16x384xbf16> to vector<128x384xbf16>
    %c0_35 = arith.constant 0 : index
    %c0_36 = arith.constant 0 : index
    %c0_37 = arith.constant 0 : index
    %46 = vector.load %arg6[%c0_35, %c0_36, %c0_37] : memref<3x384x128xbf16, #tpu.memory_space<vmem>>, vector<1x384x128xbf16>
    %47 = vector.shape_cast %46 : vector<1x384x128xbf16> to vector<384x128xbf16>
    %cst_38 = arith.constant dense<0.000000e+00> : vector<128x128xf32>
    %48 = tpu.matmul %45, %47, %cst_38 {dimension_numbers = #tpu.dot_dimension_numbers<[1], [0], [0], [1], [0, 0, 1, 1], [], []>} : vector<128x384xbf16>, vector<384x128xbf16>, vector<128x128xf32> -> vector<128x128xf32>
    %49 = arith.addf %40, %48 : vector<128x128xf32>
    %c1_39 = arith.constant 1 : index
    %c0_40 = arith.constant 0 : index
    %c0_41 = arith.constant 0 : index
    %50 = vector.load %arg12[%c1_39, %c0_40, %c0_41] : memref<10x18x128xbf16, #tpu.memory_space<vmem>>, vector<8x16x128xbf16>
    %c1_42 = arith.constant 1 : index
    %c1_43 = arith.constant 1 : index
    %c0_44 = arith.constant 0 : index
    %51 = vector.load %arg12[%c1_42, %c1_43, %c0_44] : memref<10x18x128xbf16, #tpu.memory_space<vmem>>, vector<8x16x128xbf16>
    %c1_45 = arith.constant 1 : index
    %c2_46 = arith.constant 2 : index
    %c0_47 = arith.constant 0 : index
    %52 = vector.load %arg12[%c1_45, %c2_46, %c0_47] : memref<10x18x128xbf16, #tpu.memory_space<vmem>>, vector<8x16x128xbf16>
    %53 = tpu.concatenate %50, %51, %52 in 2 : vector<8x16x128xbf16>, vector<8x16x128xbf16>, vector<8x16x128xbf16> -> vector<8x16x384xbf16>
    %54 = vector.shape_cast %53 : vector<8x16x384xbf16> to vector<128x384xbf16>
    %c1_48 = arith.constant 1 : index
    %c0_49 = arith.constant 0 : index
    %c0_50 = arith.constant 0 : index
    %55 = vector.load %arg6[%c1_48, %c0_49, %c0_50] : memref<3x384x128xbf16, #tpu.memory_space<vmem>>, vector<1x384x128xbf16>
    %56 = vector.shape_cast %55 : vector<1x384x128xbf16> to vector<384x128xbf16>
    %cst_51 = arith.constant dense<0.000000e+00> : vector<128x128xf32>
    %57 = tpu.matmul %54, %56, %cst_51 {dimension_numbers = #tpu.dot_dimension_numbers<[1], [0], [0], [1], [0, 0, 1, 1], [], []>} : vector<128x384xbf16>, vector<384x128xbf16>, vector<128x128xf32> -> vector<128x128xf32>
    %58 = arith.addf %49, %57 : vector<128x128xf32>
    %c2_52 = arith.constant 2 : index
    %c0_53 = arith.constant 0 : index
    %c0_54 = arith.constant 0 : index
    %59 = vector.load %arg12[%c2_52, %c0_53, %c0_54] : memref<10x18x128xbf16, #tpu.memory_space<vmem>>, vector<8x16x128xbf16>
    %c2_55 = arith.constant 2 : index
    %c1_56 = arith.constant 1 : index
    %c0_57 = arith.constant 0 : index
    %60 = vector.load %arg12[%c2_55, %c1_56, %c0_57] : memref<10x18x128xbf16, #tpu.memory_space<vmem>>, vector<8x16x128xbf16>
    %c2_58 = arith.constant 2 : index
    %c2_59 = arith.constant 2 : index
    %c0_60 = arith.constant 0 : index
    %61 = vector.load %arg12[%c2_58, %c2_59, %c0_60] : memref<10x18x128xbf16, #tpu.memory_space<vmem>>, vector<8x16x128xbf16>
    %62 = tpu.concatenate %59, %60, %61 in 2 : vector<8x16x128xbf16>, vector<8x16x128xbf16>, vector<8x16x128xbf16> -> vector<8x16x384xbf16>
    %63 = vector.shape_cast %62 : vector<8x16x384xbf16> to vector<128x384xbf16>
    %c2_61 = arith.constant 2 : index
    %c0_62 = arith.constant 0 : index
    %c0_63 = arith.constant 0 : index
    %64 = vector.load %arg6[%c2_61, %c0_62, %c0_63] : memref<3x384x128xbf16, #tpu.memory_space<vmem>>, vector<1x384x128xbf16>
    %65 = vector.shape_cast %64 : vector<1x384x128xbf16> to vector<384x128xbf16>
    %cst_64 = arith.constant dense<0.000000e+00> : vector<128x128xf32>
    %66 = tpu.matmul %63, %65, %cst_64 {dimension_numbers = #tpu.dot_dimension_numbers<[1], [0], [0], [1], [0, 0, 1, 1], [], []>} : vector<128x384xbf16>, vector<384x128xbf16>, vector<128x128xf32> -> vector<128x128xf32>
    %67 = arith.addf %58, %66 : vector<128x128xf32>
    %c0_65 = arith.constant 0 : index
    %c0_66 = arith.constant 0 : index
    %68 = vector.load %arg9[%c0_65, %c0_66] : memref<1x128xf32, #tpu.memory_space<vmem>>, vector<1x128xf32>
    %69 = vector.broadcast %68 : vector<1x128xf32> to vector<128x128xf32>
    %70 = arith.mulf %67, %69 : vector<128x128xf32>
    %c0_67 = arith.constant 0 : index
    %c0_68 = arith.constant 0 : index
    %71 = vector.load %arg10[%c0_67, %c0_68] : memref<1x128xf32, #tpu.memory_space<vmem>>, vector<1x128xf32>
    %72 = vector.broadcast %71 : vector<1x128xf32> to vector<128x128xf32>
    %73 = arith.addf %70, %72 : vector<128x128xf32>
    %cst_69 = arith.constant 0.000000e+00 : f32
    %74 = vector.broadcast %cst_69 : f32 to vector<128x128xf32>
    %75 = arith.cmpf ogt, %73, %74 : vector<128x128xf32>
    %cst_70 = arith.constant 1.000000e-01 : f32
    %76 = vector.broadcast %cst_70 : f32 to vector<128x128xf32>
    %77 = arith.mulf %76, %73 : vector<128x128xf32>
    %78 = arith.select %75, %73, %77 : vector<128x128xi1>, vector<128x128xf32>
    %c0_71 = arith.constant 0 : index
    %c0_72 = arith.constant 0 : index
    %c0_73 = arith.constant 0 : index
    %c0_74 = arith.constant 0 : index
    %79 = vector.load %arg2[%c0_71, %c0_72, %c0_73, %c0_74] : memref<1x8x16x128xbf16, #tpu.memory_space<vmem>>, vector<1x8x16x128xbf16>
    %80 = vector.shape_cast %79 : vector<1x8x16x128xbf16> to vector<8x16x128xbf16>
    %81 = arith.extf %80 : vector<8x16x128xbf16> to vector<8x16x128xf32>
    %82 = vector.shape_cast %81 : vector<8x16x128xf32> to vector<128x128xf32>
    %83 = arith.addf %78, %82 : vector<128x128xf32>
    %84 = vector.shape_cast %83 : vector<128x128xf32> to vector<8x16x128xf32>
    %85 = arith.truncf %84 : vector<8x16x128xf32> to vector<8x16x128xbf16>
    %c0_75 = arith.constant 0 : index
    %c0_76 = arith.constant 0 : index
    %c0_77 = arith.constant 0 : index
    %c0_78 = arith.constant 0 : index
    %86 = vector.load %arg11[%c0_75, %c0_76, %c0_77, %c0_78] : memref<1x8x16x128xbf16, #tpu.memory_space<vmem>>, vector<1x8x16x128xbf16>
    %87 = vector.shape_cast %86 : vector<1x8x16x128xbf16> to vector<8x16x128xbf16>
    %88 = vector.shape_cast %85 : vector<8x16x128xbf16> to vector<1x8x16x128xbf16>
    tpu.vector_store %arg11[%c0_75, %c0_76, %c0_77, %c0_78], %88 {strides = array<i32>} : memref<1x8x16x128xbf16, #tpu.memory_space<vmem>>, vector<1x8x16x128xbf16>,
    return
  }
  func.func @transform_0(%arg0: i32, %arg1: i32) -> (i32, i32, i32, i32) {
    %c0_i32 = arith.constant 0 : i32
    %c0_i32_0 = arith.constant 0 : i32
    %c0_i32_1 = arith.constant 0 : i32
    return %arg0, %arg1, %c0_i32, %c0_i32_0 : i32, i32, i32, i32
  }
  func.func @transform_1(%arg0: i32, %arg1: i32) -> (i32, i32, i32, i32) {
    %c8_i32 = arith.constant 8 : i32
    %0 = arith.muli %arg1, %c8_i32 : i32
    %c1_i32 = arith.constant 1 : i32
    %1 = arith.subi %0, %c1_i32 : i32
    %c0_i32 = arith.constant 0 : i32
    %2 = arith.maxsi %1, %c0_i32 : i32
    %c0_i32_0 = arith.constant 0 : i32
    %c0_i32_1 = arith.constant 0 : i32
    %c0_i32_2 = arith.constant 0 : i32
    return %arg0, %2, %c0_i32_0, %c0_i32_1 : i32, i32, i32, i32
  }
  func.func @transform_2(%arg0: i32, %arg1: i32) -> (i32, i32, i32, i32) {
    %c8_i32 = arith.constant 8 : i32
    %0 = arith.muli %arg1, %c8_i32 : i32
    %c8_i32_0 = arith.constant 8 : i32
    %1 = arith.addi %0, %c8_i32_0 : i32
    %c15_i32 = arith.constant 15 : i32
    %2 = arith.minsi %1, %c15_i32 : i32
    %c0_i32 = arith.constant 0 : i32
    %c0_i32_1 = arith.constant 0 : i32
    %c0_i32_2 = arith.constant 0 : i32
    return %arg0, %2, %c0_i32, %c0_i32_1 : i32, i32, i32, i32
  }
  func.func @transform_3(%arg0: i32, %arg1: i32) -> (i32, i32) {
    %c0_i32 = arith.constant 0 : i32
    %c0_i32_0 = arith.constant 0 : i32
    %c0_i32_1 = arith.constant 0 : i32
    return %c0_i32, %c0_i32_0 : i32, i32
  }
  func.func @transform_4(%arg0: i32, %arg1: i32) -> (i32, i32, i32) {
    %c0_i32 = arith.constant 0 : i32
    %c0_i32_0 = arith.constant 0 : i32
    %c0_i32_1 = arith.constant 0 : i32
    %c0_i32_2 = arith.constant 0 : i32
    return %c0_i32, %c0_i32_0, %c0_i32_1 : i32, i32, i32
  }
  func.func @transform_5(%arg0: i32, %arg1: i32) -> (i32, i32) {
    %c0_i32 = arith.constant 0 : i32
    %c0_i32_0 = arith.constant 0 : i32
    %c0_i32_1 = arith.constant 0 : i32
    return %c0_i32, %c0_i32_0 : i32, i32
  }
  func.func @transform_6(%arg0: i32, %arg1: i32) -> (i32, i32) {
    %c0_i32 = arith.constant 0 : i32
    %c0_i32_0 = arith.constant 0 : i32
    %c0_i32_1 = arith.constant 0 : i32
    return %c0_i32, %c0_i32_0 : i32, i32
  }
  func.func @transform_7(%arg0: i32, %arg1: i32) -> (i32, i32) {
    %c0_i32 = arith.constant 0 : i32
    %c0_i32_0 = arith.constant 0 : i32
    %c0_i32_1 = arith.constant 0 : i32
    return %c0_i32, %c0_i32_0 : i32, i32
  }
  func.func @transform_8(%arg0: i32, %arg1: i32) -> (i32, i32) {
    %c0_i32 = arith.constant 0 : i32
    %c0_i32_0 = arith.constant 0 : i32
    %c0_i32_1 = arith.constant 0 : i32
    return %c0_i32, %c0_i32_0 : i32, i32
  }
  func.func @transform_9(%arg0: i32, %arg1: i32) -> (i32, i32, i32, i32) {
    %c0_i32 = arith.constant 0 : i32
    %c0_i32_0 = arith.constant 0 : i32
    %c0_i32_1 = arith.constant 0 : i32
    return %arg0, %arg1, %c0_i32, %c0_i32_0 : i32, i32, i32, i32
  }
}

module attributes {stable_mosaic.version = 11 : i64} {
  func.func @_tail_kernel(%arg0: i32, %arg1: memref<512x128xbf16, #tpu.memory_space<vmem>>, %arg2: memref<512x128xbf16, #tpu.memory_space<vmem>>, %arg3: memref<128x128xbf16, #tpu.memory_space<vmem>>, %arg4: memref<128x128xbf16, #tpu.memory_space<vmem>>, %arg5: memref<128x128xbf16, #tpu.memory_space<vmem>>, %arg6: memref<128x128xbf16, #tpu.memory_space<vmem>>, %arg7: memref<1x128xf32, #tpu.memory_space<vmem>>, %arg8: memref<1x128xf32, #tpu.memory_space<vmem>>, %arg9: memref<1x128xf32, #tpu.memory_space<vmem>>, %arg10: memref<1x128xf32, #tpu.memory_space<vmem>>, %arg11: memref<1x128xf32, #tpu.memory_space<vmem>>, %arg12: memref<1x128xf32, #tpu.memory_space<vmem>>, %arg13: memref<512x128xf32, #tpu.memory_space<vmem>>) attributes {dimension_semantics = [#tpu.dimension_semantics<parallel>], iteration_bounds = array<i64: 1>, scalar_prefetch = 0 : i64, scratch_operands = 0 : i64, tpu.core_type = #tpu.core_type<tc>, window_params = [{transform_indices = @transform_0, window_bounds = array<i64: 512, 128>}, {transform_indices = @transform_1, window_bounds = array<i64: 512, 128>}, {pipeline_mode = #tpu.pipeline_mode<synchronous>, transform_indices = @transform_2, window_bounds = array<i64: 128, 128>}, {pipeline_mode = #tpu.pipeline_mode<synchronous>, transform_indices = @transform_3, window_bounds = array<i64: 128, 128>}, {pipeline_mode = #tpu.pipeline_mode<synchronous>, transform_indices = @transform_4, window_bounds = array<i64: 128, 128>}, {pipeline_mode = #tpu.pipeline_mode<synchronous>, transform_indices = @transform_5, window_bounds = array<i64: 128, 128>}, {pipeline_mode = #tpu.pipeline_mode<synchronous>, transform_indices = @transform_6, window_bounds = array<i64: 1, 128>}, {pipeline_mode = #tpu.pipeline_mode<synchronous>, transform_indices = @transform_7, window_bounds = array<i64: 1, 128>}, {pipeline_mode = #tpu.pipeline_mode<synchronous>, transform_indices = @transform_8, window_bounds = array<i64: 1, 128>}, {pipeline_mode = #tpu.pipeline_mode<synchronous>, transform_indices = @transform_9, window_bounds = array<i64: 1, 128>}, {pipeline_mode = #tpu.pipeline_mode<synchronous>, transform_indices = @transform_10, window_bounds = array<i64: 1, 128>}, {pipeline_mode = #tpu.pipeline_mode<synchronous>, transform_indices = @transform_11, window_bounds = array<i64: 1, 128>}, {transform_indices = @transform_12, window_bounds = array<i64: 512, 128>}]} {
    %c0 = arith.constant 0 : index
    %c0_0 = arith.constant 0 : index
    %0 = vector.load %arg1[%c0, %c0_0] : memref<512x128xbf16, #tpu.memory_space<vmem>>, vector<512x128xbf16>
    %c0_1 = arith.constant 0 : index
    %c0_2 = arith.constant 0 : index
    %1 = vector.load %arg2[%c0_1, %c0_2] : memref<512x128xbf16, #tpu.memory_space<vmem>>, vector<512x128xbf16>
    %c0_3 = arith.constant 0 : index
    %c0_4 = arith.constant 0 : index
    %2 = vector.load %arg3[%c0_3, %c0_4] : memref<128x128xbf16, #tpu.memory_space<vmem>>, vector<128x128xbf16>
    %cst = arith.constant dense<0.000000e+00> : vector<512x128xf32>
    %3 = tpu.matmul %0, %2, %cst {dimension_numbers = #tpu.dot_dimension_numbers<[1], [0], [0], [1], [0, 0, 1, 1], [], []>} : vector<512x128xbf16>, vector<128x128xbf16>, vector<512x128xf32> -> vector<512x128xf32>
    %c0_5 = arith.constant 0 : index
    %c0_6 = arith.constant 0 : index
    %4 = vector.load %arg4[%c0_5, %c0_6] : memref<128x128xbf16, #tpu.memory_space<vmem>>, vector<128x128xbf16>
    %cst_7 = arith.constant dense<0.000000e+00> : vector<512x128xf32>
    %5 = tpu.matmul %1, %4, %cst_7 {dimension_numbers = #tpu.dot_dimension_numbers<[1], [0], [0], [1], [0, 0, 1, 1], [], []>} : vector<512x128xbf16>, vector<128x128xbf16>, vector<512x128xf32> -> vector<512x128xf32>
    %c0_8 = arith.constant 0 : index
    %c0_9 = arith.constant 0 : index
    %6 = vector.load %arg7[%c0_8, %c0_9] : memref<1x128xf32, #tpu.memory_space<vmem>>, vector<1x128xf32>
    %7 = vector.broadcast %6 : vector<1x128xf32> to vector<512x128xf32>
    %8 = arith.mulf %3, %7 : vector<512x128xf32>
    %c0_10 = arith.constant 0 : index
    %c0_11 = arith.constant 0 : index
    %9 = vector.load %arg8[%c0_10, %c0_11] : memref<1x128xf32, #tpu.memory_space<vmem>>, vector<1x128xf32>
    %10 = vector.broadcast %9 : vector<1x128xf32> to vector<512x128xf32>
    %11 = arith.addf %8, %10 : vector<512x128xf32>
    %cst_12 = arith.constant 0.000000e+00 : f32
    %12 = vector.broadcast %cst_12 : f32 to vector<512x128xf32>
    %13 = arith.cmpf ogt, %11, %12 : vector<512x128xf32>
    %cst_13 = arith.constant 1.000000e-01 : f32
    %14 = vector.broadcast %cst_13 : f32 to vector<512x128xf32>
    %15 = arith.mulf %14, %11 : vector<512x128xf32>
    %16 = arith.select %13, %11, %15 : vector<512x128xi1>, vector<512x128xf32>
    %17 = arith.truncf %16 : vector<512x128xf32> to vector<512x128xbf16>
    %c0_14 = arith.constant 0 : index
    %c0_15 = arith.constant 0 : index
    %18 = vector.load %arg9[%c0_14, %c0_15] : memref<1x128xf32, #tpu.memory_space<vmem>>, vector<1x128xf32>
    %19 = vector.broadcast %18 : vector<1x128xf32> to vector<512x128xf32>
    %20 = arith.mulf %5, %19 : vector<512x128xf32>
    %c0_16 = arith.constant 0 : index
    %c0_17 = arith.constant 0 : index
    %21 = vector.load %arg10[%c0_16, %c0_17] : memref<1x128xf32, #tpu.memory_space<vmem>>, vector<1x128xf32>
    %22 = vector.broadcast %21 : vector<1x128xf32> to vector<512x128xf32>
    %23 = arith.addf %20, %22 : vector<512x128xf32>
    %cst_18 = arith.constant 0.000000e+00 : f32
    %24 = vector.broadcast %cst_18 : f32 to vector<512x128xf32>
    %25 = arith.cmpf ogt, %23, %24 : vector<512x128xf32>
    %cst_19 = arith.constant 1.000000e-01 : f32
    %26 = vector.broadcast %cst_19 : f32 to vector<512x128xf32>
    %27 = arith.mulf %26, %23 : vector<512x128xf32>
    %28 = arith.select %25, %23, %27 : vector<512x128xi1>, vector<512x128xf32>
    %29 = arith.truncf %28 : vector<512x128xf32> to vector<512x128xbf16>
    %c0_20 = arith.constant 0 : index
    %c0_21 = arith.constant 0 : index
    %30 = vector.load %arg5[%c0_20, %c0_21] : memref<128x128xbf16, #tpu.memory_space<vmem>>, vector<128x128xbf16>
    %cst_22 = arith.constant dense<0.000000e+00> : vector<512x128xf32>
    %31 = tpu.matmul %17, %30, %cst_22 {dimension_numbers = #tpu.dot_dimension_numbers<[1], [0], [0], [1], [0, 0, 1, 1], [], []>} : vector<512x128xbf16>, vector<128x128xbf16>, vector<512x128xf32> -> vector<512x128xf32>
    %c0_23 = arith.constant 0 : index
    %c0_24 = arith.constant 0 : index
    %32 = vector.load %arg6[%c0_23, %c0_24] : memref<128x128xbf16, #tpu.memory_space<vmem>>, vector<128x128xbf16>
    %cst_25 = arith.constant dense<0.000000e+00> : vector<512x128xf32>
    %33 = tpu.matmul %29, %32, %cst_25 {dimension_numbers = #tpu.dot_dimension_numbers<[1], [0], [0], [1], [0, 0, 1, 1], [], []>} : vector<512x128xbf16>, vector<128x128xbf16>, vector<512x128xf32> -> vector<512x128xf32>
    %34 = arith.addf %31, %33 : vector<512x128xf32>
    %c0_26 = arith.constant 0 : index
    %c0_27 = arith.constant 0 : index
    %35 = vector.load %arg11[%c0_26, %c0_27] : memref<1x128xf32, #tpu.memory_space<vmem>>, vector<1x128xf32>
    %36 = vector.broadcast %35 : vector<1x128xf32> to vector<512x128xf32>
    %37 = arith.mulf %34, %36 : vector<512x128xf32>
    %c0_28 = arith.constant 0 : index
    %c0_29 = arith.constant 0 : index
    %38 = vector.load %arg12[%c0_28, %c0_29] : memref<1x128xf32, #tpu.memory_space<vmem>>, vector<1x128xf32>
    %39 = vector.broadcast %38 : vector<1x128xf32> to vector<512x128xf32>
    %40 = arith.addf %37, %39 : vector<512x128xf32>
    %cst_30 = arith.constant 0.000000e+00 : f32
    %41 = vector.broadcast %cst_30 : f32 to vector<512x128xf32>
    %42 = arith.cmpf ogt, %40, %41 : vector<512x128xf32>
    %cst_31 = arith.constant 1.000000e-01 : f32
    %43 = vector.broadcast %cst_31 : f32 to vector<512x128xf32>
    %44 = arith.mulf %43, %40 : vector<512x128xf32>
    %45 = arith.select %42, %40, %44 : vector<512x128xi1>, vector<512x128xf32>
    %c0_32 = arith.constant 0 : index
    %c0_33 = arith.constant 0 : index
    %46 = vector.load %arg13[%c0_32, %c0_33] : memref<512x128xf32, #tpu.memory_space<vmem>>, vector<512x128xf32>
    tpu.vector_store %arg13[%c0_32, %c0_33], %45 {strides = array<i32>} : memref<512x128xf32, #tpu.memory_space<vmem>>, vector<512x128xf32>,
    return
  }
  func.func @transform_0(%arg0: i32) -> (i32, i32) {
    %c0_i32 = arith.constant 0 : i32
    %c0_i32_0 = arith.constant 0 : i32
    return %arg0, %c0_i32 : i32, i32
  }
  func.func @transform_1(%arg0: i32) -> (i32, i32) {
    %c0_i32 = arith.constant 0 : i32
    %c0_i32_0 = arith.constant 0 : i32
    return %arg0, %c0_i32 : i32, i32
  }
  func.func @transform_2(%arg0: i32) -> (i32, i32) {
    %c0_i32 = arith.constant 0 : i32
    %c0_i32_0 = arith.constant 0 : i32
    %c0_i32_1 = arith.constant 0 : i32
    return %c0_i32, %c0_i32_0 : i32, i32
  }
  func.func @transform_3(%arg0: i32) -> (i32, i32) {
    %c0_i32 = arith.constant 0 : i32
    %c0_i32_0 = arith.constant 0 : i32
    %c0_i32_1 = arith.constant 0 : i32
    return %c0_i32, %c0_i32_0 : i32, i32
  }
  func.func @transform_4(%arg0: i32) -> (i32, i32) {
    %c0_i32 = arith.constant 0 : i32
    %c0_i32_0 = arith.constant 0 : i32
    %c0_i32_1 = arith.constant 0 : i32
    return %c0_i32, %c0_i32_0 : i32, i32
  }
  func.func @transform_5(%arg0: i32) -> (i32, i32) {
    %c0_i32 = arith.constant 0 : i32
    %c0_i32_0 = arith.constant 0 : i32
    %c0_i32_1 = arith.constant 0 : i32
    return %c0_i32, %c0_i32_0 : i32, i32
  }
  func.func @transform_6(%arg0: i32) -> (i32, i32) {
    %c0_i32 = arith.constant 0 : i32
    %c0_i32_0 = arith.constant 0 : i32
    %c0_i32_1 = arith.constant 0 : i32
    return %c0_i32, %c0_i32_0 : i32, i32
  }
  func.func @transform_7(%arg0: i32) -> (i32, i32) {
    %c0_i32 = arith.constant 0 : i32
    %c0_i32_0 = arith.constant 0 : i32
    %c0_i32_1 = arith.constant 0 : i32
    return %c0_i32, %c0_i32_0 : i32, i32
  }
  func.func @transform_8(%arg0: i32) -> (i32, i32) {
    %c0_i32 = arith.constant 0 : i32
    %c0_i32_0 = arith.constant 0 : i32
    %c0_i32_1 = arith.constant 0 : i32
    return %c0_i32, %c0_i32_0 : i32, i32
  }
  func.func @transform_9(%arg0: i32) -> (i32, i32) {
    %c0_i32 = arith.constant 0 : i32
    %c0_i32_0 = arith.constant 0 : i32
    %c0_i32_1 = arith.constant 0 : i32
    return %c0_i32, %c0_i32_0 : i32, i32
  }
  func.func @transform_10(%arg0: i32) -> (i32, i32) {
    %c0_i32 = arith.constant 0 : i32
    %c0_i32_0 = arith.constant 0 : i32
    %c0_i32_1 = arith.constant 0 : i32
    return %c0_i32, %c0_i32_0 : i32, i32
  }
  func.func @transform_11(%arg0: i32) -> (i32, i32) {
    %c0_i32 = arith.constant 0 : i32
    %c0_i32_0 = arith.constant 0 : i32
    %c0_i32_1 = arith.constant 0 : i32
    return %c0_i32, %c0_i32_0 : i32, i32
  }
  func.func @transform_12(%arg0: i32) -> (i32, i32) {
    %c0_i32 = arith.constant 0 : i32
    %c0_i32_0 = arith.constant 0 : i32
    return %arg0, %c0_i32 : i32, i32
  }
}

</mosaic_0001>

<bundles_post_ra>
// kernel: bottleneck_csp_forward.3
= control target key start
LH: loop header
LB: loop body
LE: loop exit
PB: predicated region body
PF: predicated region fallthrough
CT: control target
= control target key end

     0   :  { %s2246_s1 = inlined_call_operand.vmem [shape: bf16[128,128], index: 1, kind: input, shape index: {}]   ;;  %s2247_s0 = inlined_call_operand.vmem [shape: bf16[512,128], index: 0, kind: input, shape index: {}]   ;;  %s2248_s2 = inlined_call_operand.vmem [shape: f32[1,128], index: 2, kind: input, shape index: {}]   ;;  %s2249_s3 = inlined_call_operand.vmem [shape: f32[1,128], index: 3, kind: input, shape index: {}]   ;;  %s2250_s4 = inlined_call_operand.vmem [shape: bf16[512,128], index: 4, kind: output, shape index: {}]  }
   0x1   :  { %v1782_v0 = vld [vmem:[%s2246_s1 + $0x38] sm:$0xff]   ;;  %v1783_v1 = vld [vmem:[%s2246_s1 + $0x30] sm:$0xff]   ;;  %v1784_v2 = vld [vmem:[%s2246_s1 + $0x28] sm:$0xff]  }
   0x2   :  { %1686 = vmatprep.subr.bf16.mxu0 %v1782_v0  ;;  %1766 = vmatprep.subr.bf16.mxu1 %v1782_v0  ;;  %v1785_v3 = vld [vmem:[%s2246_s1 + $0x20] sm:$0xff]   ;;  %v1786_v6 = vld [vmem:[%s2246_s1 + $0x18] sm:$0xff]   ;;  %v1787_v7 = vld [vmem:[%s2246_s1 + $0x10] sm:$0xff]  }
   0x3   :  { %1687 = vmatpush3.bf16.msra.mxu0 %v1782_v0  ;;  %1774 = vmatpush3.bf16.msra.mxu1 %v1782_v0  ;;  %v1790_v4 = vld [vmem:[%s2247_s0] sm:$0xff]   ;;  %v1788_v8 = vld [vmem:[%s2246_s1 + $0x8] sm:$0xff]   ;;  %v1794_v12 = vld [vmem:[%s2247_s0 + $0x10] sm:$0xff]  }
   0x4   :  { %1688 = vmatprep.subr.bf16.mxu0 %v1783_v1  ;;  %1767 = vmatprep.subr.bf16.mxu1 %v1783_v1  ;;  %v1791_v5 = vld [vmem:[%s2247_s0 + $0x80] sm:$0xff]   ;;  %v1792_v10 = vld [vmem:[%s2247_s0 + $0x8] sm:$0xff]   ;;  %v1795_v13 = vld [vmem:[%s2247_s0 + $0x90] sm:$0xff]  }
   0x5   :  { %1702 = vmatprep.mubr.bf16.mxu0 %v1790_v4  ;;  %1734 = vmatprep.mubr.bf16.mxu1 %v1791_v5  ;;  %v1789_v9 = vld [vmem:[%s2246_s1] sm:$0xff]   ;;  %v1793_v11 = vld [vmem:[%s2247_s0 + $0x88] sm:$0xff]   ;;  %v1796_v14 = vld [vmem:[%s2247_s0 + $0x18] sm:$0xff]  }
   0x6   :  { %v1797_v15 = vld [vmem:[%s2247_s0 + $0x98] sm:$0xff]   ;;  %v1798_v16 = vld [vmem:[%s2247_s0 + $0x20] sm:$0xff]   ;;  %v1800_v18 = vld [vmem:[%s2247_s0 + $0x28] sm:$0xff]  }
   0x7   :  { %1689 = vmatpush3.bf16.msra.mxu0 %v1783_v1  ;;  %1775 = vmatpush3.bf16.msra.mxu1 %v1783_v1  ;;  %v1799_v17 = vld [vmem:[%s2247_s0 + $0xa0] sm:$0xff]   ;;  %v1801_v19 = vld [vmem:[%s2247_s0 + $0xa8] sm:$0xff]   ;;  %v1802_v20 = vld [vmem:[%s2247_s0 + $0x30] sm:$0xff]  }
   0x8   :  { %1690 = vmatprep.subr.bf16.mxu0 %v1784_v2  ;;  %1768 = vmatprep.subr.bf16.mxu1 %v1784_v2  ;;  %v1803_v21 = vld [vmem:[%s2247_s0 + $0xb0] sm:$0xff]   ;;  %v1804_v22 = vld [vmem:[%s2247_s0 + $0x38] sm:$0xff]   ;;  %v1806_v24 = vld [vmem:[%s2247_s0 + $0x40] sm:$0xff]  }
   0x9   :  { %v1805_v23 = vld [vmem:[%s2247_s0 + $0xb8] sm:$0xff]   ;;  %v1807_v25 = vld [vmem:[%s2247_s0 + $0xc0] sm:$0xff]   ;;  %v1808_v26 = vld [vmem:[%s2247_s0 + $0x48] sm:$0xff]  }
   0xa   :  { %v1809_v27 = vld [vmem:[%s2247_s0 + $0xc8] sm:$0xff]   ;;  %v1810_v28 = vld [vmem:[%s2247_s0 + $0x50] sm:$0xff]   ;;  %v1812_v30 = vld [vmem:[%s2247_s0 + $0x58] sm:$0xff]  }
   0xb   :  { %1691 = vmatpush3.bf16.msra.mxu0 %v1784_v2  ;;  %1776 = vmatpush3.bf16.msra.mxu1 %v1784_v2  ;;  %v1811_v29 = vld [vmem:[%s2247_s0 + $0xd0] sm:$0xff]   ;;  %v1813_v31 = vld [vmem:[%s2247_s0 + $0xd8] sm:$0xff]   ;;  %v1814_v32 = vld [vmem:[%s2247_s0 + $0x60] sm:$0xff]  }
   0xc   :  { %1692 = vmatprep.subr.bf16.mxu0 %v1785_v3  ;;  %1769 = vmatprep.subr.bf16.mxu1 %v1785_v3  ;;  %v1815_v33 = vld [vmem:[%s2247_s0 + $0xe0] sm:$0xff]   ;;  %v1816_v34 = vld [vmem:[%s2247_s0 + $0x68] sm:$0xff]   ;;  %v1818_v36 = vld [vmem:[%s2247_s0 + $0x70] sm:$0xff]  }
   0xd   :  { %v1817_v35 = vld [vmem:[%s2247_s0 + $0xe8] sm:$0xff]   ;;  %v1819_v37 = vld [vmem:[%s2247_s0 + $0xf0] sm:$0xff]   ;;  %v1820_v38 = vld [vmem:[%s2247_s0 + $0x78] sm:$0xff]  }
   0xe   :  { %v1821_v39 = vld [vmem:[%s2247_s0 + $0xf8] sm:$0xff]   ;;  %v1970_v40 = vld [vmem:[%s2248_s2] ss:$0 sm:$0xff] }
   0xf   :  { %1693 = vmatpush3.bf16.msra.mxu0 %v1785_v3  ;;  %1777 = vmatpush3.bf16.msra.mxu1 %v1785_v3  ;;  %v1975_v42 = vld [vmem:[%s2249_s3] ss:$0 sm:$0xff] }
  0x10   :  { %1694 = vmatprep.subr.bf16.mxu0 %v1786_v6  ;;  %1770 = vmatprep.subr.bf16.mxu1 %v1786_v6 }
  0x13   :  { %1695 = vmatpush3.bf16.msra.mxu0 %v1786_v6  ;;  %1778 = vmatpush3.bf16.msra.mxu1 %v1786_v6 }
  0x14   :  { %1696 = vmatprep.subr.bf16.mxu0 %v1787_v7  ;;  %1771 = vmatprep.subr.bf16.mxu1 %v1787_v7 }
  0x17   :  { %1697 = vmatpush3.bf16.msra.mxu0 %v1787_v7  ;;  %1779 = vmatpush3.bf16.msra.mxu1 %v1787_v7 }
  0x18   :  { %1698 = vmatprep.subr.bf16.mxu0 %v1788_v8  ;;  %1772 = vmatprep.subr.bf16.mxu1 %v1788_v8 }
  0x1b   :  { %1699 = vmatpush3.bf16.msra.mxu0 %v1788_v8  ;;  %1780 = vmatpush3.bf16.msra.mxu1 %v1788_v8 }
  0x1c   :  { %1700 = vmatprep.subr.bf16.mxu0 %v1789_v9  ;;  %1773 = vmatprep.subr.bf16.mxu1 %v1789_v9 }
  0x1f   :  { %1701 = vmatpush3.bf16.msra.mxu0 %v1789_v9  ;;  %1781 = vmatpush3.bf16.msra.mxu1 %v1789_v9 }
  0x22   :  { %1703 = vmatmul.mubr.bf16.vlgmr.msra.gmra.mxu0 %v1792_v10  ;;  %1735 = vmatmul.mubr.bf16.vlgmr.msra.gmra.mxu1 %v1793_v11 }
  0x23   :  { %1706 = vmatprep.mubr.bf16.mxu0 %v1794_v12  ;;  %1738 = vmatprep.mubr.bf16.mxu1 %v1795_v13 }
  0x2a   :  { %1707 = vmatmul.mubr.bf16.gmra.mxu0 %v1796_v14  ;;  %1739 = vmatmul.mubr.bf16.gmra.mxu1 %v1797_v15 }
  0x2b   :  { %1710 = vmatprep.mubr.bf16.mxu0 %v1798_v16  ;;  %1742 = vmatprep.mubr.bf16.mxu1 %v1799_v17 }
  0x32   :  { %1711 = vmatmul.mubr.bf16.gmra.mxu0 %v1800_v18  ;;  %1743 = vmatmul.mubr.bf16.gmra.mxu1 %v1801_v19 }
  0x33   :  { %1714 = vmatprep.mubr.bf16.mxu0 %v1802_v20  ;;  %1746 = vmatprep.mubr.bf16.mxu1 %v1803_v21 }
  0x3a   :  { %1715 = vmatmul.mubr.bf16.gmra.mxu0 %v1804_v22  ;;  %1747 = vmatmul.mubr.bf16.gmra.mxu1 %v1805_v23 }
  0x3b   :  { %1718 = vmatprep.mubr.bf16.mxu0 %v1806_v24  ;;  %1750 = vmatprep.mubr.bf16.mxu1 %v1807_v25 }
  0x42   :  { %1719 = vmatmul.mubr.bf16.gmra.mxu0 %v1808_v26  ;;  %1751 = vmatmul.mubr.bf16.gmra.mxu1 %v1809_v27 }
  0x43   :  { %1722 = vmatprep.mubr.bf16.mxu0 %v1810_v28  ;;  %1754 = vmatprep.mubr.bf16.mxu1 %v1811_v29 }
  0x4a   :  { %1723 = vmatmul.mubr.bf16.gmra.mxu0 %v1812_v30  ;;  %1755 = vmatmul.mubr.bf16.gmra.mxu1 %v1813_v31 }
  0x4b   :  { %1726 = vmatprep.mubr.bf16.mxu0 %v1814_v32  ;;  %1758 = vmatprep.mubr.bf16.mxu1 %v1815_v33 }
  0x52   :  { %1727 = vmatmul.mubr.bf16.gmra.mxu0 %v1816_v34  ;;  %1759 = vmatmul.mubr.bf16.gmra.mxu1 %v1817_v35 }
  0x53   :  { %1730 = vmatprep.mubr.bf16.mxu0 %v1818_v36  ;;  %1762 = vmatprep.mubr.bf16.mxu1 %v1819_v37 }
  0x5a   :  { %1731 = vmatmul.mubr.bf16.gmra.mxu0 %v1820_v38  ;;  %1763 = vmatmul.mubr.bf16.gmra.mxu1 %v1821_v39 }
  0xe2   :  { %v1704_v41 = vpop.f32.mrf.mxu0  ;;  %v1736_v43 = vpop.f32.mrf.mxu1 }
  0xe3   :  { %v636_v44 = vmul.f32 %v1704_v41, %v1970_v40  ;;  %v668_v45 = vmul.f32 %v1736_v43, %v1970_v40 }
  0xe4   :  { %v372_v46 = vpop.f32.mrf.mxu0  ;;  %v500_v47 = vpop.f32.mrf.mxu1 }
  0xe5   :  { %v707_v48 = vadd.f32 %v1975_v42, %v636_v44  ;;  %v739_v49 = vadd.f32 %v1975_v42, %v668_v45  ;;  %v634_v50 = vmul.f32 %v1970_v40, %v372_v46  ;;  %v666_v51 = vmul.f32 %v1970_v40, %v500_v47 }
  0xe6   :  { %v1705_v52 = vpop.f32.mrf.mxu0  ;;  %v1737_v53 = vpop.f32.mrf.mxu1 }
  0xe7   :  { %vm771_vm0 = vcmp.gt.f32.partialorder %v707_v48, 0.0  ;;  %v835_v54 = vmul.f32 0.1, %v707_v48  ;;  %vm803_vm1 = vcmp.gt.f32.partialorder %v739_v49, 0.0  ;;  %v867_v55 = vmul.f32 0.1, %v739_v49 }
  0xe8   :  { %v705_v56 = vadd.f32 %v1975_v42, %v634_v50  ;;  %v737_v57 = vadd.f32 %v1975_v42, %v666_v51  ;;  %v637_v58 = vmul.f32 %v1705_v52, %v1970_v40  ;;  %v669_v59 = vmul.f32 %v1737_v53, %v1970_v40  ;;  %v375_v60 = vpop.f32.mrf.mxu0  ;;  %v503_v61 = vpop.f32.mrf.mxu1 }
  0xe9   :  { %v899_v62 = vsel %vm771_vm0, %v707_v48, %v835_v54  ;;  %v931_v63 = vsel %vm803_vm1, %v739_v49, %v867_v55  ;;  %v635_v0 = vmul.f32 %v1970_v40, %v375_v60  ;;  %v667_v1 = vmul.f32 %v1970_v40, %v503_v61 }
  0xea   :  { %vm769_vm2 = vcmp.gt.f32.partialorder %v705_v56, 0.0  ;;  %v833_v2 = vmul.f32 0.1, %v705_v56  ;;  %vm801_vm3 = vcmp.gt.f32.partialorder %v737_v57, 0.0  ;;  %v865_v3 = vmul.f32 0.1, %v737_v57  ;;  %v1708_v4 = vpop.f32.mrf.mxu0  ;;  %v1740_v5 = vpop.f32.mrf.mxu1 }
  0xeb   :  { %v708_v6 = vadd.f32 %v1975_v42, %v637_v58  ;;  %v740_v7 = vadd.f32 %v1975_v42, %v669_v59  ;;  %v706_v8 = vadd.f32 %v1975_v42, %v635_v0  ;;  %v738_v9 = vadd.f32 %v1975_v42, %v667_v1 }
  0xec   :  { %v897_v10 = vsel %vm769_vm2, %v705_v56, %v833_v2  ;;  %v929_v11 = vsel %vm801_vm3, %v737_v57, %v865_v3  ;;  %v640_v12 = vmul.f32 %v1708_v4, %v1970_v40  ;;  %v672_v13 = vmul.f32 %v1740_v5, %v1970_v40  ;;  %v388_v14 = vpop.f32.mrf.mxu0  ;;  %v516_v15 = vpop.f32.mrf.mxu1 }
  0xed   :  { %vm772_vm4 = vcmp.gt.f32.partialorder %v708_v6, 0.0  ;;  %v836_v16 = vmul.f32 0.1, %v708_v6  ;;  %vm804_vm5 = vcmp.gt.f32.partialorder %v740_v7, 0.0  ;;  %v868_v17 = vmul.f32 0.1, %v740_v7 }
  0xee   :  { %vm770_vm6 = vcmp.gt.f32.partialorder %v706_v8, 0.0  ;;  %v834_v18 = vmul.f32 0.1, %v706_v8  ;;  %vm802_vm7 = vcmp.gt.f32.partialorder %v738_v9, 0.0  ;;  %v866_v19 = vmul.f32 0.1, %v738_v9  ;;  %v1709_v20 = vpop.f32.mrf.mxu0  ;;  %v1741_v21 = vpop.f32.mrf.mxu1 }
  0xef   :  { %v900_v22 = vsel %vm772_vm4, %v708_v6, %v836_v16  ;;  %v932_v23 = vsel %vm804_vm5, %v740_v7, %v868_v17  ;;  %v711_v24 = vadd.f32 %v1975_v42, %v640_v12  ;;  %v743_v25 = vadd.f32 %v1975_v42, %v672_v13 }
  0xf0   :  { %v1463_v26 = vpack.c.bf16 %v900_v22, %v899_v62  ;;  %v1543_v27 = vpack.c.bf16 %v932_v23, %v931_v63  ;;  %v898_v28 = vsel %vm770_vm6, %v706_v8, %v834_v18  ;;  %v930_v29 = vsel %vm802_vm7, %v738_v9, %v866_v19  ;;  %v391_v30 = vpop.f32.mrf.mxu0  ;;  %v519_v31 = vpop.f32.mrf.mxu1 }
  0xf1   :  { %v1458_v32 = vpack.c.bf16 %v898_v28, %v897_v10  ;;  %v1538_v33 = vpack.c.bf16 %v930_v29, %v929_v11  ;;  %vm775_vm8 = vcmp.gt.f32.partialorder %v711_v24, 0.0  ;;  %v839_v34 = vmul.f32 0.1, %v711_v24 }
  0xf2   :  { %1615 = vst [vmem:[%s2250_s4 + $0x8] sm:$0xff] %v1463_v26   ;;  %1631 = vst [vmem:[%s2250_s4 + $0x88] sm:$0xff] %v1543_v27   ;;  %vm807_vm9 = vcmp.gt.f32.partialorder %v743_v25, 0.0  ;;  %v871_v35 = vmul.f32 0.1, %v743_v25  ;;  %v638_v36 = vmul.f32 %v1970_v40, %v388_v14  ;;  %v670_v37 = vmul.f32 %v1970_v40, %v516_v15  ;;  %v1712_v38 = vpop.f32.mrf.mxu0  ;;  %v1744_v39 = vpop.f32.mrf.mxu1 }
  0xf3   :  { %1459 = vst [vmem:[%s2250_s4] sm:$0xff] %v1458_v32   ;;  %1630 = vst [vmem:[%s2250_s4 + $0x80] sm:$0xff] %v1538_v33   ;;  %v903_v41 = vsel %vm775_vm8, %v711_v24, %v839_v34  ;;  %v641_v43 = vmul.f32 %v1709_v20, %v1970_v40  ;;  %v673_v44 = vmul.f32 %v1741_v21, %v1970_v40 }
  0xf4   :  { %v639_v45 = vmul.f32 %v1970_v40, %v391_v30  ;;  %v935_v46 = vsel %vm807_vm9, %v743_v25, %v871_v35  ;;  %v709_v47 = vadd.f32 %v1975_v42, %v638_v36  ;;  %v741_v48 = vadd.f32 %v1975_v42, %v670_v37  ;;  %v404_v50 = vpop.f32.mrf.mxu0  ;;  %v532_v51 = vpop.f32.mrf.mxu1 }
  0xf5   :  { %v671_v49 = vmul.f32 %v1970_v40, %v519_v31  ;;  %v712_v52 = vadd.f32 %v1975_v42, %v641_v43  ;;  %v744_v53 = vadd.f32 %v1975_v42, %v673_v44  ;;  %v644_v55 = vmul.f32 %v1712_v38, %v1970_v40 }
  0xf6   :  { %v710_v54 = vadd.f32 %v1975_v42, %v639_v45  ;;  %vm773_vm10 = vcmp.gt.f32.partialorder %v709_v47, 0.0  ;;  %v837_v56 = vmul.f32 0.1, %v709_v47  ;;  %vm805_vm11 = vcmp.gt.f32.partialorder %v741_v48, 0.0  ;;  %v1713_v58 = vpop.f32.mrf.mxu0  ;;  %v1745_v59 = vpop.f32.mrf.mxu1 }
  0xf7   :  { %v869_v57 = vmul.f32 0.1, %v741_v48  ;;  %vm776_vm12 = vcmp.gt.f32.partialorder %v712_v52, 0.0  ;;  %v840_v60 = vmul.f32 0.1, %v712_v52  ;;  %vm808_vm13 = vcmp.gt.f32.partialorder %v744_v53, 0.0 }
  0xf8   :  { %v872_v61 = vmul.f32 0.1, %v744_v53  ;;  %v901_v62 = vsel %vm773_vm10, %v709_v47, %v837_v56  ;;  %vm774_vm14 = vcmp.gt.f32.partialorder %v710_v54, 0.0  ;;  %v838_v0 = vmul.f32 0.1, %v710_v54  ;;  %v407_v1 = vpop.f32.mrf.mxu0  ;;  %v535_v2 = vpop.f32.mrf.mxu1 }
  0xf9   :  { %v933_v63 = vsel %vm805_vm11, %v741_v48, %v869_v57  ;;  %v904_v3 = vsel %vm776_vm12, %v712_v52, %v840_v60  ;;  %v742_v5 = vadd.f32 %v1975_v42, %v671_v49  ;;  %v715_v6 = vadd.f32 %v1975_v42, %v644_v55 }
  0xfa   :  { %v936_v4 = vsel %vm808_vm13, %v744_v53, %v872_v61  ;;  %v1473_v7 = vpack.c.bf16 %v904_v3, %v903_v41  ;;  %v902_v9 = vsel %vm774_vm14, %v710_v54, %v838_v0  ;;  %v676_v10 = vmul.f32 %v1744_v39, %v1970_v40  ;;  %v1716_v11 = vpop.f32.mrf.mxu0  ;;  %v1748_v12 = vpop.f32.mrf.mxu1 }
  0xfb   :  { %v1553_v8 = vpack.c.bf16 %v936_v4, %v935_v46  ;;  %v1468_v13 = vpack.c.bf16 %v902_v9, %v901_v62  ;;  %vm806_vm15 = vcmp.gt.f32.partialorder %v742_v5, 0.0  ;;  %v870_v14 = vmul.f32 0.1, %v742_v5 }
  0xfc   :  { %vm779_vm0 = vcmp.gt.f32.partialorder %v715_v6, 0.0  ;;  %1617 = vst [vmem:[%s2250_s4 + $0x18] sm:$0xff] %v1473_v7   ;;  %v843_v15 = vmul.f32 0.1, %v715_v6  ;;  %v747_v16 = vadd.f32 %v1975_v42, %v676_v10  ;;  %v642_v17 = vmul.f32 %v1970_v40, %v404_v50  ;;  %v420_v19 = vpop.f32.mrf.mxu0  ;;  %v548_v20 = vpop.f32.mrf.mxu1 }
  0xfd   :  { %1633 = vst [vmem:[%s2250_s4 + $0x98] sm:$0xff] %v1553_v8   ;;  %v674_v18 = vmul.f32 %v1970_v40, %v532_v51  ;;  %1616 = vst [vmem:[%s2250_s4 + $0x10] sm:$0xff] %v1468_v13   ;;  %v934_v21 = vsel %vm806_vm15, %v742_v5, %v870_v14  ;;  %v645_v22 = vmul.f32 %v1713_v58, %v1970_v40 }
  0xfe   :  { %v677_v23 = vmul.f32 %v1745_v59, %v1970_v40  ;;  %v643_v24 = vmul.f32 %v1970_v40, %v407_v1  ;;  %v1548_v25 = vpack.c.bf16 %v934_v21, %v933_v63  ;;  %v907_v26 = vsel %vm779_vm0, %v715_v6, %v843_v15  ;;  %v1717_v28 = vpop.f32.mrf.mxu0  ;;  %v1749_v29 = vpop.f32.mrf.mxu1 }
  0xff   :  { %vm811_vm1 = vcmp.gt.f32.partialorder %v747_v16, 0.0  ;;  %v875_v27 = vmul.f32 0.1, %v747_v16  ;;  %v713_v30 = vadd.f32 %v1975_v42, %v642_v17  ;;  %v745_v31 = vadd.f32 %v1975_v42, %v674_v18 }
 0x100   :  { %v716_v32 = vadd.f32 %v1975_v42, %v645_v22  ;;  %v748_v33 = vadd.f32 %v1975_v42, %v677_v23  ;;  %1632 = vst [vmem:[%s2250_s4 + $0x90] sm:$0xff] %v1548_v25   ;;  %v714_v35 = vadd.f32 %v1975_v42, %v643_v24  ;;  %v675_v36 = vmul.f32 %v1970_v40, %v535_v2  ;;  %v423_v38 = vpop.f32.mrf.mxu0  ;;  %v551_v39 = vpop.f32.mrf.mxu1 }
 0x101   :  { %v939_v34 = vsel %vm811_vm1, %v747_v16, %v875_v27  ;;  %v648_v37 = vmul.f32 %v1716_v11, %v1970_v40  ;;  %vm777_vm2 = vcmp.gt.f32.partialorder %v713_v30, 0.0  ;;  %v841_v41 = vmul.f32 0.1, %v713_v30 }
 0x102   :  { %vm809_vm3 = vcmp.gt.f32.partialorder %v745_v31, 0.0  ;;  %v873_v43 = vmul.f32 0.1, %v745_v31  ;;  %vm780_vm4 = vcmp.gt.f32.partialorder %v716_v32, 0.0  ;;  %v844_v44 = vmul.f32 0.1, %v716_v32  ;;  %v1720_v46 = vpop.f32.mrf.mxu0  ;;  %v2049_v47 = vpop.f32.mrf.mxu1 }
 0x103   :  { %vm812_vm5 = vcmp.gt.f32.partialorder %v748_v33, 0.0  ;;  %v876_v45 = vmul.f32 0.1, %v748_v33  ;;  %v905_v48 = vsel %vm777_vm2, %v713_v30, %v841_v41  ;;  %vm778_vm6 = vcmp.gt.f32.partialorder %v714_v35, 0.0 }
 0x104   :  { %v937_v49 = vsel %vm809_vm3, %v745_v31, %v873_v43  ;;  %v842_v50 = vmul.f32 0.1, %v714_v35  ;;  %v908_v51 = vsel %vm780_vm4, %v716_v32, %v844_v44  ;;  %v746_v53 = vadd.f32 %v1975_v42, %v675_v36  ;;  %v2053_v55 = vpop.f32.mrf.mxu0  ;;  %v2055_v56 = vpop.f32.mrf.mxu1 }
 0x105   :  { %v940_v52 = vsel %vm812_vm5, %v748_v33, %v876_v45  ;;  %v719_v54 = vadd.f32 %v1975_v42, %v648_v37  ;;  %v1483_v57 = vpack.c.bf16 %v908_v51, %v907_v26  ;;  %v680_v60 = vmul.f32 %v1748_v12, %v1970_v40 }
 0x106   :  { %v1563_v58 = vpack.c.bf16 %v940_v52, %v939_v34  ;;  %v906_v59 = vsel %vm778_vm6, %v714_v35, %v842_v50  ;;  %vm810_vm7 = vcmp.gt.f32.partialorder %v746_v53, 0.0  ;;  %v874_v62 = vmul.f32 0.1, %v746_v53  ;;  %v2058_v63 = vpop.f32.mrf.mxu0  ;;  %v2060_v0 = vpop.f32.mrf.mxu1 }
 0x107   :  { %v1478_v61 = vpack.c.bf16 %v906_v59, %v905_v48  ;;  %vm783_vm8 = vcmp.gt.f32.partialorder %v719_v54, 0.0  ;;  %1619 = vst [vmem:[%s2250_s4 + $0x28] sm:$0xff] %v1483_v57   ;;  %v847_v1 = vmul.f32 0.1, %v719_v54  ;;  %v751_v2 = vadd.f32 %v1975_v42, %v680_v60 }
 0x108   :  { %1635 = vst [vmem:[%s2250_s4 + $0xa8] sm:$0xff] %v1563_v58   ;;  %v646_v3 = vmul.f32 %v1970_v40, %v420_v19  ;;  %v678_v4 = vmul.f32 %v1970_v40, %v548_v20  ;;  %v938_v5 = vsel %vm810_vm7, %v746_v53, %v874_v62  ;;  %v649_v6 = vmul.f32 %v1717_v28, %v1970_v40  ;;  %v439_v9 = vpop.f32.mrf.mxu0  ;;  %v2077_v10 = vpop.f32.mrf.mxu1 }
 0x109   :  { %1618 = vst [vmem:[%s2250_s4 + $0x20] sm:$0xff] %v1478_v61   ;;  %v681_v7 = vmul.f32 %v1749_v29, %v1970_v40  ;;  %v647_v8 = vmul.f32 %v1970_v40, %v423_v38  ;;  %v1558_v11 = vpack.c.bf16 %v938_v5, %v937_v49  ;;  %v911_v12 = vsel %vm783_vm8, %v719_v54, %v847_v1 }
 0x10a   :  { %vm815_vm9 = vcmp.gt.f32.partialorder %v751_v2, 0.0  ;;  %v879_v13 = vmul.f32 0.1, %v751_v2  ;;  %v717_v14 = vadd.f32 %v1975_v42, %v646_v3  ;;  %v749_v15 = vadd.f32 %v1975_v42, %v678_v4  ;;  %v1724_v18 = vpop.f32.mrf.mxu0  ;;  %v2084_v19 = vpop.f32.mrf.mxu1 }
 0x10b   :  { %v720_v16 = vadd.f32 %v1975_v42, %v649_v6  ;;  %v752_v17 = vadd.f32 %v1975_v42, %v681_v7  ;;  %1634 = vst [vmem:[%s2250_s4 + $0xa0] sm:$0xff] %v1558_v11   ;;  %v718_v21 = vadd.f32 %v1975_v42, %v647_v8  ;;  %v679_v22 = vmul.f32 %v1970_v40, %v551_v39 }
 0x10c   :  { %v943_v20 = vsel %vm815_vm9, %v751_v2, %v879_v13  ;;  %v652_v23 = vmul.f32 %v1720_v46, %v1970_v40  ;;  %vm781_vm10 = vcmp.gt.f32.partialorder %v717_v14, 0.0  ;;  %v845_v24 = vmul.f32 0.1, %v717_v14  ;;  %v2092_v26 = vpop.f32.mrf.mxu0  ;;  %v2094_v27 = vpop.f32.mrf.mxu1 }
 0x10d   :  { %vm813_vm11 = vcmp.gt.f32.partialorder %v749_v15, 0.0  ;;  %v877_v25 = vmul.f32 0.1, %v749_v15  ;;  %vm784_vm12 = vcmp.gt.f32.partialorder %v720_v16, 0.0  ;;  %v848_v28 = vmul.f32 0.1, %v720_v16 }
 0x10e   :  { %vm816_vm13 = vcmp.gt.f32.partialorder %v752_v17, 0.0  ;;  %v880_v29 = vmul.f32 0.1, %v752_v17  ;;  %v909_v30 = vsel %vm781_vm10, %v717_v14, %v845_v24  ;;  %vm782_vm14 = vcmp.gt.f32.partialorder %v718_v21, 0.0  ;;  %v2096_v33 = vpop.f32.mrf.mxu0  ;;  %v2102_v44 = vpop.f32.mrf.mxu1 }
 0x10f   :  { %v941_v31 = vsel %vm813_vm11, %v749_v15, %v877_v25  ;;  %v846_v32 = vmul.f32 0.1, %v718_v21  ;;  %v912_v34 = vsel %vm784_vm12, %v720_v16, %v848_v28  ;;  %v750_v36 = vadd.f32 %v1975_v42, %v679_v22 }
 0x110   :  { %v944_v35 = vsel %vm816_vm13, %v752_v17, %v880_v29  ;;  %v723_v37 = vadd.f32 %v1975_v42, %v652_v23  ;;  %v1493_v38 = vpack.c.bf16 %v912_v34, %v911_v12  ;;  %v684_v43 = vmul.f32 %v2049_v47, %v1970_v40  ;;  %v2104_v48 = vpop.f32.mrf.mxu0  ;;  %v583_v60 = vpop.f32.mrf.mxu1 }
 0x111   :  { %v1573_v39 = vpack.c.bf16 %v944_v35, %v943_v20  ;;  %v910_v41 = vsel %vm782_vm14, %v718_v21, %v846_v32  ;;  %vm814_vm15 = vcmp.gt.f32.partialorder %v750_v36, 0.0  ;;  %v878_v46 = vmul.f32 0.1, %v750_v36 }
 0x112   :  { %v1488_v45 = vpack.c.bf16 %v910_v41, %v909_v30  ;;  %vm787_vm0 = vcmp.gt.f32.partialorder %v723_v37, 0.0  ;;  %1621 = vst [vmem:[%s2250_s4 + $0x38] sm:$0xff] %v1493_v38   ;;  %v851_v49 = vmul.f32 0.1, %v723_v37  ;;  %v755_v50 = vadd.f32 %v1975_v42, %v684_v43  ;;  %v1728_v2 = vpop.f32.mrf.mxu0 }
 0x113   :  { %1637 = vst [vmem:[%s2250_s4 + $0xb8] sm:$0xff] %v1573_v39   ;;  %v650_v47 = vmul.f32 %v1970_v40, %v2053_v55  ;;  %v682_v51 = vmul.f32 %v1970_v40, %v2055_v56  ;;  %v942_v52 = vsel %vm814_vm15, %v750_v36, %v878_v46  ;;  %v653_v53 = vmul.f32 %v2058_v63, %v1970_v40 }
 0x114   :  { %1620 = vst [vmem:[%s2250_s4 + $0x30] sm:$0xff] %v1488_v45   ;;  %v685_v54 = vmul.f32 %v2060_v0, %v1970_v40  ;;  %v651_v57 = vmul.f32 %v1970_v40, %v439_v9  ;;  %v1568_v58 = vpack.c.bf16 %v942_v52, %v941_v31  ;;  %v915_v59 = vsel %vm787_vm0, %v723_v37, %v851_v49  ;;  %v2136_v9 = vpop.f32.mrf.mxu1  ;;  %v2138_v14 = vpop.f32.mrf.mxu0 }
 0x115   :  { %vm819_vm1 = vcmp.gt.f32.partialorder %v755_v50, 0.0  ;;  %v883_v55 = vmul.f32 0.1, %v755_v50  ;;  %v721_v56 = vadd.f32 %v1975_v42, %v650_v47  ;;  %v753_v61 = vadd.f32 %v1975_v42, %v682_v51 }
 0x116   :  { %v724_v62 = vadd.f32 %v1975_v42, %v653_v53  ;;  %v756_v1 = vadd.f32 %v1975_v42, %v685_v54  ;;  %1636 = vst [vmem:[%s2250_s4 + $0xb0] sm:$0xff] %v1568_v58   ;;  %v722_v0 = vadd.f32 %v1975_v42, %v651_v57  ;;  %v683_v3 = vmul.f32 %v1970_v40, %v2077_v10  ;;  %v596_v25 = vpop.f32.mrf.mxu1  ;;  %v1729_v31 = vpop.f32.mrf.mxu0 }
 0x117   :  { %v947_v63 = vsel %vm819_vm1, %v755_v50, %v883_v55  ;;  %v656_v4 = vmul.f32 %v1724_v18, %v1970_v40  ;;  %vm785_vm2 = vcmp.gt.f32.partialorder %v721_v56, 0.0  ;;  %v849_v5 = vmul.f32 0.1, %v721_v56 }
 0x118   :  { %vm817_vm3 = vcmp.gt.f32.partialorder %v753_v61, 0.0  ;;  %v881_v6 = vmul.f32 0.1, %v753_v61  ;;  %vm788_vm4 = vcmp.gt.f32.partialorder %v724_v62, 0.0  ;;  %v852_v7 = vmul.f32 0.1, %v724_v62  ;;  %v1761_v45 = vpop.f32.mrf.mxu1  ;;  %v471_v49 = vpop.f32.mrf.mxu0 }
 0x119   :  { %vm820_vm5 = vcmp.gt.f32.partialorder %v756_v1, 0.0  ;;  %v884_v8 = vmul.f32 0.1, %v756_v1  ;;  %v913_v11 = vsel %vm785_vm2, %v721_v56, %v849_v5  ;;  %vm786_vm6 = vcmp.gt.f32.partialorder %v722_v0, 0.0 }
 0x11a   :  { %v945_v12 = vsel %vm817_vm3, %v753_v61, %v881_v6  ;;  %v850_v13 = vmul.f32 0.1, %v722_v0  ;;  %v916_v15 = vsel %vm788_vm4, %v724_v62, %v852_v7  ;;  %v754_v16 = vadd.f32 %v1975_v42, %v683_v3  ;;  %v599_v58 = vpop.f32.mrf.mxu1  ;;  %v1732_v61 = vpop.f32.mrf.mxu0 }
 0x11b   :  { %v948_v10 = vsel %vm820_vm5, %v756_v1, %v884_v8  ;;  %v727_v17 = vadd.f32 %v1975_v42, %v656_v4  ;;  %v1503_v18 = vpack.c.bf16 %v916_v15, %v915_v59  ;;  %v688_v22 = vmul.f32 %v2084_v19, %v1970_v40 }
 0x11c   :  { %v1583_v20 = vpack.c.bf16 %v948_v10, %v947_v63  ;;  %v914_v21 = vsel %vm786_vm6, %v722_v0, %v850_v13  ;;  %vm818_vm7 = vcmp.gt.f32.partialorder %v754_v16, 0.0  ;;  %v882_v24 = vmul.f32 0.1, %v754_v16  ;;  %v1764_v8 = vpop.f32.mrf.mxu1  ;;  %v484_v15 = vpop.f32.mrf.mxu0 }
 0x11d   :  { %v1498_v23 = vpack.c.bf16 %v914_v21, %v913_v11  ;;  %vm791_vm8 = vcmp.gt.f32.partialorder %v727_v17, 0.0  ;;  %1623 = vst [vmem:[%s2250_s4 + $0x48] sm:$0xff] %v1503_v18   ;;  %v855_v28 = vmul.f32 0.1, %v727_v17  ;;  %v759_v29 = vadd.f32 %v1975_v42, %v688_v22 }
 0x11e   :  { %1639 = vst [vmem:[%s2250_s4 + $0xc8] sm:$0xff] %v1583_v20   ;;  %v654_v30 = vmul.f32 %v1970_v40, %v2092_v26  ;;  %v686_v19 = vmul.f32 %v1970_v40, %v2094_v27  ;;  %v946_v32 = vsel %vm818_vm7, %v754_v16, %v882_v24  ;;  %v657_v34 = vmul.f32 %v2096_v33, %v1970_v40 }
 0x11f   :  { %1622 = vst [vmem:[%s2250_s4 + $0x40] sm:$0xff] %v1498_v23   ;;  %v689_v35 = vmul.f32 %v2102_v44, %v1970_v40  ;;  %v655_v36 = vmul.f32 %v1970_v40, %v2104_v48  ;;  %v1578_v37 = vpack.c.bf16 %v946_v32, %v945_v12  ;;  %v919_v26 = vsel %vm791_vm8, %v727_v17, %v855_v28 }
 0x120   :  { %vm823_vm9 = vcmp.gt.f32.partialorder %v759_v29, 0.0  ;;  %v887_v38 = vmul.f32 0.1, %v759_v29  ;;  %v725_v27 = vadd.f32 %v1975_v42, %v654_v30  ;;  %v757_v39 = vadd.f32 %v1975_v42, %v686_v19  ;;  %v1733_v19 = vpop.f32.mrf.mxu0 }
 0x121   :  { %v728_v41 = vadd.f32 %v1975_v42, %v657_v34  ;;  %v760_v43 = vadd.f32 %v1975_v42, %v689_v35  ;;  %1638 = vst [vmem:[%s2250_s4 + $0xc0] sm:$0xff] %v1578_v37   ;;  %v726_v44 = vadd.f32 %v1975_v42, %v655_v36  ;;  %v687_v46 = vmul.f32 %v1970_v40, %v583_v60 }
 0x122   :  { %v951_v33 = vsel %vm823_vm9, %v759_v29, %v887_v38  ;;  %v660_v48 = vmul.f32 %v1728_v2, %v1970_v40  ;;  %vm789_vm10 = vcmp.gt.f32.partialorder %v725_v27, 0.0  ;;  %v853_v50 = vmul.f32 0.1, %v725_v27 }
 0x123   :  { %vm821_vm11 = vcmp.gt.f32.partialorder %v757_v39, 0.0  ;;  %v885_v47 = vmul.f32 0.1, %v757_v39  ;;  %vm792_vm12 = vcmp.gt.f32.partialorder %v728_v41, 0.0  ;;  %v856_v51 = vmul.f32 0.1, %v728_v41 }
 0x124   :  { %vm824_vm13 = vcmp.gt.f32.partialorder %v760_v43, 0.0  ;;  %v888_v52 = vmul.f32 0.1, %v760_v43  ;;  %v917_v53 = vsel %vm789_vm10, %v725_v27, %v853_v50  ;;  %vm790_vm14 = vcmp.gt.f32.partialorder %v726_v44, 0.0 }
 0x125   :  { %v949_v54 = vsel %vm821_vm11, %v757_v39, %v885_v47  ;;  %v854_v57 = vmul.f32 0.1, %v726_v44  ;;  %v920_v59 = vsel %vm792_vm12, %v728_v41, %v856_v51  ;;  %v758_v60 = vadd.f32 %v1975_v42, %v687_v46 }
 0x126   :  { %v952_v55 = vsel %vm824_vm13, %v760_v43, %v888_v52  ;;  %v731_v56 = vadd.f32 %v1975_v42, %v660_v48  ;;  %v1513_v62 = vpack.c.bf16 %v920_v59, %v919_v26  ;;  %v692_v63 = vmul.f32 %v2136_v9, %v1970_v40 }
 0x127   :  { %v1593_v1 = vpack.c.bf16 %v952_v55, %v951_v33  ;;  %v918_v2 = vsel %vm790_vm14, %v726_v44, %v854_v57  ;;  %vm822_vm15 = vcmp.gt.f32.partialorder %v758_v60, 0.0  ;;  %v886_v3 = vmul.f32 0.1, %v758_v60  ;;  %v487_v33 = vpop.f32.mrf.mxu0 }
 0x128   :  { %v1508_v0 = vpack.c.bf16 %v918_v2, %v917_v53  ;;  %vm795_vm0 = vcmp.gt.f32.partialorder %v731_v56, 0.0  ;;  %1625 = vst [vmem:[%s2250_s4 + $0x58] sm:$0xff] %v1513_v62   ;;  %v859_v4 = vmul.f32 0.1, %v731_v56  ;;  %v763_v5 = vadd.f32 %v1975_v42, %v692_v63 }
 0x129   :  { %1641 = vst [vmem:[%s2250_s4 + $0xd8] sm:$0xff] %v1593_v1   ;;  %v658_v6 = vmul.f32 %v1970_v40, %v2138_v14  ;;  %v690_v7 = vmul.f32 %v1970_v40, %v596_v25  ;;  %v950_v9 = vsel %vm822_vm15, %v758_v60, %v886_v3  ;;  %v661_v11 = vmul.f32 %v1729_v31, %v1970_v40  ;;  %v612_v25 = vpop.f32.mrf.mxu1 }
 0x12a   :  { %1624 = vst [vmem:[%s2250_s4 + $0x50] sm:$0xff] %v1508_v0   ;;  %v693_v12 = vmul.f32 %v1761_v45, %v1970_v40  ;;  %v659_v13 = vmul.f32 %v1970_v40, %v471_v49  ;;  %v1588_v10 = vpack.c.bf16 %v950_v9, %v949_v54  ;;  %vm827_vm1 = vcmp.gt.f32.partialorder %v763_v5, 0.0 }
 0x12b   :  { %v891_v16 = vmul.f32 0.1, %v763_v5  ;;  %v729_v14 = vadd.f32 %v1975_v42, %v658_v6  ;;  %v761_v17 = vadd.f32 %v1975_v42, %v690_v7  ;;  %v732_v18 = vadd.f32 %v1975_v42, %v661_v11  ;;  %v1765_v27 = vpop.f32.mrf.mxu1 }
 0x12c   :  { %v764_v20 = vadd.f32 %v1975_v42, %v693_v12  ;;  %1640 = vst [vmem:[%s2250_s4 + $0xd0] sm:$0xff] %v1588_v10   ;;  %v923_v21 = vsel %vm795_vm0, %v731_v56, %v859_v4  ;;  %v730_v22 = vadd.f32 %v1975_v42, %v659_v13  ;;  %v691_v23 = vmul.f32 %v1970_v40, %v599_v58 }
 0x12d   :  { %v664_v24 = vmul.f32 %v1732_v61, %v1970_v40  ;;  %v955_v28 = vsel %vm827_vm1, %v763_v5, %v891_v16  ;;  %vm793_vm2 = vcmp.gt.f32.partialorder %v729_v14, 0.0  ;;  %v857_v29 = vmul.f32 0.1, %v729_v14  ;;  %v615_v58 = vpop.f32.mrf.mxu1 }
 0x12e   :  { %v889_v30 = vmul.f32 0.1, %v761_v17  ;;  %vm796_vm3 = vcmp.gt.f32.partialorder %v732_v18, 0.0  ;;  %v860_v31 = vmul.f32 0.1, %v732_v18  ;;  %vm828_vm4 = vcmp.gt.f32.partialorder %v764_v20, 0.0 }
 0x12f   :  { %v892_v32 = vmul.f32 0.1, %v764_v20  ;;  %v921_v34 = vsel %vm793_vm2, %v729_v14, %v857_v29  ;;  %vm825_vm5 = vcmp.gt.f32.partialorder %v761_v17, 0.0  ;;  %vm794_vm6 = vcmp.gt.f32.partialorder %v730_v22, 0.0 }
 0x130   :  { %v858_v35 = vmul.f32 0.1, %v730_v22  ;;  %v924_v36 = vsel %vm796_vm3, %v732_v18, %v860_v31  ;;  %v762_v26 = vadd.f32 %v1975_v42, %v691_v23  ;;  %v735_v38 = vadd.f32 %v1975_v42, %v664_v24 }
 0x131   :  { %v956_v37 = vsel %vm828_vm4, %v764_v20, %v892_v32  ;;  %v1523_v39 = vpack.c.bf16 %v924_v36, %v923_v21  ;;  %v696_v45 = vmul.f32 %v1764_v8, %v1970_v40  ;;  %v953_v44 = vsel %vm825_vm5, %v761_v17, %v889_v30 }
 0x132   :  { %v1603_v41 = vpack.c.bf16 %v956_v37, %v955_v28  ;;  %v922_v43 = vsel %vm794_vm6, %v730_v22, %v858_v35  ;;  %vm826_vm7 = vcmp.gt.f32.partialorder %v762_v26, 0.0  ;;  %v890_v48 = vmul.f32 0.1, %v762_v26 }
 0x133   :  { %v1518_v46 = vpack.c.bf16 %v922_v43, %v921_v34  ;;  %1627 = vst [vmem:[%s2250_s4 + $0x68] sm:$0xff] %v1523_v39   ;;  %v863_v49 = vmul.f32 0.1, %v735_v38  ;;  %v767_v50 = vadd.f32 %v1975_v42, %v696_v45  ;;  %v662_v47 = vmul.f32 %v1970_v40, %v484_v15 }
 0x134   :  { %1643 = vst [vmem:[%s2250_s4 + $0xe8] sm:$0xff] %v1603_v41   ;;  %v694_v51 = vmul.f32 %v1970_v40, %v612_v25  ;;  %v954_v52 = vsel %vm826_vm7, %v762_v26, %v890_v48  ;;  %v665_v53 = vmul.f32 %v1733_v19, %v1970_v40  ;;  %v697_v54 = vmul.f32 %v1765_v27, %v1970_v40 }
 0x135   :  { %1626 = vst [vmem:[%s2250_s4 + $0x60] sm:$0xff] %v1518_v46   ;;  %v663_v57 = vmul.f32 %v1970_v40, %v487_v33  ;;  %v1598_v59 = vpack.c.bf16 %v954_v52, %v953_v44  ;;  %vm799_vm8 = vcmp.gt.f32.partialorder %v735_v38, 0.0  ;;  %v895_v55 = vmul.f32 0.1, %v767_v50 }
 0x136   :  { %v733_v60 = vadd.f32 %v1975_v42, %v662_v47  ;;  %v765_v56 = vadd.f32 %v1975_v42, %v694_v51  ;;  %v736_v61 = vadd.f32 %v1975_v42, %v665_v53  ;;  %v768_v62 = vadd.f32 %v1975_v42, %v697_v54 }
 0x137   :  { %1642 = vst [vmem:[%s2250_s4 + $0xe0] sm:$0xff] %v1598_v59   ;;  %vm831_vm9 = vcmp.gt.f32.partialorder %v767_v50, 0.0  ;;  %v734_v1 = vadd.f32 %v1975_v42, %v663_v57  ;;  %v695_v2 = vmul.f32 %v1970_v40, %v615_v58  ;;  %v927_v63 = vsel %vm799_vm8, %v735_v38, %v863_v49 }
 0x138   :  { %vm797_vm10 = vcmp.gt.f32.partialorder %v733_v60, 0.0  ;;  %v861_v0 = vmul.f32 0.1, %v733_v60  ;;  %vm800_vm11 = vcmp.gt.f32.partialorder %v736_v61, 0.0  ;;  %v864_v3 = vmul.f32 0.1, %v736_v61 }
 0x139   :  { %vm832_vm12 = vcmp.gt.f32.partialorder %v768_v62, 0.0  ;;  %v896_v4 = vmul.f32 0.1, %v768_v62  ;;  %v959_v5 = vsel %vm831_vm9, %v767_v50, %v895_v55  ;;  %vm829_vm13 = vcmp.gt.f32.partialorder %v765_v56, 0.0 }
 0x13a   :  { %vm798_vm14 = vcmp.gt.f32.partialorder %v734_v1, 0.0  ;;  %v862_v6 = vmul.f32 0.1, %v734_v1  ;;  %v893_v7 = vmul.f32 0.1, %v765_v56  ;;  %v928_v8 = vsel %vm800_vm11, %v736_v61, %v864_v3 }
 0x13b   :  { %v960_v9 = vsel %vm832_vm12, %v768_v62, %v896_v4  ;;  %v766_v11 = vadd.f32 %v1975_v42, %v695_v2  ;;  %v925_v12 = vsel %vm797_vm10, %v733_v60, %v861_v0  ;;  %v1533_v13 = vpack.c.bf16 %v928_v8, %v927_v63 }
 0x13c   :  { %v1613_v15 = vpack.c.bf16 %v960_v9, %v959_v5  ;;  %v926_v40 = vsel %vm798_vm14, %v734_v1, %v862_v6  ;;  %v957_v14 = vsel %vm829_vm13, %v765_v56, %v893_v7 }
 0x13d   :  { %v1528_v10 = vpack.c.bf16 %v926_v40, %v925_v12  ;;  %vm830_vm15 = vcmp.gt.f32.partialorder %v766_v11, 0.0  ;;  %v894_v16 = vmul.f32 0.1, %v766_v11  ;;  %1629 = vst [vmem:[%s2250_s4 + $0x78] sm:$0xff] %v1533_v13  }
 0x13e   :  { %1645 = vst [vmem:[%s2250_s4 + $0xf8] sm:$0xff] %v1613_v15  }
 0x13f   :  { %1628 = vst [vmem:[%s2250_s4 + $0x70] sm:$0xff] %v1528_v10   ;;  %v958_v42 = vsel %vm830_vm15, %v766_v11, %v894_v16 }
 0x140   :  { %v1608_v17 = vpack.c.bf16 %v958_v42, %v957_v14 }
 0x142   :  { %1644 = vst [vmem:[%s2250_s4 + $0xf0] sm:$0xff] %v1608_v17  }

// kernel: bottleneck_csp_forward.5
= control target key start
LH: loop header
LB: loop body
LE: loop exit
PB: predicated region body
PF: predicated region fallthrough
CT: control target
= control target key end

     0   :  { %s5418_s2 = inlined_call_operand.vmem [shape: bf16[128,128], index: 2, kind: input, shape index: {}]   ;;  %s5419_s3 = inlined_call_operand.vmem [shape: bf16[128,128], index: 3, kind: input, shape index: {}]   ;;  %s5420_s0 = inlined_call_operand.vmem [shape: bf16[512,128], index: 0, kind: input, shape index: {}]   ;;  %s5421_s1 = inlined_call_operand.vmem [shape: bf16[512,128], index: 1, kind: input, shape index: {}]   ;;  %s5422_s5 = inlined_call_operand.vmem [shape: bf16[128,128], index: 5, kind: input, shape index: {}]   ;;  %s5423_s4 = inlined_call_operand.vmem [shape: bf16[128,128], index: 4, kind: input, shape index: {}]   ;;  %s5424_s6 = inlined_call_operand.vmem [shape: f32[1,128], index: 6, kind: input, shape index: {}]   ;;  %s5425_s8 = inlined_call_operand.vmem [shape: f32[1,128], index: 8, kind: input, shape index: {}]   ;;  %s5426_s7 = inlined_call_operand.vmem [shape: f32[1,128], index: 7, kind: input, shape index: {}]   ;;  %s5427_s9 = inlined_call_operand.vmem [shape: f32[1,128], index: 9, kind: input, shape index: {}]   ;;  %s5428_s10 = inlined_call_operand.vmem [shape: f32[1,128], index: 10, kind: input, shape index: {}]   ;;  %s5429_s11 = inlined_call_operand.vmem [shape: f32[1,128], index: 11, kind: input, shape index: {}]   ;;  %s5430_s12 = inlined_call_operand.vmem [shape: f32[512,128], index: 12, kind: output, shape index: {}]  }
   0x1   :  { %v3682_v0 = vld [vmem:[%s5418_s2 + $0x38] sm:$0xff]   ;;  %v3684_v2 = vld [vmem:[%s5418_s2 + $0x30] sm:$0xff]   ;;  %v3686_v4 = vld [vmem:[%s5418_s2 + $0x28] sm:$0xff]  }
   0x2   :  { %v3683_v1 = vld [vmem:[%s5419_s3 + $0x38] sm:$0xff]   ;;  %3362 = vmatprep.subr.bf16.mxu0 %v3682_v0  ;;  %v3685_v3 = vld [vmem:[%s5419_s3 + $0x30] sm:$0xff]   ;;  %v3687_v5 = vld [vmem:[%s5419_s3 + $0x28] sm:$0xff]  }
   0x3   :  { %3442 = vmatprep.subr.bf16.mxu1 %v3683_v1  ;;  %3363 = vmatpush3.bf16.msra.mxu0 %v3682_v0  ;;  %v3688_v6 = vld [vmem:[%s5418_s2 + $0x20] sm:$0xff]   ;;  %v3690_v8 = vld [vmem:[%s5418_s2 + $0x18] sm:$0xff]   ;;  %v3692_v10 = vld [vmem:[%s5418_s2 + $0x10] sm:$0xff]  }
   0x4   :  { %3443 = vmatpush3.bf16.msra.mxu1 %v3683_v1  ;;  %3364 = vmatprep.subr.bf16.mxu0 %v3684_v2  ;;  %v3689_v7 = vld [vmem:[%s5419_s3 + $0x20] sm:$0xff]   ;;  %v3691_v9 = vld [vmem:[%s5419_s3 + $0x18] sm:$0xff]   ;;  %v3693_v11 = vld [vmem:[%s5419_s3 + $0x10] sm:$0xff]  }
   0x5   :  { %3444 = vmatprep.subr.bf16.mxu1 %v3685_v3  ;;  %v3698_v12 = vld [vmem:[%s5420_s0] sm:$0xff]   ;;  %v3694_v14 = vld [vmem:[%s5418_s2 + $0x8] sm:$0xff]   ;;  %v3702_v20 = vld [vmem:[%s5420_s0 + $0x10] sm:$0xff]  }
   0x6   :  { %v3699_v13 = vld [vmem:[%s5421_s1] sm:$0xff]   ;;  %3378 = vmatprep.mubr.bf16.mxu0 %v3698_v12  ;;  %v3695_v15 = vld [vmem:[%s5419_s3 + $0x8] sm:$0xff]   ;;  %v3703_v21 = vld [vmem:[%s5421_s1 + $0x10] sm:$0xff]  }
   0x7   :  { %3365 = vmatpush3.bf16.msra.mxu0 %v3684_v2  ;;  %3458 = vmatprep.mubr.bf16.mxu1 %v3699_v13  ;;  %v3696_v16 = vld [vmem:[%s5418_s2] sm:$0xff]   ;;  %v3700_v18 = vld [vmem:[%s5420_s0 + $0x8] sm:$0xff]   ;;  %v3704_v22 = vld [vmem:[%s5420_s0 + $0x18] sm:$0xff]  }
   0x8   :  { %3445 = vmatpush3.bf16.msra.mxu1 %v3685_v3  ;;  %3366 = vmatprep.subr.bf16.mxu0 %v3686_v4  ;;  %v3697_v17 = vld [vmem:[%s5419_s3] sm:$0xff]   ;;  %v3701_v19 = vld [vmem:[%s5421_s1 + $0x8] sm:$0xff]   ;;  %v3705_v23 = vld [vmem:[%s5421_s1 + $0x18] sm:$0xff]  }
   0x9   :  { %3446 = vmatprep.subr.bf16.mxu1 %v3687_v5  ;;  %v3706_v24 = vld [vmem:[%s5420_s0 + $0x20] sm:$0xff]   ;;  %v3708_v26 = vld [vmem:[%s5420_s0 + $0x28] sm:$0xff]   ;;  %v3710_v28 = vld [vmem:[%s5420_s0 + $0x30] sm:$0xff]  }
   0xa   :  { %v3707_v25 = vld [vmem:[%s5421_s1 + $0x20] sm:$0xff]   ;;  %v3709_v27 = vld [vmem:[%s5421_s1 + $0x28] sm:$0xff]   ;;  %v3711_v29 = vld [vmem:[%s5421_s1 + $0x30] sm:$0xff]  }
   0xb   :  { %3367 = vmatpush3.bf16.msra.mxu0 %v3686_v4  ;;  %v3712_v30 = vld [vmem:[%s5420_s0 + $0x38] sm:$0xff]   ;;  %v3714_v32 = vld [vmem:[%s5420_s0 + $0x40] sm:$0xff]   ;;  %v3716_v34 = vld [vmem:[%s5420_s0 + $0x48] sm:$0xff]  }
   0xc   :  { %3447 = vmatpush3.bf16.msra.mxu1 %v3687_v5  ;;  %3368 = vmatprep.subr.bf16.mxu0 %v3688_v6  ;;  %v3713_v31 = vld [vmem:[%s5421_s1 + $0x38] sm:$0xff]   ;;  %v3715_v33 = vld [vmem:[%s5421_s1 + $0x40] sm:$0xff]   ;;  %v3717_v37 = vld [vmem:[%s5421_s1 + $0x48] sm:$0xff]  }
   0xd   :  { %3448 = vmatprep.subr.bf16.mxu1 %v3689_v7  ;;  %v3742_v35 = vld [vmem:[%s5422_s5 + $0x38] sm:$0xff]   ;;  %v3718_v38 = vld [vmem:[%s5420_s0 + $0x50] sm:$0xff]   ;;  %v3722_v42 = vld [vmem:[%s5420_s0 + $0x60] sm:$0xff]  }
   0xe   :  { %v3743_v36 = vld [vmem:[%s5423_s4 + $0x38] sm:$0xff]   ;;  %v3719_v39 = vld [vmem:[%s5421_s1 + $0x50] sm:$0xff]   ;;  %v3723_v45 = vld [vmem:[%s5421_s1 + $0x60] sm:$0xff]  }
   0xf   :  { %3369 = vmatpush3.bf16.msra.mxu0 %v3688_v6  ;;  %v3720_v40 = vld [vmem:[%s5420_s0 + $0x58] sm:$0xff]   ;;  %v3752_v43 = vld [vmem:[%s5422_s5 + $0x30] sm:$0xff]   ;;  %v3724_v46 = vld [vmem:[%s5420_s0 + $0x68] sm:$0xff]  }
  0x10   :  { %3449 = vmatpush3.bf16.msra.mxu1 %v3689_v7  ;;  %3370 = vmatprep.subr.bf16.mxu0 %v3690_v8  ;;  %v3721_v41 = vld [vmem:[%s5421_s1 + $0x58] sm:$0xff]   ;;  %v3753_v44 = vld [vmem:[%s5423_s4 + $0x30] sm:$0xff]   ;;  %v3725_v47 = vld [vmem:[%s5421_s1 + $0x68] sm:$0xff]  }
  0x11   :  { %3450 = vmatprep.subr.bf16.mxu1 %v3691_v9  ;;  %v3726_v48 = vld [vmem:[%s5420_s0 + $0x70] sm:$0xff]   ;;  %v3762_v50 = vld [vmem:[%s5422_s5 + $0x28] sm:$0xff]   ;;  %v3728_v52 = vld [vmem:[%s5420_s0 + $0x78] sm:$0xff]  }
  0x12   :  { %v3727_v49 = vld [vmem:[%s5421_s1 + $0x70] sm:$0xff]   ;;  %v3763_v51 = vld [vmem:[%s5423_s4 + $0x28] sm:$0xff]   ;;  %v3729_v53 = vld [vmem:[%s5421_s1 + $0x78] sm:$0xff]  }
  0x13   :  { %3371 = vmatpush3.bf16.msra.mxu0 %v3690_v8  ;;  %v3730_v54 = vld [vmem:[%s5420_s0 + $0x80] sm:$0xff]   ;;  %v3770_v58 = vld [vmem:[%s5422_s5 + $0x18] sm:$0xff]   ;;  %v3772_v60 = vld [vmem:[%s5422_s5 + $0x10] sm:$0xff]  }
  0x14   :  { %3451 = vmatpush3.bf16.msra.mxu1 %v3691_v9  ;;  %3372 = vmatprep.subr.bf16.mxu0 %v3692_v10  ;;  %v3731_v55 = vld [vmem:[%s5421_s1 + $0x80] sm:$0xff]   ;;  %v3771_v59 = vld [vmem:[%s5423_s4 + $0x18] sm:$0xff]   ;;  %v3773_v61 = vld [vmem:[%s5423_s4 + $0x10] sm:$0xff]  }
  0x15   :  { %3452 = vmatprep.subr.bf16.mxu1 %v3693_v11  ;;  %v3768_v56 = vld [vmem:[%s5422_s5 + $0x20] sm:$0xff]   ;;  %v3732_v62 = vld [vmem:[%s5420_s0 + $0x88] sm:$0xff]   ;;  %v3734_v0 = vld [vmem:[%s5420_s0 + $0x90] sm:$0xff]  }
  0x16   :  { %v3769_v57 = vld [vmem:[%s5423_s4 + $0x20] sm:$0xff]   ;;  %v3733_v63 = vld [vmem:[%s5421_s1 + $0x88] sm:$0xff]   ;;  %v3735_v1 = vld [vmem:[%s5421_s1 + $0x90] sm:$0xff]  }
  0x17   :  { %3373 = vmatpush3.bf16.msra.mxu0 %v3692_v10  ;;  %v3774_v2 = vld [vmem:[%s5422_s5 + $0x8] sm:$0xff]   ;;  %v3736_v4 = vld [vmem:[%s5420_s0 + $0x98] sm:$0xff]   ;;  %v3738_v6 = vld [vmem:[%s5420_s0 + $0xa0] sm:$0xff]  }
  0x18   :  { %3453 = vmatpush3.bf16.msra.mxu1 %v3693_v11  ;;  %3374 = vmatprep.subr.bf16.mxu0 %v3694_v14  ;;  %v3775_v3 = vld [vmem:[%s5423_s4 + $0x8] sm:$0xff]   ;;  %v3737_v5 = vld [vmem:[%s5421_s1 + $0x98] sm:$0xff]   ;;  %v3739_v7 = vld [vmem:[%s5421_s1 + $0xa0] sm:$0xff]  }
  0x19   :  { %3454 = vmatprep.subr.bf16.mxu1 %v3695_v15  ;;  %v3776_v8 = vld [vmem:[%s5422_s5] sm:$0xff]   ;;  %v3740_v10 = vld [vmem:[%s5420_s0 + $0xa8] sm:$0xff]   ;;  %v3744_v12 = vld [vmem:[%s5420_s0 + $0xb0] sm:$0xff]  }
  0x1a   :  { %v3777_v9 = vld [vmem:[%s5423_s4] sm:$0xff]   ;;  %v3741_v11 = vld [vmem:[%s5421_s1 + $0xa8] sm:$0xff]   ;;  %v3745_v13 = vld [vmem:[%s5421_s1 + $0xb0] sm:$0xff]  }
  0x1b   :  { %3375 = vmatpush3.bf16.msra.mxu0 %v3694_v14  ;;  %v3746_v14 = vld [vmem:[%s5420_s0 + $0xb8] sm:$0xff]  }
  0x1c   :  { %3455 = vmatpush3.bf16.msra.mxu1 %v3695_v15  ;;  %3376 = vmatprep.subr.bf16.mxu0 %v3696_v16  ;;  %v3747_v15 = vld [vmem:[%s5421_s1 + $0xb8] sm:$0xff]  }
  0x1d   :  { %3456 = vmatprep.subr.bf16.mxu1 %v3697_v17 }
  0x1f   :  { %3377 = vmatpush3.bf16.msra.mxu0 %v3696_v16  ;;  %v3748_v16 = vld [vmem:[%s5420_s0 + $0xc0] sm:$0xff]  }
  0x20   :  { %3457 = vmatpush3.bf16.msra.mxu1 %v3697_v17  ;;  %3522 = vmatprep.subr.bf16.mxu0 %v3742_v35  ;;  %v3749_v17 = vld [vmem:[%s5421_s1 + $0xc0] sm:$0xff]  }
  0x21   :  { %3602 = vmatprep.subr.bf16.mxu1 %v3743_v36 }
  0x22   :  { %3379 = vmatmul.mubr.bf16.vlgmr.msra.gmra.mxu0 %v3700_v18  ;;  %v3750_v18 = vld [vmem:[%s5420_s0 + $0xc8] sm:$0xff]  }
  0x23   :  { %3459 = vmatmul.mubr.bf16.vlgmr.msra.gmra.mxu1 %v3701_v19  ;;  %3382 = vmatprep.mubr.bf16.mxu0 %v3702_v20  ;;  %v3751_v19 = vld [vmem:[%s5421_s1 + $0xc8] sm:$0xff]   ;;  %v3754_v20 = vld [vmem:[%s5420_s0 + $0xd0] sm:$0xff]  }
  0x24   :  { %3462 = vmatprep.mubr.bf16.mxu1 %v3703_v21  ;;  %3523 = vmatpush3.bf16.msra.mxu0 %v3742_v35  ;;  %v3755_v21 = vld [vmem:[%s5421_s1 + $0xd0] sm:$0xff]  }
  0x25   :  { %3603 = vmatpush3.bf16.msra.mxu1 %v3743_v36  ;;  %3524 = vmatprep.subr.bf16.mxu0 %v3752_v43  ;;  %v4146_v36 = vld [vmem:[%s5425_s8] ss:$0 sm:$0xff] }
  0x26   :  { %3604 = vmatprep.subr.bf16.mxu1 %v3753_v44 }
  0x28   :  { %3525 = vmatpush3.bf16.msra.mxu0 %v3752_v43 }
  0x29   :  { %3605 = vmatpush3.bf16.msra.mxu1 %v3753_v44  ;;  %3526 = vmatprep.subr.bf16.mxu0 %v3762_v50  ;;  %v4158_v44 = vld [vmem:[%s5427_s9] ss:$0 sm:$0xff] }
  0x2a   :  { %3383 = vmatmul.mubr.bf16.gmra.mxu0 %v3704_v22  ;;  %3606 = vmatprep.subr.bf16.mxu1 %v3763_v51  ;;  %v3756_v22 = vld [vmem:[%s5420_s0 + $0xd8] sm:$0xff]  }
  0x2b   :  { %3463 = vmatmul.mubr.bf16.gmra.mxu1 %v3705_v23  ;;  %3386 = vmatprep.mubr.bf16.mxu0 %v3706_v24  ;;  %v3757_v23 = vld [vmem:[%s5421_s1 + $0xd8] sm:$0xff]   ;;  %v3758_v24 = vld [vmem:[%s5420_s0 + $0xe0] sm:$0xff]  }
  0x2c   :  { %3466 = vmatprep.mubr.bf16.mxu1 %v3707_v25  ;;  %3527 = vmatpush3.bf16.msra.mxu0 %v3762_v50  ;;  %v3759_v25 = vld [vmem:[%s5421_s1 + $0xe0] sm:$0xff]  }
  0x2d   :  { %3607 = vmatpush3.bf16.msra.mxu1 %v3763_v51  ;;  %3528 = vmatprep.subr.bf16.mxu0 %v3768_v56 }
  0x2e   :  { %3608 = vmatprep.subr.bf16.mxu1 %v3769_v57 }
  0x30   :  { %3529 = vmatpush3.bf16.msra.mxu0 %v3768_v56 }
  0x31   :  { %3609 = vmatpush3.bf16.msra.mxu1 %v3769_v57  ;;  %3530 = vmatprep.subr.bf16.mxu0 %v3770_v58 }
  0x32   :  { %3387 = vmatmul.mubr.bf16.gmra.mxu0 %v3708_v26  ;;  %3610 = vmatprep.subr.bf16.mxu1 %v3771_v59  ;;  %v3760_v26 = vld [vmem:[%s5420_s0 + $0xe8] sm:$0xff]  }
  0x33   :  { %3467 = vmatmul.mubr.bf16.gmra.mxu1 %v3709_v27  ;;  %3390 = vmatprep.mubr.bf16.mxu0 %v3710_v28  ;;  %v3761_v27 = vld [vmem:[%s5421_s1 + $0xe8] sm:$0xff]   ;;  %v3764_v28 = vld [vmem:[%s5420_s0 + $0xf0] sm:$0xff]  }
  0x34   :  { %3470 = vmatprep.mubr.bf16.mxu1 %v3711_v29  ;;  %3531 = vmatpush3.bf16.msra.mxu0 %v3770_v58  ;;  %v3765_v29 = vld [vmem:[%s5421_s1 + $0xf0] sm:$0xff]  }
  0x35   :  { %3611 = vmatpush3.bf16.msra.mxu1 %v3771_v59  ;;  %3532 = vmatprep.subr.bf16.mxu0 %v3772_v60 }
  0x36   :  { %3612 = vmatprep.subr.bf16.mxu1 %v3773_v61 }
  0x38   :  { %3533 = vmatpush3.bf16.msra.mxu0 %v3772_v60 }
  0x39   :  { %3613 = vmatpush3.bf16.msra.mxu1 %v3773_v61  ;;  %3534 = vmatprep.subr.bf16.mxu0 %v3774_v2 }
  0x3a   :  { %3391 = vmatmul.mubr.bf16.gmra.mxu0 %v3712_v30  ;;  %3614 = vmatprep.subr.bf16.mxu1 %v3775_v3  ;;  %v3766_v30 = vld [vmem:[%s5420_s0 + $0xf8] sm:$0xff]  }
  0x3b   :  { %3471 = vmatmul.mubr.bf16.gmra.mxu1 %v3713_v31  ;;  %3394 = vmatprep.mubr.bf16.mxu0 %v3714_v32  ;;  %v3767_v31 = vld [vmem:[%s5421_s1 + $0xf8] sm:$0xff]   ;;  %v4140_v32 = vld [vmem:[%s5424_s6] ss:$0 sm:$0xff] }
  0x3c   :  { %3474 = vmatprep.mubr.bf16.mxu1 %v3715_v33  ;;  %3535 = vmatpush3.bf16.msra.mxu0 %v3774_v2 }
  0x3d   :  { %3615 = vmatpush3.bf16.msra.mxu1 %v3775_v3  ;;  %3536 = vmatprep.subr.bf16.mxu0 %v3776_v8 }
  0x3e   :  { %3616 = vmatprep.subr.bf16.mxu1 %v3777_v9 }
  0x40   :  { %3537 = vmatpush3.bf16.msra.mxu0 %v3776_v8 }
  0x41   :  { %3617 = vmatpush3.bf16.msra.mxu1 %v3777_v9 }
  0x42   :  { %3395 = vmatmul.mubr.bf16.gmra.mxu0 %v3716_v34 }
  0x43   :  { %3475 = vmatmul.mubr.bf16.gmra.mxu1 %v3717_v37  ;;  %3398 = vmatprep.mubr.bf16.mxu0 %v3718_v38  ;;  %v4151_v38 = vld [vmem:[%s5426_s7] ss:$0 sm:$0xff] }
  0x44   :  { %3478 = vmatprep.mubr.bf16.mxu1 %v3719_v39 }
  0x4a   :  { %3399 = vmatmul.mubr.bf16.gmra.mxu0 %v3720_v40 }
  0x4b   :  { %3479 = vmatmul.mubr.bf16.gmra.mxu1 %v3721_v41  ;;  %3402 = vmatprep.mubr.bf16.mxu0 %v3722_v42 }
  0x4c   :  { %3482 = vmatprep.mubr.bf16.mxu1 %v3723_v45 }
  0x52   :  { %3403 = vmatmul.mubr.bf16.gmra.mxu0 %v3724_v46 }
  0x53   :  { %3483 = vmatmul.mubr.bf16.gmra.mxu1 %v3725_v47  ;;  %3406 = vmatprep.mubr.bf16.mxu0 %v3726_v48 }
  0x54   :  { %3486 = vmatprep.mubr.bf16.mxu1 %v3727_v49 }
  0x5a   :  { %3407 = vmatmul.mubr.bf16.gmra.mxu0 %v3728_v52 }
  0x5b   :  { %3487 = vmatmul.mubr.bf16.gmra.mxu1 %v3729_v53  ;;  %3410 = vmatprep.mubr.bf16.mxu0 %v3730_v54 }
  0x5c   :  { %3490 = vmatprep.mubr.bf16.mxu1 %v3731_v55 }
  0x62   :  { %3411 = vmatmul.mubr.bf16.gmra.mxu0 %v3732_v62 }
  0x63   :  { %3491 = vmatmul.mubr.bf16.gmra.mxu1 %v3733_v63  ;;  %3414 = vmatprep.mubr.bf16.mxu0 %v3734_v0 }
  0x64   :  { %3494 = vmatprep.mubr.bf16.mxu1 %v3735_v1 }
  0x6a   :  { %3415 = vmatmul.mubr.bf16.gmra.mxu0 %v3736_v4 }
  0x6b   :  { %3495 = vmatmul.mubr.bf16.gmra.mxu1 %v3737_v5  ;;  %3418 = vmatprep.mubr.bf16.mxu0 %v3738_v6 }
  0x6c   :  { %3498 = vmatprep.mubr.bf16.mxu1 %v3739_v7 }
  0x72   :  { %3419 = vmatmul.mubr.bf16.gmra.mxu0 %v3740_v10 }
  0x73   :  { %3499 = vmatmul.mubr.bf16.gmra.mxu1 %v3741_v11  ;;  %3422 = vmatprep.mubr.bf16.mxu0 %v3744_v12 }
  0x74   :  { %3502 = vmatprep.mubr.bf16.mxu1 %v3745_v13 }
  0x7a   :  { %3423 = vmatmul.mubr.bf16.gmra.mxu0 %v3746_v14 }
  0x7b   :  { %3503 = vmatmul.mubr.bf16.gmra.mxu1 %v3747_v15  ;;  %3426 = vmatprep.mubr.bf16.mxu0 %v3748_v16 }
  0x7c   :  { %3506 = vmatprep.mubr.bf16.mxu1 %v3749_v17 }
  0x82   :  { %3427 = vmatmul.mubr.bf16.gmra.mxu0 %v3750_v18 }
  0x83   :  { %3507 = vmatmul.mubr.bf16.gmra.mxu1 %v3751_v19  ;;  %3430 = vmatprep.mubr.bf16.mxu0 %v3754_v20 }
  0x84   :  { %3510 = vmatprep.mubr.bf16.mxu1 %v3755_v21 }
  0x8a   :  { %3431 = vmatmul.mubr.bf16.gmra.mxu0 %v3756_v22 }
  0x8b   :  { %3511 = vmatmul.mubr.bf16.gmra.mxu1 %v3757_v23  ;;  %3434 = vmatprep.mubr.bf16.mxu0 %v3758_v24 }
  0x8c   :  { %3514 = vmatprep.mubr.bf16.mxu1 %v3759_v25 }
  0x92   :  { %3435 = vmatmul.mubr.bf16.gmra.mxu0 %v3760_v26 }
  0x93   :  { %3515 = vmatmul.mubr.bf16.gmra.mxu1 %v3761_v27  ;;  %3438 = vmatprep.mubr.bf16.mxu0 %v3764_v28 }
  0x94   :  { %3518 = vmatprep.mubr.bf16.mxu1 %v3765_v29 }
  0x9a   :  { %3439 = vmatmul.mubr.bf16.gmra.mxu0 %v3766_v30 }
  0x9b   :  { %3519 = vmatmul.mubr.bf16.gmra.mxu1 %v3767_v31 }
  0xe2   :  { %v3380_v33 = vpop.f32.mrf.mxu0 }
  0xe3   :  { %v3460_v34 = vpop.f32.mrf.mxu1  ;;  %v1269_v35 = vmul.f32 %v3380_v33, %v4140_v32 }
  0xe4   :  { %v460_v37 = vpop.f32.mrf.mxu0  ;;  %v1635_v41 = vmul.f32 %v3460_v34, %v4146_v36 }
  0xe5   :  { %v1005_v39 = vpop.f32.mrf.mxu1  ;;  %v1340_v43 = vadd.f32 %v4151_v38, %v1269_v35  ;;  %v1267_v46 = vmul.f32 %v4140_v32, %v460_v37 }
  0xe6   :  { %v3381_v40 = vpop.f32.mrf.mxu0  ;;  %v1706_v51 = vadd.f32 %v4158_v44, %v1635_v41  ;;  %v1633_v52 = vmul.f32 %v4146_v36, %v1005_v39 }
  0xe7   :  { %v3461_v42 = vpop.f32.mrf.mxu1  ;;  %v1270_v49 = vmul.f32 %v3381_v40, %v4140_v32  ;;  %v1468_v55 = vmul.f32 0.1, %v1340_v43  ;;  %vm1404_vm0 = vcmp.gt.f32.partialorder %v1340_v43, 0.0  ;;  %v1338_v57 = vadd.f32 %v4151_v38, %v1267_v46 }
  0xe8   :  { %v463_v45 = vpop.f32.mrf.mxu0  ;;  %v1636_v47 = vmul.f32 %v3461_v42, %v4146_v36  ;;  %v1834_v63 = vmul.f32 0.1, %v1706_v51  ;;  %v1704_v0 = vadd.f32 %v4158_v44, %v1633_v52  ;;  %vm1770_vm1 = vcmp.gt.f32.partialorder %v1706_v51, 0.0 }
  0xe9   :  { %v1008_v48 = vpop.f32.mrf.mxu1  ;;  %v1268_v59 = vmul.f32 %v4140_v32, %v463_v45  ;;  %v1341_v61 = vadd.f32 %v4151_v38, %v1270_v49  ;;  %v4172_v3 = vsel %vm1404_vm0, %v1340_v43, %v1468_v55  ;;  %vm1402_vm2 = vcmp.gt.f32.partialorder %v1338_v57, 0.0 }
  0xea   :  { %v3384_v50 = vpop.f32.mrf.mxu0  ;;  %v1634_v53 = vmul.f32 %v4146_v36, %v1008_v48  ;;  %v1707_v58 = vadd.f32 %v4158_v44, %v1636_v47  ;;  %v1466_v5 = vmul.f32 0.1, %v1338_v57  ;;  %v1898_v13 = vsel %vm1770_vm1, %v1706_v51, %v1834_v63 }
  0xeb   :  { %v3464_v54 = vpop.f32.mrf.mxu1  ;;  %v1339_v7 = vadd.f32 %v4151_v38, %v1268_v59  ;;  %v1469_v9 = vmul.f32 0.1, %v1341_v61  ;;  %v1273_v10 = vmul.f32 %v3384_v50, %v4140_v32  ;;  %v1832_v14 = vmul.f32 0.1, %v1704_v0 }
  0xec   :  { %v476_v56 = vpop.f32.mrf.mxu0  ;;  %v1705_v1 = vadd.f32 %v4158_v44, %v1634_v53  ;;  %v1835_v6 = vmul.f32 0.1, %v1707_v58  ;;  %vm1771_vm3 = vcmp.gt.f32.partialorder %v1707_v58, 0.0  ;;  %v1639_v11 = vmul.f32 %v3464_v54, %v4146_v36 }
  0xed   :  { %v1021_v60 = vpop.f32.mrf.mxu1  ;;  %vm1405_vm4 = vcmp.gt.f32.partialorder %v1341_v61, 0.0  ;;  %vm1768_vm5 = vcmp.gt.f32.partialorder %v1704_v0, 0.0  ;;  %v1271_v17 = vmul.f32 %v4140_v32, %v476_v56  ;;  %v1467_v21 = vmul.f32 0.1, %v1339_v7 }
  0xee   :  { %v3385_v62 = vpop.f32.mrf.mxu0  ;;  %v1833_v15 = vmul.f32 0.1, %v1705_v1  ;;  %v1637_v18 = vmul.f32 %v4146_v36, %v1021_v60  ;;  %vm1769_vm6 = vcmp.gt.f32.partialorder %v1705_v1, 0.0  ;;  %v1899_v20 = vsel %vm1771_vm3, %v1707_v58, %v1835_v6 }
  0xef   :  { %v3465_v2 = vpop.f32.mrf.mxu1  ;;  %v1274_v22 = vmul.f32 %v3385_v62, %v4140_v32  ;;  %v1533_v25 = vsel %vm1405_vm4, %v1341_v61, %v1469_v9  ;;  %v4182_v26 = vadd.f32 %v4151_v38, %v1273_v10  ;;  %v4185_v27 = vadd.f32 %v4158_v44, %v1639_v11 }
  0xf0   :  { %v479_v4 = vpop.f32.mrf.mxu0  ;;  %v1640_v28 = vmul.f32 %v3465_v2, %v4146_v36  ;;  %v1896_v31 = vsel %vm1768_vm5, %v1704_v0, %v1832_v14  ;;  %v1897_v33 = vsel %vm1769_vm6, %v1705_v1, %v1833_v15  ;;  %vm1403_vm7 = vcmp.gt.f32.partialorder %v1339_v7, 0.0 }
  0xf1   :  { %v1024_v8 = vpop.f32.mrf.mxu1  ;;  %v1272_v30 = vmul.f32 %v4140_v32, %v479_v4  ;;  %v1961_v35 = vpack.c.bf16 %v1899_v20, %v1898_v13  ;;  %v1342_v37 = vadd.f32 %v4151_v38, %v1271_v17  ;;  %v1708_v39 = vadd.f32 %v4158_v44, %v1637_v18 }
  0xf2   :  { %v3388_v12 = vpop.f32.mrf.mxu0  ;;  %v1638_v23 = vmul.f32 %v4146_v36, %v1024_v8  ;;  %v1960_v40 = vpack.c.bf16 %v1897_v33, %v1896_v31  ;;  %v4193_v42 = vadd.f32 %v4151_v38, %v1274_v22  ;;  %v1530_v45 = vsel %vm1402_vm2, %v1338_v57, %v1466_v5 }
  0xf3   :  { %v3468_v16 = vpop.f32.mrf.mxu1  ;;  %v1531_v46 = vsel %vm1403_vm7, %v1339_v7, %v1467_v21  ;;  %v1595_v48 = vpack.c.bf16 %v1533_v25, %v4172_v3  ;;  %vm1408_vm8 = vcmp.gt.f32.partialorder %v4182_v26, 0.0  ;;  %v1472_v49 = vmul.f32 0.1, %v4182_v26 }
  0xf4   :  { %v492_v19 = vpop.f32.mrf.mxu0  ;;  %v1709_v43 = vadd.f32 %v4158_v44, %v1638_v23  ;;  %3538 = vmatprep.mubr.bf16.mxu0 %v1960_v40  ;;  %v1594_v50 = vpack.c.bf16 %v1531_v46, %v1530_v45  ;;  %vm1774_vm9 = vcmp.gt.f32.partialorder %v4185_v27, 0.0  ;;  %v1711_v52 = vadd.f32 %v4158_v44, %v1640_v28 }
  0xf5   :  { %v1037_v24 = vpop.f32.mrf.mxu1  ;;  %v1343_v53 = vadd.f32 %v4151_v38, %v1272_v30  ;;  %v1277_v54 = vmul.f32 %v3388_v12, %v4140_v32  ;;  %3539 = vmatmul.mubr.bf16.vlgmr.msra.gmra.mxu0 %v1961_v35  ;;  %v1838_v56 = vmul.f32 0.1, %v4185_v27  ;;  %vm1406_vm10 = vcmp.gt.f32.partialorder %v1342_v37, 0.0 }
  0xf6   :  { %v3389_v29 = vpop.f32.mrf.mxu0  ;;  %v1470_v57 = vmul.f32 0.1, %v1342_v37  ;;  %v1643_v58 = vmul.f32 %v3468_v16, %v4146_v36  ;;  %3618 = vmatprep.mubr.bf16.mxu1 %v1594_v50  ;;  %vm1772_vm11 = vcmp.gt.f32.partialorder %v1708_v39, 0.0  ;;  %v1836_v60 = vmul.f32 0.1, %v1708_v39 }
  0xf7   :  { %v3469_v34 = vpop.f32.mrf.mxu1  ;;  %vm1409_vm12 = vcmp.gt.f32.partialorder %v4193_v42, 0.0  ;;  %v1837_v61 = vmul.f32 0.1, %v1709_v43  ;;  %3619 = vmatmul.mubr.bf16.vlgmr.msra.gmra.mxu1 %v1595_v48  ;;  %v1473_v63 = vmul.f32 0.1, %v4193_v42  ;;  %v1275_v0 = vmul.f32 %v4140_v32, %v492_v19 }
  0xf8   :  { %v495_v41 = vpop.f32.mrf.mxu0  ;;  %v1641_v1 = vmul.f32 %v4146_v36, %v1037_v24  ;;  %vm1775_vm13 = vcmp.gt.f32.partialorder %v1711_v52, 0.0  ;;  %v1839_v4 = vmul.f32 0.1, %v1711_v52  ;;  %v1471_v5 = vmul.f32 0.1, %v1343_v53 }
  0xf9   :  { %v1040_v47 = vpop.f32.mrf.mxu1  ;;  %v4220_v6 = vadd.f32 %v4151_v38, %v1277_v54  ;;  %v4223_v8 = vadd.f32 %v4158_v44, %v1643_v58  ;;  %v1278_v9 = vmul.f32 %v3389_v29, %v4140_v32  ;;  %v1644_v10 = vmul.f32 %v3469_v34, %v4146_v36 }
  0xfa   :  { %v4200_v51 = vpop.f32.mrf.mxu0  ;;  %v1642_v2 = vmul.f32 %v4146_v36, %v1040_v47  ;;  %vm1773_vm14 = vcmp.gt.f32.partialorder %v1709_v43, 0.0  ;;  %v1276_v12 = vmul.f32 %v4140_v32, %v495_v41  ;;  %v1900_v13 = vsel %vm1772_vm11, %v1708_v39, %v1836_v60 }
  0xfb   :  { %v3472_v55 = vpop.f32.mrf.mxu1  ;;  %v1901_v14 = vsel %vm1773_vm14, %v1709_v43, %v1837_v61  ;;  %vm1407_vm15 = vcmp.gt.f32.partialorder %v1343_v53, 0.0  ;;  %v1346_v16 = vadd.f32 %v4151_v38, %v1275_v0  ;;  %v1712_v17 = vadd.f32 %v4158_v44, %v1641_v1 }
  0xfc   :  { %v4208_v59 = vpop.f32.mrf.mxu0  ;;  %v1713_v18 = vadd.f32 %v4158_v44, %v1642_v2  ;;  %v1962_v19 = vpack.c.bf16 %v1901_v14, %v1900_v13  ;;  %vm1412_vm0 = vcmp.gt.f32.partialorder %v4220_v6, 0.0  ;;  %v1534_v21 = vsel %vm1406_vm10, %v1342_v37, %v1470_v57 }
  0xfd   :  { %v4211_v62 = vpop.f32.mrf.mxu1  ;;  %v1535_v22 = vsel %vm1407_vm15, %v1343_v53, %v1471_v5  ;;  %v1902_v23 = vsel %vm1774_vm9, %v4185_v27, %v1838_v56  ;;  %v1903_v24 = vsel %vm1775_vm13, %v1711_v52, %v1839_v4  ;;  %v1536_v30 = vsel %vm1408_vm8, %v4182_v26, %v1472_v49 }
  0xfe   :  { %v4217_v3 = vpop.f32.mrf.mxu0  ;;  %3542 = vmatprep.mubr.bf16.mxu0 %v1962_v19  ;;  %v1596_v28 = vpack.c.bf16 %v1535_v22, %v1534_v21  ;;  %v1963_v29 = vpack.c.bf16 %v1903_v24, %v1902_v23  ;;  %v1537_v31 = vsel %vm1409_vm12, %v4193_v42, %v1473_v63  ;;  %v1349_v34 = vadd.f32 %v4151_v38, %v1278_v9 }
  0xff   :  { %v3473_v7 = vpop.f32.mrf.mxu1  ;;  %v1715_v27 = vadd.f32 %v4158_v44, %v1644_v10  ;;  %v1347_v35 = vadd.f32 %v4151_v38, %v1276_v12  ;;  %v1597_v37 = vpack.c.bf16 %v1537_v31, %v1536_v30  ;;  %v1476_v40 = vmul.f32 0.1, %v4220_v6 }
 0x100   :  { %v4227_v11 = vpop.f32.mrf.mxu0  ;;  %v1842_v41 = vmul.f32 0.1, %v4223_v8  ;;  %v1281_v26 = vmul.f32 %v4200_v51, %v4140_v32  ;;  %v1647_v42 = vmul.f32 %v3472_v55, %v4146_v36  ;;  %3622 = vmatprep.mubr.bf16.mxu1 %v1596_v28  ;;  %3543 = vmatmul.mubr.bf16.gmra.mxu0 %v1963_v29  ;;  %vm1778_vm1 = vcmp.gt.f32.partialorder %v4223_v8, 0.0 }
 0x101   :  { %v1056_v15 = vpop.f32.mrf.mxu1  ;;  %vm1410_vm2 = vcmp.gt.f32.partialorder %v1346_v16, 0.0  ;;  %v1840_v45 = vmul.f32 0.1, %v1712_v17  ;;  %v1841_v46 = vmul.f32 0.1, %v1713_v18  ;;  %3623 = vmatmul.mubr.bf16.gmra.mxu1 %v1597_v37  ;;  %vm1776_vm3 = vcmp.gt.f32.partialorder %v1712_v17, 0.0 }
 0x102   :  { %v4234_v20 = vpop.f32.mrf.mxu0  ;;  %v1474_v48 = vmul.f32 0.1, %v1346_v16  ;;  %v1279_v49 = vmul.f32 %v4140_v32, %v4208_v59  ;;  %vm1777_vm4 = vcmp.gt.f32.partialorder %v1713_v18, 0.0  ;;  %vm1413_vm5 = vcmp.gt.f32.partialorder %v1349_v34, 0.0 }
 0x103   :  { %v4242_v25 = vpop.f32.mrf.mxu1  ;;  %v1477_v51 = vmul.f32 0.1, %v1349_v34  ;;  %vm1779_vm6 = vcmp.gt.f32.partialorder %v1715_v27, 0.0  ;;  %v1475_v52 = vmul.f32 0.1, %v1347_v35  ;;  %v4272_v55 = vadd.f32 %v4151_v38, %v1281_v26 }
 0x104   :  { %v4250_v33 = vpop.f32.mrf.mxu0  ;;  %v1843_v54 = vmul.f32 0.1, %v1715_v27  ;;  %v4275_v56 = vadd.f32 %v4158_v44, %v1647_v42  ;;  %v1645_v57 = vmul.f32 %v4146_v36, %v4211_v62  ;;  %v1282_v59 = vmul.f32 %v4217_v3, %v4140_v32 }
 0x105   :  { %v4255_v39 = vpop.f32.mrf.mxu1  ;;  %v1648_v60 = vmul.f32 %v3473_v7, %v4146_v36  ;;  %v1904_v61 = vsel %vm1776_vm3, %v1712_v17, %v1840_v45  ;;  %v1905_v63 = vsel %vm1777_vm4, %v1713_v18, %v1841_v46  ;;  %v4288_v1 = vadd.f32 %v4151_v38, %v1279_v49 }
 0x106   :  { %v4262_v43 = vpop.f32.mrf.mxu0  ;;  %v1646_v2 = vmul.f32 %v4146_v36, %v1056_v15  ;;  %v1964_v4 = vpack.c.bf16 %v1905_v63, %v1904_v61  ;;  %vm1411_vm7 = vcmp.gt.f32.partialorder %v1347_v35, 0.0  ;;  %v1280_v5 = vmul.f32 %v4140_v32, %v4227_v11 }
 0x107   :  { %v4265_v47 = vpop.f32.mrf.mxu1  ;;  %v1538_v3 = vsel %vm1410_vm2, %v1346_v16, %v1474_v48  ;;  %v1539_v7 = vsel %vm1411_vm7, %v1347_v35, %v1475_v52  ;;  %v1906_v9 = vsel %vm1778_vm1, %v4223_v8, %v1842_v41  ;;  %v1907_v13 = vsel %vm1779_vm6, %v1715_v27, %v1843_v54 }
 0x108   :  { %v4269_v50 = vpop.f32.mrf.mxu0  ;;  %3546 = vmatprep.mubr.bf16.mxu0 %v1964_v4  ;;  %v1598_v12 = vpack.c.bf16 %v1539_v7, %v1538_v3  ;;  %v1540_v14 = vsel %vm1412_vm0, %v4220_v6, %v1476_v40  ;;  %v1541_v15 = vsel %vm1413_vm5, %v1349_v34, %v1477_v51  ;;  %v1716_v16 = vadd.f32 %v4158_v44, %v1645_v57 }
 0x109   :  { %v1072_v53 = vpop.f32.mrf.mxu1  ;;  %v1965_v17 = vpack.c.bf16 %v1907_v13, %v1906_v9  ;;  %v1599_v18 = vpack.c.bf16 %v1541_v15, %v1540_v14  ;;  %vm1416_vm8 = vcmp.gt.f32.partialorder %v4272_v55, 0.0  ;;  %v1480_v8 = vmul.f32 0.1, %v4272_v55 }
 0x10a   :  { %v4279_v58 = vpop.f32.mrf.mxu0  ;;  %v1353_v21 = vadd.f32 %v4151_v38, %v1282_v59  ;;  %v1717_v22 = vadd.f32 %v4158_v44, %v1646_v2  ;;  %3626 = vmatprep.mubr.bf16.mxu1 %v1598_v12  ;;  %vm1782_vm9 = vcmp.gt.f32.partialorder %v4275_v56, 0.0  ;;  %v1846_v23 = vmul.f32 0.1, %v4275_v56 }
 0x10b   :  { %v4285_v0 = vpop.f32.mrf.mxu1  ;;  %v1719_v24 = vadd.f32 %v4158_v44, %v1648_v60  ;;  %v1351_v28 = vadd.f32 %v4151_v38, %v1280_v5  ;;  %3547 = vmatmul.mubr.bf16.gmra.mxu0 %v1965_v17  ;;  %3627 = vmatmul.mubr.bf16.gmra.mxu1 %v1599_v18  ;;  %vm1414_vm10 = vcmp.gt.f32.partialorder %v4288_v1, 0.0  ;;  %v1478_v30 = vmul.f32 0.1, %v4288_v1 }
 0x10c   :  { %v4291_v62 = vpop.f32.mrf.mxu0  ;;  %v1285_v31 = vmul.f32 %v4234_v20, %v4140_v32  ;;  %v1651_v34 = vmul.f32 %v4242_v25, %v4146_v36  ;;  %vm1780_vm11 = vcmp.gt.f32.partialorder %v1716_v16, 0.0  ;;  %v1844_v35 = vmul.f32 0.1, %v1716_v16 }
 0x10d   :  { %v4299_v10 = vpop.f32.mrf.mxu1  ;;  %v1283_v37 = vmul.f32 %v4140_v32, %v4250_v33  ;;  %v1649_v40 = vmul.f32 %v4146_v36, %v4255_v39  ;;  %vm1417_vm12 = vcmp.gt.f32.partialorder %v1353_v21, 0.0  ;;  %v1481_v26 = vmul.f32 0.1, %v1353_v21 }
 0x10e   :  { %v4306_v11 = vpop.f32.mrf.mxu0  ;;  %v1845_v42 = vmul.f32 0.1, %v1717_v22  ;;  %v1650_v20 = vmul.f32 %v4146_v36, %v1072_v53  ;;  %vm1783_vm13 = vcmp.gt.f32.partialorder %v1719_v24, 0.0  ;;  %v1847_v25 = vmul.f32 0.1, %v1719_v24 }
 0x10f   :  { %v4309_v19 = vpop.f32.mrf.mxu1  ;;  %v1479_v46 = vmul.f32 0.1, %v1351_v28  ;;  %vm1781_vm14 = vcmp.gt.f32.partialorder %v1717_v22, 0.0  ;;  %v4343_v33 = vadd.f32 %v4151_v38, %v1285_v31  ;;  %v4346_v39 = vadd.f32 %v4158_v44, %v1651_v34 }
 0x110   :  { %v4315_v6 = vpop.f32.mrf.mxu0  ;;  %v1286_v49 = vmul.f32 %v4262_v43, %v4140_v32  ;;  %v1652_v51 = vmul.f32 %v4265_v47, %v4146_v36  ;;  %v4355_v53 = vadd.f32 %v4151_v38, %v1283_v37  ;;  %v1720_v54 = vadd.f32 %v4158_v44, %v1649_v40 }
 0x111   :  { %v4321_v29 = vpop.f32.mrf.mxu1  ;;  %v1284_v57 = vmul.f32 %v4140_v32, %v4269_v50  ;;  %v1289_v59 = vmul.f32 %v4279_v58, %v4140_v32  ;;  %v1721_v43 = vadd.f32 %v4158_v44, %v1650_v20  ;;  %v1908_v61 = vsel %vm1780_vm11, %v1716_v16, %v1844_v35 }
 0x112   :  { %v4329_v27 = vpop.f32.mrf.mxu0  ;;  %v1909_v47 = vsel %vm1781_vm14, %v1717_v22, %v1845_v42  ;;  %vm1415_vm15 = vcmp.gt.f32.partialorder %v1351_v28, 0.0  ;;  %v1542_v4 = vsel %vm1414_vm10, %v4288_v1, %v1478_v30  ;;  %v1910_v50 = vsel %vm1782_vm9, %v4275_v56, %v1846_v23 }
 0x113   :  { %v4335_v41 = vpop.f32.mrf.mxu1  ;;  %v1966_v2 = vpack.c.bf16 %v1909_v47, %v1908_v61  ;;  %v1543_v5 = vsel %vm1415_vm15, %v1351_v28, %v1479_v46  ;;  %v1911_v7 = vsel %vm1783_vm13, %v1719_v24, %v1847_v25  ;;  %v1544_v9 = vsel %vm1416_vm8, %v4272_v55, %v1480_v8 }
 0x114   :  { %v4338_v45 = vpop.f32.mrf.mxu0  ;;  %v1600_v3 = vpack.c.bf16 %v1543_v5, %v1542_v4  ;;  %v1545_v12 = vsel %vm1417_vm12, %v1353_v21, %v1481_v26  ;;  %v1355_v1 = vadd.f32 %v4151_v38, %v1284_v57  ;;  %v1967_v14 = vpack.c.bf16 %v1911_v7, %v1910_v50 }
 0x115   :  { %v4340_v48 = vpop.f32.mrf.mxu1  ;;  %3550 = vmatprep.mubr.bf16.mxu0 %v1966_v2  ;;  %v1601_v15 = vpack.c.bf16 %v1545_v12, %v1544_v9  ;;  %vm1420_vm0 = vcmp.gt.f32.partialorder %v4343_v33, 0.0  ;;  %v1484_v56 = vmul.f32 0.1, %v4343_v33  ;;  %v1357_v17 = vadd.f32 %v4151_v38, %v1286_v49 }
 0x116   :  { %v4352_v52 = vpop.f32.mrf.mxu0  ;;  %3630 = vmatprep.mubr.bf16.mxu1 %v1600_v3  ;;  %vm1786_vm1 = vcmp.gt.f32.partialorder %v4346_v39, 0.0  ;;  %v1850_v55 = vmul.f32 0.1, %v4346_v39  ;;  %v1723_v8 = vadd.f32 %v4158_v44, %v1652_v51  ;;  %v4395_v21 = vadd.f32 %v4151_v38, %v1289_v59  ;;  %3551 = vmatmul.mubr.bf16.gmra.mxu0 %v1967_v14 }
 0x117   :  { %v4362_v60 = vpop.f32.mrf.mxu1  ;;  %3631 = vmatmul.mubr.bf16.gmra.mxu1 %v1601_v15  ;;  %vm1418_vm2 = vcmp.gt.f32.partialorder %v4355_v53, 0.0  ;;  %v1848_v23 = vmul.f32 0.1, %v1720_v54  ;;  %v1849_v24 = vmul.f32 0.1, %v1721_v43  ;;  %v1655_v28 = vmul.f32 %v4285_v0, %v4146_v36 }
 0x118   :  { %v4366_v63 = vpop.f32.mrf.mxu0  ;;  %v1482_v31 = vmul.f32 0.1, %v4355_v53  ;;  %vm1784_vm3 = vcmp.gt.f32.partialorder %v1720_v54, 0.0  ;;  %v1483_v34 = vmul.f32 0.1, %v1355_v1  ;;  %vm1785_vm4 = vcmp.gt.f32.partialorder %v1721_v43, 0.0 }
 0x119   :  { %v4374_v58 = vpop.f32.mrf.mxu1  ;;  %vm1421_vm5 = vcmp.gt.f32.partialorder %v1357_v17, 0.0  ;;  %vm1419_vm6 = vcmp.gt.f32.partialorder %v1355_v1, 0.0  ;;  %v1287_v37 = vmul.f32 %v4140_v32, %v4291_v62  ;;  %v1653_v40 = vmul.f32 %v4146_v36, %v4299_v10 }
 0x11a   :  { %v4381_v13 = vpop.f32.mrf.mxu0  ;;  %v1485_v0 = vmul.f32 0.1, %v1357_v17  ;;  %vm1787_vm7 = vcmp.gt.f32.partialorder %v1723_v8, 0.0  ;;  %v1851_v42 = vmul.f32 0.1, %v1723_v8  ;;  %v1290_v20 = vmul.f32 %v4306_v11, %v4140_v32 }
 0x11b   :  { %v4384_v16 = vpop.f32.mrf.mxu1  ;;  %v1656_v46 = vmul.f32 %v4309_v19, %v4146_v36  ;;  %v1654_v49 = vmul.f32 %v4146_v36, %v4321_v29  ;;  %v1912_v62 = vsel %vm1784_vm3, %v1720_v54, %v1848_v23  ;;  %v1913_v51 = vsel %vm1785_vm4, %v1721_v43, %v1849_v24 }
 0x11c   :  { %v4389_v18 = vpop.f32.mrf.mxu0  ;;  %v1288_v57 = vmul.f32 %v4140_v32, %v4315_v6  ;;  %v1968_v59 = vpack.c.bf16 %v1913_v51, %v1912_v62  ;;  %v1546_v11 = vsel %vm1418_vm2, %v4355_v53, %v1482_v31  ;;  %v1547_v61 = vsel %vm1419_vm6, %v1355_v1, %v1483_v34 }
 0x11d   :  { %v4397_v22 = vpop.f32.mrf.mxu1  ;;  %v1726_v19 = vadd.f32 %v4158_v44, %v1655_v28  ;;  %v1358_v29 = vadd.f32 %v4151_v38, %v1287_v37  ;;  %v1724_v54 = vadd.f32 %v4158_v44, %v1653_v40  ;;  %v1602_v43 = vpack.c.bf16 %v1547_v61, %v1546_v11 }
 0x11e   :  { %v4402_v30 = vpop.f32.mrf.mxu0  ;;  %3554 = vmatprep.mubr.bf16.mxu0 %v1968_v59  ;;  %v1914_v6 = vsel %vm1786_vm1, %v4346_v39, %v1850_v55  ;;  %v1915_v53 = vsel %vm1787_vm7, %v1723_v8, %v1851_v42  ;;  %v1548_v4 = vsel %vm1420_vm0, %v4343_v33, %v1484_v56  ;;  %v1549_v5 = vsel %vm1421_vm5, %v1357_v17, %v1485_v0 }
 0x11f   :  { %v4405_v35 = vpop.f32.mrf.mxu1  ;;  %v4448_v3 = vadd.f32 %v4151_v38, %v1290_v20  ;;  %v1725_v7 = vadd.f32 %v4158_v44, %v1654_v49  ;;  %3634 = vmatprep.mubr.bf16.mxu1 %v1602_v43  ;;  %v1969_v9 = vpack.c.bf16 %v1915_v53, %v1914_v6  ;;  %v1603_v12 = vpack.c.bf16 %v1549_v5, %v1548_v4 }
 0x120   :  { %v4411_v26 = vpop.f32.mrf.mxu0  ;;  %vm1424_vm8 = vcmp.gt.f32.partialorder %v4395_v21, 0.0  ;;  %v1488_v39 = vmul.f32 0.1, %v4395_v21  ;;  %v1727_v33 = vadd.f32 %v4158_v44, %v1656_v46  ;;  %v1359_v14 = vadd.f32 %v4151_v38, %v1288_v57 }
 0x121   :  { %v4415_v25 = vpop.f32.mrf.mxu1  ;;  %vm1790_vm9 = vcmp.gt.f32.partialorder %v1726_v19, 0.0  ;;  %v1854_v56 = vmul.f32 0.1, %v1726_v19  ;;  %vm1422_vm10 = vcmp.gt.f32.partialorder %v1358_v29, 0.0  ;;  %v1293_v17 = vmul.f32 %v4329_v27, %v4140_v32  ;;  %3555 = vmatmul.mubr.bf16.gmra.mxu0 %v1969_v9  ;;  %3635 = vmatmul.mubr.bf16.gmra.mxu1 %v1603_v12 }
 0x122   :  { %v4422_v10 = vpop.f32.mrf.mxu0  ;;  %v1486_v8 = vmul.f32 0.1, %v1358_v29  ;;  %v1852_v23 = vmul.f32 0.1, %v1724_v54  ;;  %v1659_v24 = vmul.f32 %v4335_v41, %v4146_v36  ;;  %v1291_v28 = vmul.f32 %v4140_v32, %v4338_v45 }
 0x123   :  { %v4430_v47 = vpop.f32.mrf.mxu1  ;;  %vm1788_vm11 = vcmp.gt.f32.partialorder %v1724_v54, 0.0  ;;  %vm1425_vm12 = vcmp.gt.f32.partialorder %v4448_v3, 0.0  ;;  %v1489_v34 = vmul.f32 0.1, %v4448_v3  ;;  %v1853_v27 = vmul.f32 0.1, %v1725_v7 }
 0x124   :  { %v4435_v2 = vpop.f32.mrf.mxu0  ;;  %vm1791_vm13 = vcmp.gt.f32.partialorder %v1727_v33, 0.0  ;;  %v1855_v40 = vmul.f32 0.1, %v1727_v33  ;;  %v1487_v0 = vmul.f32 0.1, %v1359_v14  ;;  %vm1789_vm14 = vcmp.gt.f32.partialorder %v1725_v7, 0.0 }
 0x125   :  { %v4445_v50 = vpop.f32.mrf.mxu1  ;;  %vm1423_vm15 = vcmp.gt.f32.partialorder %v1359_v14, 0.0  ;;  %v4476_v41 = vadd.f32 %v4151_v38, %v1293_v17  ;;  %v1292_v45 = vmul.f32 %v4140_v32, %v4366_v63  ;;  %v1658_v20 = vmul.f32 %v4146_v36, %v4374_v58 }
 0x126   :  { %v4451_v1 = vpop.f32.mrf.mxu0  ;;  %v4485_v49 = vadd.f32 %v4158_v44, %v1659_v24  ;;  %v4488_v62 = vadd.f32 %v4151_v38, %v1291_v28  ;;  %v1657_v51 = vmul.f32 %v4146_v36, %v4340_v48  ;;  %v1294_v57 = vmul.f32 %v4352_v52, %v4140_v32 }
 0x127   :  { %v4457_v15 = vpop.f32.mrf.mxu1  ;;  %v1660_v63 = vmul.f32 %v4362_v60, %v4146_v36  ;;  %v1916_v58 = vsel %vm1788_vm11, %v1724_v54, %v1852_v23  ;;  %v1917_v11 = vsel %vm1789_vm14, %v1725_v7, %v1853_v27  ;;  %v1550_v61 = vsel %vm1422_vm10, %v1358_v29, %v1486_v8 }
 0x128   :  { %v4461_v55 = vpop.f32.mrf.mxu0  ;;  %v1970_v6 = vpack.c.bf16 %v1917_v11, %v1916_v58  ;;  %v1551_v53 = vsel %vm1423_vm15, %v1359_v14, %v1487_v0  ;;  %v1918_v48 = vsel %vm1790_vm9, %v1726_v19, %v1854_v56  ;;  %v1919_v4 = vsel %vm1791_vm13, %v1727_v33, %v1855_v40 }
 0x129   :  { %v4467_v31 = vpop.f32.mrf.mxu1  ;;  %v1363_v5 = vadd.f32 %v4151_v38, %v1292_v45  ;;  %v1729_v60 = vadd.f32 %v4158_v44, %v1658_v20  ;;  %v1604_v9 = vpack.c.bf16 %v1551_v53, %v1550_v61  ;;  %v1971_v54 = vpack.c.bf16 %v1919_v4, %v1918_v48 }
 0x12a   :  { %v4471_v37 = vpop.f32.mrf.mxu0  ;;  %vm1428_vm0 = vcmp.gt.f32.partialorder %v4476_v41, 0.0  ;;  %v1492_v29 = vmul.f32 0.1, %v4476_v41  ;;  %3558 = vmatprep.mubr.bf16.mxu0 %v1970_v6  ;;  %v1552_v19 = vsel %vm1424_vm8, %v4395_v21, %v1488_v39  ;;  %v1553_v12 = vsel %vm1425_vm12, %v4448_v3, %v1489_v34 }
 0x12b   :  { %v4473_v42 = vpop.f32.mrf.mxu1  ;;  %vm1794_vm1 = vcmp.gt.f32.partialorder %v4485_v49, 0.0  ;;  %v1728_v14 = vadd.f32 %v4158_v44, %v1657_v51  ;;  %v1297_v56 = vmul.f32 %v4381_v13, %v4140_v32  ;;  %3638 = vmatprep.mubr.bf16.mxu1 %v1604_v9  ;;  %3559 = vmatmul.mubr.bf16.gmra.mxu0 %v1971_v54  ;;  %v1605_v17 = vpack.c.bf16 %v1553_v12, %v1552_v19 }
 0x12c   :  { %v4482_v46 = vpop.f32.mrf.mxu0  ;;  %v1858_v21 = vmul.f32 0.1, %v4485_v49  ;;  %vm1426_vm2 = vcmp.gt.f32.partialorder %v4488_v62, 0.0  ;;  %v1365_v3 = vadd.f32 %v4151_v38, %v1294_v57  ;;  %v1731_v39 = vadd.f32 %v4158_v44, %v1660_v63 }
 0x12d   :  { %v4494_v59 = vpop.f32.mrf.mxu1  ;;  %v1490_v24 = vmul.f32 0.1, %v4488_v62  ;;  %v1491_v28 = vmul.f32 0.1, %v1363_v5  ;;  %v1857_v34 = vmul.f32 0.1, %v1729_v60  ;;  %3639 = vmatmul.mubr.bf16.gmra.mxu1 %v1605_v17  ;;  %v1663_v27 = vmul.f32 %v4384_v16, %v4146_v36 }
 0x12e   :  { %v4500_v43 = vpop.f32.mrf.mxu0  ;;  %vm1427_vm3 = vcmp.gt.f32.partialorder %v1363_v5, 0.0  ;;  %vm1793_vm4 = vcmp.gt.f32.partialorder %v1729_v60, 0.0  ;;  %v1295_v40 = vmul.f32 %v4140_v32, %v4389_v18  ;;  %v1856_v45 = vmul.f32 0.1, %v1728_v14 }
 0x12f   :  { %v4505_v52 = vpop.f32.mrf.mxu1  ;;  %v4543_v20 = vadd.f32 %v4151_v38, %v1297_v56  ;;  %v1661_v51 = vmul.f32 %v4146_v36, %v4397_v22  ;;  %v1296_v57 = vmul.f32 %v4140_v32, %v4411_v26  ;;  %vm1792_vm5 = vcmp.gt.f32.partialorder %v1728_v14, 0.0 }
 0x130   :  { %v4509_v7 = vpop.f32.mrf.mxu0  ;;  %vm1429_vm6 = vcmp.gt.f32.partialorder %v1365_v3, 0.0  ;;  %v1493_v16 = vmul.f32 0.1, %v1365_v3  ;;  %v1859_v58 = vmul.f32 0.1, %v1731_v39  ;;  %vm1795_vm7 = vcmp.gt.f32.partialorder %v1731_v39, 0.0 }
 0x131   :  { %v4519_v33 = vpop.f32.mrf.mxu1  ;;  %v1662_v18 = vmul.f32 %v4146_v36, %v4415_v25  ;;  %v1921_v11 = vsel %vm1793_vm4, %v1729_v60, %v1857_v34  ;;  %v1555_v61 = vsel %vm1427_vm3, %v1363_v5, %v1491_v28  ;;  %v4557_v22 = vadd.f32 %v4158_v44, %v1663_v27 }
 0x132   :  { %v4525_v8 = vpop.f32.mrf.mxu0  ;;  %v1366_v26 = vadd.f32 %v4151_v38, %v1295_v40  ;;  %v1298_v53 = vmul.f32 %v4402_v30, %v4140_v32  ;;  %v1664_v48 = vmul.f32 %v4405_v35, %v4146_v36  ;;  %v1732_v4 = vadd.f32 %v4158_v44, %v1661_v51 }
 0x133   :  { %v4531_v23 = vpop.f32.mrf.mxu1  ;;  %v1367_v25 = vadd.f32 %v4151_v38, %v1296_v57  ;;  %v1920_v60 = vsel %vm1792_vm5, %v1728_v14, %v1856_v45  ;;  %v1554_v5 = vsel %vm1426_vm2, %v4488_v62, %v1490_v24  ;;  %v1922_v30 = vsel %vm1794_vm1, %v4485_v49, %v1858_v21 }
 0x134   :  { %v4534_v13 = vpop.f32.mrf.mxu0  ;;  %v1972_v54 = vpack.c.bf16 %v1921_v11, %v1920_v60  ;;  %v1606_v19 = vpack.c.bf16 %v1555_v61, %v1554_v5  ;;  %v1923_v12 = vsel %vm1795_vm7, %v1731_v39, %v1859_v58  ;;  %v1733_v35 = vadd.f32 %v4158_v44, %v1662_v18 }
 0x135   :  { %v4540_v0 = vpop.f32.mrf.mxu1  ;;  %v1973_v56 = vpack.c.bf16 %v1923_v12, %v1922_v30  ;;  %v1556_v14 = vsel %vm1428_vm0, %v4476_v41, %v1492_v29  ;;  %v1557_v17 = vsel %vm1429_vm6, %v1365_v3, %v1493_v16  ;;  %vm1432_vm8 = vcmp.gt.f32.partialorder %v4543_v20, 0.0 }
 0x136   :  { %v4549_v63 = vpop.f32.mrf.mxu0  ;;  %v1496_v24 = vmul.f32 0.1, %v4543_v20  ;;  %3562 = vmatprep.mubr.bf16.mxu0 %v1972_v54  ;;  %3642 = vmatprep.mubr.bf16.mxu1 %v1606_v19  ;;  %v1607_v49 = vpack.c.bf16 %v1557_v17, %v1556_v14  ;;  %vm1798_vm9 = vcmp.gt.f32.partialorder %v4557_v22, 0.0  ;;  %v1862_v21 = vmul.f32 0.1, %v4557_v22 }
 0x137   :  { %v4554_v6 = vpop.f32.mrf.mxu1  ;;  %v1369_v39 = vadd.f32 %v4151_v38, %v1298_v53  ;;  %v1735_v28 = vadd.f32 %v4158_v44, %v1664_v48  ;;  %3563 = vmatmul.mubr.bf16.gmra.mxu0 %v1973_v56  ;;  %vm1430_vm10 = vcmp.gt.f32.partialorder %v1366_v26, 0.0  ;;  %v1494_v29 = vmul.f32 0.1, %v1366_v26 }
 0x138   :  { %v4569_v9 = vpop.f32.mrf.mxu0  ;;  %v1301_v3 = vmul.f32 %v4422_v10, %v4140_v32  ;;  %v1667_v34 = vmul.f32 %v4430_v47, %v4146_v36  ;;  %3643 = vmatmul.mubr.bf16.gmra.mxu1 %v1607_v49  ;;  %vm1796_vm11 = vcmp.gt.f32.partialorder %v1732_v4, 0.0  ;;  %v1495_v27 = vmul.f32 0.1, %v1367_v25 }
 0x139   :  { %v4580_v62 = vpop.f32.mrf.mxu1  ;;  %v1861_v40 = vmul.f32 0.1, %v1733_v35  ;;  %v1299_v45 = vmul.f32 %v4140_v32, %v4435_v2  ;;  %v1860_v57 = vmul.f32 0.1, %v1732_v4  ;;  %vm1431_vm12 = vcmp.gt.f32.partialorder %v1367_v25, 0.0 }
 0x13a   :  { %v4588_v41 = vpop.f32.mrf.mxu0  ;;  %vm1797_vm13 = vcmp.gt.f32.partialorder %v1733_v35, 0.0  ;;  %v1665_v16 = vmul.f32 %v4146_v36, %v4445_v50  ;;  %vm1433_vm14 = vcmp.gt.f32.partialorder %v1369_v39, 0.0  ;;  %v1497_v10 = vmul.f32 0.1, %v1369_v39 }
 0x13b   :  { %v4596_v51 = vpop.f32.mrf.mxu1  ;;  %v1302_v47 = vmul.f32 %v4451_v1, %v4140_v32  ;;  %v1666_v58 = vmul.f32 %v4146_v36, %v4467_v31  ;;  %vm1799_vm15 = vcmp.gt.f32.partialorder %v1735_v28, 0.0  ;;  %v1863_v2 = vmul.f32 0.1, %v1735_v28 }
 0x13c   :  { %v4604_v18 = vpop.f32.mrf.mxu0  ;;  %v4607_v11 = vadd.f32 %v4151_v38, %v1301_v3  ;;  %v4610_v61 = vadd.f32 %v4158_v44, %v1667_v34  ;;  %v4613_v50 = vadd.f32 %v4151_v38, %v1299_v45  ;;  %v1300_v53 = vmul.f32 %v4140_v32, %v4461_v55 }
 0x13d   :  { %v1925_v1 = vsel %vm1797_vm13, %v1733_v35, %v1861_v40  ;;  %v1559_v48 = vsel %vm1431_vm12, %v1367_v25, %v1495_v27  ;;  %v4617_v60 = vpop.f32.mrf.mxu1  ;;  %v1736_v31 = vadd.f32 %v4158_v44, %v1665_v16  ;;  %v1668_v5 = vmul.f32 %v4457_v15, %v4146_v36  ;;  %v4677_v16 = vld [vmem:[%s5426_s7] ss:$0 sm:$0xff] }
 0x13e   :  { %v1924_v54 = vsel %vm1796_vm11, %v1732_v4, %v1860_v57  ;;  %v1558_v19 = vsel %vm1430_vm10, %v1366_v26, %v1494_v29  ;;  %v4625_v30 = vadd.f32 %v4151_v38, %v1302_v47  ;;  %v1737_v12 = vadd.f32 %v4158_v44, %v1666_v58  ;;  %v4628_v35 = vpop.f32.mrf.mxu0 }
 0x13f   :  { %v1974_v56 = vpack.c.bf16 %v1925_v1, %v1924_v54  ;;  %v1608_v55 = vpack.c.bf16 %v1559_v48, %v1558_v19  ;;  %v1926_v25 = vsel %vm1798_vm9, %v4557_v22, %v1862_v21  ;;  %v1927_v14 = vsel %vm1799_vm15, %v1735_v28, %v1863_v2  ;;  %v4640_v29 = vpop.f32.mrf.mxu1 }
 0x140   :  { %v1560_v15 = vsel %vm1432_vm8, %v4543_v20, %v1496_v24  ;;  %v1561_v26 = vsel %vm1433_vm14, %v1369_v39, %v1497_v10  ;;  %vm1436_vm0 = vcmp.gt.f32.partialorder %v4607_v11, 0.0  ;;  %v1371_v4 = vadd.f32 %v4151_v38, %v1300_v53  ;;  %v4653_v3 = vpop.f32.mrf.mxu0 }
 0x141   :  { %3566 = vmatprep.mubr.bf16.mxu0 %v1974_v56  ;;  %3646 = vmatprep.mubr.bf16.mxu1 %v1608_v55  ;;  %v1975_v17 = vpack.c.bf16 %v1927_v14, %v1926_v25  ;;  %v1609_v49 = vpack.c.bf16 %v1561_v26, %v1560_v15  ;;  %v1500_v22 = vmul.f32 0.1, %v4607_v11  ;;  %vm1802_vm1 = vcmp.gt.f32.partialorder %v4610_v61, 0.0  ;;  %v4658_v45 = vpop.f32.mrf.mxu1 }
 0x142   :  { %v1866_v21 = vmul.f32 0.1, %v4610_v61  ;;  %v1739_v20 = vadd.f32 %v4158_v44, %v1668_v5  ;;  %v1498_v24 = vmul.f32 0.1, %v4613_v50  ;;  %v1305_v39 = vmul.f32 %v4471_v37, %v4140_v32  ;;  %v4688_v58 = vpop.f32.mrf.mxu0 }
 0x143   :  { %v1671_v38 = vmul.f32 %v4473_v42, %v4146_v36  ;;  %3567 = vmatmul.mubr.bf16.gmra.mxu0 %v1975_v17  ;;  %3647 = vmatmul.mubr.bf16.gmra.mxu1 %v1609_v49  ;;  %v1303_v28 = vmul.f32 %v4140_v32, %v4482_v46  ;;  %vm1434_vm2 = vcmp.gt.f32.partialorder %v4613_v50, 0.0  ;;  %vm1800_vm3 = vcmp.gt.f32.partialorder %v1736_v31, 0.0  ;;  %v4663_v32 = vld [vmem:[%s5425_s8] ss:$0 sm:$0xff]  ;;  %v4702_v19 = vpop.f32.mrf.mxu1 }
 0x144   :  { %v1864_v34 = vmul.f32 0.1, %v1736_v31  ;;  %v1865_v27 = vmul.f32 0.1, %v1737_v12  ;;  %vm1437_vm4 = vcmp.gt.f32.partialorder %v4625_v30, 0.0  ;;  %vm1801_vm5 = vcmp.gt.f32.partialorder %v1737_v12, 0.0  ;;  %v4725_v14 = vpop.f32.mrf.mxu0 }
 0x145   :  { %v1501_v40 = vmul.f32 0.1, %v4625_v30  ;;  %v1499_v37 = vmul.f32 0.1, %v1371_v4  ;;  %vm1803_vm6 = vcmp.gt.f32.partialorder %v1739_v20, 0.0  ;;  %vm1435_vm7 = vcmp.gt.f32.partialorder %v1371_v4, 0.0 }
 0x146   :  { %v1669_v36 = vmul.f32 %v4663_v32, %v4494_v59  ;;  %v4670_v42 = vld [vmem:[%s5424_s6] ss:$0 sm:$0xff]  ;;  %v1867_v57 = vmul.f32 0.1, %v1739_v20  ;;  %v4680_v10 = vadd.f32 %v4677_v16, %v1305_v39  ;;  %v4683_v47 = vadd.f32 %v4158_v44, %v1671_v38  ;;  %v4746_v39 = vpop.f32.mrf.mxu0 }
 0x147   :  { %v1306_v46 = vmul.f32 %v4670_v42, %v4500_v43  ;;  %v4686_v59 = vadd.f32 %v4677_v16, %v1303_v28  ;;  %v1672_v43 = vmul.f32 %v4663_v32, %v4505_v52  ;;  %v1670_v2 = vmul.f32 %v4663_v32, %v4519_v33  ;;  %v4707_v52 = vld [vmem:[%s5427_s9] ss:$0 sm:$0xff] }
 0x148   :  { %v1928_v53 = vsel %vm1800_vm3, %v1736_v31, %v1864_v34  ;;  %v1929_v1 = vsel %vm1801_vm5, %v1737_v12, %v1865_v27  ;;  %v1304_v48 = vmul.f32 %v4670_v42, %v4509_v7  ;;  %v1562_v5 = vsel %vm1434_vm2, %v4613_v50, %v1498_v24 }
 0x149   :  { %v1976_v44 = vpack.c.bf16 %v1929_v1, %v1928_v53  ;;  %v1563_v54 = vsel %vm1435_vm7, %v1371_v4, %v1499_v37  ;;  %v1740_v33 = vadd.f32 %v4707_v52, %v1669_v36  ;;  %v4711_v31 = vadd.f32 %v4677_v16, %v1306_v46  ;;  %v4772_v53 = vpop.f32.mrf.mxu0 }
 0x14a   :  { %v1309_v7 = vmul.f32 %v4670_v42, %v4525_v8  ;;  %v1610_v12 = vpack.c.bf16 %v1563_v54, %v1562_v5  ;;  %v1930_v50 = vsel %vm1802_vm1, %v4610_v61, %v1866_v21  ;;  %v1931_v56 = vsel %vm1803_vm6, %v1739_v20, %v1867_v57 }
 0x14b   :  { %3570 = vmatprep.mubr.bf16.mxu0 %v1976_v44  ;;  %v1564_v55 = vsel %vm1436_vm0, %v4607_v11, %v1500_v22  ;;  %v1565_v25 = vsel %vm1437_vm4, %v4625_v30, %v1501_v40  ;;  %vm1440_vm8 = vcmp.gt.f32.partialorder %v4680_v10, 0.0  ;;  %v1743_v8 = vadd.f32 %v4707_v52, %v1672_v43  ;;  %v4734_v30 = vpop.f32.mrf.mxu1 }
 0x14c   :  { %v1741_v15 = vadd.f32 %v4707_v52, %v1670_v2  ;;  %3650 = vmatprep.mubr.bf16.mxu1 %v1610_v12  ;;  %v1977_v61 = vpack.c.bf16 %v1931_v56, %v1930_v50  ;;  %v1611_v26 = vpack.c.bf16 %v1565_v25, %v1564_v55  ;;  %v1504_v4 = vmul.f32 0.1, %v4680_v10  ;;  %v4798_v56 = vpop.f32.mrf.mxu0 }
 0x14d   :  { %vm1806_vm9 = vcmp.gt.f32.partialorder %v4683_v47, 0.0  ;;  %v1870_v11 = vmul.f32 0.1, %v4683_v47  ;;  %v1375_v17 = vadd.f32 %v4677_v16, %v1304_v48  ;;  %vm1438_vm10 = vcmp.gt.f32.partialorder %v4686_v59, 0.0  ;;  %v4751_v40 = vpop.f32.mrf.mxu1 }
 0x14e   :  { %v1502_v49 = vmul.f32 0.1, %v4686_v59  ;;  %v4739_v22 = vadd.f32 %v4677_v16, %v1309_v7  ;;  %v1675_v21 = vmul.f32 %v4663_v32, %v4531_v23  ;;  %3571 = vmatmul.mubr.bf16.gmra.mxu0 %v1977_v61  ;;  %3651 = vmatmul.mubr.bf16.gmra.mxu1 %v1611_v26  ;;  %vm1804_vm11 = vcmp.gt.f32.partialorder %v1740_v33, 0.0 }
 0x14f   :  { %v1868_v20 = vmul.f32 0.1, %v1740_v33  ;;  %vm1441_vm12 = vcmp.gt.f32.partialorder %v4711_v31, 0.0  ;;  %v1307_v24 = vmul.f32 %v4670_v42, %v4534_v13  ;;  %v1505_v38 = vmul.f32 0.1, %v4711_v31  ;;  %v4784_v5 = vpop.f32.mrf.mxu1 }
 0x150   :  { %vm1807_vm13 = vcmp.gt.f32.partialorder %v1743_v8, 0.0  ;;  %v1869_v28 = vmul.f32 0.1, %v1741_v15  ;;  %v1673_v34 = vmul.f32 %v4663_v32, %v4540_v0  ;;  %v1871_v27 = vmul.f32 0.1, %v1743_v8 }
 0x151   :  { %vm1439_vm14 = vcmp.gt.f32.partialorder %v1375_v17, 0.0  ;;  %v1503_v23 = vmul.f32 0.1, %v1375_v17  ;;  %vm1805_vm15 = vcmp.gt.f32.partialorder %v1741_v15, 0.0  ;;  %v4754_v37 = vmul.f32 0.1, %v4739_v22  ;;  %v4810_v61 = vpop.f32.mrf.mxu1 }
 0x152   :  { %v4757_v13 = vadd.f32 %v4707_v52, %v1675_v21  ;;  %v1308_v36 = vmul.f32 %v4670_v42, %v4569_v9  ;;  %v1674_v46 = vmul.f32 %v4663_v32, %v4580_v62  ;;  %v4764_v0 = vadd.f32 %v4677_v16, %v1307_v24  ;;  %v4819_v21 = vpop.f32.mrf.mxu0 }
 0x153   :  { %v1310_v57 = vmul.f32 %v4670_v42, %v4549_v63  ;;  %v1676_v43 = vmul.f32 %v4663_v32, %v4554_v6  ;;  %v1313_v2 = vmul.f32 %v4670_v42, %v4588_v41  ;;  %v1744_v1 = vadd.f32 %v4707_v52, %v1673_v34 }
 0x154   :  { %v1932_v9 = vsel %vm1804_vm11, %v1740_v33, %v1868_v20  ;;  %v1933_v48 = vsel %vm1805_vm15, %v1741_v15, %v1869_v28  ;;  %v1566_v62 = vsel %vm1438_vm10, %v4686_v59, %v1502_v49  ;;  %v1567_v63 = vsel %vm1439_vm14, %v1375_v17, %v1503_v23 }
 0x155   :  { %v1978_v44 = vpack.c.bf16 %v1933_v48, %v1932_v9  ;;  %v1934_v6 = vsel %vm1806_vm9, %v4683_v47, %v1870_v11  ;;  %v1935_v41 = vsel %vm1807_vm13, %v1743_v8, %v1871_v27  ;;  %v1379_v54 = vadd.f32 %v4677_v16, %v1308_v36 }
 0x156   :  { %v1745_v33 = vadd.f32 %v4707_v52, %v1674_v46  ;;  %v1612_v7 = vpack.c.bf16 %v1567_v63, %v1566_v62  ;;  %v1979_v12 = vpack.c.bf16 %v1935_v41, %v1934_v6  ;;  %vm1444_vm0 = vcmp.gt.f32.partialorder %v4739_v22, 0.0 }
 0x157   :  { %vm1810_vm1 = vcmp.gt.f32.partialorder %v4757_v13, 0.0  ;;  %v1679_v59 = vmul.f32 %v4663_v32, %v4596_v51  ;;  %3574 = vmatprep.mubr.bf16.mxu0 %v1978_v44  ;;  %v1568_v47 = vsel %vm1440_vm8, %v4680_v10, %v1504_v4  ;;  %v1569_v50 = vsel %vm1441_vm12, %v4711_v31, %v1505_v38 }
 0x158   :  { %v1874_v55 = vmul.f32 0.1, %v4757_v13  ;;  %vm1442_vm2 = vcmp.gt.f32.partialorder %v4764_v0, 0.0  ;;  %v1381_v25 = vadd.f32 %v4677_v16, %v1310_v57  ;;  %3654 = vmatprep.mubr.bf16.mxu1 %v1612_v7  ;;  %3575 = vmatmul.mubr.bf16.gmra.mxu0 %v1979_v12  ;;  %v1613_v51 = vpack.c.bf16 %v1569_v50, %v1568_v47 }
 0x159   :  { %v1506_v8 = vmul.f32 0.1, %v4764_v0  ;;  %v1747_v15 = vadd.f32 %v4707_v52, %v1676_v43  ;;  %v4806_v10 = vadd.f32 %v4677_v16, %v1313_v2  ;;  %v1311_v31 = vmul.f32 %v4670_v42, %v4604_v18 }
 0x15a   :  { %vm1808_vm3 = vcmp.gt.f32.partialorder %v1744_v1, 0.0  ;;  %vm1443_vm4 = vcmp.gt.f32.partialorder %v1379_v54, 0.0  ;;  %v1507_v26 = vmul.f32 0.1, %v1379_v54  ;;  %v1873_v4 = vmul.f32 0.1, %v1745_v33  ;;  %3655 = vmatmul.mubr.bf16.gmra.mxu1 %v1613_v51 }
 0x15b   :  { %vm1809_vm5 = vcmp.gt.f32.partialorder %v1745_v33, 0.0  ;;  %v4813_v11 = vadd.f32 %v4707_v52, %v1679_v59  ;;  %v1677_v17 = vmul.f32 %v4663_v32, %v4617_v60  ;;  %v1314_v49 = vmul.f32 %v4670_v42, %v4628_v35  ;;  %v4829_v60 = vpop.f32.mrf.mxu1 }
 0x15c   :  { %v1872_v18 = vmul.f32 0.1, %v1744_v1  ;;  %vm1445_vm6 = vcmp.gt.f32.partialorder %v1381_v25, 0.0  ;;  %v1509_v20 = vmul.f32 0.1, %v1381_v25  ;;  %v1680_v24 = vmul.f32 %v4663_v32, %v4640_v29 }
 0x15d   :  { %vm1811_vm7 = vcmp.gt.f32.partialorder %v1747_v15, 0.0  ;;  %v1875_v38 = vmul.f32 0.1, %v1747_v15  ;;  %v4824_v28 = vmul.f32 0.1, %v4806_v10  ;;  %v4827_v34 = vadd.f32 %v4677_v16, %v1311_v31  ;;  %v4863_v6 = vpop.f32.mrf.mxu1 }
 0x15e   :  { %v1317_v35 = vmul.f32 %v4670_v42, %v4688_v58  ;;  %v1683_v27 = vmul.f32 %v4663_v32, %v4702_v19  ;;  %v1937_v23 = vsel %vm1809_vm5, %v1745_v33, %v1873_v4  ;;  %v1571_v29 = vsel %vm1443_vm4, %v1379_v54, %v1507_v26  ;;  %v4848_v58 = vpop.f32.mrf.mxu0 }
 0x15f   :  { %v4838_v36 = vmul.f32 0.1, %v4813_v11  ;;  %v4841_v46 = vadd.f32 %v4707_v52, %v1677_v17  ;;  %v4844_v57 = vadd.f32 %v4677_v16, %v1314_v49  ;;  %v1312_v43 = vmul.f32 %v4670_v42, %v4653_v3 }
 0x160   :  { %v4851_v19 = vadd.f32 %v4707_v52, %v1680_v24  ;;  %v1678_v2 = vmul.f32 %v4663_v32, %v4658_v45  ;;  %v1936_v9 = vsel %vm1808_vm3, %v1744_v1, %v1872_v18  ;;  %v1570_v48 = vsel %vm1442_vm2, %v4764_v0, %v1506_v8  ;;  %v4880_v12 = vpop.f32.mrf.mxu0 }
 0x161   :  { %v1980_v62 = vpack.c.bf16 %v1937_v23, %v1936_v9  ;;  %v1614_v44 = vpack.c.bf16 %v1571_v29, %v1570_v48  ;;  %v1938_v3 = vsel %vm1810_vm1, %v4757_v13, %v1874_v55  ;;  %v1939_v63 = vsel %vm1811_vm7, %v1747_v15, %v1875_v38 }
 0x162   :  { %vm1446_vm8 = vcmp.gt.f32.partialorder %v4827_v34, 0.0  ;;  %v1388_v45 = vadd.f32 %v4677_v16, %v1317_v35  ;;  %v1754_v1 = vadd.f32 %v4707_v52, %v1683_v27  ;;  %v1981_v41 = vpack.c.bf16 %v1939_v63, %v1938_v3  ;;  %v4902_v31 = vpop.f32.mrf.mxu0 }
 0x163   :  { %v1572_v0 = vsel %vm1444_vm0, %v4739_v22, %v4754_v37  ;;  %vm1448_vm9 = vcmp.gt.f32.partialorder %v4806_v10, 0.0  ;;  %vm1814_vm10 = vcmp.gt.f32.partialorder %v4813_v11, 0.0  ;;  %v1510_v13 = vmul.f32 0.1, %v4827_v34  ;;  %3578 = vmatprep.mubr.bf16.mxu0 %v1980_v62  ;;  %3658 = vmatprep.mubr.bf16.mxu1 %v1614_v44 }
 0x164   :  { %v1573_v54 = vsel %vm1445_vm6, %v1381_v25, %v1509_v20  ;;  %v1315_v33 = vmul.f32 %v4670_v42, %v4725_v14  ;;  %v1681_v7 = vmul.f32 %v4663_v32, %v4734_v30  ;;  %vm1812_vm11 = vcmp.gt.f32.partialorder %v4841_v46, 0.0  ;;  %3579 = vmatmul.mubr.bf16.gmra.mxu0 %v1981_v41  ;;  %v4890_v30 = vpop.f32.mrf.mxu1  ;;  %v4931_v23 = vpop.f32.mrf.mxu0 }
 0x165   :  { %v1749_v22 = vadd.f32 %v4707_v52, %v1678_v2  ;;  %v1615_v37 = vpack.c.bf16 %v1573_v54, %v1572_v0  ;;  %v1318_v59 = vmul.f32 %v4670_v42, %v4746_v39  ;;  %v1876_v47 = vmul.f32 0.1, %v4841_v46 }
 0x166   :  { %vm1449_vm12 = vcmp.gt.f32.partialorder %v4844_v57, 0.0  ;;  %v1513_v14 = vmul.f32 0.1, %v4844_v57  ;;  %v1383_v50 = vadd.f32 %v4677_v16, %v1312_v43  ;;  %vm1452_vm13 = vcmp.gt.f32.partialorder %v1388_v45, 0.0  ;;  %v3516_v20 = vpop.f32.mrf.mxu1 }
 0x167   :  { %v1516_v55 = vmul.f32 0.1, %v1388_v45  ;;  %vm1818_vm14 = vcmp.gt.f32.partialorder %v1754_v1, 0.0  ;;  %v1882_v25 = vmul.f32 0.1, %v1754_v1  ;;  %3659 = vmatmul.mubr.bf16.gmra.mxu1 %v1615_v37  ;;  %v4893_v51 = vadd.f32 %v4677_v16, %v1315_v33 }
 0x168   :  { %v4896_v39 = vadd.f32 %v4707_v52, %v1681_v7  ;;  %v1684_v8 = vmul.f32 %v4663_v32, %v4751_v40  ;;  %v1316_v15 = vmul.f32 %v4670_v42, %v4772_v53  ;;  %vm1815_vm15 = vcmp.gt.f32.partialorder %v4851_v19, 0.0  ;;  %v4944_v44 = vpop.f32.mrf.mxu1 }
 0x169   :  { %v1877_v26 = vmul.f32 0.1, %v1749_v22  ;;  %v4906_v4 = vadd.f32 %v4677_v16, %v1318_v59  ;;  %v1321_v17 = vmul.f32 %v4670_v42, %v4798_v56  ;;  %v1879_v49 = vmul.f32 0.1, %v4851_v19 }
 0x16a   :  { %v1511_v18 = vmul.f32 0.1, %v1383_v50  ;;  %vm1813_vm0 = vcmp.gt.f32.partialorder %v1749_v22, 0.0  ;;  %v1687_v40 = vmul.f32 %v4663_v32, %v4810_v61  ;;  %vm1447_vm1 = vcmp.gt.f32.partialorder %v1383_v50, 0.0 }
 0x16b   :  { %v4914_v53 = vsel %vm1452_vm13, %v1388_v45, %v1516_v55  ;;  %v4917_v24 = vsel %vm1818_vm14, %v1754_v1, %v1882_v25  ;;  %v1682_v38 = vmul.f32 %v4663_v32, %v4784_v5  ;;  %v4922_v56 = vmul.f32 0.1, %v4893_v51 }
 0x16c   :  { %v4925_v35 = vmul.f32 0.1, %v4896_v39  ;;  %v1755_v27 = vadd.f32 %v4707_v52, %v1684_v8  ;;  %v4929_v61 = vadd.f32 %v4677_v16, %v1316_v15  ;;  %vm1453_vm2 = vcmp.gt.f32.partialorder %v4906_v4, 0.0 }
 0x16d   :  { %v1392_v29 = vadd.f32 %v4677_v16, %v1321_v17  ;;  %v1940_v5 = vsel %vm1812_vm11, %v4841_v46, %v1876_v47  ;;  %v1941_v43 = vsel %vm1813_vm0, %v1749_v22, %v1877_v26  ;;  %vm1816_vm3 = vcmp.gt.f32.partialorder %v4896_v39, 0.0 }
 0x16e   :  { %v1758_v2 = vadd.f32 %v4707_v52, %v1687_v40  ;;  %v1982_v9 = vpack.c.bf16 %v1941_v43, %v1940_v5  ;;  %v1574_v48 = vsel %vm1446_vm8, %v4827_v34, %v1510_v13  ;;  %v1575_v62 = vsel %vm1447_vm1, %v1383_v50, %v1511_v18 }
 0x16f   :  { %vm1450_vm4 = vcmp.gt.f32.partialorder %v4893_v51, 0.0  ;;  %v1616_v3 = vpack.c.bf16 %v1575_v62, %v1574_v48  ;;  %v1942_v46 = vsel %vm1814_vm10, %v4813_v11, %v4838_v36  ;;  %v1943_v63 = vsel %vm1815_vm15, %v4851_v19, %v1879_v49  ;;  %v3437_v36 = vpop.f32.mrf.mxu0 }
 0x170   :  { %v1576_v34 = vsel %vm1448_vm9, %v4806_v10, %v4824_v28  ;;  %3582 = vmatprep.mubr.bf16.mxu0 %v1982_v9  ;;  %v1983_v45 = vpack.c.bf16 %v1943_v63, %v1942_v46  ;;  %v1577_v1 = vsel %vm1449_vm12, %v4844_v57, %v1513_v14  ;;  %v1319_v41 = vmul.f32 %v4670_v42, %v4819_v21  ;;  %v3517_v57 = vpop.f32.mrf.mxu1 }
 0x171   :  { %v1685_v11 = vmul.f32 %v4663_v32, %v4829_v60  ;;  %v1517_v19 = vmul.f32 0.1, %v4906_v4  ;;  %v1753_v0 = vadd.f32 %v4707_v52, %v1682_v38  ;;  %3662 = vmatprep.mubr.bf16.mxu1 %v1616_v3  ;;  %v1617_v13 = vpack.c.bf16 %v1577_v1, %v1576_v34  ;;  %v687_v37 = vpop.f32.mrf.mxu0 }
 0x172   :  { %v1322_v10 = vmul.f32 %v4670_v42, %v4848_v58  ;;  %vm1819_vm5 = vcmp.gt.f32.partialorder %v1755_v27, 0.0  ;;  %v1883_v28 = vmul.f32 0.1, %v1755_v27  ;;  %vm1451_vm6 = vcmp.gt.f32.partialorder %v4929_v61, 0.0  ;;  %3583 = vmatmul.mubr.bf16.gmra.mxu0 %v1983_v45  ;;  %v1232_v8 = vpop.f32.mrf.mxu1 }
 0x173   :  { %v1688_v21 = vmul.f32 %v4663_v32, %v4863_v6  ;;  %vm1456_vm7 = vcmp.gt.f32.partialorder %v1392_v29, 0.0  ;;  %v1520_v60 = vmul.f32 0.1, %v1392_v29  ;;  %v1886_v54 = vmul.f32 0.1, %v1758_v2  ;;  %3663 = vmatmul.mubr.bf16.gmra.mxu1 %v1617_v13  ;;  %v3440_v18 = vpop.f32.mrf.mxu0 }
 0x174   :  { %v4973_v33 = vadd.f32 %v4677_v16, %v1319_v41  ;;  %vm1822_vm8 = vcmp.gt.f32.partialorder %v1758_v2, 0.0  ;;  %v4976_v7 = vadd.f32 %v4707_v52, %v1685_v11  ;;  %v1393_v58 = vadd.f32 %v4677_v16, %v1322_v10  ;;  %v3520_v43 = vpop.f32.mrf.mxu1 }
 0x175   :  { %v1320_v22 = vmul.f32 %v4670_v42, %v4880_v12  ;;  %v1515_v6 = vmul.f32 0.1, %v4929_v61  ;;  %v1881_v59 = vmul.f32 0.1, %v1753_v0  ;;  %v1325_v47 = vmul.f32 %v4670_v42, %v4902_v31  ;;  %v700_v3 = vpop.f32.mrf.mxu0 }
 0x176   :  { %v1691_v14 = vmul.f32 %v4663_v32, %v3516_v20  ;;  %v1581_v50 = vsel %vm1453_vm2, %v4906_v4, %v1517_v19  ;;  %v1947_v55 = vsel %vm1819_vm5, %v1755_v27, %v1883_v28  ;;  %vm1817_vm9 = vcmp.gt.f32.partialorder %v1753_v0, 0.0 }
 0x177   :  { %v1759_v25 = vadd.f32 %v4707_v52, %v1688_v21  ;;  %v4991_v12 = vsel %vm1456_vm7, %v1392_v29, %v1520_v60  ;;  %v4993_v15 = vsel %vm1822_vm8, %v1758_v2, %v1886_v54  ;;  %v4996_v26 = vmul.f32 0.1, %v4973_v33 }
 0x178   :  { %v1686_v31 = vmul.f32 %v4663_v32, %v4890_v30  ;;  %v1884_v17 = vmul.f32 0.1, %v4976_v7  ;;  %vm1457_vm10 = vcmp.gt.f32.partialorder %v1393_v58, 0.0  ;;  %v1521_v4 = vmul.f32 0.1, %v1393_v58 }
 0x179   :  { %v1391_v49 = vadd.f32 %v4677_v16, %v1320_v22  ;;  %vm1454_vm11 = vcmp.gt.f32.partialorder %v4973_v33, 0.0  ;;  %vm1820_vm12 = vcmp.gt.f32.partialorder %v4976_v7, 0.0  ;;  %v1396_v40 = vadd.f32 %v4677_v16, %v1325_v47 }
 0x17a   :  { %v1762_v20 = vadd.f32 %v4707_v52, %v1691_v14  ;;  %v1944_v30 = vsel %vm1816_vm3, %v4896_v39, %v4925_v35  ;;  %v1945_v38 = vsel %vm1817_vm9, %v1753_v0, %v1881_v59  ;;  %vm1823_vm13 = vcmp.gt.f32.partialorder %v1759_v25, 0.0  ;;  %v3441_v0 = vpop.f32.mrf.mxu0 }
 0x17b   :  { %v1984_v27 = vpack.c.bf16 %v1945_v38, %v1944_v30  ;;  %v1578_v29 = vsel %vm1450_vm4, %v4893_v51, %v4922_v56  ;;  %v1579_v5 = vsel %vm1451_vm6, %v4929_v61, %v1515_v6  ;;  %v1887_v2 = vmul.f32 0.1, %v1759_v25 }
 0x17c   :  { %v1618_v9 = vpack.c.bf16 %v1579_v5, %v1578_v29  ;;  %v1985_v48 = vpack.c.bf16 %v1947_v55, %v4917_v24  ;;  %v1323_v39 = vmul.f32 %v4670_v42, %v4931_v23  ;;  %v1757_v35 = vadd.f32 %v4707_v52, %v1686_v31  ;;  %v703_v14 = vpop.f32.mrf.mxu0 }
 0x17d   :  { %3586 = vmatprep.mubr.bf16.mxu0 %v1984_v27  ;;  %v1619_v62 = vpack.c.bf16 %v1581_v50, %v4914_v53  ;;  %v1689_v51 = vmul.f32 %v4663_v32, %v4944_v44  ;;  %v1326_v56 = vmul.f32 %v4670_v42, %v3437_v36  ;;  %vm1460_vm14 = vcmp.gt.f32.partialorder %v1396_v40, 0.0  ;;  %v1245_v44 = vpop.f32.mrf.mxu1 }
 0x17e   :  { %v1524_v61 = vmul.f32 0.1, %v1396_v40  ;;  %v1890_v46 = vmul.f32 0.1, %v1762_v20  ;;  %3666 = vmatprep.mubr.bf16.mxu1 %v1618_v9  ;;  %3587 = vmatmul.mubr.bf16.gmra.mxu0 %v1985_v48  ;;  %v1692_v24 = vmul.f32 %v4663_v32, %v3517_v57  ;;  %vm1826_vm15 = vcmp.gt.f32.partialorder %v1762_v20, 0.0 }
 0x17f   :  { %3667 = vmatmul.mubr.bf16.gmra.mxu1 %v1619_v62  ;;  %v5028_v23 = vadd.f32 %v4677_v16, %v1323_v39  ;;  %v1324_v53 = vmul.f32 %v4670_v42, %v687_v37  ;;  %v1690_v63 = vmul.f32 %v4663_v32, %v1232_v8  ;;  %vm1455_vm0 = vcmp.gt.f32.partialorder %v1391_v49, 0.0  ;;  %v3521_v54 = vpop.f32.mrf.mxu1 }
 0x180   :  { %v5033_v34 = vadd.f32 %v4707_v52, %v1689_v51  ;;  %v1397_v45 = vadd.f32 %v4677_v16, %v1326_v56  ;;  %v1329_v1 = vmul.f32 %v4670_v42, %v3440_v18  ;;  %v1585_v41 = vsel %vm1457_vm10, %v1393_v58, %v1521_v4 }
 0x181   :  { %v1951_v11 = vsel %vm1823_vm13, %v1759_v25, %v1887_v2  ;;  %v1519_v36 = vmul.f32 0.1, %v1391_v49  ;;  %v1885_v19 = vmul.f32 0.1, %v1757_v35  ;;  %vm1821_vm1 = vcmp.gt.f32.partialorder %v1757_v35, 0.0  ;;  %v1248_v18 = vpop.f32.mrf.mxu1 }
 0x182   :  { %v5040_v13 = vsel %vm1460_vm14, %v1396_v40, %v1524_v61  ;;  %v5043_v10 = vsel %vm1826_vm15, %v1762_v20, %v1890_v46  ;;  %v1763_v28 = vadd.f32 %v4707_v52, %v1692_v24  ;;  %vm1458_vm2 = vcmp.gt.f32.partialorder %v5028_v23, 0.0 }
 0x183   :  { %v1522_v21 = vmul.f32 0.1, %v5028_v23  ;;  %v1395_v57 = vadd.f32 %v4677_v16, %v1324_v53  ;;  %v1761_v60 = vadd.f32 %v4707_v52, %v1690_v63  ;;  %vm1824_vm3 = vcmp.gt.f32.partialorder %v5033_v34, 0.0 }
 0x184   :  { %vm1461_vm4 = vcmp.gt.f32.partialorder %v1397_v45, 0.0  ;;  %v1525_v58 = vmul.f32 0.1, %v1397_v45  ;;  %v5052_v22 = vadd.f32 %v4677_v16, %v1329_v1  ;;  %v1948_v37 = vsel %vm1820_vm12, %v4976_v7, %v1884_v17 }
 0x185   :  { %v1949_v6 = vsel %vm1821_vm1, %v1757_v35, %v1885_v19  ;;  %v1582_v59 = vsel %vm1454_vm11, %v4973_v33, %v4996_v26  ;;  %v1583_v47 = vsel %vm1455_vm0, %v1391_v49, %v1519_v36  ;;  %v1891_v50 = vmul.f32 0.1, %v1763_v28 }
 0x186   :  { %v1695_v55 = vmul.f32 %v4663_v32, %v3520_v43  ;;  %v1986_v25 = vpack.c.bf16 %v1949_v6, %v1948_v37  ;;  %v1620_v8 = vpack.c.bf16 %v1583_v47, %v1582_v59  ;;  %v1987_v31 = vpack.c.bf16 %v1951_v11, %v4993_v15  ;;  %v5104_v37 = vld [vmem:[%s5429_s11] ss:$0 sm:$0xff] }
 0x187   :  { %v1621_v4 = vpack.c.bf16 %v1585_v41, %v4991_v12  ;;  %v1327_v7 = vmul.f32 %v4670_v42, %v700_v3  ;;  %v1693_v17 = vmul.f32 %v4663_v32, %v1245_v44  ;;  %vm1827_vm5 = vcmp.gt.f32.partialorder %v1763_v28, 0.0 }
 0x188   :  { %3590 = vmatprep.mubr.bf16.mxu0 %v1986_v25  ;;  %3670 = vmatprep.mubr.bf16.mxu1 %v1620_v8  ;;  %v1330_v33 = vmul.f32 %v4670_v42, %v3441_v0  ;;  %v1696_v26 = vmul.f32 %v4663_v32, %v3521_v54  ;;  %v1328_v49 = vmul.f32 %v4670_v42, %v703_v14  ;;  %v1888_v40 = vmul.f32 0.1, %v5033_v34 }
 0x189   :  { %vm1459_vm6 = vcmp.gt.f32.partialorder %v1395_v57, 0.0  ;;  %3591 = vmatmul.mubr.bf16.gmra.mxu0 %v1987_v31  ;;  %3671 = vmatmul.mubr.bf16.gmra.mxu1 %v1621_v4  ;;  %v1398_v12 = vadd.f32 %v4677_v16, %v1327_v7  ;;  %v1764_v15 = vadd.f32 %v4707_v52, %v1693_v17  ;;  %v1523_v20 = vmul.f32 0.1, %v1395_v57 }
 0x18a   :  { %v1889_v30 = vmul.f32 0.1, %v1761_v60  ;;  %v1399_v38 = vadd.f32 %v4677_v16, %v1328_v49  ;;  %v1694_v27 = vmul.f32 %v4663_v32, %v1248_v18  ;;  %v1589_v29 = vsel %vm1461_vm4, %v1397_v45, %v1525_v58 }
 0x18b   :  { %v1955_v5 = vsel %vm1827_vm5, %v1763_v28, %v1891_v50  ;;  %vm1825_vm7 = vcmp.gt.f32.partialorder %v1761_v60, 0.0  ;;  %v1766_v42 = vadd.f32 %v4707_v52, %v1695_v55  ;;  %vm1462_vm8 = vcmp.gt.f32.partialorder %v1398_v12, 0.0 }
 0x18c   :  { %v1526_v43 = vmul.f32 0.1, %v1398_v12  ;;  %v1401_v2 = vadd.f32 %v4677_v16, %v1330_v33  ;;  %v1767_v9 = vadd.f32 %v4707_v52, %v1696_v26  ;;  %vm1828_vm9 = vcmp.gt.f32.partialorder %v1764_v15, 0.0 }
 0x18d   :  { %v1892_v48 = vmul.f32 0.1, %v1764_v15  ;;  %v1527_v39 = vmul.f32 0.1, %v1399_v38  ;;  %v1765_v35 = vadd.f32 %v4707_v52, %v1694_v27  ;;  %vm1463_vm10 = vcmp.gt.f32.partialorder %v1399_v38, 0.0 }
 0x18e   :  { %v1952_v32 = vsel %vm1824_vm3, %v5033_v34, %v1888_v40  ;;  %v1953_v62 = vsel %vm1825_vm7, %v1761_v60, %v1889_v30  ;;  %v1586_v51 = vsel %vm1458_vm2, %v5028_v23, %v1522_v21  ;;  %v1587_v3 = vsel %vm1459_vm6, %v1395_v57, %v1523_v20  ;;  %v5099_v60 = vld [vmem:[%s5428_s10] ss:$0 sm:$0xff] }
 0x18f   :  { %vm1829_vm11 = vcmp.gt.f32.partialorder %v1765_v35, 0.0  ;;  %v1893_v56 = vmul.f32 0.1, %v1765_v35  ;;  %v1988_v16 = vpack.c.bf16 %v1953_v62, %v1952_v32  ;;  %v1895_v61 = vmul.f32 0.1, %v1767_v9 }
 0x190   :  { %v1622_v46 = vpack.c.bf16 %v1587_v3, %v1586_v51  ;;  %v1989_v24 = vpack.c.bf16 %v1955_v5, %v5043_v10  ;;  %v1623_v52 = vpack.c.bf16 %v1589_v29, %v5040_v13  ;;  %v1956_v53 = vsel %vm1828_vm9, %v1764_v15, %v1892_v48 }
 0x191   :  { %3594 = vmatprep.mubr.bf16.mxu0 %v1988_v16  ;;  %v1957_v63 = vsel %vm1829_vm11, %v1765_v35, %v1893_v56  ;;  %v1590_v44 = vsel %vm1462_vm8, %v1398_v12, %v1526_v43  ;;  %v1591_v34 = vsel %vm1463_vm10, %v1399_v38, %v1527_v39  ;;  %v1529_v23 = vmul.f32 0.1, %v1401_v2 }
 0x192   :  { %vm1831_vm12 = vcmp.gt.f32.partialorder %v1767_v9, 0.0  ;;  %3674 = vmatprep.mubr.bf16.mxu1 %v1622_v46  ;;  %3595 = vmatmul.mubr.bf16.gmra.mxu0 %v1989_v24  ;;  %v1990_v45 = vpack.c.bf16 %v1957_v63, %v1956_v53  ;;  %v1624_v1 = vpack.c.bf16 %v1591_v34, %v1590_v44  ;;  %v1894_v41 = vmul.f32 0.1, %v1766_v42 }
 0x193   :  { %vm1465_vm13 = vcmp.gt.f32.partialorder %v1401_v2, 0.0  ;;  %3675 = vmatmul.mubr.bf16.gmra.mxu1 %v1623_v52  ;;  %v1528_v11 = vmul.f32 0.1, %v5052_v22  ;;  %vm1830_vm14 = vcmp.gt.f32.partialorder %v1766_v42, 0.0  ;;  %vm1464_vm15 = vcmp.gt.f32.partialorder %v5052_v22, 0.0 }
 0x194   :  { %3598 = vmatprep.mubr.bf16.mxu0 %v1990_v45  ;;  %3678 = vmatprep.mubr.bf16.mxu1 %v1624_v1  ;;  %v1959_v36 = vsel %vm1831_vm12, %v1767_v9, %v1895_v61  ;;  %v1593_v19 = vsel %vm1465_vm13, %v1401_v2, %v1529_v23  ;;  %v1958_v0 = vsel %vm1830_vm14, %v1766_v42, %v1894_v41 }
 0x195   :  { %v1592_v13 = vsel %vm1464_vm15, %v5052_v22, %v1528_v11  ;;  %v1991_v10 = vpack.c.bf16 %v1959_v36, %v1958_v0 }
 0x196   :  { %v1625_v28 = vpack.c.bf16 %v1593_v19, %v1592_v13 }
 0x19a   :  { %3599 = vmatmul.mubr.bf16.gmra.mxu0 %v1991_v10 }
 0x19b   :  { %3679 = vmatmul.mubr.bf16.gmra.mxu1 %v1625_v28 }
 0x1b5   :  { %v3540_v21 = vpop.f32.mrf.mxu0 }
 0x1b7   :  { %v3620_v57 = vpop.f32.mrf.mxu1  ;;  %v2106_v54 = vpop.f32.mrf.mxu0 }
 0x1b8   :  { %v2452_v58 = vadd.f32 %v3620_v57, %v3540_v21 }
 0x1b9   :  { %v2443_v6 = vpop.f32.mrf.mxu1  ;;  %v3541_v22 = vpop.f32.mrf.mxu0 }
 0x1ba   :  { %v2707_v59 = vmul.f32 %v5099_v60, %v2452_v58  ;;  %v2444_v47 = vadd.f32 %v2443_v6, %v2106_v54 }
 0x1bb   :  { %v3621_v14 = vpop.f32.mrf.mxu1  ;;  %v2109_v8 = vpop.f32.mrf.mxu0 }
 0x1bc   :  { %v2778_v50 = vadd.f32 %v5104_v37, %v2707_v59  ;;  %v2705_v55 = vmul.f32 %v5099_v60, %v2444_v47  ;;  %v2455_v25 = vadd.f32 %v3621_v14, %v3541_v22 }
 0x1bd   :  { %v2446_v31 = vpop.f32.mrf.mxu1 }
 0x1be   :  { %vm2842_vm0 = vcmp.gt.f32.partialorder %v2778_v50, 0.0  ;;  %v2906_v4 = vmul.f32 0.1, %v2778_v50  ;;  %v2776_v7 = vadd.f32 %v5104_v37, %v2705_v55  ;;  %v2708_v17 = vmul.f32 %v5099_v60, %v2455_v25 }
 0x1bf   :  { %v2447_v18 = vadd.f32 %v2446_v31, %v2109_v8 }
 0x1c0   :  { %v2970_v33 = vsel %vm2842_vm0, %v2778_v50, %v2906_v4  ;;  %vm2840_vm1 = vcmp.gt.f32.partialorder %v2776_v7, 0.0  ;;  %v2904_v26 = vmul.f32 0.1, %v2776_v7  ;;  %v2779_v49 = vadd.f32 %v5104_v37, %v2708_v17  ;;  %v3544_v40 = vpop.f32.mrf.mxu0 }
 0x1c1   :  { %3034 = vst [vmem:[%s5430_s12 + $0x10] sm:$0xff] %v2970_v33  ;;  %v2706_v12 = vmul.f32 %v5099_v60, %v2447_v18  ;;  %v3624_v15 = vpop.f32.mrf.mxu1 }
 0x1c2   :  { %v2968_v20 = vsel %vm2840_vm1, %v2776_v7, %v2904_v26  ;;  %vm2843_vm2 = vcmp.gt.f32.partialorder %v2779_v49, 0.0  ;;  %v2907_v30 = vmul.f32 0.1, %v2779_v49  ;;  %v2468_v38 = vadd.f32 %v3624_v15, %v3544_v40  ;;  %v2122_v27 = vpop.f32.mrf.mxu0 }
 0x1c3   :  { %3032 = vst [vmem:[%s5430_s12] sm:$0xff] %v2968_v20  ;;  %v2777_v29 = vadd.f32 %v5104_v37, %v2706_v12  ;;  %v2459_v5 = vpop.f32.mrf.mxu1 }
 0x1c4   :  { %v2971_v42 = vsel %vm2843_vm2, %v2779_v49, %v2907_v30  ;;  %v2711_v43 = vmul.f32 %v5099_v60, %v2468_v38  ;;  %v2460_v2 = vadd.f32 %v2459_v5, %v2122_v27  ;;  %v3545_v9 = vpop.f32.mrf.mxu0 }
 0x1c5   :  { %3035 = vst [vmem:[%s5430_s12 + $0x18] sm:$0xff] %v2971_v42  ;;  %vm2841_vm3 = vcmp.gt.f32.partialorder %v2777_v29, 0.0  ;;  %v2905_v48 = vmul.f32 0.1, %v2777_v29  ;;  %v3625_v39 = vpop.f32.mrf.mxu1 }
 0x1c6   :  { %v2782_v35 = vadd.f32 %v5104_v37, %v2711_v43  ;;  %v2709_v32 = vmul.f32 %v5099_v60, %v2460_v2  ;;  %v2471_v62 = vadd.f32 %v3625_v39, %v3545_v9  ;;  %v2125_v51 = vpop.f32.mrf.mxu0 }
 0x1c7   :  { %v2969_v56 = vsel %vm2841_vm3, %v2777_v29, %v2905_v48  ;;  %v2462_v16 = vpop.f32.mrf.mxu1 }
 0x1c8   :  { %3033 = vst [vmem:[%s5430_s12 + $0x8] sm:$0xff] %v2969_v56  ;;  %vm2846_vm4 = vcmp.gt.f32.partialorder %v2782_v35, 0.0  ;;  %v2910_v3 = vmul.f32 0.1, %v2782_v35  ;;  %v2780_v61 = vadd.f32 %v5104_v37, %v2709_v32  ;;  %v2712_v46 = vmul.f32 %v5099_v60, %v2471_v62 }
 0x1c9   :  { %v2463_v24 = vadd.f32 %v2462_v16, %v2125_v51 }
 0x1ca   :  { %v2974_v52 = vsel %vm2846_vm4, %v2782_v35, %v2910_v3  ;;  %vm2844_vm5 = vcmp.gt.f32.partialorder %v2780_v61, 0.0  ;;  %v2908_v53 = vmul.f32 0.1, %v2780_v61  ;;  %v2783_v63 = vadd.f32 %v5104_v37, %v2712_v46 }
 0x1cb   :  { %3038 = vst [vmem:[%s5430_s12 + $0x30] sm:$0xff] %v2974_v52  ;;  %v2710_v44 = vmul.f32 %v5099_v60, %v2463_v24  ;;  %v3548_v34 = vpop.f32.mrf.mxu0  ;;  %v3628_v23 = vpop.f32.mrf.mxu1 }
 0x1cc   :  { %v2972_v45 = vsel %vm2844_vm5, %v2780_v61, %v2908_v53  ;;  %vm2847_vm6 = vcmp.gt.f32.partialorder %v2783_v63, 0.0  ;;  %v2911_v1 = vmul.f32 0.1, %v2783_v63  ;;  %v2484_v41 = vadd.f32 %v3628_v23, %v3548_v34 }
 0x1cd   :  { %3036 = vst [vmem:[%s5430_s12 + $0x20] sm:$0xff] %v2972_v45  ;;  %v2781_v11 = vadd.f32 %v5104_v37, %v2710_v44  ;;  %v2138_v36 = vpop.f32.mrf.mxu0  ;;  %v2475_v19 = vpop.f32.mrf.mxu1 }
 0x1ce   :  { %v2975_v0 = vsel %vm2847_vm6, %v2783_v63, %v2911_v1  ;;  %v2715_v13 = vmul.f32 %v5099_v60, %v2484_v41  ;;  %v2476_v10 = vadd.f32 %v2475_v19, %v2138_v36 }
 0x1cf   :  { %3039 = vst [vmem:[%s5430_s12 + $0x38] sm:$0xff] %v2975_v0  ;;  %vm2845_vm7 = vcmp.gt.f32.partialorder %v2781_v11, 0.0  ;;  %v2909_v28 = vmul.f32 0.1, %v2781_v11  ;;  %v3549_v21 = vpop.f32.mrf.mxu0  ;;  %v3629_v57 = vpop.f32.mrf.mxu1 }
 0x1d0   :  { %v2786_v54 = vadd.f32 %v5104_v37, %v2715_v13  ;;  %v2713_v58 = vmul.f32 %v5099_v60, %v2476_v10  ;;  %v2487_v6 = vadd.f32 %v3629_v57, %v3549_v21 }
 0x1d1   :  { %v2973_v22 = vsel %vm2845_vm7, %v2781_v11, %v2909_v28  ;;  %v2141_v59 = vpop.f32.mrf.mxu0  ;;  %v2478_v47 = vpop.f32.mrf.mxu1 }
 0x1d2   :  { %3037 = vst [vmem:[%s5430_s12 + $0x28] sm:$0xff] %v2973_v22  ;;  %vm2850_vm8 = vcmp.gt.f32.partialorder %v2786_v54, 0.0  ;;  %v2914_v14 = vmul.f32 0.1, %v2786_v54  ;;  %v2784_v50 = vadd.f32 %v5104_v37, %v2713_v58  ;;  %v2716_v55 = vmul.f32 %v5099_v60, %v2487_v6 }
 0x1d3   :  { %v2479_v25 = vadd.f32 %v2478_v47, %v2141_v59 }
 0x1d4   :  { %v2978_v8 = vsel %vm2850_vm8, %v2786_v54, %v2914_v14  ;;  %vm2848_vm9 = vcmp.gt.f32.partialorder %v2784_v50, 0.0  ;;  %v2912_v31 = vmul.f32 0.1, %v2784_v50  ;;  %v2787_v4 = vadd.f32 %v5104_v37, %v2716_v55 }
 0x1d5   :  { %3042 = vst [vmem:[%s5430_s12 + $0x50] sm:$0xff] %v2978_v8  ;;  %v2714_v7 = vmul.f32 %v5099_v60, %v2479_v25 }
 0x1d6   :  { %v2976_v17 = vsel %vm2848_vm9, %v2784_v50, %v2912_v31  ;;  %vm2851_vm10 = vcmp.gt.f32.partialorder %v2787_v4, 0.0  ;;  %v2915_v18 = vmul.f32 0.1, %v2787_v4  ;;  %v3552_v26 = vpop.f32.mrf.mxu0 }
 0x1d7   :  { %3040 = vst [vmem:[%s5430_s12 + $0x40] sm:$0xff] %v2976_v17  ;;  %v2785_v33 = vadd.f32 %v5104_v37, %v2714_v7  ;;  %v3632_v49 = vpop.f32.mrf.mxu1 }
 0x1d8   :  { %v2979_v40 = vsel %vm2851_vm10, %v2787_v4, %v2915_v18  ;;  %v2500_v12 = vadd.f32 %v3632_v49, %v3552_v26  ;;  %v2154_v20 = vpop.f32.mrf.mxu0 }
 0x1d9   :  { %3043 = vst [vmem:[%s5430_s12 + $0x58] sm:$0xff] %v2979_v40  ;;  %vm2849_vm11 = vcmp.gt.f32.partialorder %v2785_v33, 0.0  ;;  %v2913_v15 = vmul.f32 0.1, %v2785_v33  ;;  %v2491_v30 = vpop.f32.mrf.mxu1 }
 0x1da   :  { %v2719_v38 = vmul.f32 %v5099_v60, %v2500_v12  ;;  %v2492_v27 = vadd.f32 %v2491_v30, %v2154_v20  ;;  %v3553_v5 = vpop.f32.mrf.mxu0 }
 0x1db   :  { %v2977_v29 = vsel %vm2849_vm11, %v2785_v33, %v2913_v15  ;;  %v3633_v42 = vpop.f32.mrf.mxu1 }
 0x1dc   :  { %3041 = vst [vmem:[%s5430_s12 + $0x48] sm:$0xff] %v2977_v29  ;;  %v2790_v43 = vadd.f32 %v5104_v37, %v2719_v38  ;;  %v2717_v2 = vmul.f32 %v5099_v60, %v2492_v27  ;;  %v2503_v9 = vadd.f32 %v3633_v42, %v3553_v5  ;;  %v2157_v48 = vpop.f32.mrf.mxu0 }
 0x1dd   :  { %v2494_v39 = vpop.f32.mrf.mxu1 }
 0x1de   :  { %vm2854_vm12 = vcmp.gt.f32.partialorder %v2790_v43, 0.0  ;;  %v2918_v35 = vmul.f32 0.1, %v2790_v43  ;;  %v2788_v32 = vadd.f32 %v5104_v37, %v2717_v2  ;;  %v2720_v62 = vmul.f32 %v5099_v60, %v2503_v9 }
 0x1df   :  { %v2495_v51 = vadd.f32 %v2494_v39, %v2157_v48 }
 0x1e0   :  { %v2982_v56 = vsel %vm2854_vm12, %v2790_v43, %v2918_v35  ;;  %vm2852_vm13 = vcmp.gt.f32.partialorder %v2788_v32, 0.0  ;;  %v2916_v16 = vmul.f32 0.1, %v2788_v32  ;;  %v2791_v3 = vadd.f32 %v5104_v37, %v2720_v62 }
 0x1e1   :  { %3046 = vst [vmem:[%s5430_s12 + $0x70] sm:$0xff] %v2982_v56  ;;  %v2718_v61 = vmul.f32 %v5099_v60, %v2495_v51  ;;  %v3556_v52 = vpop.f32.mrf.mxu0  ;;  %v3636_v53 = vpop.f32.mrf.mxu1 }
 0x1e2   :  { %v2980_v46 = vsel %vm2852_vm13, %v2788_v32, %v2916_v16  ;;  %vm2855_vm14 = vcmp.gt.f32.partialorder %v2791_v3, 0.0  ;;  %v2919_v24 = vmul.f32 0.1, %v2791_v3  ;;  %v2516_v44 = vadd.f32 %v3636_v53, %v3556_v52 }
 0x1e3   :  { %3044 = vst [vmem:[%s5430_s12 + $0x60] sm:$0xff] %v2980_v46  ;;  %v2789_v63 = vadd.f32 %v5104_v37, %v2718_v61  ;;  %v2170_v23 = vpop.f32.mrf.mxu0  ;;  %v2507_v45 = vpop.f32.mrf.mxu1 }
 0x1e4   :  { %v2983_v34 = vsel %vm2855_vm14, %v2791_v3, %v2919_v24  ;;  %v2723_v41 = vmul.f32 %v5099_v60, %v2516_v44  ;;  %v2508_v11 = vadd.f32 %v2507_v45, %v2170_v23 }
 0x1e5   :  { %3047 = vst [vmem:[%s5430_s12 + $0x78] sm:$0xff] %v2983_v34  ;;  %vm2853_vm15 = vcmp.gt.f32.partialorder %v2789_v63, 0.0  ;;  %v2917_v1 = vmul.f32 0.1, %v2789_v63  ;;  %v3557_v36 = vpop.f32.mrf.mxu0  ;;  %v3637_v19 = vpop.f32.mrf.mxu1 }
 0x1e6   :  { %v2794_v13 = vadd.f32 %v5104_v37, %v2723_v41  ;;  %v2721_v10 = vmul.f32 %v5099_v60, %v2508_v11  ;;  %v2519_v28 = vadd.f32 %v3637_v19, %v3557_v36 }
 0x1e7   :  { %v2981_v0 = vsel %vm2853_vm15, %v2789_v63, %v2917_v1  ;;  %v2173_v21 = vpop.f32.mrf.mxu0  ;;  %v2510_v57 = vpop.f32.mrf.mxu1 }
 0x1e8   :  { %3045 = vst [vmem:[%s5430_s12 + $0x68] sm:$0xff] %v2981_v0  ;;  %vm2858_vm0 = vcmp.gt.f32.partialorder %v2794_v13, 0.0  ;;  %v2922_v54 = vmul.f32 0.1, %v2794_v13  ;;  %v2792_v58 = vadd.f32 %v5104_v37, %v2721_v10  ;;  %v2724_v6 = vmul.f32 %v5099_v60, %v2519_v28 }
 0x1e9   :  { %v2511_v22 = vadd.f32 %v2510_v57, %v2173_v21 }
 0x1ea   :  { %v2986_v59 = vsel %vm2858_vm0, %v2794_v13, %v2922_v54  ;;  %vm2856_vm1 = vcmp.gt.f32.partialorder %v2792_v58, 0.0  ;;  %v2920_v47 = vmul.f32 0.1, %v2792_v58  ;;  %v2795_v14 = vadd.f32 %v5104_v37, %v2724_v6 }
 0x1eb   :  { %3050 = vst [vmem:[%s5430_s12 + $0x90] sm:$0xff] %v2986_v59  ;;  %v2722_v50 = vmul.f32 %v5099_v60, %v2511_v22  ;;  %v3560_v55 = vpop.f32.mrf.mxu0 }
 0x1ec   :  { %v2984_v25 = vsel %vm2856_vm1, %v2792_v58, %v2920_v47  ;;  %vm2859_vm2 = vcmp.gt.f32.partialorder %v2795_v14, 0.0  ;;  %v2923_v8 = vmul.f32 0.1, %v2795_v14 }
 0x1ed   :  { %3048 = vst [vmem:[%s5430_s12 + $0x80] sm:$0xff] %v2984_v25  ;;  %v2793_v31 = vadd.f32 %v5104_v37, %v2722_v50  ;;  %v3640_v4 = vpop.f32.mrf.mxu1  ;;  %v2186_v7 = vpop.f32.mrf.mxu0 }
 0x1ee   :  { %v2987_v17 = vsel %vm2859_vm2, %v2795_v14, %v2923_v8  ;;  %v2532_v18 = vadd.f32 %v3640_v4, %v3560_v55 }
 0x1ef   :  { %3051 = vst [vmem:[%s5430_s12 + $0x98] sm:$0xff] %v2987_v17  ;;  %vm2857_vm3 = vcmp.gt.f32.partialorder %v2793_v31, 0.0  ;;  %v2921_v33 = vmul.f32 0.1, %v2793_v31  ;;  %v2523_v26 = vpop.f32.mrf.mxu1  ;;  %v3561_v49 = vpop.f32.mrf.mxu0 }
 0x1f0   :  { %v2727_v40 = vmul.f32 %v5099_v60, %v2532_v18  ;;  %v2524_v12 = vadd.f32 %v2523_v26, %v2186_v7 }
 0x1f1   :  { %v2985_v15 = vsel %vm2857_vm3, %v2793_v31, %v2921_v33  ;;  %v3641_v20 = vpop.f32.mrf.mxu1  ;;  %v2189_v29 = vpop.f32.mrf.mxu0 }
 0x1f2   :  { %3049 = vst [vmem:[%s5430_s12 + $0x88] sm:$0xff] %v2985_v15  ;;  %v2798_v30 = vadd.f32 %v5104_v37, %v2727_v40  ;;  %v2725_v38 = vmul.f32 %v5099_v60, %v2524_v12  ;;  %v2535_v27 = vadd.f32 %v3641_v20, %v3561_v49 }
 0x1f3   :  { %v2526_v5 = vpop.f32.mrf.mxu1 }
 0x1f4   :  { %vm2862_vm4 = vcmp.gt.f32.partialorder %v2798_v30, 0.0  ;;  %v2926_v42 = vmul.f32 0.1, %v2798_v30  ;;  %v2796_v43 = vadd.f32 %v5104_v37, %v2725_v38  ;;  %v2728_v2 = vmul.f32 %v5099_v60, %v2535_v27 }
 0x1f5   :  { %v2527_v9 = vadd.f32 %v2526_v5, %v2189_v29 }
 0x1f6   :  { %v2990_v48 = vsel %vm2862_vm4, %v2798_v30, %v2926_v42  ;;  %vm2860_vm5 = vcmp.gt.f32.partialorder %v2796_v43, 0.0  ;;  %v2924_v39 = vmul.f32 0.1, %v2796_v43  ;;  %v2799_v35 = vadd.f32 %v5104_v37, %v2728_v2 }
 0x1f7   :  { %3054 = vst [vmem:[%s5430_s12 + $0xb0] sm:$0xff] %v2990_v48  ;;  %v2726_v32 = vmul.f32 %v5099_v60, %v2527_v9  ;;  %v3564_v62 = vpop.f32.mrf.mxu0 }
 0x1f8   :  { %v2988_v51 = vsel %vm2860_vm5, %v2796_v43, %v2924_v39  ;;  %vm2863_vm6 = vcmp.gt.f32.partialorder %v2799_v35, 0.0  ;;  %v2927_v56 = vmul.f32 0.1, %v2799_v35  ;;  %v3644_v16 = vpop.f32.mrf.mxu1 }
 0x1f9   :  { %3052 = vst [vmem:[%s5430_s12 + $0xa0] sm:$0xff] %v2988_v51  ;;  %v2797_v3 = vadd.f32 %v5104_v37, %v2726_v32  ;;  %v2548_v61 = vadd.f32 %v3644_v16, %v3564_v62  ;;  %v2202_v46 = vpop.f32.mrf.mxu0 }
 0x1fa   :  { %v2991_v24 = vsel %vm2863_vm6, %v2799_v35, %v2927_v56  ;;  %v2539_v52 = vpop.f32.mrf.mxu1 }
 0x1fb   :  { %3055 = vst [vmem:[%s5430_s12 + $0xb8] sm:$0xff] %v2991_v24  ;;  %vm2861_vm7 = vcmp.gt.f32.partialorder %v2797_v3, 0.0  ;;  %v2925_v53 = vmul.f32 0.1, %v2797_v3  ;;  %v2731_v63 = vmul.f32 %v5099_v60, %v2548_v61  ;;  %v2540_v44 = vadd.f32 %v2539_v52, %v2202_v46  ;;  %v3565_v34 = vpop.f32.mrf.mxu0 }
 0x1fc   :  { %v3645_v23 = vpop.f32.mrf.mxu1 }
 0x1fd   :  { %v2989_v45 = vsel %vm2861_vm7, %v2797_v3, %v2925_v53  ;;  %v2802_v1 = vadd.f32 %v5104_v37, %v2731_v63  ;;  %v2729_v41 = vmul.f32 %v5099_v60, %v2540_v44  ;;  %v2551_v11 = vadd.f32 %v3645_v23, %v3565_v34  ;;  %v2205_v36 = vpop.f32.mrf.mxu0 }
 0x1fe   :  { %3053 = vst [vmem:[%s5430_s12 + $0xa8] sm:$0xff] %v2989_v45  ;;  %v2542_v19 = vpop.f32.mrf.mxu1 }
 0x1ff   :  { %vm2866_vm8 = vcmp.gt.f32.partialorder %v2802_v1, 0.0  ;;  %v2930_v0 = vmul.f32 0.1, %v2802_v1  ;;  %v2800_v13 = vadd.f32 %v5104_v37, %v2729_v41  ;;  %v2732_v10 = vmul.f32 %v5099_v60, %v2551_v11 }
 0x200   :  { %v2543_v28 = vadd.f32 %v2542_v19, %v2205_v36 }
 0x201   :  { %v2994_v21 = vsel %vm2866_vm8, %v2802_v1, %v2930_v0  ;;  %vm2864_vm9 = vcmp.gt.f32.partialorder %v2800_v13, 0.0  ;;  %v2928_v57 = vmul.f32 0.1, %v2800_v13  ;;  %v2803_v54 = vadd.f32 %v5104_v37, %v2732_v10 }
 0x202   :  { %3058 = vst [vmem:[%s5430_s12 + $0xd0] sm:$0xff] %v2994_v21  ;;  %v2730_v58 = vmul.f32 %v5099_v60, %v2543_v28 }
 0x203   :  { %v2992_v6 = vsel %vm2864_vm9, %v2800_v13, %v2928_v57  ;;  %vm2867_vm10 = vcmp.gt.f32.partialorder %v2803_v54, 0.0  ;;  %v2931_v22 = vmul.f32 0.1, %v2803_v54  ;;  %v3568_v59 = vpop.f32.mrf.mxu0  ;;  %v3648_v47 = vpop.f32.mrf.mxu1 }
 0x204   :  { %3056 = vst [vmem:[%s5430_s12 + $0xc0] sm:$0xff] %v2992_v6  ;;  %v2801_v14 = vadd.f32 %v5104_v37, %v2730_v58  ;;  %v2564_v50 = vadd.f32 %v3648_v47, %v3568_v59 }
 0x205   :  { %v2995_v55 = vsel %vm2867_vm10, %v2803_v54, %v2931_v22  ;;  %v2218_v25 = vpop.f32.mrf.mxu0  ;;  %v2555_v8 = vpop.f32.mrf.mxu1 }
 0x206   :  { %3059 = vst [vmem:[%s5430_s12 + $0xd8] sm:$0xff] %v2995_v55  ;;  %vm2865_vm11 = vcmp.gt.f32.partialorder %v2801_v14, 0.0  ;;  %v2929_v31 = vmul.f32 0.1, %v2801_v14  ;;  %v2735_v4 = vmul.f32 %v5099_v60, %v2564_v50  ;;  %v2556_v7 = vadd.f32 %v2555_v8, %v2218_v25 }
 0x207   :  { %v3569_v17 = vpop.f32.mrf.mxu0  ;;  %v3649_v18 = vpop.f32.mrf.mxu1 }
 0x208   :  { %v2993_v33 = vsel %vm2865_vm11, %v2801_v14, %v2929_v31  ;;  %v2806_v26 = vadd.f32 %v5104_v37, %v2735_v4  ;;  %v2733_v49 = vmul.f32 %v5099_v60, %v2556_v7  ;;  %v2567_v40 = vadd.f32 %v3649_v18, %v3569_v17 }
 0x209   :  { %3057 = vst [vmem:[%s5430_s12 + $0xc8] sm:$0xff] %v2993_v33  ;;  %v2221_v12 = vpop.f32.mrf.mxu0  ;;  %v2558_v15 = vpop.f32.mrf.mxu1 }
 0x20a   :  { %vm2870_vm12 = vcmp.gt.f32.partialorder %v2806_v26, 0.0  ;;  %v2934_v20 = vmul.f32 0.1, %v2806_v26  ;;  %v2804_v30 = vadd.f32 %v5104_v37, %v2733_v49  ;;  %v2736_v38 = vmul.f32 %v5099_v60, %v2567_v40 }
 0x20b   :  { %v2559_v27 = vadd.f32 %v2558_v15, %v2221_v12 }
 0x20c   :  { %v2998_v29 = vsel %vm2870_vm12, %v2806_v26, %v2934_v20  ;;  %vm2868_vm13 = vcmp.gt.f32.partialorder %v2804_v30, 0.0  ;;  %v2932_v5 = vmul.f32 0.1, %v2804_v30  ;;  %v2807_v42 = vadd.f32 %v5104_v37, %v2736_v38 }
 0x20d   :  { %3062 = vst [vmem:[%s5430_s12 + $0xf0] sm:$0xff] %v2998_v29  ;;  %v2734_v43 = vmul.f32 %v5099_v60, %v2559_v27 }
 0x20e   :  { %v2996_v2 = vsel %vm2868_vm13, %v2804_v30, %v2932_v5  ;;  %vm2871_vm14 = vcmp.gt.f32.partialorder %v2807_v42, 0.0  ;;  %v2935_v9 = vmul.f32 0.1, %v2807_v42  ;;  %v3572_v48 = vpop.f32.mrf.mxu0  ;;  %v3652_v39 = vpop.f32.mrf.mxu1 }
 0x20f   :  { %3060 = vst [vmem:[%s5430_s12 + $0xe0] sm:$0xff] %v2996_v2  ;;  %v2805_v35 = vadd.f32 %v5104_v37, %v2734_v43  ;;  %v2580_v32 = vadd.f32 %v3652_v39, %v3572_v48 }
 0x210   :  { %v2999_v62 = vsel %vm2871_vm14, %v2807_v42, %v2935_v9  ;;  %v2234_v51 = vpop.f32.mrf.mxu0  ;;  %v2571_v56 = vpop.f32.mrf.mxu1 }
 0x211   :  { %3063 = vst [vmem:[%s5430_s12 + $0xf8] sm:$0xff] %v2999_v62  ;;  %vm2869_vm15 = vcmp.gt.f32.partialorder %v2805_v35, 0.0  ;;  %v2933_v16 = vmul.f32 0.1, %v2805_v35  ;;  %v2739_v3 = vmul.f32 %v5099_v60, %v2580_v32  ;;  %v2572_v61 = vadd.f32 %v2571_v56, %v2234_v51 }
 0x212   :  { %v3573_v46 = vpop.f32.mrf.mxu0  ;;  %v3653_v24 = vpop.f32.mrf.mxu1 }
 0x213   :  { %v2997_v52 = vsel %vm2869_vm15, %v2805_v35, %v2933_v16  ;;  %v2810_v53 = vadd.f32 %v5104_v37, %v2739_v3  ;;  %v2737_v63 = vmul.f32 %v5099_v60, %v2572_v61  ;;  %v2583_v44 = vadd.f32 %v3653_v24, %v3573_v46 }
 0x214   :  { %3061 = vst [vmem:[%s5430_s12 + $0xe8] sm:$0xff] %v2997_v52  ;;  %v2237_v34 = vpop.f32.mrf.mxu0  ;;  %v2574_v23 = vpop.f32.mrf.mxu1 }
 0x215   :  { %vm2874_vm0 = vcmp.gt.f32.partialorder %v2810_v53, 0.0  ;;  %v2938_v45 = vmul.f32 0.1, %v2810_v53  ;;  %v2808_v1 = vadd.f32 %v5104_v37, %v2737_v63  ;;  %v2740_v41 = vmul.f32 %v5099_v60, %v2583_v44 }
 0x216   :  { %v2575_v11 = vadd.f32 %v2574_v23, %v2237_v34 }
 0x217   :  { %v3002_v36 = vsel %vm2874_vm0, %v2810_v53, %v2938_v45  ;;  %vm2872_vm1 = vcmp.gt.f32.partialorder %v2808_v1, 0.0  ;;  %v2936_v19 = vmul.f32 0.1, %v2808_v1  ;;  %v2811_v0 = vadd.f32 %v5104_v37, %v2740_v41 }
 0x218   :  { %3066 = vst [vmem:[%s5430_s12 + $0x110] sm:$0xff] %v3002_v36  ;;  %v2738_v13 = vmul.f32 %v5099_v60, %v2575_v11  ;;  %v3576_v10 = vpop.f32.mrf.mxu0 }
 0x219   :  { %v3000_v28 = vsel %vm2872_vm1, %v2808_v1, %v2936_v19  ;;  %vm2875_vm2 = vcmp.gt.f32.partialorder %v2811_v0, 0.0  ;;  %v2939_v21 = vmul.f32 0.1, %v2811_v0 }
 0x21a   :  { %3064 = vst [vmem:[%s5430_s12 + $0x100] sm:$0xff] %v3000_v28  ;;  %v2809_v57 = vadd.f32 %v5104_v37, %v2738_v13  ;;  %v3656_v54 = vpop.f32.mrf.mxu1  ;;  %v2250_v58 = vpop.f32.mrf.mxu0 }
 0x21b   :  { %v3003_v6 = vsel %vm2875_vm2, %v2811_v0, %v2939_v21  ;;  %v2596_v22 = vadd.f32 %v3656_v54, %v3576_v10 }
 0x21c   :  { %3067 = vst [vmem:[%s5430_s12 + $0x118] sm:$0xff] %v3003_v6  ;;  %vm2873_vm3 = vcmp.gt.f32.partialorder %v2809_v57, 0.0  ;;  %v2937_v59 = vmul.f32 0.1, %v2809_v57  ;;  %v2587_v47 = vpop.f32.mrf.mxu1  ;;  %v3577_v14 = vpop.f32.mrf.mxu0 }
 0x21d   :  { %v2743_v50 = vmul.f32 %v5099_v60, %v2596_v22  ;;  %v2588_v55 = vadd.f32 %v2587_v47, %v2250_v58 }
 0x21e   :  { %v3001_v25 = vsel %vm2873_vm3, %v2809_v57, %v2937_v59  ;;  %v3657_v8 = vpop.f32.mrf.mxu1  ;;  %v2253_v17 = vpop.f32.mrf.mxu0 }
 0x21f   :  { %3065 = vst [vmem:[%s5430_s12 + $0x108] sm:$0xff] %v3001_v25  ;;  %v2814_v31 = vadd.f32 %v5104_v37, %v2743_v50  ;;  %v2741_v4 = vmul.f32 %v5099_v60, %v2588_v55  ;;  %v2599_v7 = vadd.f32 %v3657_v8, %v3577_v14 }
 0x220   :  { %v2590_v18 = vpop.f32.mrf.mxu1 }
 0x221   :  { %vm2878_vm4 = vcmp.gt.f32.partialorder %v2814_v31, 0.0  ;;  %v2942_v33 = vmul.f32 0.1, %v2814_v31  ;;  %v2812_v26 = vadd.f32 %v5104_v37, %v2741_v4  ;;  %v2744_v49 = vmul.f32 %v5099_v60, %v2599_v7 }
 0x222   :  { %v2591_v40 = vadd.f32 %v2590_v18, %v2253_v17 }
 0x223   :  { %v3006_v12 = vsel %vm2878_vm4, %v2814_v31, %v2942_v33  ;;  %vm2876_vm5 = vcmp.gt.f32.partialorder %v2812_v26, 0.0  ;;  %v2940_v15 = vmul.f32 0.1, %v2812_v26  ;;  %v2815_v20 = vadd.f32 %v5104_v37, %v2744_v49 }
 0x224   :  { %3070 = vst [vmem:[%s5430_s12 + $0x130] sm:$0xff] %v3006_v12  ;;  %v2742_v30 = vmul.f32 %v5099_v60, %v2591_v40  ;;  %v3580_v38 = vpop.f32.mrf.mxu0 }
 0x225   :  { %v3004_v27 = vsel %vm2876_vm5, %v2812_v26, %v2940_v15  ;;  %vm2879_vm6 = vcmp.gt.f32.partialorder %v2815_v20, 0.0  ;;  %v2943_v29 = vmul.f32 0.1, %v2815_v20 }
 0x226   :  { %3068 = vst [vmem:[%s5430_s12 + $0x120] sm:$0xff] %v3004_v27  ;;  %v2813_v5 = vadd.f32 %v5104_v37, %v2742_v30  ;;  %v2266_v43 = vpop.f32.mrf.mxu0 }
 0x227   :  { %v3660_v42 = vpop.f32.mrf.mxu1  ;;  %v3007_v2 = vsel %vm2879_vm6, %v2815_v20, %v2943_v29 }
 0x228   :  { %v2612_v9 = vadd.f32 %v3660_v42, %v3580_v38  ;;  %3071 = vst [vmem:[%s5430_s12 + $0x138] sm:$0xff] %v3007_v2  ;;  %vm2877_vm7 = vcmp.gt.f32.partialorder %v2813_v5, 0.0  ;;  %v2941_v48 = vmul.f32 0.1, %v2813_v5  ;;  %v3581_v35 = vpop.f32.mrf.mxu0 }
 0x229   :  { %v2603_v39 = vpop.f32.mrf.mxu1 }
 0x22a   :  { %v2747_v32 = vmul.f32 %v5099_v60, %v2612_v9  ;;  %v2604_v62 = vadd.f32 %v2603_v39, %v2266_v43  ;;  %v3005_v51 = vsel %vm2877_vm7, %v2813_v5, %v2941_v48  ;;  %v2269_v46 = vpop.f32.mrf.mxu0 }
 0x22b   :  { %v3661_v56 = vpop.f32.mrf.mxu1  ;;  %3069 = vst [vmem:[%s5430_s12 + $0x128] sm:$0xff] %v3005_v51 }
 0x22c   :  { %v2818_v16 = vadd.f32 %v5104_v37, %v2747_v32  ;;  %v2745_v3 = vmul.f32 %v5099_v60, %v2604_v62  ;;  %v2615_v61 = vadd.f32 %v3661_v56, %v3581_v35 }
 0x22d   :  { %v2606_v24 = vpop.f32.mrf.mxu1 }
 0x22e   :  { %vm2882_vm8 = vcmp.gt.f32.partialorder %v2818_v16, 0.0  ;;  %v2946_v52 = vmul.f32 0.1, %v2818_v16  ;;  %v2816_v53 = vadd.f32 %v5104_v37, %v2745_v3  ;;  %v2748_v63 = vmul.f32 %v5099_v60, %v2615_v61 }
 0x22f   :  { %v2607_v44 = vadd.f32 %v2606_v24, %v2269_v46 }
 0x230   :  { %v3010_v34 = vsel %vm2882_vm8, %v2818_v16, %v2946_v52  ;;  %vm2880_vm9 = vcmp.gt.f32.partialorder %v2816_v53, 0.0  ;;  %v2944_v23 = vmul.f32 0.1, %v2816_v53  ;;  %v2819_v45 = vadd.f32 %v5104_v37, %v2748_v63 }
 0x231   :  { %3074 = vst [vmem:[%s5430_s12 + $0x150] sm:$0xff] %v3010_v34  ;;  %v2746_v1 = vmul.f32 %v5099_v60, %v2607_v44 }
 0x232   :  { %v3008_v41 = vsel %vm2880_vm9, %v2816_v53, %v2944_v23  ;;  %vm2883_vm10 = vcmp.gt.f32.partialorder %v2819_v45, 0.0  ;;  %v2947_v11 = vmul.f32 0.1, %v2819_v45  ;;  %v3584_v36 = vpop.f32.mrf.mxu0 }
 0x233   :  { %3072 = vst [vmem:[%s5430_s12 + $0x140] sm:$0xff] %v3008_v41  ;;  %v2817_v19 = vadd.f32 %v5104_v37, %v2746_v1  ;;  %v3664_v0 = vpop.f32.mrf.mxu1 }
 0x234   :  { %v3011_v13 = vsel %vm2883_vm10, %v2819_v45, %v2947_v11  ;;  %v2628_v10 = vadd.f32 %v3664_v0, %v3584_v36  ;;  %v2282_v28 = vpop.f32.mrf.mxu0 }
 0x235   :  { %3075 = vst [vmem:[%s5430_s12 + $0x158] sm:$0xff] %v3011_v13  ;;  %vm2881_vm11 = vcmp.gt.f32.partialorder %v2817_v19, 0.0  ;;  %v2945_v21 = vmul.f32 0.1, %v2817_v19  ;;  %v2619_v57 = vpop.f32.mrf.mxu1 }
 0x236   :  { %v2751_v54 = vmul.f32 %v5099_v60, %v2628_v10  ;;  %v2620_v58 = vadd.f32 %v2619_v57, %v2282_v28  ;;  %v3585_v6 = vpop.f32.mrf.mxu0 }
 0x237   :  { %v3009_v22 = vsel %vm2881_vm11, %v2817_v19, %v2945_v21  ;;  %v3665_v59 = vpop.f32.mrf.mxu1 }
 0x238   :  { %3073 = vst [vmem:[%s5430_s12 + $0x148] sm:$0xff] %v3009_v22  ;;  %v2822_v47 = vadd.f32 %v5104_v37, %v2751_v54  ;;  %v2749_v14 = vmul.f32 %v5099_v60, %v2620_v58  ;;  %v2631_v50 = vadd.f32 %v3665_v59, %v3585_v6  ;;  %v2285_v55 = vpop.f32.mrf.mxu0 }
 0x239   :  { %v2622_v25 = vpop.f32.mrf.mxu1 }
 0x23a   :  { %vm2886_vm12 = vcmp.gt.f32.partialorder %v2822_v47, 0.0  ;;  %v2950_v8 = vmul.f32 0.1, %v2822_v47  ;;  %v2820_v31 = vadd.f32 %v5104_v37, %v2749_v14  ;;  %v2752_v4 = vmul.f32 %v5099_v60, %v2631_v50 }
 0x23b   :  { %v2623_v7 = vadd.f32 %v2622_v25, %v2285_v55 }
 0x23c   :  { %v3014_v17 = vsel %vm2886_vm12, %v2822_v47, %v2950_v8  ;;  %vm2884_vm13 = vcmp.gt.f32.partialorder %v2820_v31, 0.0  ;;  %v2948_v18 = vmul.f32 0.1, %v2820_v31  ;;  %v2823_v33 = vadd.f32 %v5104_v37, %v2752_v4 }
 0x23d   :  { %3078 = vst [vmem:[%s5430_s12 + $0x170] sm:$0xff] %v3014_v17  ;;  %v2750_v26 = vmul.f32 %v5099_v60, %v2623_v7 }
 0x23e   :  { %v3588_v49 = vpop.f32.mrf.mxu0  ;;  %v3012_v40 = vsel %vm2884_vm13, %v2820_v31, %v2948_v18  ;;  %vm2887_vm14 = vcmp.gt.f32.partialorder %v2823_v33, 0.0  ;;  %v2951_v12 = vmul.f32 0.1, %v2823_v33 }
 0x23f   :  { %v3668_v15 = vpop.f32.mrf.mxu1  ;;  %3076 = vst [vmem:[%s5430_s12 + $0x160] sm:$0xff] %v3012_v40  ;;  %v2821_v20 = vadd.f32 %v5104_v37, %v2750_v26 }
 0x240   :  { %v2644_v30 = vadd.f32 %v3668_v15, %v3588_v49  ;;  %v2298_v38 = vpop.f32.mrf.mxu0  ;;  %v3015_v27 = vsel %vm2887_vm14, %v2823_v33, %v2951_v12 }
 0x241   :  { %v2635_v29 = vpop.f32.mrf.mxu1  ;;  %3079 = vst [vmem:[%s5430_s12 + $0x178] sm:$0xff] %v3015_v27  ;;  %vm2885_vm15 = vcmp.gt.f32.partialorder %v2821_v20, 0.0  ;;  %v2949_v5 = vmul.f32 0.1, %v2821_v20 }
 0x242   :  { %v2755_v42 = vmul.f32 %v5099_v60, %v2644_v30  ;;  %v2636_v43 = vadd.f32 %v2635_v29, %v2298_v38  ;;  %v3589_v2 = vpop.f32.mrf.mxu0 }
 0x243   :  { %v3669_v9 = vpop.f32.mrf.mxu1  ;;  %v3013_v48 = vsel %vm2885_vm15, %v2821_v20, %v2949_v5  ;;  %v3782_v5 = vld [vmem:[%s5428_s10] ss:$0 sm:$0xff] }
 0x244   :  { %v2826_v39 = vadd.f32 %v5104_v37, %v2755_v42  ;;  %v2753_v35 = vmul.f32 %v5099_v60, %v2636_v43  ;;  %v2647_v32 = vadd.f32 %v3669_v9, %v3589_v2  ;;  %v2301_v62 = vpop.f32.mrf.mxu0  ;;  %3077 = vst [vmem:[%s5430_s12 + $0x168] sm:$0xff] %v3013_v48 }
 0x245   :  { %v2638_v51 = vpop.f32.mrf.mxu1 }
 0x246   :  { %vm2890_vm0 = vcmp.gt.f32.partialorder %v2826_v39, 0.0  ;;  %v2954_v56 = vmul.f32 0.1, %v2826_v39  ;;  %v2824_v16 = vadd.f32 %v5104_v37, %v2753_v35  ;;  %v2756_v3 = vmul.f32 %v5099_v60, %v2647_v32 }
 0x247   :  { %v2639_v61 = vadd.f32 %v2638_v51, %v2301_v62 }
 0x248   :  { %v3018_v46 = vsel %vm2890_vm0, %v2826_v39, %v2954_v56  ;;  %vm2888_vm1 = vcmp.gt.f32.partialorder %v2824_v16, 0.0  ;;  %v2952_v24 = vmul.f32 0.1, %v2824_v16  ;;  %v2827_v52 = vadd.f32 %v5104_v37, %v2756_v3  ;;  %v3783_v39 = vld [vmem:[%s5429_s11] ss:$0 sm:$0xff] }
 0x249   :  { %3082 = vst [vmem:[%s5430_s12 + $0x190] sm:$0xff] %v3018_v46  ;;  %v2754_v53 = vmul.f32 %v5099_v60, %v2639_v61  ;;  %v3592_v63 = vpop.f32.mrf.mxu0  ;;  %v3672_v44 = vpop.f32.mrf.mxu1 }
 0x24a   :  { %v3016_v34 = vsel %vm2888_vm1, %v2824_v16, %v2952_v24  ;;  %vm2891_vm2 = vcmp.gt.f32.partialorder %v2827_v52, 0.0  ;;  %v2955_v23 = vmul.f32 0.1, %v2827_v52  ;;  %v2660_v45 = vadd.f32 %v3672_v44, %v3592_v63 }
 0x24b   :  { %3080 = vst [vmem:[%s5430_s12 + $0x180] sm:$0xff] %v3016_v34  ;;  %v2825_v1 = vadd.f32 %v5104_v37, %v2754_v53  ;;  %v2314_v41 = vpop.f32.mrf.mxu0  ;;  %v2651_v11 = vpop.f32.mrf.mxu1 }
 0x24c   :  { %v3019_v36 = vsel %vm2891_vm2, %v2827_v52, %v2955_v23  ;;  %v2759_v19 = vmul.f32 %v5099_v60, %v2660_v45  ;;  %v2652_v0 = vadd.f32 %v2651_v11, %v2314_v41 }
 0x24d   :  { %3083 = vst [vmem:[%s5430_s12 + $0x198] sm:$0xff] %v3019_v36  ;;  %vm2889_vm3 = vcmp.gt.f32.partialorder %v2825_v1, 0.0  ;;  %v2953_v13 = vmul.f32 0.1, %v2825_v1  ;;  %v3593_v10 = vpop.f32.mrf.mxu0  ;;  %v3673_v28 = vpop.f32.mrf.mxu1 }
 0x24e   :  { %v2830_v21 = vadd.f32 %v5104_v37, %v2759_v19  ;;  %v2757_v57 = vmul.f32 %v5099_v60, %v2652_v0  ;;  %v2663_v54 = vadd.f32 %v3673_v28, %v3593_v10 }
 0x24f   :  { %v3017_v58 = vsel %vm2889_vm3, %v2825_v1, %v2953_v13  ;;  %v2317_v6 = vpop.f32.mrf.mxu0  ;;  %v2654_v22 = vpop.f32.mrf.mxu1 }
 0x250   :  { %3081 = vst [vmem:[%s5430_s12 + $0x188] sm:$0xff] %v3017_v58  ;;  %vm2894_vm4 = vcmp.gt.f32.partialorder %v2830_v21, 0.0  ;;  %v2958_v59 = vmul.f32 0.1, %v2830_v21  ;;  %v2828_v47 = vadd.f32 %v5104_v37, %v2757_v57  ;;  %v2760_v14 = vmul.f32 %v5099_v60, %v2663_v54 }
 0x251   :  { %v2655_v50 = vadd.f32 %v2654_v22, %v2317_v6 }
 0x252   :  { %v3022_v55 = vsel %vm2894_vm4, %v2830_v21, %v2958_v59  ;;  %vm2892_vm5 = vcmp.gt.f32.partialorder %v2828_v47, 0.0  ;;  %v2956_v25 = vmul.f32 0.1, %v2828_v47  ;;  %v2831_v8 = vadd.f32 %v5104_v37, %v2760_v14  ;;  %v3596_v31 = vpop.f32.mrf.mxu0 }
 0x253   :  { %3086 = vst [vmem:[%s5430_s12 + $0x1b0] sm:$0xff] %v3022_v55  ;;  %v2758_v4 = vmul.f32 %v5099_v60, %v2655_v50  ;;  %v3676_v7 = vpop.f32.mrf.mxu1 }
 0x254   :  { %v3020_v17 = vsel %vm2892_vm5, %v2828_v47, %v2956_v25  ;;  %vm2895_vm6 = vcmp.gt.f32.partialorder %v2831_v8, 0.0  ;;  %v2959_v18 = vmul.f32 0.1, %v2831_v8  ;;  %v2676_v33 = vadd.f32 %v3676_v7, %v3596_v31  ;;  %v2330_v26 = vpop.f32.mrf.mxu0 }
 0x255   :  { %3084 = vst [vmem:[%s5430_s12 + $0x1a0] sm:$0xff] %v3020_v17  ;;  %v2829_v49 = vadd.f32 %v5104_v37, %v2758_v4  ;;  %v2667_v40 = vpop.f32.mrf.mxu1 }
 0x256   :  { %v3023_v12 = vsel %vm2895_vm6, %v2831_v8, %v2959_v18  ;;  %v2763_v15 = vmul.f32 %v5099_v60, %v2676_v33  ;;  %v2668_v20 = vadd.f32 %v2667_v40, %v2330_v26  ;;  %v3597_v30 = vpop.f32.mrf.mxu0 }
 0x257   :  { %3087 = vst [vmem:[%s5430_s12 + $0x1b8] sm:$0xff] %v3023_v12  ;;  %vm2893_vm7 = vcmp.gt.f32.partialorder %v2829_v49, 0.0  ;;  %v2957_v38 = vmul.f32 0.1, %v2829_v49  ;;  %v3677_v27 = vpop.f32.mrf.mxu1 }
 0x258   :  { %v2834_v29 = vadd.f32 %v5104_v37, %v2763_v15  ;;  %v2761_v42 = vmul.f32 %v3782_v5, %v2668_v20  ;;  %v2679_v43 = vadd.f32 %v3677_v27, %v3597_v30  ;;  %v2333_v2 = vpop.f32.mrf.mxu0 }
 0x259   :  { %v3021_v9 = vsel %vm2893_vm7, %v2829_v49, %v2957_v38  ;;  %v2670_v60 = vpop.f32.mrf.mxu1 }
 0x25a   :  { %3085 = vst [vmem:[%s5430_s12 + $0x1a8] sm:$0xff] %v3021_v9  ;;  %vm2898_vm8 = vcmp.gt.f32.partialorder %v2834_v29, 0.0  ;;  %v2962_v48 = vmul.f32 0.1, %v2834_v29  ;;  %v2832_v37 = vadd.f32 %v3783_v39, %v2761_v42  ;;  %v2764_v35 = vmul.f32 %v3782_v5, %v2679_v43  ;;  %v3600_v32 = vpop.f32.mrf.mxu0 }
 0x25b   :  { %v2671_v62 = vadd.f32 %v2670_v60, %v2333_v2  ;;  %v3680_v51 = vpop.f32.mrf.mxu1 }
 0x25c   :  { %v3026_v56 = vsel %vm2898_vm8, %v2834_v29, %v2962_v48  ;;  %vm2896_vm9 = vcmp.gt.f32.partialorder %v2832_v37, 0.0  ;;  %v2960_v16 = vmul.f32 0.1, %v2832_v37  ;;  %v2835_v3 = vadd.f32 %v3783_v39, %v2764_v35  ;;  %v2346_v61 = vpop.f32.mrf.mxu0 }
 0x25d   :  { %3090 = vst [vmem:[%s5430_s12 + $0x1d0] sm:$0xff] %v3026_v56  ;;  %v2762_v46 = vmul.f32 %v3782_v5, %v2671_v62  ;;  %v2692_v24 = vadd.f32 %v3680_v51, %v3600_v32  ;;  %v2683_v52 = vpop.f32.mrf.mxu1 }
 0x25e   :  { %v3024_v53 = vsel %vm2896_vm9, %v2832_v37, %v2960_v16  ;;  %vm2899_vm10 = vcmp.gt.f32.partialorder %v2835_v3, 0.0  ;;  %v2963_v63 = vmul.f32 0.1, %v2835_v3  ;;  %v2684_v44 = vadd.f32 %v2683_v52, %v2346_v61  ;;  %v3601_v34 = vpop.f32.mrf.mxu0 }
 0x25f   :  { %3088 = vst [vmem:[%s5430_s12 + $0x1c0] sm:$0xff] %v3024_v53  ;;  %v2833_v23 = vadd.f32 %v3783_v39, %v2762_v46  ;;  %v2767_v45 = vmul.f32 %v3782_v5, %v2692_v24  ;;  %v3681_v1 = vpop.f32.mrf.mxu1 }
 0x260   :  { %v3027_v41 = vsel %vm2899_vm10, %v2835_v3, %v2963_v63  ;;  %v2765_v11 = vmul.f32 %v3782_v5, %v2684_v44  ;;  %v2695_v36 = vadd.f32 %v3681_v1, %v3601_v34  ;;  %v2349_v19 = vpop.f32.mrf.mxu0 }
 0x261   :  { %3091 = vst [vmem:[%s5430_s12 + $0x1d8] sm:$0xff] %v3027_v41  ;;  %vm2897_vm11 = vcmp.gt.f32.partialorder %v2833_v23, 0.0  ;;  %v2961_v0 = vmul.f32 0.1, %v2833_v23  ;;  %v2838_v13 = vadd.f32 %v3783_v39, %v2767_v45  ;;  %v2686_v10 = vpop.f32.mrf.mxu1 }
 0x262   :  { %v2836_v28 = vadd.f32 %v3783_v39, %v2765_v11  ;;  %v2768_v21 = vmul.f32 %v3782_v5, %v2695_v36  ;;  %v2687_v57 = vadd.f32 %v2686_v10, %v2349_v19 }
 0x263   :  { %v3025_v54 = vsel %vm2897_vm11, %v2833_v23, %v2961_v0  ;;  %vm2902_vm12 = vcmp.gt.f32.partialorder %v2838_v13, 0.0  ;;  %v2966_v58 = vmul.f32 0.1, %v2838_v13 }
 0x264   :  { %3089 = vst [vmem:[%s5430_s12 + $0x1c8] sm:$0xff] %v3025_v54  ;;  %vm2900_vm13 = vcmp.gt.f32.partialorder %v2836_v28, 0.0  ;;  %v2964_v6 = vmul.f32 0.1, %v2836_v28  ;;  %v2839_v22 = vadd.f32 %v3783_v39, %v2768_v21  ;;  %v2766_v59 = vmul.f32 %v3782_v5, %v2687_v57 }
 0x265   :  { %v3030_v47 = vsel %vm2902_vm12, %v2838_v13, %v2966_v58 }
 0x266   :  { %3094 = vst [vmem:[%s5430_s12 + $0x1f0] sm:$0xff] %v3030_v47  ;;  %v3028_v14 = vsel %vm2900_vm13, %v2836_v28, %v2964_v6  ;;  %vm2903_vm14 = vcmp.gt.f32.partialorder %v2839_v22, 0.0  ;;  %v2967_v50 = vmul.f32 0.1, %v2839_v22  ;;  %v2837_v55 = vadd.f32 %v3783_v39, %v2766_v59 }
 0x267   :  { %3092 = vst [vmem:[%s5430_s12 + $0x1e0] sm:$0xff] %v3028_v14 }
 0x268   :  { %v3031_v25 = vsel %vm2903_vm14, %v2839_v22, %v2967_v50  ;;  %vm2901_vm15 = vcmp.gt.f32.partialorder %v2837_v55, 0.0  ;;  %v2965_v8 = vmul.f32 0.1, %v2837_v55 }
 0x269   :  { %3095 = vst [vmem:[%s5430_s12 + $0x1f8] sm:$0xff] %v3031_v25 }
 0x26a   :  { %v3029_v31 = vsel %vm2901_vm15, %v2837_v55, %v2965_v8 }
 0x26b   :  { %3093 = vst [vmem:[%s5430_s12 + $0x1e8] sm:$0xff] %v3029_v31 }

// kernel: bottleneck_csp_forward.4
= control target key start
LH: loop header
LB: loop body
LE: loop exit
PB: predicated region body
PF: predicated region fallthrough
CT: control target
= control target key end

     0   :  { %s4804_s30 = smov 0   ;;  %s4806_s10 = smov 0   ;;  %s6123_s0 = inlined_call_operand.vmem [shape: bf16[2,16,16,128], index: 0, kind: input, shape index: {}, may-alias: {0,1,2}]   ;;  %s6124_s1 = inlined_call_operand.vmem [shape: bf16[2,16,16,128], index: 1, kind: input, shape index: {}, may-alias: {0,1,2}]   ;;  %s6125_s2 = inlined_call_operand.vmem [shape: bf16[2,16,16,128], index: 2, kind: input, shape index: {}, may-alias: {0,1,2}]   ;;  %s6126_s3 = inlined_call_operand.vmem [shape: bf16[128,128], index: 3, kind: input, shape index: {}]   ;;  %s6127_s4 = inlined_call_operand.vmem [shape: bf16[3,384,128], index: 4, kind: input, shape index: {}]   ;;  %s6128_s5 = inlined_call_operand.vmem [shape: f32[1,128], index: 5, kind: input, shape index: {}]   ;;  %s6129_s6 = inlined_call_operand.vmem [shape: f32[1,128], index: 6, kind: input, shape index: {}]   ;;  %s6130_s7 = inlined_call_operand.vmem [shape: f32[1,128], index: 7, kind: input, shape index: {}]   ;;  %s6131_s8 = inlined_call_operand.vmem [shape: f32[1,128], index: 8, kind: input, shape index: {}]   ;;  %s6132_s9 = inlined_call_operand.vmem [shape: bf16[2,16,16,128], index: 9, kind: output, shape index: {}]  }
   0x1   :  { %s4808_s11 = smov 0   ;;  %s4810_s12 = smov 0  }
   0x2   :  { %s4812_s13 = smov 0  }
   0x3 LB: > { %s28_s14 = sadd.s32 1, %s4743_s11  ;;  %s31_s15 = sadd.s32 1, %s4747_s12  ;;  %s4751_s13 = sphi %s4812_s13, %s19_s13   ;;  %s4747_s12 = sphi %s4810_s12, %s6184_s12   ;;  %s4743_s11 = sphi %s4808_s11, %s6183_s11   ;;  %s4739_s10 = sphi %s4806_s10, %s6182_s10   ;;  %s4735_s30 = sphi %s4804_s30, %s6181_s30  }
   0x4   : > { %p29_p0 = scmp.ge.s32.totalorder %s28_s14, 2  ;;  %p3668_p1 = scmp.ge.s32.totalorder %s4751_s13, 1 }
   0x5   : > { %p373_p2 = scmp.lt.s32.totalorder %s4751_s13, 5 }
   0x6   : > { %s6186_s14 = smov (%p29_p0, %s28_s14), 0  ;;  %s6188_s15 = smov (!%p29_p0, %s31_s15), %s4747_s12 }
   0x7   : > { %p374_p3 = pnand %p3668_p1, %p373_p2  ;;  %p33_p4 = scmp.ge.s32.totalorder %s6188_s15, 2 }
   0x9   : > { %s6190_s15 = smov (%p33_p4, %s6188_s15), 0  ;;  %377 = sbr.rel (%p374_p3) target bundleno = 691 (0x2b3), region = 56 }
   0xe   : > { %v4551_v0 = vld [vmem:[%s6126_s3 + $0x38] sm:$0xff]   ;;  %s4837_s18 = sshll.u32 %s4735_s30, 3  ;;  %v4552_v1 = vld [vmem:[%s6126_s3 + $0x30] sm:$0xff]   ;;  %p446_p5 = scmp.lt.s32.totalorder %s4739_s10, 1  ;;  %v4553_v2 = vld [vmem:[%s6126_s3 + $0x28] sm:$0xff]   ;;  %v4753_v18 = vmov 0  }
   0xf   : > { %4378 = vmatprep.subr.bf16.mxu0 %v4551_v0  ;;  %p448_p6 = scmp.lt.s32.totalorder %s4837_s18, 15  ;;  %v4554_v3 = vld [vmem:[%s6126_s3 + $0x20] sm:$0xff]   ;;  %s4856_s29 = sadd.s32 4294967295, %s4837_s18  ;;  %v4555_v4 = vld [vmem:[%s6126_s3 + $0x18] sm:$0xff]   ;;  %v4556_v5 = vld [vmem:[%s6126_s3 + $0x10] sm:$0xff]   ;;  %vm1248_vm3 = vcmask 1043456  }
  0x10   : > { %4379 = vmatpush3.bf16.msra.mxu0 %v4551_v0  ;;  %s6192_s10 = smov (!%p446_p5, %s4739_s10), 1  ;;  %p458_p7 = scmp.gt.s32.totalorder %s4856_s29, 0  ;;  %v4557_v7 = vld [vmem:[%s6126_s3 + $0x8] sm:$0xff]   ;;  %v4558_v8 = vld [vmem:[%s6126_s3] sm:$0xff]   ;;  %968 = vst [vmem:[#allocation2 + $0xc] sm:$0xf] %v4753_v18  ;;  %v875_v45 = vstv %s4856_s29 }
  0x11   : > { %4380 = vmatprep.subr.bf16.mxu0 %v4552_v1  ;;  %s449_s23 = scalar_select %p448_p6, %s4837_s18, 15  ;;  %965 = vst [vmem:[#allocation2] sm:$0xf] %v4753_v18  ;;  %966 = vst [vmem:[#allocation2 + $0x4] sm:$0xf] %v4753_v18  ;;  %v4569_v19 = vld [vmem:[%s6127_s4 + $0x138] sm:$0xff]  }
  0x12   : > { %s4847_s24 = sshll.u32 %s6192_s10, 5  ;;  %p3675_p8 = scmp.lt.s32.totalorder %s4856_s29, 15  ;;  %967 = vst [vmem:[#allocation2 + $0x8] sm:$0x1] %v4753_v18  ;;  %969 = vst [vmem:[#allocation2 + $0x10] sm:$0xf] %v4753_v18  ;;  %4138 = vmatprep.subr.bf16.mxu1 %v4569_v19 }
  0x13   : > { %s3670_s25 = sshll.u32 %s449_s23, 1  ;;  %s474_s20 = sadd.s32 8, %s4837_s18  ;;  %970 = vst [vmem:[#allocation2 + $0x14] sm:$0x1] %v4753_v18  ;;  %971 = vst [vmem:[#allocation2 + $0x18] sm:$0xf] %v4753_v18 }
  0x14   : > { %4381 = vmatpush3.bf16.msra.mxu0 %v4552_v1  ;;  %s4853_s28 = sadd.s32 %s4847_s24, %s3670_s25  ;;  %p4873_p9 = scmp.lt.s32.totalorder %s474_s20, 15  ;;  %972 = vst [vmem:[#allocation2 + $0x1c] sm:$0xf] %v4753_v18  ;;  %973 = vst [vmem:[#allocation2 + $0x20] sm:$0x1] %v4753_v18  ;;  %v4570_v20 = vld [vmem:[%s6127_s4 + $0xf8] sm:$0xff]  }
  0x15   : > { %4382 = vmatprep.subr.bf16.mxu0 %v4553_v2  ;;  %s6133_s30 = sshll.u32 %s4853_s28, 2  ;;  %974 = vst [vmem:[#allocation2 + $0x24] sm:$0xf] %v4753_v18  ;;  %975 = vst [vmem:[#allocation2 + $0x28] sm:$0xf] %v4753_v18  ;;  %4139 = vmatpush3.bf16.msra.mxu1 %v4570_v20  ;;  %v4571_v21 = vld [vmem:[%s6127_s4 + $0x130] sm:$0xff]  }
  0x16   : > { %s4865_s17 = scalar_lea.vmem %s6123_s0, %s6133_s30  ;;  %s6196_s20 = smov (!%p4873_p9, %s474_s20), 15  ;;  %976 = vst [vmem:[#allocation2 + $0x2c] sm:$0x1] %v4753_v18  ;;  %977 = vst [vmem:[#allocation2 + $0x30] sm:$0xf] %v4753_v18  ;;  %v4572_v22 = vld [vmem:[%s6127_s4 + $0xf0] sm:$0xff]   ;;  %4140 = vmatprep.subr.bf16.mxu1 %v4571_v21 }
  0x17   : > { %s459_s19 = scalar_select %p458_p7, %s4856_s29, 0  ;;  %v4560_v9 = vld [vmem:[%s4865_s17] sm:$0xff]   ;;  %v4561_v10 = vld [vmem:[%s4865_s17 + $0x8] sm:$0xff]   ;;  %v4562_v11 = vld [vmem:[%s4865_s17 + $0x10] sm:$0xff]   ;;  %978 = vst [vmem:[#allocation2 + $0x34] sm:$0xf] %v4753_v18 }
  0x18   : > { %4383 = vmatpush3.bf16.msra.mxu0 %v4553_v2  ;;  %s6198_s20 = smov (!%p4873_p9, %s6196_s20), 15  ;;  %v4563_v12 = vld [vmem:[%s4865_s17 + $0x18] sm:$0xff]   ;;  %v4564_v13 = vld [vmem:[%s4865_s17 + $0x20] sm:$0xff]   ;;  %v4565_v14 = vld [vmem:[%s4865_s17 + $0x28] sm:$0xff]   ;;  %979 = vst [vmem:[#allocation2 + $0x38] sm:$0x1] %v4753_v18 }
  0x19   : > { %4384 = vmatprep.subr.bf16.mxu0 %v4554_v3  ;;  %s6194_s19 = smov (!%p3675_p8, %s459_s19), 15  ;;  %v4566_v15 = vld [vmem:[%s4865_s17 + $0x30] sm:$0xff]   ;;  %v4567_v16 = vld [vmem:[%s4865_s17 + $0x38] sm:$0xff]   ;;  %980 = vst [vmem:[#allocation2 + $0x3c] sm:$0xf] %v4753_v18  ;;  %4141 = vmatpush3.bf16.msra.mxu1 %v4572_v22  ;;  %v4574_v24 = vld [vmem:[%s6127_s4 + $0x128] sm:$0xff]  }
  0x1a   : > { %s3680_s23 = sshll.u32 %s6194_s19, 1  ;;  %981 = vst [vmem:[#allocation2 + $0x40] sm:$0xf] %v4753_v18  ;;  %982 = vst [vmem:[#allocation2 + $0x44] sm:$0x1] %v4753_v18  ;;  %v4573_v23 = vld [vmem:[%s6127_s4 + $0x178] sm:$0xff]   ;;  %4142 = vmatprep.subr.bf16.mxu1 %v4574_v24 }
  0x1b   : > { %s466_s26 = sadd.s32 %s3680_s23, %s4847_s24  ;;  %s3687_s23 = sshll.u32 %s6198_s20, 1  ;;  %983 = vst [vmem:[#allocation2 + $0x48] sm:$0xf] %v4753_v18  ;;  %984 = vst [vmem:[#allocation2 + $0x4c] sm:$0xf] %v4753_v18  ;;  %v4575_v25 = vld [vmem:[%s6127_s4 + $0xe8] sm:$0xff]  }
  0x1c   : > { %4385 = vmatpush3.bf16.msra.mxu0 %v4554_v3  ;;  %s3682_s18 = sshll.u32 %s466_s26, 2  ;;  %s483_s26 = sadd.s32 %s3687_s23, %s4847_s24  ;;  %985 = vst [vmem:[#allocation2 + $0x50] sm:$0x1] %v4753_v18  ;;  %986 = vst [vmem:[#allocation2 + $0x54] sm:$0xf] %v4753_v18  ;;  %v4576_v26 = vld [vmem:[%s6127_s4 + $0x170] sm:$0xff]  }
  0x1d   : > { %4386 = vmatprep.subr.bf16.mxu0 %v4555_v4  ;;  %s468_s22 = scalar_lea.vmem %s6124_s1, %s3682_s18  ;;  %s3689_s18 = sshll.u32 %s483_s26, 2  ;;  %987 = vst [vmem:[#allocation2 + $0x58] sm:$0xf] %v4753_v18  ;;  %988 = vst [vmem:[#allocation2 + $0x5c] sm:$0x1] %v4753_v18  ;;  %4143 = vmatpush3.bf16.msra.mxu1 %v4575_v25  ;;  %v4577_v27 = vld [vmem:[%s6127_s4 + $0x120] sm:$0xff]  }
  0x1e   : > { %v4559_v6 = vld [vmem:[%s468_s22] sm:$0xff]   ;;  %s485_s30 = scalar_lea.vmem %s6125_s2, %s3689_s18  ;;  %989 = vst [vmem:[#allocation2 + $0x60] sm:$0xf] %v4753_v18  ;;  %990 = vst [vmem:[#allocation2 + $0x64] sm:$0xf] %v4753_v18  ;;  %v4579_v29 = vld [vmem:[%s6127_s4 + $0x168] sm:$0xff]   ;;  %4144 = vmatprep.subr.bf16.mxu1 %v4577_v27 }
  0x1f   : > { %4394 = vmatprep.mubr.bf16.mxu0 %v4559_v6  ;;  %v4568_v17 = vld [vmem:[%s485_s30] sm:$0xff]   ;;  %991 = vst [vmem:[#allocation2 + $0x68] sm:$0x1] %v4753_v18  ;;  %992 = vst [vmem:[#allocation2 + $0x6c] sm:$0xf] %v4753_v18  ;;  %v4580_v30 = vld [vmem:[%s6127_s4 + $0x118] sm:$0xff]  }
  0x20   : > { %4387 = vmatpush3.bf16.msra.mxu0 %v4555_v4  ;;  %993 = vst [vmem:[#allocation2 + $0x70] sm:$0xf] %v4753_v18  ;;  %994 = vst [vmem:[#allocation2 + $0x74] sm:$0x1] %v4753_v18  ;;  %v4578_v28 = vld [vmem:[%s6127_s4 + $0xe0] sm:$0xff]   ;;  %v4581_v31 = vld [vmem:[%s6127_s4 + $0xd8] sm:$0xff]  }
  0x21   : > { %4388 = vmatprep.subr.bf16.mxu0 %v4556_v5  ;;  %4145 = vmatpush3.bf16.msra.mxu1 %v4578_v28  ;;  %v4582_v32 = vld [vmem:[%s6127_s4 + $0x160] sm:$0xff]   ;;  %v4583_v33 = vld [vmem:[%s6127_s4 + $0x110] sm:$0xff]   ;;  %v4585_v35 = vld [vmem:[%s6127_s4 + $0x158] sm:$0xff]   ;;  %v876_v47 = vadd.s32 1, %v875_v45  ;;  %v4998_v50 = vadd.s32 3, %v875_v45  ;;  %vm885_vm2 = vcmp.ge.s32.totalorder %v875_v45, 0 }
  0x22   : > { %4146 = vmatprep.subr.bf16.mxu1 %v4580_v30  ;;  %v4584_v34 = vld [vmem:[%s6127_s4 + $0xd0] sm:$0xff]   ;;  %v4586_v36 = vld [vmem:[%s6127_s4 + $0x108] sm:$0xff]   ;;  %v4592_v39 = vld [vmem:[%s6127_s4 + $0x100] sm:$0xff]   ;;  %vm895_vm4 = vcmp.lt.s32.totalorder %v875_v45, 16  ;;  %vm1249_vm5 = vsmask.f32 7938 }
  0x23   : > { %v4587_v37 = vld [vmem:[%s6127_s4 + $0xc8] sm:$0xff]   ;;  %v4588_v38 = vld [vmem:[%s6127_s4 + $0x150] sm:$0xff]   ;;  %v4593_v40 = vld [vmem:[%s6127_s4 + $0xc0] sm:$0xff]   ;;  %vm886_vm0 = vcmp.ge.s32.totalorder %v876_v47, 0  ;;  %vm896_vm1 = vcmp.lt.s32.totalorder %v876_v47, 16  ;;  %vm888_vm6 = vcmp.ge.s32.totalorder %v4998_v50, 0 }
  0x24   : > { %4389 = vmatpush3.bf16.msra.mxu0 %v4556_v5  ;;  %v4594_v41 = vld [vmem:[%s6127_s4 + $0x148] sm:$0xff]   ;;  %v4595_v42 = vld [vmem:[%s6127_s4 + $0x140] sm:$0xff]   ;;  %v4596_v43 = vld [vmem:[%s6127_s4 + $0x78] sm:$0xff]   ;;  %vm898_vm7 = vcmp.lt.s32.totalorder %v4998_v50, 16  ;;  %v5005_v56 = vadd.s32 2, %v875_v45  ;;  %v5014_v62 = vadd.s32 5, %v875_v45 }
  0x25   : > { %4390 = vmatprep.subr.bf16.mxu0 %v4557_v7  ;;  %4147 = vmatpush3.bf16.msra.mxu1 %v4581_v31  ;;  %v4984_v44 = vld [vmem:[%s6127_s4 + $0xb8] sm:$0xff]   ;;  %v4991_v46 = vld [vmem:[%s6128_s5] ss:$0 sm:$0xff]  ;;  %vm5008_vm9 = vmand %vm886_vm0, %vm896_vm1  ;;  %vm1045_vm10 = vsmask.f32 256  ;;  %v5016_v63 = vadd.s32 4, %v875_v45 }
  0x26   : > { %4148 = vmatprep.subr.bf16.mxu1 %v4583_v33  ;;  %v4996_v49 = vld [vmem:[%s6129_s6] ss:$0 sm:$0xff]  ;;  %vm1046_vm11 = vsmask.f32 4368  ;;  %v5018_v0 = vadd.s32 6, %v875_v45  ;;  %vm5022_vm13 = vmand %vm885_vm2, %vm895_vm4  ;;  %vm1255_vm14 = vcmask 1040384  }
  0x27   : > { %vm887_vm15 = vcmp.ge.s32.totalorder %v5005_v56, 0  ;;  %vm897_vm0 = vcmp.lt.s32.totalorder %v5005_v56, 16  ;;  %vm5047_vm4 = vmand %vm1248_vm3, %vm1249_vm5  ;;  %v1260_v31 = vld [vmem:[#allocation2 + $0xc] sm:$0xf]  ;;  %s6168_s25 = sshll.u32 %s4853_s28, 2 }
  0x28   : > { %4391 = vmatpush3.bf16.msra.mxu0 %v4557_v7  ;;  %vm5058_vm3 = vmand %vm888_vm6, %vm898_vm7  ;;  %s6040_s19 = scalar_lea.vmem %s6132_s9, %s6168_s25 }
  0x29   : > { %4392 = vmatprep.subr.bf16.mxu0 %v4558_v8  ;;  %4149 = vmatpush3.bf16.msra.mxu1 %v4584_v34  ;;  %vm5071_vm5 = vmor %vm1045_vm10, %vm1046_vm11  ;;  %vm900_vm11 = vcmp.lt.s32.totalorder %v5014_v62, 16 }
  0x2a   : > { %4150 = vmatprep.subr.bf16.mxu1 %v4586_v36  ;;  %vm5077_vm6 = vmand %vm1255_vm14, %vm1045_vm10 }
  0x2b   : > { %vm5091_vm10 = vmand %vm887_vm15, %vm897_vm0 }
  0x2c   : > { %4393 = vmatpush3.bf16.msra.mxu0 %v4558_v8  ;;  %v5032_v8 = vadd.s32 7, %v875_v45 }
  0x2d   : > { %4414 = vmatprep.subr.bf16.mxu0 %v4573_v23  ;;  %4151 = vmatpush3.bf16.msra.mxu1 %v4587_v37 }
  0x2e   : > { %4152 = vmatprep.subr.bf16.mxu1 %v4592_v39 }
  0x2f   : > { %4395 = vmatmul.mubr.bf16.vlgmr.msra.gmra.mxu0 %v4560_v9  ;;  %v5034_v9 = vadd.s32 8, %v875_v45 }
  0x30   : > { %4398 = vmatprep.mubr.bf16.mxu0 %v4561_v10  ;;  %4415 = vmatpush3.bf16.msra.mxu0 %v4573_v23 }
  0x31   : > { %4416 = vmatprep.subr.bf16.mxu0 %v4576_v26  ;;  %4153 = vmatpush3.bf16.msra.mxu1 %v4593_v40 }
  0x32   : > { %4218 = vmatprep.subr.bf16.mxu1 %v4596_v43 }
  0x34   : > { %4417 = vmatpush3.bf16.msra.mxu0 %v4576_v26 }
  0x35   : > { %4418 = vmatprep.subr.bf16.mxu0 %v4579_v29 }
  0x37   : > { %4399 = vmatmul.mubr.bf16.gmra.mxu0 %v4562_v11 }
  0x38   : > { %4402 = vmatprep.mubr.bf16.mxu0 %v4563_v12  ;;  %4419 = vmatpush3.bf16.msra.mxu0 %v4579_v29 }
  0x39   : > { %4420 = vmatprep.subr.bf16.mxu0 %v4582_v32 }
  0x3c   : > { %4421 = vmatpush3.bf16.msra.mxu0 %v4582_v32 }
  0x3d   : > { %4422 = vmatprep.subr.bf16.mxu0 %v4585_v35 }
  0x3f   : > { %4403 = vmatmul.mubr.bf16.gmra.mxu0 %v4564_v13 }
  0x40   : > { %4406 = vmatprep.mubr.bf16.mxu0 %v4565_v14  ;;  %4423 = vmatpush3.bf16.msra.mxu0 %v4585_v35 }
  0x41   : > { %4424 = vmatprep.subr.bf16.mxu0 %v4588_v38 }
  0x44   : > { %4425 = vmatpush3.bf16.msra.mxu0 %v4588_v38 }
  0x45   : > { %4426 = vmatprep.subr.bf16.mxu0 %v4594_v41 }
  0x47   : > { %4407 = vmatmul.mubr.bf16.gmra.mxu0 %v4566_v15 }
  0x48   : > { %4410 = vmatprep.mubr.bf16.mxu0 %v4567_v16  ;;  %4427 = vmatpush3.bf16.msra.mxu0 %v4594_v41  ;;  %v1251_v41 = vld [vmem:[#allocation2] sm:$0xf] }
  0x49   : > { %4428 = vmatprep.subr.bf16.mxu0 %v4595_v42 }
  0x4c   : > { %4429 = vmatpush3.bf16.msra.mxu0 %v4595_v42 }
  0x4d   : > { %4446 = vmatprep.subr.bf16.mxu0 %v4984_v44 }
  0x4f   : > { %4411 = vmatmul.mubr.bf16.gmra.mxu0 %v4568_v17  ;;  %v5040_v17 = vadd.s32 9, %v875_v45 }
  0xef   : > { %v4396_v48 = vpop.f32.mrf.mxu0 }
  0xf0   : > { %v769_v51 = vmul.f32 %v4396_v48, %v4991_v46 }
  0xf1   : > { %v681_v52 = vpop.f32.mrf.mxu0 }
  0xf2   : > { %v796_v53 = vadd.f32 %v4996_v49, %v769_v51  ;;  %v767_v54 = vmul.f32 %v4991_v46, %v681_v52 }
  0xf3   : > { %v4397_v55 = vpop.f32.mrf.mxu0 }
  0xf4   : > { %vm816_vm8 = vcmp.gt.f32.partialorder %v796_v53, 0.0  ;;  %v836_v57 = vmul.f32 0.1, %v796_v53  ;;  %v794_v59 = vadd.f32 %v4996_v49, %v767_v54  ;;  %v770_v60 = vmul.f32 %v4397_v55, %v4991_v46 }
  0xf5   : > { %v684_v61 = vpop.f32.mrf.mxu0 }
  0xf6   : > { %v856_v1 = vsel %vm816_vm8, %v796_v53, %v836_v57  ;;  %vm814_vm12 = vcmp.gt.f32.partialorder %v794_v59, 0.0  ;;  %v834_v2 = vmul.f32 0.1, %v794_v59  ;;  %v797_v4 = vadd.f32 %v4996_v49, %v770_v60  ;;  %v1264_v57 = vld [vmem:[#allocation2 + $0x14] sm:$0x1] }
  0xf7   : > { %v937_v5 = vsel %vm5008_vm9, %v856_v1, 0.0  ;;  %v768_v6 = vmul.f32 %v4991_v46, %v684_v61  ;;  %v4400_v7 = vpop.f32.mrf.mxu0 }
  0xf8   : > { %v4000_v10 = vpack.c.bf16 %v937_v5, %v937_v5  ;;  %v854_v11 = vsel %vm814_vm12, %v794_v59, %v834_v2  ;;  %vm817_vm1 = vcmp.gt.f32.partialorder %v797_v4, 0.0  ;;  %v837_v12 = vmul.f32 0.1, %v797_v4  ;;  %v1278_v5 = vld [vmem:[#allocation2 + $0x2c] sm:$0x1] }
  0xf9   : > { %v935_v13 = vsel %vm5022_vm13, %v854_v11, 0.0  ;;  %v795_v14 = vadd.f32 %v4996_v49, %v768_v6  ;;  %v773_v15 = vmul.f32 %v4400_v7, %v4991_v46  ;;  %v697_v16 = vpop.f32.mrf.mxu0  ;;  %vm889_vm12 = vcmp.ge.s32.totalorder %v5016_v63, 0 }
  0xfa   : > { %v1066_v18 = vshrl.u32 %v4000_v10, 16  ;;  %v1069_v19 = vshll.u32 %v4000_v10, 16  ;;  %v3998_v20 = vpack.c.bf16 %v935_v13, %v935_v13  ;;  %v857_v21 = vsel %vm817_vm1, %v797_v4, %v837_v12 }
  0xfb   : > { %v938_v22 = vsel %vm5008_vm9, %v857_v21, 0.0  ;;  %vm815_vm2 = vcmp.gt.f32.partialorder %v795_v14, 0.0  ;;  %v835_v23 = vmul.f32 0.1, %v795_v14  ;;  %v800_v24 = vadd.f32 %v4996_v49, %v773_v15  ;;  %v4401_v25 = vpop.f32.mrf.mxu0  ;;  %v1257_v21 = vld [vmem:[#allocation2 + $0x8] sm:$0x1] }
  0xfc   : > { %v1068_v26 = vrot.slane %v1066_v18, 7  ;;  %v1049_v27 = vshrl.u32 %v3998_v20, 16  ;;  %v1052_v28 = vshll.u32 %v3998_v20, 16  ;;  %v4001_v29 = vpack.c.bf16 %v938_v22, %v938_v22 }
  0xfd   : > { %v855_v32 = vsel %vm815_vm2, %v795_v14, %v835_v23  ;;  %vm820_vm8 = vcmp.gt.f32.partialorder %v800_v24, 0.0  ;;  %v840_v33 = vmul.f32 0.1, %v800_v24  ;;  %v771_v34 = vmul.f32 %v4991_v46, %v697_v16  ;;  %v700_v35 = vpop.f32.mrf.mxu0 }
  0xfe   : > { %v1071_v36 = vor.u32 %v1069_v19, %v1068_v26  ;;  %v1072_v37 = vrot.slane %v1068_v26, 4  ;;  %v5052_v38 = vrot.slane %v1049_v27, 7  ;;  %v1074_v39 = vshrl.u32 %v4001_v29, 16 }
  0xff   : > { %v1077_v42 = vshll.u32 %v4001_v29, 16  ;;  %v936_v43 = vsel %vm5022_vm13, %v855_v32, 0.0  ;;  %v860_v45 = vsel %vm820_vm8, %v800_v24, %v840_v33  ;;  %v798_v47 = vadd.f32 %v4996_v49, %v771_v34  ;;  %v4404_v48 = vpop.f32.mrf.mxu0 }
 0x100   : > { %v1261_v51 = vsel %vm5047_vm4, %v1071_v36, %v1260_v31  ;;  %v1054_v52 = vor.u32 %v1052_v28, %v5052_v38  ;;  %v1055_v50 = vrot.slane %v5052_v38, 4  ;;  %v1076_v54 = vrot.slane %v1074_v39, 7  ;;  %v1274_v28 = vld [vmem:[#allocation2 + $0x24] sm:$0xf] }
 0x101   : > { %1262 = vst [vmem:[#allocation2 + $0xc] sm:$0xf] %v1261_v51  ;;  %v3999_v58 = vpack.c.bf16 %v936_v43, %v936_v43  ;;  %v941_v59 = vsel %vm5058_vm3, %v860_v45, 0.0  ;;  %vm818_vm7 = vcmp.gt.f32.partialorder %v798_v47, 0.0  ;;  %v838_v60 = vmul.f32 0.1, %v798_v47  ;;  %v713_v61 = vpop.f32.mrf.mxu0 }
 0x102   : > { %vm890_vm9 = vcmp.ge.s32.totalorder %v5014_v62, 0  ;;  %v1252_v1 = vsel %vm5047_vm4, %v1054_v52, %v1251_v41  ;;  %v1079_v2 = vor.u32 %v1077_v42, %v1076_v54  ;;  %v1081_v3 = vrot.slane %v1076_v54, 4 }
 0x103   : > { %v4004_v4 = vpack.c.bf16 %v941_v59, %v941_v59  ;;  %1253 = vst [vmem:[#allocation2] sm:$0xf] %v1252_v1  ;;  %v1057_v6 = vshrl.u32 %v3999_v58, 16  ;;  %v1060_v7 = vshll.u32 %v3999_v58, 16  ;;  %v858_v10 = vsel %vm818_vm7, %v798_v47, %v838_v60  ;;  %v4405_v56 = vpop.f32.mrf.mxu0  ;;  %v1267_v47 = vld [vmem:[#allocation2 + $0x18] sm:$0xf]  ;;  %vm5131_vm1 = vmand %vm890_vm9, %vm900_vm11 }
 0x104   : > { %v774_v11 = vmul.f32 %v4401_v25, %v4991_v46  ;;  %v1080_v12 = vsel %vm5071_vm5, %v1072_v37, %v1079_v2  ;;  %v1265_v13 = vsel %vm5077_vm6, %v1081_v3, %v1264_v57  ;;  %vm899_vm13 = vcmp.lt.s32.totalorder %v5016_v63, 16 }
 0x105   : > { %v1100_v14 = vshrl.u32 %v4004_v4, 16  ;;  %v1103_v15 = vshll.u32 %v4004_v4, 16  ;;  %1263 = vst [vmem:[#allocation2 + $0x10] sm:$0xf] %v1080_v12  ;;  %1266 = vst [vmem:[#allocation2 + $0x14] sm:$0x1] %v1265_v13  ;;  %v772_v20 = vmul.f32 %v4991_v46, %v700_v35  ;;  %v777_v24 = vmul.f32 %v4404_v48, %v4991_v46  ;;  %v716_v35 = vpop.f32.mrf.mxu0 }
 0x106   : > { %v1059_v16 = vrot.slane %v1057_v6, 7  ;;  %v939_v18 = vsel %vm5091_vm10, %v858_v10, 0.0  ;;  %v801_v19 = vadd.f32 %v4996_v49, %v774_v11  ;;  %v775_v25 = vmul.f32 %v4991_v46, %v713_v61  ;;  %vm5145_vm8 = vmand %vm889_vm12, %vm899_vm13 }
 0x107   : > { %v5106_v22 = vrot.slane %v1100_v14, 7  ;;  %v4002_v23 = vpack.c.bf16 %v939_v18, %v939_v18  ;;  %v799_v39 = vadd.f32 %v4996_v49, %v772_v20  ;;  %v804_v45 = vadd.f32 %v4996_v49, %v777_v24  ;;  %v4408_v58 = vpop.f32.mrf.mxu0 }
 0x108   : > { %v1062_v26 = vor.u32 %v1060_v7, %v1059_v16  ;;  %v1064_v27 = vrot.slane %v1059_v16, 4  ;;  %vm821_vm14 = vcmp.gt.f32.partialorder %v801_v19, 0.0  ;;  %v841_v29 = vmul.f32 0.1, %v801_v19 }
 0x109   : > { %v1105_v31 = vor.u32 %v1103_v15, %v5106_v22  ;;  %v1106_v32 = vrot.slane %v5106_v22, 4  ;;  %v1083_v33 = vshrl.u32 %v4002_v23, 16  ;;  %v1086_v34 = vshll.u32 %v4002_v23, 16  ;;  %v729_v16 = vpop.f32.mrf.mxu0 }
 0x10a   : > { %v1063_v36 = vsel %vm5071_vm5, %v1055_v50, %v1062_v26  ;;  %v1258_v37 = vsel %vm5077_vm6, %v1064_v27, %v1257_v21  ;;  %v861_v38 = vsel %vm821_vm14, %v801_v19, %v841_v29  ;;  %vm819_vm15 = vcmp.gt.f32.partialorder %v799_v39, 0.0 }
 0x10b   : > { %1254 = vst [vmem:[#allocation2 + $0x4] sm:$0xf] %v1063_v36  ;;  %1259 = vst [vmem:[#allocation2 + $0x8] sm:$0x1] %v1258_v37  ;;  %v1275_v41 = vsel %vm5047_vm4, %v1105_v31, %v1274_v28  ;;  %v5119_v42 = vrot.slane %v1083_v33, 7  ;;  %v942_v43 = vsel %vm5058_vm3, %v861_v38, 0.0  ;;  %v802_v52 = vadd.f32 %v4996_v49, %v775_v25 }
 0x10c   : > { %1276 = vst [vmem:[#allocation2 + $0x24] sm:$0xf] %v1275_v41  ;;  %v4005_v48 = vpack.c.bf16 %v942_v43, %v942_v43  ;;  %v839_v51 = vmul.f32 0.1, %v799_v39  ;;  %vm824_vm0 = vcmp.gt.f32.partialorder %v804_v45, 0.0  ;;  %v778_v11 = vmul.f32 %v4405_v56, %v4991_v46 }
 0x10d   : > { %v1088_v50 = vor.u32 %v1086_v34, %v5119_v42  ;;  %v1089_v54 = vrot.slane %v5119_v42, 4  ;;  %v844_v57 = vmul.f32 0.1, %v804_v45  ;;  %vm822_vm2 = vcmp.gt.f32.partialorder %v802_v52, 0.0  ;;  %v1271_v28 = vld [vmem:[#allocation2 + $0x20] sm:$0x1]  ;;  %v4409_v34 = vpop.f32.mrf.mxu0 }
 0x10e   : > { %v1108_v59 = vshrl.u32 %v4005_v48, 16  ;;  %v1111_v60 = vshll.u32 %v4005_v48, 16  ;;  %v859_v61 = vsel %vm819_vm15, %v799_v39, %v839_v51  ;;  %v842_v4 = vmul.f32 0.1, %v802_v52  ;;  %v1288_v36 = vld [vmem:[#allocation2 + $0x3c] sm:$0xf] }
 0x10f   : > { %v1268_v1 = vsel %vm5047_vm4, %v1088_v50, %v1267_v47  ;;  %v940_v2 = vsel %vm5091_vm10, %v859_v61, 0.0  ;;  %v864_v3 = vsel %vm824_vm0, %v804_v45, %v844_v57  ;;  %v776_v14 = vmul.f32 %v4991_v46, %v716_v35 }
 0x110   : > { %1269 = vst [vmem:[#allocation2 + $0x18] sm:$0xf] %v1268_v1  ;;  %v1110_v6 = vrot.slane %v1108_v59, 7  ;;  %v4003_v62 = vpack.c.bf16 %v940_v2, %v940_v2  ;;  %v945_v7 = vsel %vm5131_vm1, %v864_v3, 0.0  ;;  %v862_v13 = vsel %vm822_vm2, %v802_v52, %v842_v4  ;;  %v1281_v52 = vld [vmem:[#allocation2 + $0x30] sm:$0xf]  ;;  %v732_v59 = vpop.f32.mrf.mxu0 }
 0x111   : > { %v4008_v12 = vpack.c.bf16 %v945_v7, %v945_v7  ;;  %v781_v15 = vmul.f32 %v4408_v58, %v4991_v46  ;;  %vm892_vm3 = vcmp.ge.s32.totalorder %v5032_v8, 0  ;;  %vm902_vm7 = vcmp.lt.s32.totalorder %v5032_v8, 16 }
 0x112   : > { %v1113_v18 = vor.u32 %v1111_v60, %v1110_v6  ;;  %v1115_v19 = vrot.slane %v1110_v6, 4  ;;  %v1091_v20 = vshrl.u32 %v4003_v62, 16  ;;  %v1094_v21 = vshll.u32 %v4003_v62, 16  ;;  %vm5193_vm14 = vmand %vm892_vm3, %vm902_vm7  ;;  %v4412_v10 = vpop.f32.mrf.mxu0 }
 0x113   : > { %v1134_v63 = vshrl.u32 %v4008_v12, 16  ;;  %v1137_v22 = vshll.u32 %v4008_v12, 16  ;;  %v943_v56 = vsel %vm5145_vm8, %v862_v13, 0.0  ;;  %v805_v23 = vadd.f32 %v4996_v49, %v778_v11 }
 0x114   : > { %v1114_v24 = vsel %vm5071_vm5, %v1106_v32, %v1113_v18  ;;  %v1279_v25 = vsel %vm5077_vm6, %v1115_v19, %v1278_v5  ;;  %v1093_v26 = vrot.slane %v1091_v20, 7  ;;  %v4006_v27 = vpack.c.bf16 %v943_v56, %v943_v56 }
 0x115   : > { %vm891_vm9 = vcmp.ge.s32.totalorder %v5018_v0, 0  ;;  %vm901_vm11 = vcmp.lt.s32.totalorder %v5018_v0, 16  ;;  %1277 = vst [vmem:[#allocation2 + $0x28] sm:$0xf] %v1114_v24  ;;  %1280 = vst [vmem:[#allocation2 + $0x2c] sm:$0x1] %v1279_v25  ;;  %v803_v33 = vadd.f32 %v4996_v49, %v776_v14  ;;  %v808_v58 = vadd.f32 %v4996_v49, %v781_v15 }
 0x116   : > { %v5163_v29 = vrot.slane %v1134_v63, 7  ;;  %vm825_vm10 = vcmp.gt.f32.partialorder %v805_v23, 0.0  ;;  %v845_v31 = vmul.f32 0.1, %v805_v23  ;;  %v1096_v32 = vor.u32 %v1094_v21, %v1093_v26  ;;  %v1292_v15 = vld [vmem:[#allocation2 + $0x44] sm:$0x1]  ;;  %vm5206_vm2 = vmand %vm891_vm9, %vm901_vm11 }
 0x117   : > { %v1098_v35 = vrot.slane %v1093_v26, 4  ;;  %v1117_v37 = vshrl.u32 %v4006_v27, 16  ;;  %v1120_v38 = vshll.u32 %v4006_v27, 16  ;;  %vm823_vm12 = vcmp.gt.f32.partialorder %v803_v33, 0.0  ;;  %v1285_v0 = vld [vmem:[#allocation2 + $0x38] sm:$0x1] }
 0x118   : > { %v1139_v39 = vor.u32 %v1137_v22, %v5163_v29  ;;  %v1140_v41 = vrot.slane %v5163_v29, 4  ;;  %v865_v42 = vsel %vm825_vm10, %v805_v23, %v845_v31  ;;  %v1097_v43 = vsel %vm5071_vm5, %v1089_v54, %v1096_v32 }
 0x119   : > { %v1272_v45 = vsel %vm5077_vm6, %v1098_v35, %v1271_v28  ;;  %v5172_v47 = vrot.slane %v1117_v37, 7  ;;  %v946_v48 = vsel %vm5131_vm1, %v865_v42, 0.0  ;;  %1270 = vst [vmem:[#allocation2 + $0x1c] sm:$0xf] %v1097_v43  ;;  %v843_v57 = vmul.f32 0.1, %v803_v33 }
 0x11a   : > { %1273 = vst [vmem:[#allocation2 + $0x20] sm:$0x1] %v1272_v45  ;;  %v1289_v51 = vsel %vm5047_vm4, %v1139_v39, %v1288_v36  ;;  %v4009_v50 = vpack.c.bf16 %v946_v48, %v946_v48  ;;  %v779_v61 = vmul.f32 %v4991_v46, %v729_v16  ;;  %v782_v40 = vmul.f32 %v4409_v34, %v4991_v46 }
 0x11b   : > { %1290 = vst [vmem:[#allocation2 + $0x3c] sm:$0xf] %v1289_v51  ;;  %v1122_v54 = vor.u32 %v1120_v38, %v5172_v47  ;;  %v1123_v60 = vrot.slane %v5172_v47, 4  ;;  %v863_v3 = vsel %vm823_vm12, %v803_v33, %v843_v57  ;;  %vm828_vm13 = vcmp.gt.f32.partialorder %v808_v58, 0.0  ;;  %v1302_v47 = vld [vmem:[#allocation2 + $0x54] sm:$0xf]  ;;  %v745_v51 = vpop.f32.mrf.mxu0 }
 0x11c   : > { %v1142_v1 = vshrl.u32 %v4009_v50, 16  ;;  %v1145_v2 = vshll.u32 %v4009_v50, 16  ;;  %v944_v6 = vsel %vm5145_vm8, %v863_v3, 0.0  ;;  %v848_v62 = vmul.f32 0.1, %v808_v58 }
 0x11d   : > { %v1282_v4 = vsel %vm5047_vm4, %v1122_v54, %v1281_v52  ;;  %v806_v7 = vadd.f32 %v4996_v49, %v779_v61  ;;  %v4007_v5 = vpack.c.bf16 %v944_v6, %v944_v6  ;;  %v809_v13 = vadd.f32 %v4996_v49, %v782_v40 }
 0x11e   : > { %1283 = vst [vmem:[#allocation2 + $0x30] sm:$0xf] %v1282_v4  ;;  %v1144_v11 = vrot.slane %v1142_v1, 7  ;;  %v780_v14 = vmul.f32 %v4991_v46, %v732_v59  ;;  %v868_v16 = vsel %vm828_vm13, %v808_v58, %v848_v62  ;;  %v785_v19 = vmul.f32 %v4412_v10, %v4991_v46  ;;  %v1639_v58 = vld [vmem:[#allocation2 + $0x10] sm:$0xf] }
 0x11f   : > { %vm826_vm15 = vcmp.gt.f32.partialorder %v806_v7, 0.0  ;;  %v846_v18 = vmul.f32 0.1, %v806_v7  ;;  %vm894_vm0 = vcmp.ge.s32.totalorder %v5040_v17, 0  ;;  %vm904_vm1 = vcmp.lt.s32.totalorder %v5040_v17, 16 }
 0x120   : > { %v1147_v8 = vor.u32 %v1145_v2, %v1144_v11  ;;  %v1149_v20 = vrot.slane %v1144_v11, 4  ;;  %v1125_v21 = vshrl.u32 %v4007_v5, 16  ;;  %v1128_v63 = vshll.u32 %v4007_v5, 16  ;;  %v1638_v4 = vld [vmem:[#allocation2 + $0xc] sm:$0xf]  ;;  %vm5237_vm12 = vmand %vm894_vm0, %vm904_vm1 }
 0x121   : > { %v949_v56 = vsel %vm5193_vm14, %v868_v16, 0.0  ;;  %v866_v23 = vsel %vm826_vm15, %v806_v7, %v846_v18  ;;  %vm829_vm8 = vcmp.gt.f32.partialorder %v809_v13, 0.0  ;;  %v849_v24 = vmul.f32 0.1, %v809_v13  ;;  %v1295_v62 = vld [vmem:[#allocation2 + $0x48] sm:$0xf] }
 0x122   : > { %v1148_v25 = vsel %vm5071_vm5, %v1140_v41, %v1147_v8  ;;  %v1293_v26 = vsel %vm5077_vm6, %v1149_v20, %v1292_v15  ;;  %v1127_v27 = vrot.slane %v1125_v21, 7  ;;  %v4012_v28 = vpack.c.bf16 %v949_v56, %v949_v56  ;;  %v1306_v15 = vld [vmem:[#allocation2 + $0x5c] sm:$0x1] }
 0x123   : > { %1291 = vst [vmem:[#allocation2 + $0x40] sm:$0xf] %v1148_v25  ;;  %1294 = vst [vmem:[#allocation2 + $0x44] sm:$0x1] %v1293_v26  ;;  %v947_v29 = vsel %vm5206_vm2, %v866_v23, 0.0  ;;  %v869_v31 = vsel %vm829_vm8, %v809_v13, %v849_v24  ;;  %v807_v33 = vadd.f32 %v4996_v49, %v780_v14  ;;  %v812_v34 = vadd.f32 %v4996_v49, %v785_v19  ;;  %v4413_v13 = vpop.f32.mrf.mxu0 }
 0x124   : > { %vm893_vm3 = vcmp.ge.s32.totalorder %v5034_v9, 0  ;;  %vm903_vm7 = vcmp.lt.s32.totalorder %v5034_v9, 16  ;;  %v1130_v32 = vor.u32 %v1128_v63, %v1127_v27  ;;  %v1132_v35 = vrot.slane %v1127_v27, 4  ;;  %v5245_v19 = vld [vmem:[#allocation2 + $0x14] ss:$0 sps:$4 sm:$0x11]  }
 0x125   : > { %v1168_v36 = vshrl.u32 %v4012_v28, 16  ;;  %v1171_v37 = vshll.u32 %v4012_v28, 16  ;;  %v4010_v38 = vpack.c.bf16 %v947_v29, %v947_v29  ;;  %v950_v39 = vsel %vm5193_vm14, %v869_v31, 0.0  ;;  %vm5259_vm14 = vmand %vm893_vm3, %vm903_vm7  ;;  %v1662_v28 = vld [vmem:[#allocation2 + $0xc] sm:$0xe] }
 0x126   : > { %vm827_vm9 = vcmp.gt.f32.partialorder %v807_v33, 0.0  ;;  %v847_v41 = vmul.f32 0.1, %v807_v33  ;;  %v1131_v42 = vsel %vm5071_vm5, %v1123_v60, %v1130_v32  ;;  %v1286_v43 = vsel %vm5077_vm6, %v1132_v35, %v1285_v0  ;;  %v748_v0 = vpop.f32.mrf.mxu0  ;;  %v1299_v29 = vld [vmem:[#allocation2 + $0x50] sm:$0x1] }
 0x127   : > { %v1170_v45 = vrot.slane %v1168_v36, 7  ;;  %v4013_v48 = vpack.c.bf16 %v950_v39, %v950_v39  ;;  %1284 = vst [vmem:[#allocation2 + $0x34] sm:$0xf] %v1131_v42  ;;  %1287 = vst [vmem:[#allocation2 + $0x38] sm:$0x1] %v1286_v43  ;;  %v1151_v52 = vshrl.u32 %v4010_v38, 16  ;;  %v783_v3 = vmul.f32 %v4991_v46, %v745_v51 }
 0x128   : > { %v1154_v50 = vshll.u32 %v4010_v38, 16  ;;  %v867_v57 = vsel %vm827_vm9, %v807_v33, %v847_v41  ;;  %vm832_vm11 = vcmp.gt.f32.partialorder %v812_v34, 0.0  ;;  %vm1556_vm10 = vcmask 1046528   ;;  %v1642_v27 = vld [vmem:[#allocation2 + $0x24] sm:$0xf] }
 0x129   : > { %v1173_v59 = vor.u32 %v1171_v37, %v1170_v45  ;;  %v1174_v54 = vrot.slane %v1170_v45, 4  ;;  %v1176_v61 = vshrl.u32 %v4013_v48, 16  ;;  %v1179_v40 = vshll.u32 %v4013_v48, 16  ;;  %v1316_v48 = vld [vmem:[#allocation2 + $0x6c] sm:$0xf] }
 0x12a   : > { %v1153_v60 = vrot.slane %v1151_v52, 7  ;;  %v948_v1 = vsel %vm5206_vm2, %v867_v57, 0.0  ;;  %v852_v2 = vmul.f32 0.1, %v812_v34  ;;  %v5241_v12 = vcombine.low %v1638_v4, %v1639_v58  ;;  %v1646_v53 = vld [vmem:[#allocation2 + $0x3c] sm:$0xf] }
 0x12b   : > { %v1303_v6 = vsel %vm5047_vm4, %v1173_v59, %v1302_v47  ;;  %v1178_v7 = vrot.slane %v1176_v61, 7  ;;  %v4011_v11 = vpack.c.bf16 %v948_v1, %v948_v1  ;;  %v810_v18 = vadd.f32 %v4996_v49, %v783_v3  ;;  %v1641_v61 = vld [vmem:[#allocation2 + $0x1c] sm:$0xf]  ;;  %v1663_v3 = vld [vmem:[#allocation2 + $0x18] sm:$0xe] }
 0x12c   : > { %1304 = vst [vmem:[#allocation2 + $0x54] sm:$0xf] %v1303_v6  ;;  %v1156_v14 = vor.u32 %v1154_v50, %v1153_v60  ;;  %v1157_v10 = vrot.slane %v1153_v60, 4  ;;  %v872_v16 = vsel %vm832_vm11, %v812_v34, %v852_v2  ;;  %v3776_v33 = vcombine.low %v1662_v28, %v1639_v58 }
 0x12d   : > { %v1181_v8 = vor.u32 %v1179_v40, %v1178_v7  ;;  %v1183_v20 = vrot.slane %v1178_v7, 4  ;;  %v1159_v17 = vshrl.u32 %v4011_v11, 16  ;;  %v1162_v21 = vshll.u32 %v4011_v11, 16  ;;  %v1309_v40 = vld [vmem:[#allocation2 + $0x60] sm:$0xf] }
 0x12e   : > { %v1296_v63 = vsel %vm5047_vm4, %v1156_v14, %v1295_v62  ;;  %v953_v22 = vsel %vm5237_vm12, %v872_v16, 0.0  ;;  %vm830_vm13 = vcmp.gt.f32.partialorder %v810_v18, 0.0  ;;  %v850_v56 = vmul.f32 0.1, %v810_v18 }
 0x12f   : > { %1297 = vst [vmem:[#allocation2 + $0x48] sm:$0xf] %v1296_v63  ;;  %v1182_v23 = vsel %vm5071_vm5, %v1174_v54, %v1181_v8  ;;  %v1307_v24 = vsel %vm5077_vm6, %v1183_v20, %v1306_v15  ;;  %v1161_v25 = vrot.slane %v1159_v17, 7  ;;  %v4016_v26 = vpack.c.bf16 %v953_v22, %v953_v22  ;;  %v5287_v7 = vld [vmem:[#allocation2 + $0x20] ss:$0 sps:$4 sm:$0x11]  }
 0x130   : > { %1305 = vst [vmem:[#allocation2 + $0x58] sm:$0xf] %v1182_v23  ;;  %1308 = vst [vmem:[#allocation2 + $0x5c] sm:$0x1] %v1307_v24  ;;  %v870_v31 = vsel %vm830_vm13, %v810_v18, %v850_v56  ;;  %v1871_v34 = vrot.slane %v5245_v19, 1  ;;  %v786_v32 = vmul.f32 %v4413_v13, %v4991_v46  ;;  %v1870_v39 = vrot.slane %v3776_v33, 1 }
 0x131   : > { %v1164_v35 = vor.u32 %v1162_v21, %v1161_v25  ;;  %v1166_v36 = vrot.slane %v1161_v25, 4  ;;  %v1202_v37 = vshrl.u32 %v4016_v26, 16  ;;  %v1205_v38 = vshll.u32 %v4016_v26, 16  ;;  %v1643_v15 = vld [vmem:[#allocation2 + $0x28] sm:$0xf] }
 0x132   : > { %v951_v9 = vsel %vm5259_vm14, %v870_v31, 0.0  ;;  %v813_v41 = vadd.f32 %v4996_v49, %v786_v32  ;;  %v784_v42 = vmul.f32 %v4991_v46, %v748_v0  ;;  %vm1427_vm15 = vsmask.f32 7424  ;;  %v5294_v20 = vld [vmem:[#allocation2 + $0x2c] ss:$0 sps:$4 sm:$0x11]  }
 0x133   : > { %v1165_v43 = vsel %vm5071_vm5, %v1157_v10, %v1164_v35  ;;  %v1300_v45 = vsel %vm5077_vm6, %v1166_v36, %v1299_v29  ;;  %v5273_v47 = vrot.slane %v1202_v37, 7  ;;  %v4014_v51 = vpack.c.bf16 %v951_v9, %v951_v9  ;;  %v1320_v23 = vld [vmem:[#allocation2 + $0x74] sm:$0x1]  ;;  %v1664_v31 = vld [vmem:[#allocation2 + $0x24] sm:$0xe] }
 0x134   : > { %1298 = vst [vmem:[#allocation2 + $0x4c] sm:$0xf] %v1165_v43  ;;  %1301 = vst [vmem:[#allocation2 + $0x50] sm:$0x1] %v1300_v45  ;;  %v1872_v52 = vsel %vm1556_vm10, %v1870_v39, %v1871_v34  ;;  %vm833_vm0 = vcmp.gt.f32.partialorder %v813_v41, 0.0  ;;  %v811_v57 = vadd.f32 %v4996_v49, %v784_v42  ;;  %v1743_v2 = vshrl.u32 %v5241_v12, 16 }
 0x135   : > { %v853_v50 = vmul.f32 0.1, %v813_v41  ;;  %v1207_v46 = vor.u32 %v1205_v38, %v5273_v47  ;;  %v1208_v58 = vrot.slane %v5273_v47, 4  ;;  %v1185_v59 = vshrl.u32 %v4014_v51, 16  ;;  %4430 = vmatprep.mubr.bf16.mxu0 %v1872_v52  ;;  %v4606_v34 = vld [vmem:[%s6127_s4 + $0xb0] sm:$0xff]  }
 0x136   : > { %v1188_v54 = vshll.u32 %v4014_v51, 16  ;;  %vm831_vm1 = vcmp.gt.f32.partialorder %v811_v57, 0.0  ;;  %v851_v1 = vmul.f32 0.1, %v811_v57  ;;  %v1745_v62 = vshll.u32 %v5241_v12, 16  ;;  %v4605_v9 = vld [vmem:[%s6127_s4 + $0x70] sm:$0xff]  }
 0x137   : > { %v873_v60 = vsel %vm833_vm0, %v813_v41, %v853_v50  ;;  %v1317_v4 = vsel %vm5047_vm4, %v1207_v46, %v1316_v48  ;;  %v5282_v6 = vrot.slane %v1185_v59, 7  ;;  %v1750_v14 = vshll.u32 %v5245_v19, 16  ;;  %v4597_v19 = vld [vmem:[%s6127_s4 + $0x38] sm:$0xff]   ;;  %v1313_v32 = vld [vmem:[#allocation2 + $0x68] sm:$0x1]  ;;  %v4607_v45 = vld [vmem:[%s6127_s4 + $0x30] sm:$0xff]  }
 0x138   : > { %v954_v49 = vsel %vm5237_vm12, %v873_v60, 0.0  ;;  %1318 = vst [vmem:[#allocation2 + $0x6c] sm:$0xf] %v1317_v4  ;;  %v871_v13 = vsel %vm831_vm1, %v811_v57, %v851_v1  ;;  %v3777_v10 = vcombine.low %v1663_v3, %v1641_v61  ;;  %v1747_v5 = vrot.slane %v1745_v62, 1  ;;  %v1640_v38 = vld [vmem:[#allocation2 + $0x18] sm:$0xf] }
 0x139   : > { %v4017_v11 = vpack.c.bf16 %v954_v49, %v954_v49  ;;  %v1190_v16 = vor.u32 %v1188_v54, %v5282_v6  ;;  %v1191_v18 = vrot.slane %v5282_v6, 4  ;;  %v952_v8 = vsel %vm5259_vm14, %v871_v13, 0.0  ;;  %v4611_v48 = vld [vmem:[%s6127_s4 + $0xa8] sm:$0xff]   ;;  %v5325_v57 = vld [vmem:[#allocation2 + $0x38] ss:$0 sps:$4 sm:$0x11]  }
 0x13a   : > { %v4015_v63 = vpack.c.bf16 %v952_v8, %v952_v8  ;;  %v1752_v22 = vrot.slane %v1750_v14, 1  ;;  %v1748_v24 = vor.u32 %v1747_v5, %v1743_v2  ;;  %v1873_v25 = vrot.slane %v3777_v10, 1  ;;  %v1647_v46 = vld [vmem:[#allocation2 + $0x40] sm:$0xf]  ;;  %v1666_v59 = vld [vmem:[#allocation2 + $0x3c] sm:$0xe] }
 0x13b   : > { %v1210_v17 = vshrl.u32 %v4017_v11, 16  ;;  %v1213_v21 = vshll.u32 %v4017_v11, 16  ;;  %v1310_v56 = vsel %vm5047_vm4, %v1190_v16, %v1309_v40  ;;  %v1874_v26 = vrot.slane %v5287_v7, 1  ;;  %v5333_v60 = vld [vmem:[#allocation2 + $0x44] ss:$0 sps:$4 sm:$0x11]  }
 0x13c   : > { %1311 = vst [vmem:[#allocation2 + $0x60] sm:$0xf] %v1310_v56  ;;  %v1193_v0 = vshrl.u32 %v4015_v63, 16  ;;  %v1196_v29 = vshll.u32 %v4015_v63, 16  ;;  %v5302_v33 = vcombine.low %v1642_v27, %v1643_v15  ;;  %v1753_v30 = vsel %vm1427_vm15, %v1748_v24, %v1752_v22  ;;  %v4615_v3 = vld [vmem:[%s6127_s4 + $0x68] sm:$0xff]  }
 0x13d   : > { %v1212_v28 = vrot.slane %v1210_v17, 7  ;;  %v1875_v35 = vsel %vm1556_vm10, %v1873_v25, %v1874_v26  ;;  %v3778_v36 = vcombine.low %v1664_v31, %v1643_v15  ;;  %v1877_v37 = vrot.slane %v5294_v20, 1  ;;  %2127 = vmatprep.mubr.bf16.mxu1 %v1753_v30  ;;  %v1665_v11 = vld [vmem:[#allocation2 + $0x30] sm:$0xe]  ;;  %v1667_v16 = vld [vmem:[#allocation2 + $0x48] sm:$0xe] }
 0x13e   : > { %v1195_v42 = vrot.slane %v1193_v0, 7  ;;  %4431 = vmatmul.mubr.bf16.vlgmr.msra.gmra.mxu0 %v1875_v35  ;;  %v5313_v43 = vcombine.low %v1640_v38, %v1641_v61  ;;  %2128 = vmatmul.mubr.bf16.vlgmr.msra.gmra.mxu1 %v5241_v12  ;;  %v1762_v52 = vshll.u32 %v5287_v7, 16  ;;  %v1769_v50 = vshll.u32 %v5302_v33, 16  ;;  %v1644_v7 = vld [vmem:[#allocation2 + $0x30] sm:$0xf]  ;;  %v4617_v27 = vld [vmem:[%s6127_s4 + $0x28] sm:$0xff]  }
 0x13f   : > { %v1215_v39 = vor.u32 %v1213_v21, %v1212_v28  ;;  %v1217_v41 = vrot.slane %v1212_v28, 4  ;;  %v1876_v51 = vrot.slane %v3778_v36, 1  ;;  %4447 = vmatpush3.bf16.msra.mxu0 %v4984_v44  ;;  %4219 = vmatpush3.bf16.msra.mxu1 %v4597_v19  ;;  %v1645_v44 = vld [vmem:[#allocation2 + $0x34] sm:$0xf]  ;;  %v1774_v62 = vshll.u32 %v5294_v20, 16  ;;  %v4616_v19 = vld [vmem:[%s6127_s4 + $0xa0] sm:$0xff]  }
 0x140   : > { %v1198_v12 = vor.u32 %v1196_v29, %v1195_v42  ;;  %v1200_v40 = vrot.slane %v1195_v42, 4  ;;  %4448 = vmatprep.subr.bf16.mxu0 %v4606_v34  ;;  %v1755_v2 = vshrl.u32 %v5313_v43, 16  ;;  %v1757_v47 = vshll.u32 %v5313_v43, 16  ;;  %4220 = vmatprep.subr.bf16.mxu1 %v4605_v9  ;;  %v1649_v8 = vld [vmem:[#allocation2 + $0x4c] sm:$0xf] }
 0x141   : > { %v1216_v54 = vsel %vm5071_vm5, %v1208_v58, %v1215_v39  ;;  %v1321_v61 = vsel %vm5077_vm6, %v1217_v41, %v1320_v23  ;;  %v1878_v1 = vsel %vm1556_vm10, %v1876_v51, %v1877_v37  ;;  %v1767_v58 = vshrl.u32 %v5302_v33, 16  ;;  %v5351_v63 = vld [vmem:[#allocation2 + $0x50] ss:$0 sps:$4 sm:$0x11]   ;;  %v1668_v0 = vld [vmem:[#allocation2 + $0x54] sm:$0xe] }
 0x142   : > { %1319 = vst [vmem:[#allocation2 + $0x70] sm:$0xf] %v1216_v54  ;;  %1322 = vst [vmem:[#allocation2 + $0x74] sm:$0x1] %v1321_v61  ;;  %v1199_v4 = vsel %vm5071_vm5, %v1191_v18, %v1198_v12  ;;  %v1314_v6 = vsel %vm5077_vm6, %v1200_v40, %v1313_v32  ;;  %4434 = vmatprep.mubr.bf16.mxu0 %v1878_v1  ;;  %v1771_v49 = vrot.slane %v1769_v50, 1  ;;  %v1759_v13 = vrot.slane %v1757_v47, 1 }
 0x143   : > { %1312 = vst [vmem:[#allocation2 + $0x64] sm:$0xf] %v1199_v4  ;;  %1315 = vst [vmem:[#allocation2 + $0x68] sm:$0x1] %v1314_v6  ;;  %4449 = vmatpush3.bf16.msra.mxu0 %v4606_v34  ;;  %v5347_v14 = vcombine.low %v1644_v7, %v1645_v44  ;;  %v3779_v10 = vcombine.low %v1665_v11, %v1645_v44  ;;  %v1880_v15 = vrot.slane %v5325_v57, 1  ;;  %v1764_v18 = vrot.slane %v1762_v52, 1 }
 0x144   : > { %4221 = vmatpush3.bf16.msra.mxu1 %v4607_v45  ;;  %4450 = vmatprep.subr.bf16.mxu0 %v4611_v48  ;;  %v3780_v55 = vcombine.low %v1666_v59, %v1647_v46  ;;  %v1760_v5 = vor.u32 %v1759_v13, %v1755_v2  ;;  %v1772_v20 = vor.u32 %v1771_v49, %v1767_v58  ;;  %v1883_v21 = vrot.slane %v5333_v60, 1  ;;  %v5357_v23 = vld [vmem:[#allocation2 + $0x5c] ss:$0 sps:$4 sm:$0x11]   ;;  %v4622_v32 = vld [vmem:[%s6127_s4 + $0x60] sm:$0xff]   ;;  %v4623_v51 = vld [vmem:[%s6127_s4 + $0x90] sm:$0xff]  }
 0x145   : > { %v1879_v17 = vrot.slane %v3779_v10, 1  ;;  %4222 = vmatprep.subr.bf16.mxu1 %v4615_v3  ;;  %v1781_v56 = vshll.u32 %v5347_v14, 16  ;;  %v1776_v25 = vrot.slane %v1774_v62, 1  ;;  %v3781_v28 = vcombine.low %v1667_v16, %v1649_v8  ;;  %v4621_v34 = vld [vmem:[%s6127_s4 + $0x98] sm:$0xff]   ;;  %v1669_v9 = vld [vmem:[#allocation2 + $0x60] sm:$0xe] }
 0x146   : > { %v1882_v22 = vrot.slane %v3780_v55, 1  ;;  %v1765_v24 = vsel %vm1427_vm15, %v1760_v5, %v1764_v18  ;;  %v5364_v29 = vcombine.low %v1646_v53, %v1647_v46  ;;  %v5373_v30 = vld [vmem:[#allocation2 + $0x58] sm:$0xf]  ;;  %v1886_v38 = vrot.slane %v5351_v63, 1  ;;  %v5390_v50 = vld [vmem:[#allocation2 + $0x4] sm:$0xf] }
 0x147   : > { %v1881_v26 = vsel %vm1556_vm10, %v1879_v17, %v1880_v15  ;;  %4451 = vmatpush3.bf16.msra.mxu0 %v4611_v48  ;;  %2135 = vmatprep.mubr.bf16.mxu1 %v1765_v24  ;;  %v1777_v35 = vsel %vm1427_vm15, %v1772_v20, %v1776_v25  ;;  %v1783_v36 = vrot.slane %v1781_v56, 1  ;;  %v1885_v37 = vrot.slane %v3781_v28, 1  ;;  %v4624_v48 = vld [vmem:[%s6127_s4 + $0x20] sm:$0xff]   ;;  %v1648_v59 = vld [vmem:[#allocation2 + $0x48] sm:$0xf]  ;;  %v4635_v44 = vld [vmem:[%s6127_s4 + $0x58] sm:$0xff]  }
 0x148   : > { %4435 = vmatmul.mubr.bf16.gmra.mxu0 %v1881_v26  ;;  %v1884_v31 = vsel %vm1556_vm10, %v1882_v22, %v1883_v21  ;;  %2136 = vmatmul.mubr.bf16.gmra.mxu1 %v5313_v43  ;;  %v3782_v39 = vcombine.low %v1668_v0, %v5373_v30  ;;  %v1889_v41 = vrot.slane %v5357_v23, 1  ;;  %v1779_v43 = vshrl.u32 %v5347_v14, 16  ;;  %v1347_v2 = vld [vmem:[#allocation2] sm:$0xe]  ;;  %v4637_v47 = vld [vmem:[%s6127_s4 + $0x18] sm:$0xff]   ;;  %v4631_v4 = vld [vmem:[%s6127_s4 + $0x88] sm:$0xff]  }
 0x149   : > { %4438 = vmatprep.mubr.bf16.mxu0 %v1884_v31  ;;  %2143 = vmatprep.mubr.bf16.mxu1 %v1777_v35  ;;  %v1786_v45 = vshll.u32 %v5325_v57, 16  ;;  %v1887_v54 = vsel %vm1556_vm10, %v1885_v37, %v1886_v38  ;;  %v1793_v61 = vshll.u32 %v5364_v29, 16  ;;  %v5404_v58 = vcombine.low %v1648_v59, %v1649_v8  ;;  %v5410_v6 = vld [vmem:[#allocation2 + $0x8] ss:$0 sps:$4 sm:$0x11]   ;;  %v4645_v62 = vld [vmem:[%s6127_s4 + $0x50] sm:$0xff]  }
 0x14a   : > { %4452 = vmatprep.subr.bf16.mxu0 %v4616_v19  ;;  %v5380_v42 = vld [vmem:[#allocation2 + $0x64] sm:$0xf]  ;;  %4223 = vmatpush3.bf16.msra.mxu1 %v4617_v27  ;;  %v1888_v52 = vrot.slane %v3782_v39, 1  ;;  %v1784_v46 = vor.u32 %v1783_v36, %v1779_v43  ;;  %v5394_v57 = vld [vmem:[#allocation2 + $0x68] ss:$0 sps:$4 sm:$0x11]   ;;  %v3752_v49 = vcombine.low %v1347_v2, %v5390_v50 }
 0x14b   : > { %4453 = vmatpush3.bf16.msra.mxu0 %v4616_v19  ;;  %4224 = vmatprep.subr.bf16.mxu1 %v4622_v32  ;;  %v3783_v12 = vcombine.low %v1669_v9, %v5380_v42  ;;  %v1788_v1 = vrot.slane %v1786_v45, 1  ;;  %v1798_v3 = vshll.u32 %v5333_v60, 16  ;;  %v1795_v11 = vrot.slane %v1793_v61, 1  ;;  %v4647_v15 = vld [vmem:[%s6127_s4 + $0x10] sm:$0xff]   ;;  %v4636_v16 = vld [vmem:[%s6127_s4 + $0x80] sm:$0xff]   ;;  %v4657_v19 = vld [vmem:[%s6127_s4 + $0x48] sm:$0xff]  }
 0x14c   : > { %4454 = vmatprep.subr.bf16.mxu0 %v4621_v34  ;;  %v1890_v40 = vsel %vm1556_vm10, %v1888_v52, %v1889_v41  ;;  %v1892_v60 = vrot.slane %v5394_v57, 1  ;;  %v1791_v10 = vshrl.u32 %v5364_v29, 16  ;;  %v1557_v53 = vrot.slane %v3752_v49, 1  ;;  %v5427_v18 = vld [vmem:[#allocation2 + $0x10] sm:$0xf]  ;;  %v4659_v26 = vld [vmem:[%s6127_s4 + $0x8] sm:$0xff]  }
 0x14d   : > { %v1789_v7 = vsel %vm1427_vm15, %v1784_v46, %v1788_v1  ;;  %v1891_v13 = vrot.slane %v3783_v12, 1  ;;  %v1800_v8 = vrot.slane %v1798_v3, 1  ;;  %v1650_v5 = vld [vmem:[#allocation2 + $0x54] sm:$0xf]  ;;  %v1805_v17 = vshll.u32 %v5404_v58, 16  ;;  %v4640_v0 = vld [vmem:[%s6127_s4 + $0x1f8] sm:$0xff]  }
 0x14e   : > { %4225 = vmatpush3.bf16.msra.mxu1 %v4624_v48  ;;  %v1796_v55 = vor.u32 %v1795_v11, %v1791_v10  ;;  %v5431_v21 = vld [vmem:[#allocation2 + $0x1c] sm:$0xf]  ;;  %v1348_v22 = vld [vmem:[#allocation2 + $0xc] sm:$0xe]  ;;  %v1349_v25 = vld [vmem:[#allocation2 + $0x18] sm:$0xe]  ;;  %v5443_v27 = vcombine.low %v1650_v5, %v5373_v30 }
 0x14f   : > { %4455 = vmatpush3.bf16.msra.mxu0 %v4621_v34  ;;  %4226 = vmatprep.subr.bf16.mxu1 %v4635_v44  ;;  %v1893_v20 = vsel %vm1556_vm10, %v1891_v13, %v1892_v60  ;;  %v5436_v56 = vld [vmem:[#allocation2 + $0x14] ss:$0 sps:$4 sm:$0x11]   ;;  %v3753_v24 = vcombine.low %v1348_v22, %v5427_v18  ;;  %v5449_v31 = vld [vmem:[#allocation2 + $0x20] ss:$0 sps:$4 sm:$0x11]   ;;  %v3754_v34 = vcombine.low %v1349_v25, %v5431_v21 }
 0x150   : > { %4439 = vmatmul.mubr.bf16.gmra.mxu0 %v1887_v54  ;;  %4456 = vmatprep.subr.bf16.mxu0 %v4623_v51  ;;  %v4669_v32 = vld [vmem:[%s6127_s4 + $0x40] sm:$0xff]   ;;  %v1801_v30 = vsel %vm1427_vm15, %v1796_v55, %v1800_v8  ;;  %v1803_v35 = vshrl.u32 %v5404_v58, 16  ;;  %v1807_v36 = vrot.slane %v1805_v17, 1  ;;  %v1810_v37 = vshll.u32 %v5351_v63, 16  ;;  %v5464_v43 = vld [vmem:[#allocation2 + $0x28] sm:$0xf] }
 0x151   : > { %2144 = vmatmul.mubr.bf16.gmra.mxu1 %v5302_v33  ;;  %4442 = vmatprep.mubr.bf16.mxu0 %v1890_v40  ;;  %v1558_v33 = vrot.slane %v5410_v6, 1  ;;  %v1560_v38 = vrot.slane %v3753_v24, 1  ;;  %v1561_v9 = vrot.slane %v5436_v56, 1  ;;  %v4671_v39 = vld [vmem:[%s6127_s4] sm:$0xff]   ;;  %v1564_v41 = vrot.slane %v5449_v31, 1  ;;  %v5469_v63 = vld [vmem:[%s6127_s4 + $0x238] sm:$0xff]  }
 0x152   : > { %2151 = vmatprep.mubr.bf16.mxu1 %v1789_v7  ;;  %4227 = vmatpush3.bf16.msra.mxu1 %v4637_v47  ;;  %v1652_v45 = vld [vmem:[#allocation2 + $0x60] sm:$0xf]  ;;  %v1808_v48 = vor.u32 %v1807_v36, %v1803_v35  ;;  %v1817_v52 = vshll.u32 %v5443_v27, 16  ;;  %v5472_v46 = vld [vmem:[#allocation2 + $0x34] sm:$0xf]  ;;  %v4644_v59 = vld [vmem:[%s6127_s4 + $0x1b8] sm:$0xff]  }
 0x153   : > { %4457 = vmatpush3.bf16.msra.mxu0 %v4623_v51  ;;  %4228 = vmatprep.subr.bf16.mxu1 %v4645_v62  ;;  %v1559_v28 = vsel %vm1556_vm10, %v1557_v53, %v1558_v33  ;;  %v1812_v51 = vrot.slane %v1810_v37, 1  ;;  %v1350_v54 = vld [vmem:[#allocation2 + $0x24] sm:$0xe]  ;;  %v1562_v61 = vsel %vm1556_vm10, %v1560_v38, %v1561_v9  ;;  %v4646_v12 = vld [vmem:[%s6127_s4 + $0x1f0] sm:$0xff]   ;;  %v5485_v2 = vcombine.low %v1652_v45, %v5380_v42  ;;  %v5504_v53 = vld [vmem:[#allocation2 + $0x40] sm:$0xf] }
 0x154   : > { %4458 = vmatprep.subr.bf16.mxu0 %v4631_v4  ;;  %v5481_v40 = vld [vmem:[#allocation2 + $0x2c] ss:$0 sps:$4 sm:$0x11]   ;;  %v3755_v44 = vcombine.low %v1350_v54, %v5464_v43  ;;  %v1351_v1 = vld [vmem:[#allocation2 + $0x30] sm:$0xe]  ;;  %v1815_v62 = vshrl.u32 %v5443_v27, 16 }
 0x155   : > { %v5488_v3 = vld [vmem:[#allocation2 + $0x38] ss:$0 sps:$4 sm:$0x11]   ;;  %v1813_v49 = vsel %vm1427_vm15, %v1808_v48, %v1812_v51  ;;  %v1819_v7 = vrot.slane %v1817_v52, 1  ;;  %v1822_v42 = vshll.u32 %v5357_v23, 16  ;;  %v4648_v11 = vld [vmem:[%s6127_s4 + $0x1b0] sm:$0xff]  }
 0x156   : > { %4229 = vmatpush3.bf16.msra.mxu1 %v4647_v15  ;;  %v1566_v13 = vrot.slane %v3755_v44, 1  ;;  %v1567_v60 = vrot.slane %v5481_v40, 1  ;;  %v1570_v15 = vrot.slane %v5488_v3, 1  ;;  %v1352_v23 = vld [vmem:[#allocation2 + $0x3c] sm:$0xe]  ;;  %v1829_v55 = vshll.u32 %v5485_v2, 16 }
 0x157   : > { %4459 = vmatpush3.bf16.msra.mxu0 %v4631_v4  ;;  %4230 = vmatprep.subr.bf16.mxu1 %v4657_v19  ;;  %v3756_v4 = vcombine.low %v1351_v1, %v5472_v46  ;;  %v1820_v33 = vor.u32 %v1819_v7, %v1815_v62  ;;  %v1353_v8 = vld [vmem:[#allocation2 + $0x48] sm:$0xe]  ;;  %v5507_v5 = vld [vmem:[#allocation2 + $0x1c] sm:$0xf]  ;;  %v2628_v22 = vld [vmem:[#allocation2 + $0x18] sm:$0xf] }
 0x158   : > { %4443 = vmatmul.mubr.bf16.gmra.mxu0 %v1893_v20  ;;  %4460 = vmatprep.subr.bf16.mxu0 %v4636_v16  ;;  %v1323_v20 = vld [vmem:[#allocation2] sm:$0xf]  ;;  %v4656_v17 = vld [vmem:[%s6127_s4 + $0x1a8] sm:$0xff]   ;;  %v1568_v19 = vsel %vm1556_vm10, %v1566_v13, %v1567_v60  ;;  %v5516_v25 = vld [vmem:[#allocation2 + $0x44] ss:$0 sps:$4 sm:$0x11]   ;;  %v5529_v35 = vcombine.low %v2628_v22, %v5507_v5 }
 0x159   : > { %2152 = vmatmul.mubr.bf16.gmra.mxu1 %v5347_v14  ;;  %4462 = vmatprep.mubr.bf16.mxu0 %v1559_v28  ;;  %v1563_v14 = vrot.slane %v3754_v34, 1  ;;  %v1569_v10 = vrot.slane %v3756_v4, 1  ;;  %v4658_v24 = vld [vmem:[%s6127_s4 + $0x1e0] sm:$0xff]   ;;  %v5519_v28 = vld [vmem:[#allocation2 + $0x4c] sm:$0xf]  ;;  %v1827_v37 = vshrl.u32 %v5485_v2, 16 }
 0x15a   : > { %2159 = vmatprep.mubr.bf16.mxu1 %v1801_v30  ;;  %4231 = vmatpush3.bf16.msra.mxu1 %v4659_v26  ;;  %v3757_v26 = vcombine.low %v1352_v23, %v5504_v53  ;;  %v3758_v30 = vcombine.low %v1353_v8, %v5519_v28  ;;  %v1831_v38 = vrot.slane %v1829_v55, 1  ;;  %v4660_v9 = vld [vmem:[%s6127_s4 + $0x1a0] sm:$0xff]   ;;  %v1354_v48 = vld [vmem:[#allocation2 + $0x54] sm:$0xe]  ;;  %v4668_v54 = vld [vmem:[%s6127_s4 + $0x198] sm:$0xff]  }
 0x15b   : > { %4461 = vmatpush3.bf16.msra.mxu0 %v4636_v16  ;;  %4232 = vmatprep.subr.bf16.mxu1 %v4669_v32  ;;  %v1565_v47 = vsel %vm1556_vm10, %v1563_v14, %v1564_v41  ;;  %v1824_v16 = vrot.slane %v1822_v42, 1  ;;  %v1571_v34 = vsel %vm1556_vm10, %v1569_v10, %v1570_v15  ;;  %v5525_v32 = vld [vmem:[#allocation2 + $0x50] ss:$0 sps:$4 sm:$0x11]   ;;  %v1573_v14 = vrot.slane %v5516_v25, 1  ;;  %v4676_v8 = vld [vmem:[%s6127_s4 + $0x1c8] sm:$0xff]  }
 0x15c   : > { %4298 = vmatprep.subr.bf16.mxu0 %v4640_v0  ;;  %v5522_v0 = vcombine.low %v1323_v20, %v5390_v50  ;;  %v1834_v50 = vshll.u32 %v5394_v57, 16  ;;  %v1575_v41 = vrot.slane %v3758_v30, 1  ;;  %v1576_v45 = vrot.slane %v5525_v32, 1  ;;  %v4670_v1 = vld [vmem:[%s6127_s4 + $0x1d0] sm:$0xff]   ;;  %v1325_v42 = vld [vmem:[#allocation2 + $0xc] sm:$0xf] }
 0x15d   : > { %v1825_v36 = vsel %vm1427_vm15, %v1820_v33, %v1824_v16  ;;  %v2735_v57 = vshll.u32 %v5529_v35, 16  ;;  %v1832_v51 = vor.u32 %v1831_v38, %v1827_v37  ;;  %v5565_v60 = vcombine.low %v1325_v42, %v5427_v18  ;;  %v4672_v10 = vld [vmem:[%s6127_s4 + $0x190] sm:$0xff]   ;;  %v4677_v22 = vld [vmem:[%s6127_s4 + $0x188] sm:$0xff]  }
 0x15e   : > { %4233 = vmatpush3.bf16.msra.mxu1 %v4671_v39  ;;  %v1572_v39 = vrot.slane %v3757_v26, 1  ;;  %v1836_v52 = vrot.slane %v1834_v50, 1  ;;  %v1577_v62 = vsel %vm1556_vm10, %v1575_v41, %v1576_v45  ;;  %v2733_v15 = vshrl.u32 %v5529_v35, 16  ;;  %v5589_v30 = vld [vmem:[#allocation2 + $0x34] sm:$0xf] }
 0x15f   : > { %4478 = vmatprep.subr.bf16.mxu1 %v5469_v63  ;;  %v2737_v7 = vrot.slane %v2735_v57, 1  ;;  %v1429_v33 = vshrl.u32 %v5522_v0, 16  ;;  %v1436_v18 = vshll.u32 %v5410_v6, 16  ;;  %v1327_v6 = vld [vmem:[#allocation2 + $0x18] sm:$0xf] }
 0x160   : > { %4463 = vmatmul.mubr.bf16.vlgmr.msra.gmra.mxu0 %v1562_v61  ;;  %v5548_v61 = vld [vmem:[#allocation2 + $0x58] sm:$0xf]  ;;  %v1574_v44 = vsel %vm1556_vm10, %v1572_v39, %v1573_v14  ;;  %v4685_v38 = vld [vmem:[#allocation2 + $0x2c] ss:$0 sps:$4 sm:$0x11]  }
 0x161   : > { %2160 = vmatmul.mubr.bf16.gmra.mxu1 %v5364_v29  ;;  %4466 = vmatprep.mubr.bf16.mxu0 %v1565_v47  ;;  %v4652_v29 = vld [vmem:[%s6127_s4 + $0x1e8] sm:$0xff]   ;;  %v5556_v47 = vld [vmem:[#allocation2 + $0x5c] ss:$0 sps:$4 sm:$0x11]   ;;  %v3759_v4 = vcombine.low %v1354_v48, %v5548_v61  ;;  %v2738_v20 = vor.u32 %v2737_v7, %v2733_v15  ;;  %v2652_v50 = vld [vmem:[#allocation2 + $0x18] sm:$0xe] }
 0x162   : > { %2167 = vmatprep.mubr.bf16.mxu1 %v1813_v49  ;;  %4299 = vmatpush3.bf16.msra.mxu0 %v4644_v59  ;;  %v1431_v59 = vshll.u32 %v5522_v0, 16  ;;  %v5559_v49 = vld [vmem:[#allocation2 + $0x28] sm:$0xf]  ;;  %v1579_v55 = vrot.slane %v5556_v47, 1  ;;  %v2632_v14 = vld [vmem:[#allocation2 + $0x30] sm:$0xf] }
 0x163   : > { %4300 = vmatprep.subr.bf16.mxu0 %v4646_v12  ;;  %v5550_v12 = vld [vmem:[#allocation2 + $0x20] ss:$0 sps:$4 sm:$0x11]   ;;  %v1578_v16 = vrot.slane %v3759_v4, 1  ;;  %v5600_v48 = vcombine.low %v2632_v14, %v5589_v30  ;;  %v2752_v4 = vshll.u32 %v4685_v38, 16 }
 0x164   : > { %v1433_v13 = vrot.slane %v1431_v59, 1  ;;  %v2740_v23 = vshll.u32 %v5550_v12, 16  ;;  %v1448_v59 = vshll.u32 %v5436_v56, 16  ;;  %v4686_v56 = vld [vmem:[%s6127_s4 + $0x230] sm:$0xff]  }
 0x165   : > { %v1580_v37 = vsel %vm1556_vm10, %v1578_v16, %v1579_v55  ;;  %v2754_v16 = vrot.slane %v2752_v4, 1 }
 0x166   : > { %4301 = vmatpush3.bf16.msra.mxu0 %v4648_v11  ;;  %v1837_v11 = vsel %vm1427_vm15, %v1832_v51, %v1836_v52  ;;  %v2742_v26 = vrot.slane %v2740_v23, 1  ;;  %v2861_v52 = vrot.slane %v5550_v12, 1  ;;  %v2759_v12 = vshll.u32 %v5600_v48, 16  ;;  %v5620_v23 = vld [vmem:[#allocation2 + $0x38] ss:$0 sps:$4 sm:$0x11]  }
 0x167   : > { %4302 = vmatprep.subr.bf16.mxu0 %v4652_v29  ;;  %v2630_v29 = vld [vmem:[#allocation2 + $0x24] sm:$0xf]  ;;  %v1450_v15 = vrot.slane %v1448_v59, 1  ;;  %v5667_v59 = vld [vmem:[#allocation2 + $0x50] ss:$0 sps:$4 sm:$0x11]  }
 0x168   : > { %4467 = vmatmul.mubr.bf16.gmra.mxu0 %v1568_v19  ;;  %v4680_v19 = vld [vmem:[%s6127_s4 + $0x1c0] sm:$0xff]   ;;  %v2743_v39 = vsel %vm1427_vm15, %v2738_v20, %v2742_v26  ;;  %v2761_v20 = vrot.slane %v2759_v12, 1  ;;  %v5673_v12 = vld [vmem:[#allocation2 + $0x58] sm:$0xf] }
 0x169   : > { %2168 = vmatmul.mubr.bf16.gmra.mxu1 %v5404_v58  ;;  %4470 = vmatprep.mubr.bf16.mxu0 %v1571_v34  ;;  %v4664_v58 = vld [vmem:[%s6127_s4 + $0x1d8] sm:$0xff]  }
 0x16a   : > { %2175 = vmatprep.mubr.bf16.mxu1 %v1825_v36  ;;  %4303 = vmatpush3.bf16.msra.mxu0 %v4656_v17  ;;  %v1434_v17 = vor.u32 %v1433_v13, %v1429_v33  ;;  %v1438_v36 = vrot.slane %v1436_v18, 1 }
 0x16b   : > { %4304 = vmatprep.subr.bf16.mxu0 %v4658_v24  ;;  %v1443_v24 = vshll.u32 %v5565_v60, 16 }
 0x16c   : > { %v1439_v41 = vsel %vm1427_vm15, %v1434_v17, %v1438_v36 }
 0x16d   : > { %v1445_v45 = vrot.slane %v1443_v24, 1  ;;  %v2764_v24 = vshll.u32 %v5620_v23, 16 }
 0x16e   : > { %4305 = vmatpush3.bf16.msra.mxu0 %v4660_v9  ;;  %v5593_v9 = vcombine.low %v1327_v6, %v5431_v21  ;;  %v4682_v21 = vld [vmem:[%s6127_s4 + $0x180] sm:$0xff]  }
 0x16f   : > { %4306 = vmatprep.subr.bf16.mxu0 %v4664_v58  ;;  %v3896_v58 = vcombine.low %v2652_v50, %v5507_v5  ;;  %v2653_v5 = vld [vmem:[#allocation2 + $0x24] sm:$0xe]  ;;  %v1331_v50 = vld [vmem:[#allocation2 + $0x30] sm:$0xf] }
 0x170   : > { %4471 = vmatmul.mubr.bf16.gmra.mxu0 %v1574_v44  ;;  %v2864_v44 = vrot.slane %v4685_v38, 1  ;;  %v5647_v38 = vld [vmem:[#allocation2 + $0x4c] sm:$0xf]  ;;  %v5650_v14 = vcombine.low %v1331_v50, %v5472_v46 }
 0x171   : > { %2176 = vmatmul.mubr.bf16.gmra.mxu1 %v5443_v27  ;;  %4474 = vmatprep.mubr.bf16.mxu0 %v1577_v62  ;;  %v5573_v27 = vcombine.low %v2630_v29, %v5559_v49  ;;  %v2860_v51 = vrot.slane %v3896_v58, 1  ;;  %v1455_v62 = vshll.u32 %v5593_v9, 16  ;;  %v5618_v29 = vld [vmem:[#allocation2 + $0x40] sm:$0xf] }
 0x172   : > { %2183 = vmatprep.mubr.bf16.mxu1 %v1837_v11  ;;  %4307 = vmatpush3.bf16.msra.mxu0 %v4668_v54  ;;  %v3897_v54 = vcombine.low %v2653_v5, %v5559_v49  ;;  %v2634_v49 = vld [vmem:[#allocation2 + $0x3c] sm:$0xf]  ;;  %v1472_v5 = vshll.u32 %v5481_v40, 16  ;;  %v2638_v40 = vld [vmem:[#allocation2 + $0x54] sm:$0xf] }
 0x173   : > { %4308 = vmatprep.subr.bf16.mxu0 %v4670_v1  ;;  %v2747_v34 = vshll.u32 %v5573_v27, 16  ;;  %v2745_v1 = vshrl.u32 %v5573_v27, 16  ;;  %v5612_v7 = vsel %vm1556_vm10, %v2860_v51, %v2861_v52  ;;  %v1457_v55 = vrot.slane %v1455_v62, 1 }
 0x174   : > { %v2863_v11 = vrot.slane %v3897_v54, 1  ;;  %v5632_v17 = vcombine.low %v2634_v49, %v5618_v29  ;;  %v4695_v54 = vld [vmem:[%s6127_s4 + $0x218] sm:$0xff]   ;;  %v2788_v49 = vshll.u32 %v5667_v59, 16 }
 0x175   : > { %v2749_v57 = vrot.slane %v2747_v34, 1  ;;  %v5644_v34 = vld [vmem:[#allocation2 + $0x44] ss:$0 sps:$4 sm:$0x11]  }
 0x176   : > { %4309 = vmatpush3.bf16.msra.mxu0 %v4672_v10  ;;  %v1329_v10 = vld [vmem:[#allocation2 + $0x24] sm:$0xf]  ;;  %v5623_v33 = vsel %vm1556_vm10, %v2863_v11, %v2864_v44  ;;  %v2771_v36 = vshll.u32 %v5632_v17, 16  ;;  %v2776_v51 = vshll.u32 %v5644_v34, 16  ;;  %v1333_v44 = vld [vmem:[#allocation2 + $0x3c] sm:$0xf] }
 0x177   : > { %4310 = vmatprep.subr.bf16.mxu0 %v4676_v8  ;;  %v2750_v13 = vor.u32 %v2749_v57, %v2745_v1  ;;  %v5626_v18 = vcombine.low %v1329_v10, %v5464_v43  ;;  %v1453_v43 = vshrl.u32 %v5593_v9, 16  ;;  %v5676_v11 = vcombine.low %v1333_v44, %v5504_v53  ;;  %v4698_v10 = vld [vmem:[%s6127_s4 + $0x210] sm:$0xff]  }
 0x178   : > { %4475 = vmatmul.mubr.bf16.gmra.mxu0 %v1580_v37  ;;  %v2636_v37 = vld [vmem:[#allocation2 + $0x48] sm:$0xf]  ;;  %v2773_v57 = vrot.slane %v2771_v36, 1  ;;  %v2778_v4 = vrot.slane %v2776_v51, 1 }
 0x179   : > { %2184 = vmatmul.mubr.bf16.gmra.mxu1 %v5485_v2  ;;  %3117 = vmatprep.mubr.bf16.mxu0 %v2743_v39  ;;  %v1441_v2 = vshrl.u32 %v5565_v60, 16  ;;  %v1458_v6 = vor.u32 %v1457_v55, %v1453_v43  ;;  %v2766_v39 = vrot.slane %v2764_v24, 1  ;;  %v5661_v52 = vcombine.low %v2636_v37, %v5647_v38 }
 0x17a   : > { %2465 = vmatprep.mubr.bf16.mxu1 %v1439_v41  ;;  %4311 = vmatpush3.bf16.msra.mxu0 %v4677_v22  ;;  %v2755_v22 = vsel %vm1427_vm15, %v2750_v13, %v2754_v16  ;;  %v1465_v46 = vshrl.u32 %v5626_v18, 16  ;;  %v5688_v55 = vcombine.low %v2638_v40, %v5673_v12  ;;  %v1491_v43 = vshll.u32 %v5676_v11, 16 }
 0x17b   : > { %4312 = vmatprep.subr.bf16.mxu0 %v4680_v19  ;;  %v1446_v42 = vor.u32 %v1445_v45, %v1441_v2  ;;  %v1460_v19 = vshll.u32 %v5449_v31, 16  ;;  %v4692_v45 = vld [vmem:[%s6127_s4 + $0x220] sm:$0xff]   ;;  %v2769_v2 = vshrl.u32 %v5632_v17, 16  ;;  %v2783_v62 = vshll.u32 %v5661_v52, 16 }
 0x17c   : > { %v2781_v16 = vshrl.u32 %v5661_v52, 16  ;;  %v2790_v24 = vrot.slane %v2788_v49, 1  ;;  %v1496_v37 = vshll.u32 %v5516_v25, 16  ;;  %v1489_v25 = vshrl.u32 %v5676_v11, 16 }
 0x17d   : > { %v1451_v8 = vsel %vm1427_vm15, %v1446_v42, %v1450_v15  ;;  %v1462_v31 = vrot.slane %v1460_v19, 1  ;;  %v2774_v1 = vor.u32 %v2773_v57, %v2769_v2  ;;  %v1474_v42 = vrot.slane %v1472_v5, 1  ;;  %v5696_v19 = vld [vmem:[#allocation2 + $0x5c] ss:$0 sps:$4 sm:$0x11]  }
 0x17e   : > { %4313 = vmatpush3.bf16.msra.mxu0 %v4682_v21  ;;  %v2785_v53 = vrot.slane %v2783_v62, 1  ;;  %v2800_v50 = vshll.u32 %v5696_v19, 16  ;;  %v1498_v51 = vrot.slane %v1496_v37, 1  ;;  %v1508_v62 = vshll.u32 %v5525_v32, 16 }
 0x17f   : > { %v1463_v58 = vsel %vm1427_vm15, %v1458_v6, %v1462_v31  ;;  %v2779_v15 = vsel %vm1427_vm15, %v2774_v1, %v2778_v4  ;;  %v1493_v31 = vrot.slane %v1491_v43, 1  ;;  %v2867_v37 = vrot.slane %v5620_v23, 1 }
 0x180   : > { %v2802_v5 = vrot.slane %v2800_v50, 1  ;;  %v2655_v50 = vld [vmem:[#allocation2 + $0x3c] sm:$0xe] }
 0x181   : > { %2466 = vmatmul.mubr.bf16.vlgmr.msra.gmra.mxu1 %v5522_v0  ;;  %3118 = vmatmul.mubr.bf16.vlgmr.msra.gmra.mxu0 %v5529_v35  ;;  %v2757_v0 = vshrl.u32 %v5600_v48, 16  ;;  %v4689_v35 = vld [vmem:[%s6127_s4 + $0x228] sm:$0xff]   ;;  %v1494_v57 = vor.u32 %v1493_v31, %v1489_v25  ;;  %v2657_v25 = vld [vmem:[#allocation2 + $0x54] sm:$0xe] }
 0x182   : > { %4479 = vmatpush3.bf16.msra.mxu1 %v5469_v63  ;;  %2473 = vmatprep.mubr.bf16.mxu1 %v1451_v8  ;;  %v1467_v63 = vshll.u32 %v5626_v18, 16  ;;  %v1477_v8 = vshrl.u32 %v5650_v14, 16 }
 0x183   : > { %3125 = vmatprep.mubr.bf16.mxu0 %v2755_v22  ;;  %4480 = vmatprep.subr.bf16.mxu1 %v4686_v56  ;;  %v2762_v26 = vor.u32 %v2761_v20, %v2757_v0  ;;  %v1484_v20 = vshll.u32 %v5488_v3, 16  ;;  %v2786_v0 = vor.u32 %v2785_v53, %v2781_v16  ;;  %v1499_v1 = vsel %vm1427_vm15, %v1494_v57, %v1498_v51 }
 0x184   : > { %v1469_v41 = vrot.slane %v1467_v63, 1  ;;  %v2640_v63 = vld [vmem:[#allocation2 + $0x60] sm:$0xf]  ;;  %v3901_v57 = vcombine.low %v2657_v25, %v5673_v12  ;;  %v2876_v51 = vrot.slane %v5696_v19, 1 }
 0x185   : > { %v2767_v21 = vsel %vm1427_vm15, %v2762_v26, %v2766_v39  ;;  %v1486_v6 = vrot.slane %v1484_v20, 1  ;;  %v5699_v26 = vld [vmem:[#allocation2 + $0x64] sm:$0xf] }
 0x186   : > { %4481 = vmatpush3.bf16.msra.mxu1 %v4686_v56  ;;  %v4704_v39 = vld [vmem:[%s6127_s4 + $0x200] sm:$0xff]  }
 0x187   : > { %4482 = vmatprep.subr.bf16.mxu1 %v4689_v35 }
 0x189   : > { %2474 = vmatmul.mubr.bf16.gmra.mxu1 %v5565_v60  ;;  %3126 = vmatmul.mubr.bf16.gmra.mxu0 %v5573_v27  ;;  %v1470_v60 = vor.u32 %v1469_v41, %v1465_v46  ;;  %v1479_v27 = vshll.u32 %v5650_v14, 16 }
 0x18a   : > { %2481 = vmatprep.mubr.bf16.mxu1 %v1463_v58  ;;  %3133 = vmatprep.mubr.bf16.mxu0 %v2767_v21  ;;  %v2793_v58 = vshrl.u32 %v5688_v55, 16  ;;  %v1337_v21 = vld [vmem:[#allocation2 + $0x54] sm:$0xf] }
 0x18b   : > { %4483 = vmatpush3.bf16.msra.mxu1 %v4689_v35  ;;  %v1475_v13 = vsel %vm1427_vm15, %v1470_v60, %v1474_v42  ;;  %v1481_v56 = vrot.slane %v1479_v27, 1  ;;  %v2795_v35 = vshll.u32 %v5688_v55, 16  ;;  %v2642_v60 = vld [vmem:[#allocation2 + $0x6c] sm:$0xf]  ;;  %v5719_v27 = vld [vmem:[#allocation2 + $0x70] sm:$0xf] }
 0x18c   : > { %4484 = vmatprep.subr.bf16.mxu1 %v4692_v45 }
 0x18d   : > { %v1482_v22 = vor.u32 %v1481_v56, %v1477_v8  ;;  %v2797_v41 = vrot.slane %v2795_v35, 1 }
 0x18f   : > { %4485 = vmatpush3.bf16.msra.mxu1 %v4692_v45  ;;  %v1487_v36 = vsel %vm1427_vm15, %v1482_v22, %v1486_v6  ;;  %v3886_v45 = vcombine.low %v2640_v63, %v5699_v26 }
 0x190   : > { %4486 = vmatprep.subr.bf16.mxu1 %v4695_v54 }
 0x191   : > { %2482 = vmatmul.mubr.bf16.gmra.mxu1 %v5593_v9  ;;  %3134 = vmatmul.mubr.bf16.gmra.mxu0 %v5600_v48  ;;  %v4701_v9 = vld [vmem:[%s6127_s4 + $0x208] sm:$0xff]   ;;  %v2807_v2 = vshll.u32 %v3886_v45, 16 }
 0x192   : > { %2489 = vmatprep.mubr.bf16.mxu1 %v1475_v13  ;;  %3141 = vmatprep.mubr.bf16.mxu0 %v2779_v15  ;;  %v1335_v48 = vld [vmem:[#allocation2 + $0x48] sm:$0xf]  ;;  %v2805_v13 = vshrl.u32 %v3886_v45, 16  ;;  %v5730_v15 = vld [vmem:[#allocation2 + $0x74] ss:$0 sps:$4 sm:$0x11]  }
 0x193   : > { %4487 = vmatpush3.bf16.msra.mxu1 %v4695_v54  ;;  %v5702_v3 = vcombine.low %v1335_v48, %v5519_v28  ;;  %v2791_v28 = vsel %vm1427_vm15, %v2786_v0, %v2790_v24  ;;  %v3743_v54 = vcombine.low %v1337_v21, %v5548_v61  ;;  %v2809_v56 = vrot.slane %v2807_v2, 1  ;;  %v2658_v21 = vld [vmem:[#allocation2 + $0x60] sm:$0xe] }
 0x194   : > { %4488 = vmatprep.subr.bf16.mxu1 %v4698_v10  ;;  %v3887_v61 = vcombine.low %v2642_v60, %v5719_v27  ;;  %v2882_v60 = vrot.slane %v5730_v15, 1 }
 0x195   : > { %v1503_v46 = vshll.u32 %v5702_v3, 16  ;;  %v1501_v44 = vshrl.u32 %v5702_v3, 16  ;;  %v2810_v16 = vor.u32 %v2809_v56, %v2805_v13  ;;  %v1515_v53 = vshll.u32 %v3743_v54, 16 }
 0x196   : > { %v2819_v8 = vshll.u32 %v3887_v61, 16  ;;  %v1513_v20 = vshrl.u32 %v3743_v54, 16  ;;  %v2817_v43 = vshrl.u32 %v3887_v61, 16 }
 0x197   : > { %4489 = vmatpush3.bf16.msra.mxu1 %v4698_v10  ;;  %v1505_v4 = vrot.slane %v1503_v46, 1  ;;  %v1510_v10 = vrot.slane %v1508_v62, 1  ;;  %v1517_v22 = vrot.slane %v1515_v53, 1 }
 0x198   : > { %4490 = vmatprep.subr.bf16.mxu1 %v4701_v9  ;;  %v2821_v0 = vrot.slane %v2819_v8, 1 }
 0x199   : > { %2490 = vmatmul.mubr.bf16.gmra.mxu1 %v5626_v18  ;;  %3142 = vmatmul.mubr.bf16.gmra.mxu0 %v5632_v17  ;;  %v5717_v18 = vld [vmem:[#allocation2 + $0x68] ss:$0 sps:$4 sm:$0x11]   ;;  %v2798_v17 = vor.u32 %v2797_v41, %v2793_v58  ;;  %v1506_v49 = vor.u32 %v1505_v4, %v1501_v44  ;;  %v1518_v24 = vor.u32 %v1517_v22, %v1513_v20 }
 0x19a   : > { %2497 = vmatprep.mubr.bf16.mxu1 %v1487_v36  ;;  %3149 = vmatprep.mubr.bf16.mxu0 %v2791_v28  ;;  %v2812_v42 = vshll.u32 %v5717_v18, 16  ;;  %v2822_v6 = vor.u32 %v2821_v0, %v2817_v43 }
 0x19b   : > { %4491 = vmatpush3.bf16.msra.mxu1 %v4701_v9  ;;  %v2803_v40 = vsel %vm1427_vm15, %v2798_v17, %v2802_v5  ;;  %v2824_v9 = vshll.u32 %v5730_v15, 16  ;;  %v2659_v17 = vld [vmem:[#allocation2 + $0x6c] sm:$0xe] }
 0x19c   : > { %4492 = vmatprep.subr.bf16.mxu1 %v4704_v39  ;;  %v2814_v32 = vrot.slane %v2812_v42, 1  ;;  %v3903_v5 = vcombine.low %v2659_v17, %v5719_v27 }
 0x19d   : > { %v2826_v63 = vrot.slane %v2824_v9, 1 }
 0x19e   : > { %v2815_v48 = vsel %vm1427_vm15, %v2810_v16, %v2814_v32  ;;  %v2881_v2 = vrot.slane %v3903_v5, 1 }
 0x19f   : > { %4493 = vmatpush3.bf16.msra.mxu1 %v4704_v39  ;;  %v2656_v39 = vld [vmem:[#allocation2 + $0x48] sm:$0xe] }
 0x1a0   : > { %v3900_v58 = vcombine.low %v2656_v39, %v5647_v38  ;;  %v2875_v38 = vrot.slane %v3901_v57, 1 }
 0x1a1   : > { %2498 = vmatmul.mubr.bf16.gmra.mxu1 %v5650_v14  ;;  %3150 = vmatmul.mubr.bf16.gmra.mxu0 %v5661_v52  ;;  %v1511_v14 = vsel %vm1427_vm15, %v1506_v49, %v1510_v10  ;;  %v1520_v52 = vshll.u32 %v5556_v47, 16 }
 0x1a2   : > { %2505 = vmatprep.mubr.bf16.mxu1 %v1499_v1  ;;  %3157 = vmatprep.mubr.bf16.mxu0 %v2803_v40 }
 0x1a3   : > { %v1522_v35 = vrot.slane %v1520_v52, 1 }
 0x1a5   : > { %v1523_v47 = vsel %vm1427_vm15, %v1518_v24, %v1522_v35 }
 0x1a9   : > { %2506 = vmatmul.mubr.bf16.gmra.mxu1 %v5676_v11  ;;  %3158 = vmatmul.mubr.bf16.gmra.mxu0 %v5688_v55  ;;  %v2827_v11 = vsel %vm1427_vm15, %v2822_v6, %v2826_v63  ;;  %v2654_v55 = vld [vmem:[#allocation2 + $0x30] sm:$0xe] }
 0x1aa   : > { %2513 = vmatprep.mubr.bf16.mxu1 %v1511_v14  ;;  %3165 = vmatprep.mubr.bf16.mxu0 %v2815_v48  ;;  %v3898_v36 = vcombine.low %v2654_v55, %v5589_v30  ;;  %v2872_v30 = vrot.slane %v3900_v58, 1 }
 0x1ac   : > { %v2866_v31 = vrot.slane %v3898_v36, 1 }
 0x1ae   : > { %v2868_v28 = vsel %vm1556_vm10, %v2866_v31, %v2867_v37 }
 0x1b1   : > { %2514 = vmatmul.mubr.bf16.gmra.mxu1 %v5702_v3  ;;  %3166 = vmatmul.mubr.bf16.gmra.mxu0 %v3886_v45  ;;  %v3899_v3 = vcombine.low %v2655_v50, %v5618_v29  ;;  %v2870_v45 = vrot.slane %v5644_v34, 1  ;;  %v2879_v34 = vrot.slane %v5717_v18, 1 }
 0x1b2   : > { %2521 = vmatprep.mubr.bf16.mxu1 %v1523_v47  ;;  %3173 = vmatprep.mubr.bf16.mxu0 %v2827_v11 }
 0x1b3   : > { %v2869_v41 = vrot.slane %v3899_v3, 1 }
 0x1b5   : > { %v2871_v23 = vsel %vm1556_vm10, %v2869_v41, %v2870_v45 }
 0x1b9   : > { %2522 = vmatmul.mubr.bf16.gmra.mxu1 %v3743_v54  ;;  %3174 = vmatmul.mubr.bf16.gmra.mxu0 %v3887_v61 }
 0x1ba   : > { %4494 = vmatprep.mubr.bf16.mxu1 %v5612_v7  ;;  %v2873_v7 = vrot.slane %v5667_v59, 1  ;;  %v2877_v59 = vsel %vm1556_vm10, %v2875_v38, %v2876_v51 }
 0x1bc   : > { %v2874_v29 = vsel %vm1556_vm10, %v2872_v30, %v2873_v7 }
 0x1c1   : > { %4495 = vmatmul.mubr.bf16.vlgmr.msra.gmra.mxu1 %v5623_v33  ;;  %v3902_v33 = vcombine.low %v2658_v21, %v5699_v26  ;;  %v2883_v26 = vsel %vm1556_vm10, %v2881_v2, %v2882_v60 }
 0x1c2   : > { %4498 = vmatprep.mubr.bf16.mxu1 %v2868_v28 }
 0x1c3   : > { %v2878_v46 = vrot.slane %v3902_v33, 1 }
 0x1c5   : > { %v2880_v12 = vsel %vm1556_vm10, %v2878_v46, %v2879_v34 }
 0x1c9   : > { %4499 = vmatmul.mubr.bf16.gmra.mxu1 %v2871_v23 }
 0x1ca   : > { %4502 = vmatprep.mubr.bf16.mxu1 %v2874_v29 }
 0x1d1   : > { %4503 = vmatmul.mubr.bf16.gmra.mxu1 %v2877_v59 }
 0x1d2   : > { %4506 = vmatprep.mubr.bf16.mxu1 %v2880_v12 }
 0x1d9   : > { %4507 = vmatmul.mubr.bf16.gmra.mxu1 %v2883_v26 }
 0x1fe   : > { %v4432_v54 = vpop.f32.mrf.mxu0  ;;  %v4154_v19 = vpop.f32.mrf.mxu1 }
 0x200   : > { %v2226_v44 = vpop.f32.mrf.mxu0  ;;  %v4155_v1 = vpop.f32.mrf.mxu1 }
 0x201   : > { %v4156_v18 = vadd.f32 %v4155_v1, %v4154_v19 }
 0x202   : > { %v4433_v4 = vpop.f32.mrf.mxu0  ;;  %v4157_v62 = vpop.f32.mrf.mxu1 }
 0x203   : > { %v5761_v42 = vadd.f32 %v4156_v18, %v2226_v44 }
 0x204   : > { %v2229_v27 = vpop.f32.mrf.mxu0  ;;  %v4158_v40 = vpop.f32.mrf.mxu1 }
 0x205   : > { %v4159_v13 = vadd.f32 %v4158_v40, %v4157_v62 }
 0x207   : > { %v5763_v56 = vadd.f32 %v4159_v13, %v2229_v27 }
 0x208   : > { %v4436_v61 = vpop.f32.mrf.mxu0  ;;  %v4160_v49 = vpop.f32.mrf.mxu1 }
 0x20a   : > { %v2242_v10 = vpop.f32.mrf.mxu0  ;;  %v4161_v15 = vpop.f32.mrf.mxu1 }
 0x20b   : > { %v4162_v16 = vadd.f32 %v4161_v15, %v4160_v49 }
 0x20c   : > { %v4437_v32 = vpop.f32.mrf.mxu0  ;;  %v4163_v53 = vpop.f32.mrf.mxu1 }
 0x20d   : > { %v5765_v8 = vadd.f32 %v4432_v54, %v4162_v16 }
 0x20e   : > { %v2245_v14 = vpop.f32.mrf.mxu0  ;;  %v4164_v20 = vpop.f32.mrf.mxu1 }
 0x20f   : > { %v4165_v52 = vadd.f32 %v4164_v20, %v4163_v53 }
 0x210   : > { %v4440_v9 = vpop.f32.mrf.mxu0 }
 0x211   : > { %v4166_v48 = vpop.f32.mrf.mxu1  ;;  %v5767_v22 = vadd.f32 %v4433_v4, %v4165_v52 }
 0x212   : > { %v2258_v43 = vpop.f32.mrf.mxu0 }
 0x213   : > { %v4167_v0 = vpop.f32.mrf.mxu1 }
 0x214   : > { %v4168_v24 = vadd.f32 %v4167_v0, %v4166_v48  ;;  %v4441_v35 = vpop.f32.mrf.mxu0 }
 0x215   : > { %v4169_v6 = vpop.f32.mrf.mxu1 }
 0x216   : > { %v5769_v63 = vadd.f32 %v4168_v24, %v2242_v10  ;;  %v2261_v47 = vpop.f32.mrf.mxu0 }
 0x217   : > { %v4170_v11 = vpop.f32.mrf.mxu1 }
 0x218   : > { %v4171_v55 = vadd.f32 %v4170_v11, %v4169_v6  ;;  %v4444_v36 = vpop.f32.mrf.mxu0 }
 0x219   : > { %v4172_v31 = vpop.f32.mrf.mxu1 }
 0x21a   : > { %v5771_v37 = vadd.f32 %v4171_v55, %v2245_v14  ;;  %v2274_v50 = vpop.f32.mrf.mxu0 }
 0x21b   : > { %v4173_v39 = vpop.f32.mrf.mxu1 }
 0x21c   : > { %v4174_v3 = vadd.f32 %v4173_v39, %v4172_v31  ;;  %v4445_v28 = vpop.f32.mrf.mxu0 }
 0x21d   : > { %v4175_v58 = vpop.f32.mrf.mxu1 }
 0x21e   : > { %v5773_v41 = vadd.f32 %v4436_v61, %v4174_v3  ;;  %v2277_v45 = vpop.f32.mrf.mxu0 }
 0x21f   : > { %v4176_v30 = vpop.f32.mrf.mxu1 }
 0x220   : > { %v4177_v7 = vadd.f32 %v4176_v30, %v4175_v58  ;;  %v5775_v25 = vpop.f32.mrf.mxu0 }
 0x221   : > { %v4178_v21 = vpop.f32.mrf.mxu1 }
 0x222   : > { %v5777_v23 = vadd.f32 %v4437_v32, %v4177_v7  ;;  %v2564_v57 = vpop.f32.mrf.mxu0 }
 0x223   : > { %v4179_v29 = vpop.f32.mrf.mxu1 }
 0x224   : > { %v4180_v33 = vadd.f32 %v4179_v29, %v4178_v21  ;;  %v5779_v38 = vpop.f32.mrf.mxu0 }
 0x225   : > { %v4181_v51 = vpop.f32.mrf.mxu1 }
 0x226   : > { %v5781_v46 = vadd.f32 %v4180_v33, %v2258_v43  ;;  %v2567_v34 = vpop.f32.mrf.mxu0 }
 0x227   : > { %v4182_v17 = vpop.f32.mrf.mxu1 }
 0x228   : > { %v4183_v59 = vadd.f32 %v4182_v17, %v4181_v51  ;;  %v5783_v5 = vpop.f32.mrf.mxu0 }
 0x229   : > { %v4184_v12 = vpop.f32.mrf.mxu1 }
 0x22a   : > { %v5785_v2 = vadd.f32 %v4183_v59, %v2261_v47  ;;  %v5787_v60 = vpop.f32.mrf.mxu0 }
 0x22b   : > { %v4185_v26 = vpop.f32.mrf.mxu1 }
 0x22c   : > { %v4186_v54 = vadd.f32 %v4185_v26, %v4184_v12  ;;  %v5789_v19 = vpop.f32.mrf.mxu0 }
 0x22d   : > { %v4187_v44 = vpop.f32.mrf.mxu1 }
 0x22e   : > { %v5791_v1 = vadd.f32 %v4440_v9, %v4186_v54  ;;  %v5793_v18 = vpop.f32.mrf.mxu0 }
 0x22f   : > { %v4188_v4 = vpop.f32.mrf.mxu1 }
 0x230   : > { %v4189_v62 = vadd.f32 %v4188_v4, %v4187_v44  ;;  %v5795_v27 = vpop.f32.mrf.mxu0 }
 0x231   : > { %v4190_v40 = vpop.f32.mrf.mxu1 }
 0x232   : > { %v5797_v13 = vadd.f32 %v4441_v35, %v4189_v62  ;;  %v5799_v61 = vpop.f32.mrf.mxu0 }
 0x233   : > { %v4191_v49 = vpop.f32.mrf.mxu1 }
 0x234   : > { %v4192_v10 = vadd.f32 %v4191_v49, %v4190_v40  ;;  %v5801_v15 = vpop.f32.mrf.mxu0 }
 0x235   : > { %v4193_v16 = vpop.f32.mrf.mxu1 }
 0x236   : > { %v5803_v32 = vadd.f32 %v4192_v10, %v2274_v50  ;;  %v5805_v53 = vpop.f32.mrf.mxu0 }
 0x237   : > { %v4194_v14 = vpop.f32.mrf.mxu1 }
 0x238   : > { %v4195_v20 = vadd.f32 %v4194_v14, %v4193_v16  ;;  %v5807_v52 = vpop.f32.mrf.mxu0 }
 0x239   : > { %v4196_v9 = vpop.f32.mrf.mxu1 }
 0x23a   : > { %v5809_v48 = vadd.f32 %v4195_v20, %v2277_v45  ;;  %v5811_v43 = vpop.f32.mrf.mxu0 }
 0x23b   : > { %v4197_v0 = vpop.f32.mrf.mxu1 }
 0x23c   : > { %v4198_v24 = vadd.f32 %v4197_v0, %v4196_v9  ;;  %v5813_v35 = vpop.f32.mrf.mxu0 }
 0x23d   : > { %v4199_v6 = vpop.f32.mrf.mxu1 }
 0x23e   : > { %v5815_v47 = vadd.f32 %v4444_v36, %v4198_v24  ;;  %v5817_v11 = vpop.f32.mrf.mxu0 }
 0x23f   : > { %v4200_v55 = vpop.f32.mrf.mxu1 }
 0x240   : > { %v4201_v31 = vadd.f32 %v4200_v55, %v4199_v6 }
 0x241   : > { %v4234_v50 = vpop.f32.mrf.mxu1  ;;  %v5819_v39 = vpop.f32.mrf.mxu0 }
 0x242   : > { %v5821_v3 = vadd.f32 %v4445_v28, %v4201_v31 }
 0x243   : > { %v4235_v58 = vpop.f32.mrf.mxu1  ;;  %v5823_v45 = vpop.f32.mrf.mxu0 }
 0x244   : > { %v4236_v30 = vadd.f32 %v4235_v58, %v4234_v50 }
 0x245   : > { %v4237_v7 = vpop.f32.mrf.mxu1  ;;  %v5825_v21 = vpop.f32.mrf.mxu0 }
 0x246   : > { %v2468_v29 = vadd.f32 %v4236_v30, %v5761_v42 }
 0x247   : > { %v4238_v36 = vpop.f32.mrf.mxu1  ;;  %v5828_v33 = vpop.f32.mrf.mxu0 }
 0x248   : > { %v4239_v51 = vadd.f32 %v4238_v36, %v4237_v7  ;;  %v5830_v17 = vadd.f32 %v2564_v57, %v2468_v29 }
 0x249   : > { %v4240_v59 = vpop.f32.mrf.mxu1  ;;  %v5832_v12 = vpop.f32.mrf.mxu0 }
 0x24a   : > { %v2471_v28 = vadd.f32 %v4239_v51, %v5763_v56 }
 0x24b   : > { %v4241_v26 = vpop.f32.mrf.mxu1  ;;  %v5835_v54 = vpop.f32.mrf.mxu0 }
 0x24c   : > { %v4242_v44 = vadd.f32 %v4241_v26, %v4240_v59  ;;  %v5837_v4 = vadd.f32 %v2567_v34, %v2471_v28 }
 0x24d   : > { %v4243_v62 = vpop.f32.mrf.mxu1  ;;  %v5839_v40 = vpop.f32.mrf.mxu0 }
 0x24e   : > { %v2476_v42 = vadd.f32 %v4242_v44, %v5765_v8 }
 0x24f   : > { %v4244_v49 = vpop.f32.mrf.mxu1  ;;  %v5842_v10 = vpop.f32.mrf.mxu0 }
 0x250   : > { %v4245_v57 = vadd.f32 %v4244_v49, %v4243_v62  ;;  %v5845_v16 = vadd.f32 %v5775_v25, %v2476_v42 }
 0x251   : > { %v4246_v14 = vpop.f32.mrf.mxu1  ;;  %v5847_v56 = vpop.f32.mrf.mxu0 }
 0x252   : > { %v2479_v20 = vadd.f32 %v4245_v57, %v5767_v22 }
 0x253   : > { %v4247_v9 = vpop.f32.mrf.mxu1  ;;  %v5850_v34 = vpop.f32.mrf.mxu0 }
 0x254   : > { %v4248_v0 = vadd.f32 %v4247_v9, %v4246_v14  ;;  %v5853_v24 = vadd.f32 %v5779_v38, %v2479_v20 }
 0x255   : > { %v4249_v8 = vpop.f32.mrf.mxu1  ;;  %v5855_v6 = vpop.f32.mrf.mxu0 }
 0x256   : > { %v2484_v55 = vadd.f32 %v4248_v0, %v5769_v63 }
 0x257   : > { %v4250_v31 = vpop.f32.mrf.mxu1  ;;  %v5858_v25 = vpop.f32.mrf.mxu0 }
 0x258   : > { %v4251_v50 = vadd.f32 %v4250_v31, %v4249_v8  ;;  %v5861_v58 = vadd.f32 %v5787_v60, %v2484_v55 }
 0x259   : > { %v4252_v22 = vpop.f32.mrf.mxu1  ;;  %v5863_v30 = vpop.f32.mrf.mxu0 }
 0x25a   : > { %v2487_v7 = vadd.f32 %v4251_v50, %v5771_v37 }
 0x25b   : > { %v4253_v29 = vpop.f32.mrf.mxu1  ;;  %v5866_v38 = vpop.f32.mrf.mxu0 }
 0x25c   : > { %v4254_v36 = vadd.f32 %v4253_v29, %v4252_v22  ;;  %v5869_v51 = vadd.f32 %v5793_v18, %v2487_v7 }
 0x25d   : > { %v4255_v63 = vpop.f32.mrf.mxu1  ;;  %v5871_v59 = vpop.f32.mrf.mxu0 }
 0x25e   : > { %v2492_v28 = vadd.f32 %v4254_v36, %v5773_v41 }
 0x25f   : > { %v4256_v26 = vpop.f32.mrf.mxu1  ;;  %v5874_v60 = vpop.f32.mrf.mxu0 }
 0x260   : > { %v4257_v44 = vadd.f32 %v4256_v26, %v4255_v63  ;;  %v5877_v62 = vadd.f32 %v5783_v5, %v2492_v28 }
 0x261   : > { %v4258_v37 = vpop.f32.mrf.mxu1  ;;  %v5879_v42 = vpop.f32.mrf.mxu0 }
 0x262   : > { %v2495_v49 = vadd.f32 %v4257_v44, %v5777_v23 }
 0x263   : > { %v4259_v57 = vpop.f32.mrf.mxu1  ;;  %v5882_v18 = vpop.f32.mrf.mxu0 }
 0x264   : > { %v4260_v14 = vadd.f32 %v4259_v57, %v4258_v37  ;;  %v5885_v20 = vadd.f32 %v5789_v19, %v2495_v49 }
 0x265   : > { %v4261_v41 = vpop.f32.mrf.mxu1  ;;  %v5887_v9 = vpop.f32.mrf.mxu0 }
 0x266   : > { %v2500_v0 = vadd.f32 %v4260_v14, %v5781_v46 }
 0x267   : > { %v4262_v8 = vpop.f32.mrf.mxu1  ;;  %v5890_v5 = vpop.f32.mrf.mxu0 }
 0x268   : > { %v4263_v55 = vadd.f32 %v4262_v8, %v4261_v41  ;;  %v5893_v31 = vadd.f32 %v5799_v61, %v2500_v0 }
 0x269   : > { %v4264_v23 = vpop.f32.mrf.mxu1  ;;  %v5895_v50 = vpop.f32.mrf.mxu0 }
 0x26a   : > { %v2503_v22 = vadd.f32 %v4263_v55, %v5785_v2 }
 0x26b   : > { %v4265_v7 = vpop.f32.mrf.mxu1  ;;  %v5898_v19 = vpop.f32.mrf.mxu0 }
 0x26c   : > { %v4266_v29 = vadd.f32 %v4265_v7, %v4264_v23  ;;  %v5901_v36 = vadd.f32 %v5805_v53, %v2503_v22 }
 0x26d   : > { %v4267_v46 = vpop.f32.mrf.mxu1  ;;  %v5903_v63 = vpop.f32.mrf.mxu0 }
 0x26e   : > { %6161 = vst [vmem:[#allocation3_spill] sm:$0xff] %v5901_v36  ;;  %v2508_v28 = vadd.f32 %v4266_v29, %v5791_v1  ;;  %v5962_v36 = vld [vmem:[%s6130_s7] ss:$0 sm:$0xff] }
 0x26f   : > { %v4268_v26 = vpop.f32.mrf.mxu1  ;;  %v5906_v61 = vpop.f32.mrf.mxu0 }
 0x270   : > { %v4269_v44 = vadd.f32 %v4268_v26, %v4267_v46  ;;  %v5909_v37 = vadd.f32 %v5795_v27, %v2508_v28 }
 0x271   : > { %v4270_v2 = vpop.f32.mrf.mxu1  ;;  %v5911_v49 = vpop.f32.mrf.mxu0 }
 0x272   : > { %v2511_v57 = vadd.f32 %v4269_v44, %v5797_v13  ;;  %v5930_v44 = vld [vmem:[%s4865_s17 + $0x8] sm:$0xff]  }
 0x273   : > { %v4271_v14 = vpop.f32.mrf.mxu1  ;;  %v5914_v53 = vpop.f32.mrf.mxu0 }
 0x274   : > { %v4272_v41 = vadd.f32 %v4271_v14, %v4270_v2  ;;  %v5917_v1 = vadd.f32 %v5801_v15, %v2511_v57  ;;  %v5936_v2 = vld [vmem:[%s4865_s17 + $0x18] sm:$0xff]   ;;  %v5939_v57 = vld [vmem:[%s4865_s17 + $0x10] sm:$0xff]   ;;  %v4322_v14 = vadd.f32 %v5835_v54, %v5832_v12  ;;  %v4316_v12 = vadd.f32 %v5823_v45, %v5819_v39 }
 0x275   : > { %v4273_v0 = vpop.f32.mrf.mxu1  ;;  %v5919_v8 = vpop.f32.mrf.mxu0  ;;  %v4319_v39 = vadd.f32 %v5828_v33, %v5825_v21  ;;  %v4325_v45 = vadd.f32 %v5842_v10, %v5839_v40  ;;  %v5984_v21 = vld [vmem:[%s6131_s8] ss:$0 sm:$0xff]  ;;  %v5988_v40 = vadd.f32 %v5882_v18, %v5879_v42 }
 0x276   : > { %6162 = vst [vmem:[#allocation4_spill] sm:$0xff] %v5917_v1  ;;  %v2516_v27 = vadd.f32 %v4272_v41, %v5803_v32  ;;  %v5933_v32 = vld [vmem:[%s4865_s17] sm:$0xff]   ;;  %v4337_v1 = vadd.f32 %v5874_v60, %v5871_v59 }
 0x277   : > { %v4274_v55 = vpop.f32.mrf.mxu1  ;;  %v4354_v22 = vpop.f32.mrf.mxu0 }
 0x278   : > { %v4275_v23 = vadd.f32 %v4274_v55, %v4273_v0  ;;  %v5923_v13 = vadd.f32 %v5811_v43, %v2516_v27  ;;  %v5949_v27 = vld [vmem:[%s4865_s17 + $0x20] sm:$0xff]  }
 0x279   : > { %v4276_v7 = vpop.f32.mrf.mxu1  ;;  %v4356_v46 = vpop.f32.mrf.mxu0 }
 0x27a   : > { %6163 = vst [vmem:[#allocation5_spill] sm:$0xff] %v5923_v13  ;;  %v2519_v29 = vadd.f32 %v4275_v23, %v5809_v48  ;;  %v4328_v48 = vadd.f32 %v5850_v34, %v5847_v56  ;;  %v4334_v13 = vadd.f32 %v5866_v38, %v5863_v30  ;;  %v5994_v34 = vadd.f32 %v5890_v5, %v5887_v9 }
 0x27b   : > { %v4277_v15 = vpop.f32.mrf.mxu1  ;;  %v4357_v41 = vpop.f32.mrf.mxu0  ;;  %v6007_v9 = vadd.f32 %v5914_v53, %v5911_v49  ;;  %v6010_v5 = vadd.f32 %v4354_v22, %v5919_v8 }
 0x27c   : > { %v5927_v28 = vadd.f32 %v5817_v11, %v2519_v29  ;;  %v5946_v11 = vld [vmem:[%s4865_s17 + $0x28] sm:$0xff]   ;;  %v4278_v30 = vadd.f32 %v4277_v15, %v4276_v7 }
 0x27d   : > { %v4279_v26 = vpop.f32.mrf.mxu1  ;;  %v4056_v29 = vunpack.c.l.bf16 %v5946_v11 }
 0x27e   : > { %6164 = vst [vmem:[#allocation6_spill] sm:$0xff] %v5927_v28  ;;  %v4331_v28 = vadd.f32 %v5858_v25, %v5855_v6  ;;  %v4346_v6 = vadd.f32 %v5898_v19, %v5895_v50  ;;  %v6000_v25 = vadd.f32 %v5906_v61, %v5903_v63  ;;  %v6012_v50 = vadd.f32 %v4357_v41, %v4356_v46 }
 0x27f   : > { %v4280_v43 = vpop.f32.mrf.mxu1 }
 0x280   : > { %v4281_v19 = vadd.f32 %v4280_v43, %v4279_v26 }
 0x281   : > { %v4496_v55 = vpop.f32.mrf.mxu1 }
 0x282   : > { %v3225_v54 = vadd.f32 %v4496_v55, %v4322_v14  ;;  %v4359_v14 = vpop.f32.mrf.mxu0  ;;  %v2527_v26 = vadd.f32 %v4281_v19, %v5821_v3 }
 0x283   : > { %v3216_v23 = vpop.f32.mrf.mxu1 }
 0x284   : > { %v3281_v55 = vadd.f32 %v3225_v54, %v5845_v16  ;;  %v3217_v0 = vadd.f32 %v4316_v12, %v3216_v23  ;;  %v4360_v60 = vpop.f32.mrf.mxu0 }
 0x285   : > { %v4497_v33 = vpop.f32.mrf.mxu1 }
 0x286   : > { %v3304_v10 = vmul.f32 %v5962_v36, %v3281_v55  ;;  %v3279_v16 = vadd.f32 %v3217_v0, %v5830_v17  ;;  %v3228_v56 = vadd.f32 %v4497_v33, %v4325_v45  ;;  %v6017_v0 = vadd.f32 %v4360_v60, %v4359_v14 }
 0x287   : > { %v3219_v38 = vpop.f32.mrf.mxu1 }
 0x288   : > { %v3327_v59 = vadd.f32 %v5984_v21, %v3304_v10  ;;  %v3302_v42 = vmul.f32 %v5962_v36, %v3279_v16  ;;  %v3282_v17 = vadd.f32 %v3228_v56, %v5853_v24  ;;  %v3220_v18 = vadd.f32 %v4319_v39, %v3219_v38 }
 0x289   : > { %v4500_v63 = vpop.f32.mrf.mxu1  ;;  %v2524_v24 = vadd.f32 %v4278_v30, %v5815_v47  ;;  %v6166_v10 = vunpack.c.l.bf16 %v5933_v32  ;;  %v6167_v30 = vunpack.c.h.bf16 %v5930_v44 }
 0x28a   : > { %vm3343_vm4 = vcmp.gt.f32.partialorder %v3327_v59, 0.0  ;;  %v3359_v61 = vmul.f32 0.1, %v3327_v59  ;;  %v3325_v7 = vadd.f32 %v5984_v21, %v3302_v42  ;;  %v3305_v15 = vmul.f32 %v5962_v36, %v3282_v17 }
 0x28b   : > { %v3280_v49 = vadd.f32 %v3220_v18, %v5837_v4  ;;  %v3241_v53 = vadd.f32 %v4500_v63, %v4334_v13  ;;  %v3232_v23 = vpop.f32.mrf.mxu1  ;;  %v6165_v13 = vunpack.c.l.bf16 %v5930_v44  ;;  %v6169_v63 = vunpack.c.h.bf16 %v5933_v32 }
 0x28c   : > { %v3375_v8 = vsel %vm3343_vm4, %v3327_v59, %v3359_v61  ;;  %vm3341_vm5 = vcmp.gt.f32.partialorder %v3325_v7, 0.0  ;;  %v3357_v22 = vmul.f32 0.1, %v3325_v7  ;;  %v3328_v46 = vadd.f32 %v5984_v21, %v3305_v15 }
 0x28d   : > { %v3303_v43 = vmul.f32 %v5962_v36, %v3280_v49  ;;  %v3285_v41 = vadd.f32 %v3241_v53, %v5877_v62  ;;  %v3233_v12 = vadd.f32 %v4328_v48, %v3232_v23  ;;  %v4501_v54 = vpop.f32.mrf.mxu1  ;;  %v3423_v45 = vadd.f32 %v6165_v13, %v3375_v8 }
 0x28e   : > { %v3373_v47 = vsel %vm3341_vm5, %v3325_v7, %v3357_v22  ;;  %vm3344_vm6 = vcmp.gt.f32.partialorder %v3328_v46, 0.0  ;;  %v3360_v39 = vmul.f32 0.1, %v3328_v46  ;;  %v3244_v4 = vadd.f32 %v4501_v54, %v4337_v1 }
 0x28f   : > { %v3326_v14 = vadd.f32 %v5984_v21, %v3303_v43  ;;  %v3308_v55 = vmul.f32 %v5962_v36, %v3285_v41  ;;  %v3283_v3 = vadd.f32 %v3233_v12, %v5861_v58  ;;  %v3235_v33 = vpop.f32.mrf.mxu1  ;;  %v3421_v62 = vadd.f32 %v6166_v10, %v3373_v47  ;;  %v6174_v10 = vld [vmem:[#allocation3_spill] sm:$0xff] }
 0x290   : > { %v3376_v48 = vsel %vm3344_vm6, %v3328_v46, %v3360_v39  ;;  %v3286_v16 = vadd.f32 %v3244_v4, %v5885_v20  ;;  %v3236_v56 = vadd.f32 %v4331_v28, %v3235_v33  ;;  %v2621_v23 = vadd.f32 %v5807_v52, %v2524_v24 }
 0x291   : > { %v3424_v1 = vadd.f32 %v6167_v30, %v3376_v48  ;;  %vm3342_vm2 = vcmp.gt.f32.partialorder %v3326_v14, 0.0  ;;  %v3358_v38 = vmul.f32 0.1, %v3326_v14  ;;  %v3331_v59 = vadd.f32 %v5984_v21, %v3308_v55  ;;  %v4504_v60 = vpop.f32.mrf.mxu1 }
 0x292   : > { %v3306_v58 = vmul.f32 %v5962_v36, %v3283_v3  ;;  %v3309_v20 = vmul.f32 %v5962_v36, %v3286_v16  ;;  %v3284_v28 = vadd.f32 %v3236_v56, %v5869_v51  ;;  %v3257_v44 = vadd.f32 %v4504_v60, %v4346_v6  ;;  %v6172_v3 = vld [vmem:[#allocation4_spill] sm:$0xff] }
 0x293   : > { %v4074_v42 = vpack.c.bf16 %v3424_v1, %v3423_v45  ;;  %v3374_v17 = vsel %vm3342_vm2, %v3326_v14, %v3358_v38  ;;  %vm3347_vm8 = vcmp.gt.f32.partialorder %v3331_v59, 0.0  ;;  %v3363_v18 = vmul.f32 0.1, %v3331_v59  ;;  %v3248_v19 = vpop.f32.mrf.mxu1 }
 0x294   : > { %v3422_v61 = vadd.f32 %v6169_v63, %v3374_v17  ;;  %v3329_v7 = vadd.f32 %v5984_v21, %v3306_v58  ;;  %v3332_v15 = vadd.f32 %v5984_v21, %v3309_v20  ;;  %v3307_v49 = vmul.f32 %v5962_v36, %v3284_v28 }
 0x295   : > { %4113 = vst [vmem:[%s6040_s19 + $0x8] sm:$0xff] %v4074_v42   ;;  %v3289_v53 = vadd.f32 %v3257_v44, %v5909_v37  ;;  %v3249_v51 = vadd.f32 %v5988_v40, %v3248_v19  ;;  %v4505_v6 = vpop.f32.mrf.mxu1  ;;  %v2624_v8 = vadd.f32 %v5813_v35, %v2527_v26  ;;  %v3379_v32 = vsel %vm3347_vm8, %v3331_v59, %v3363_v18 }
 0x296   : > { %v4069_v22 = vpack.c.bf16 %v3422_v61, %v3421_v62  ;;  %vm3345_vm3 = vcmp.gt.f32.partialorder %v3329_v7, 0.0  ;;  %v3361_v46 = vmul.f32 0.1, %v3329_v7  ;;  %vm3348_vm7 = vcmp.gt.f32.partialorder %v3332_v15, 0.0 }
 0x297   : > { %v3364_v43 = vmul.f32 0.1, %v3332_v15  ;;  %v3330_v41 = vadd.f32 %v5984_v21, %v3307_v49  ;;  %v3312_v12 = vmul.f32 %v5962_v36, %v3289_v53  ;;  %v3251_v54 = vpop.f32.mrf.mxu1  ;;  %v3287_v40 = vadd.f32 %v3249_v51, %v5893_v31 }
 0x298   : > { %4070 = vst [vmem:[%s6040_s19] sm:$0xff] %v4069_v22   ;;  %v3377_v37 = vsel %vm3345_vm3, %v3329_v7, %v3361_v46  ;;  %v3260_v47 = vadd.f32 %v4505_v6, %v6000_v25  ;;  %v3252_v52 = vadd.f32 %v5994_v34, %v3251_v54  ;;  %v6170_v35 = vunpack.c.l.bf16 %v5936_v2  ;;  %v6176_v7 = vld [vmem:[#allocation5_spill] sm:$0xff] }
 0x299   : > { %v3380_v26 = vsel %vm3348_vm7, %v3332_v15, %v3364_v43  ;;  %vm3346_vm9 = vcmp.gt.f32.partialorder %v3330_v41, 0.0  ;;  %v3362_v39 = vmul.f32 0.1, %v3330_v41  ;;  %v4508_v4 = vpop.f32.mrf.mxu1  ;;  %v6171_v13 = vunpack.c.h.bf16 %v5936_v2 }
 0x29a   : > { %v3427_v24 = vadd.f32 %v6170_v35, %v3379_v32  ;;  %v3335_v14 = vadd.f32 %v5984_v21, %v3312_v12  ;;  %v3310_v55 = vmul.f32 %v5962_v36, %v3287_v40  ;;  %v3290_v31 = vadd.f32 %v3260_v47, %v6172_v3  ;;  %v4112_v32 = vld [vmem:[%s4865_s17 + $0x38] sm:$0xff]  }
 0x29b   : > { %v3428_v45 = vadd.f32 %v6171_v13, %v3380_v26  ;;  %v6173_v25 = vunpack.c.l.bf16 %v5939_v57  ;;  %v3378_v33 = vsel %vm3346_vm9, %v3330_v41, %v3362_v39  ;;  %v3288_v62 = vadd.f32 %v3252_v52, %v6174_v10  ;;  %v3264_v16 = vpop.f32.mrf.mxu1 }
 0x29c   : > { %v3273_v48 = vadd.f32 %v4508_v4, %v6012_v50  ;;  %v6175_v2 = vunpack.c.h.bf16 %v5939_v57  ;;  %vm3351_vm11 = vcmp.gt.f32.partialorder %v3335_v14, 0.0  ;;  %v3367_v1 = vmul.f32 0.1, %v3335_v14  ;;  %v4111_v4 = vld [vmem:[%s4865_s17 + $0x30] sm:$0xff]  }
 0x29d   : > { %v3425_v34 = vadd.f32 %v6173_v25, %v3377_v37  ;;  %v4084_v56 = vpack.c.bf16 %v3428_v45, %v3427_v24  ;;  %v3333_v38 = vadd.f32 %v5984_v21, %v3310_v55  ;;  %v3313_v59 = vmul.f32 %v5962_v36, %v3290_v31  ;;  %v4509_v20 = vpop.f32.mrf.mxu1 }
 0x29e   : > { %v3426_v30 = vadd.f32 %v6175_v2, %v3378_v33  ;;  %v3311_v60 = vmul.f32 %v5962_v36, %v3288_v62  ;;  %v3293_v58 = vadd.f32 %v3273_v48, %v2621_v23  ;;  %v3383_v44 = vsel %vm3351_vm11, %v3335_v14, %v3367_v1 }
 0x29f   : > { %4115 = vst [vmem:[%s6040_s19 + $0x18] sm:$0xff] %v4084_v56   ;;  %v3265_v50 = vadd.f32 %v6007_v9, %v3264_v16  ;;  %v3276_v42 = vadd.f32 %v4509_v20, %v6017_v0  ;;  %v3431_v57 = vadd.f32 %v4056_v29, %v3383_v44  ;;  %vm3349_vm10 = vcmp.gt.f32.partialorder %v3333_v38, 0.0  ;;  %v3267_v19 = vpop.f32.mrf.mxu1 }
 0x2a0   : > { %v4079_v28 = vpack.c.bf16 %v3426_v30, %v3425_v34  ;;  %v3365_v17 = vmul.f32 0.1, %v3333_v38  ;;  %v3336_v18 = vadd.f32 %v5984_v21, %v3313_v59  ;;  %v3334_v63 = vadd.f32 %v5984_v21, %v3311_v60 }
 0x2a1   : > { %v3316_v61 = vmul.f32 %v5962_v36, %v3293_v58  ;;  %v3291_v15 = vadd.f32 %v3265_v50, %v6176_v7  ;;  %v3294_v49 = vadd.f32 %v3276_v42, %v2624_v8  ;;  %v3268_v53 = vadd.f32 %v6010_v5, %v3267_v19  ;;  %v6178_v8 = vld [vmem:[#allocation6_spill] sm:$0xff] }
 0x2a2   : > { %4114 = vst [vmem:[%s6040_s19 + $0x10] sm:$0xff] %v4079_v28   ;;  %v3381_v9 = vsel %vm3349_vm10, %v3333_v38, %v3365_v17  ;;  %vm3352_vm12 = vcmp.gt.f32.partialorder %v3336_v18, 0.0  ;;  %v3368_v0 = vmul.f32 0.1, %v3336_v18  ;;  %v6177_v29 = vunpack.c.l.bf16 %v5949_v27 }
 0x2a3   : > { %vm3350_vm13 = vcmp.gt.f32.partialorder %v3334_v63, 0.0  ;;  %v3366_v6 = vmul.f32 0.1, %v3334_v63  ;;  %v3339_v23 = vadd.f32 %v5984_v21, %v3316_v61  ;;  %v3314_v46 = vmul.f32 %v5962_v36, %v3291_v15 }
 0x2a4   : > { %v3429_v51 = vadd.f32 %v6177_v29, %v3381_v9  ;;  %v3384_v22 = vsel %vm3352_vm12, %v3336_v18, %v3368_v0  ;;  %v3317_v43 = vmul.f32 %v5962_v36, %v3294_v49  ;;  %v3292_v41 = vadd.f32 %v3268_v53, %v6178_v8 }
 0x2a5   : > { %v6179_v12 = vunpack.c.h.bf16 %v5946_v11  ;;  %v3382_v54 = vsel %vm3350_vm13, %v3334_v63, %v3366_v6  ;;  %vm3355_vm14 = vcmp.gt.f32.partialorder %v3339_v23, 0.0  ;;  %v3371_v37 = vmul.f32 0.1, %v3339_v23 }
 0x2a6   : > { %v6180_v40 = vunpack.c.h.bf16 %v5949_v27  ;;  %v3337_v52 = vadd.f32 %v5984_v21, %v3314_v46  ;;  %v3340_v35 = vadd.f32 %v5984_v21, %v3317_v43  ;;  %v3315_v24 = vmul.f32 %v5962_v36, %v3292_v41 }
 0x2a7   : > { %v3432_v5 = vadd.f32 %v6179_v12, %v3384_v22  ;;  %v4064_v39 = vunpack.c.l.bf16 %v4112_v32  ;;  %v4065_v45 = vunpack.c.h.bf16 %v4112_v32  ;;  %v3387_v14 = vsel %vm3355_vm14, %v3339_v23, %v3371_v37 }
 0x2a8   : > { %v3430_v47 = vadd.f32 %v6180_v40, %v3382_v54  ;;  %vm3353_vm15 = vcmp.gt.f32.partialorder %v3337_v52, 0.0  ;;  %v3369_v11 = vmul.f32 0.1, %v3337_v52  ;;  %vm3356_vm0 = vcmp.gt.f32.partialorder %v3340_v35, 0.0 }
 0x2a9   : > { %v4094_v26 = vpack.c.bf16 %v3432_v5, %v3431_v57  ;;  %v3372_v27 = vmul.f32 0.1, %v3340_v35  ;;  %v3338_v55 = vadd.f32 %v5984_v21, %v3315_v24  ;;  %v4060_v3 = vunpack.c.l.bf16 %v4111_v4 }
 0x2aa   : > { %v4089_v13 = vpack.c.bf16 %v3430_v47, %v3429_v51  ;;  %v4061_v31 = vunpack.c.h.bf16 %v4111_v4  ;;  %v3385_v25 = vsel %vm3353_vm15, %v3337_v52, %v3369_v11  ;;  %v3435_v33 = vadd.f32 %v4064_v39, %v3387_v14 }
 0x2ab   : > { %4117 = vst [vmem:[%s6040_s19 + $0x28] sm:$0xff] %v4094_v26   ;;  %v3388_v36 = vsel %vm3356_vm0, %v3340_v35, %v3372_v27  ;;  %vm3354_vm1 = vcmp.gt.f32.partialorder %v3338_v55, 0.0  ;;  %v3370_v34 = vmul.f32 0.1, %v3338_v55  ;;  %v3433_v48 = vadd.f32 %v4060_v3, %v3385_v25 }
 0x2ac   : > { %4116 = vst [vmem:[%s6040_s19 + $0x20] sm:$0xff] %v4089_v13   ;;  %v3436_v10 = vadd.f32 %v4065_v45, %v3388_v36 }
 0x2ad   : > { %v3386_v62 = vsel %vm3354_vm1, %v3338_v55, %v3370_v34 }
 0x2ae   : > { %v4104_v16 = vpack.c.bf16 %v3436_v10, %v3435_v33  ;;  %v3434_v56 = vadd.f32 %v4061_v31, %v3386_v62 }
 0x2b0   : > { %4119 = vst [vmem:[%s6040_s19 + $0x38] sm:$0xff] %v4104_v16   ;;  %v4099_v2 = vpack.c.bf16 %v3434_v56, %v3433_v48 }
 0x2b2   : > { %4118 = vst [vmem:[%s6040_s19 + $0x30] sm:$0xff] %v4099_v2  }
 0x2b3 PF: > { %s19_s13 = sadd.s32 1, %s4751_s13   ;;  %s6181_s30 = smov %s4743_s11 }
 0x2b4   : > { %p16_p10 = scmp.ge.s32.totalorder %s19_s13, 6   ;;  %s6182_s10 = smov %s4747_s12 }
 0x2b5   : > { %s6183_s11 = smov %s6186_s14  ;;  %s6184_s12 = smov %s6190_s15 }
 0x2b6   :  { %18 = sbr.rel (!%p16_p10) target bundleno = 3 (0x3), region = 96 }

</bundles_post_ra>
